<compile_context>
chip_gen: v6e
topology: v6e:2x2x1
jax: 0.10.0
libtpu: 0.0.40
codegen_flags: <defaults>
</compile_context>

<pallas_src>
import jax
import jax.numpy as jnp
from jax import lax
from jax.experimental import pallas as pl
from jax.experimental.pallas import tpu as pltpu

EPS = 1e-5  # nn.InstanceNorm2d default eps


# ---------------- in-kernel helpers (traced inside the Pallas body) -----------

def _conv3x3_fused(x, w_ref, b):
    """3x3 'same' conv with reflect(1) padding as 3 MXU matmuls (K = 3*C).

    x:     (H, W, C) float; cast ONCE to bf16 before the tap concats so every
           temporary below (xh/left/right/xcat) is bf16.
    w_ref: Ref (3, 3*C, C) bf16, indexed [ky, kx*C + cin, cout]
    b:     (1, C) f32
    Returns (H, W, C) f32.
    """
    H, W, C = x.shape
    xb = x.astype(jnp.bfloat16)
    # Reflect-pad along H: outer-dim concat, no lane/sublane relayout.
    xh = jnp.concatenate([xb[1:2], xb, xb[H - 2:H - 1]], axis=0)        # (H+2, W, C)
    # kx = 0 / 2 taps: W-shift with reflect boundary.
    left = jnp.concatenate([xh[:, 1:2], xh[:, :W - 1]], axis=1)         # (H+2, W, C)
    right = jnp.concatenate([xh[:, 1:], xh[:, W - 2:W - 1]], axis=1)    # (H+2, W, C)
    # Fuse the three kx taps along the contraction (lane) axis -> K = 3*C (bf16).
    xcat = jnp.concatenate([left, xh, right], axis=-1)
    xf = xcat.reshape((H + 2) * W, 3 * C)
    # One matmul per ky over overlapping, sublane-aligned H windows; f32 accum.
    acc = jnp.dot(xf[0:H * W], w_ref[0], preferred_element_type=jnp.float32)
    acc = acc + jnp.dot(xf[W:(H + 1) * W], w_ref[1],
                        preferred_element_type=jnp.float32)
    acc = acc + jnp.dot(xf[2 * W:(H + 2) * W], w_ref[2],
                        preferred_element_type=jnp.float32)
    return acc.reshape(H, W, C) + b.reshape(1, 1, C)


def _instance_norm(y):
    # Per-channel spatial norm, biased variance, eps=1e-5, matching
    # nn.InstanceNorm2d(affine=False).  Two-pass for accuracy; the extra
    # elementwise sweep is negligible next to the MXU work.
    # Zero-padded channels stay exactly 0: mu=0, d=0, var=0 -> 0*rsqrt(eps)=0.
    mu = jnp.mean(y, axis=(0, 1), keepdims=True)
    d = y - mu
    var = jnp.mean(d * d, axis=(0, 1), keepdims=True)
    return d * lax.rsqrt(var + EPS)


# ------------------------------- Pallas kernel --------------------------------

def resnet_block_kernel(x_ref, w1_ref, b1_ref, w2_ref, b2_ref, o_ref):
    # x_ref is intentionally re-read for the residual instead of holding the full
    # (H, W, C) value live across both convs (saves ~1 activation of peak VMEM).
    h = _conv3x3_fused(x_ref[0], w1_ref, b1_ref[...])
    h = jnp.maximum(_instance_norm(h), 0.0)              # InstanceNorm -> ReLU
    h = _conv3x3_fused(h, w2_ref, b2_ref[...])
    h = _instance_norm(h)
    o_ref[0] = (x_ref[0].astype(jnp.float32) + h).astype(o_ref.dtype)


# --------------------------------- wrappers ------------------------------------

def _build_pallas_call(B, H, W, Cp, act_dtype, *, single_buffer_weights,
                       vmem_limit, cost):
    # Grid-invariant weights/biases: single-buffer them to save 2*w_bytes of VMEM.
    wkw = dict(pipeline_mode=pl.Buffered(1)) if single_buffer_weights else {}
    act_spec = pl.BlockSpec((1, H, W, Cp), lambda b: (b, 0, 0, 0))
    w_spec = pl.BlockSpec((3, 3 * Cp, Cp), lambda b: (0, 0, 0), **wkw)
    b_spec = pl.BlockSpec((1, Cp), lambda b: (0, 0), **wkw)
    return pl.pallas_call(
        resnet_block_kernel,
        out_shape=jax.ShapeDtypeStruct((B, H, W, Cp), act_dtype),
        grid_spec=pltpu.PrefetchScalarGridSpec(
            num_scalar_prefetch=0,
            grid=(B,),
            in_specs=[act_spec, w_spec, b_spec, w_spec, b_spec],
            out_specs=act_spec,
        ),
        # Safe aliasing: identical block layout/dtype, disjoint blocks per batch
        # step, and x_ref is fully consumed before the o_ref writeback.
        input_output_aliases={0: 0},
        cost_estimate=cost,
        compiler_params=pltpu.CompilerParams(
            dimension_semantics=("parallel",),
            vmem_limit_bytes=vmem_limit),
    )


def resnet_block_nhwc(x, w1, b1, w2, b2, act_dtype=jnp.float32):
    """x: (B, H, W, C); w*: (3, 3, C, C) HWIO; b*: (1, C) or (C,).

    act_dtype: storage dtype of the activation blocks (float32 or bfloat16).
    bf16 halves activation HBM traffic and in/out block VMEM; conv accumulation
    and instance-norm math remain f32 in-kernel either way.
    """
    B, H, W, C = x.shape
    b1 = jnp.asarray(b1).reshape(1, C)
    b2 = jnp.asarray(b2).reshape(1, C)
    # Lane-dense channels: pad C up to a multiple of 128.  Padded input/weight/bias
    # channels are zero, so padded outputs stay exactly zero through conv,
    # instance norm, ReLU and the residual add.
    # TODO(synk): for genuinely tiny C (<< 128) this wastes most of the 256-wide MXU
    # on v6e/v7x; fall back to an XLA conv (or spatial-in-lanes layout) in that regime.
    Cp = ((C + 127) // 128) * 128
    pc = Cp - C
    if pc:
        x = jnp.pad(x, ((0, 0), (0, 0), (0, 0), (0, pc)))
        w1 = jnp.pad(w1, ((0, 0), (0, 0), (0, pc), (0, pc)))
        w2 = jnp.pad(w2, ((0, 0), (0, 0), (0, pc), (0, pc)))
        b1 = jnp.pad(b1, ((0, 0), (0, pc)))
        b2 = jnp.pad(b2, ((0, 0), (0, pc)))
    x = x.astype(act_dtype)
    # Fused-tap weight layout: (ky, kx, cin, cout) -> (ky, kx*Cp + cin, cout);
    # bf16 halves weight VMEM/HBM traffic and runs at native MXU rate.
    w1f = w1.reshape(3, 3 * Cp, Cp).astype(jnp.bfloat16)
    w2f = w2.reshape(3, 3 * Cp, Cp).astype(jnp.bfloat16)
    b1 = b1.astype(jnp.float32)
    b2 = b2.astype(jnp.float32)

    # TODO(synk): W % 8 != 0 still works but triggers sublane-relayout copies on the
    # ky-window slices; a reflect-filled W pad plus masked norm stats would keep them
    # as aligned views.
    # TODO(synk): add an H-band grid axis (two-sweep instance norm with pl.when
    # init/finalize) so large activations fit v7x's 64 MiB VMEM and B==1 still
    # occupies both v7x TensorCores.

    # Generation-aware scoped-VMEM limit: never below the 32 MiB default, capped
    # at ~80% of the physical VMEM of the attached chip.
    act_io = H * W * Cp * jnp.dtype(act_dtype).itemsize
    act_f32 = H * W * Cp * 4
    w_bytes = 2 * 9 * Cp * Cp * 2                       # both convs, bf16
    need = 4 * act_io + 2 * w_bytes + 8 * act_f32       # conservative estimate
    try:
        vmem_cap = int(pltpu.get_tpu_info().vmem_capacity_bytes)
    except Exception:                                    # pragma: no cover
        vmem_cap = 128 << 20
    vmem_limit = int(min(max(need + need // 2, 32 << 20),
                         max(32 << 20, (vmem_cap * 4) // 5)))

    cost = pl.CostEstimate(
        flops=36 * B * H * W * Cp * Cp,                  # 2 convs, 9*Cp MACs/output
        transcendentals=2 * B * Cp,                      # two rsqrt per channel
        bytes_accessed=2 * B * act_io + w_bytes + 4 * Cp * 4,
    )

    args = (x, w1f, b1, w2f, b2)
    try:
        out = _build_pallas_call(B, H, W, Cp, act_dtype,
                                 single_buffer_weights=True,
                                 vmem_limit=vmem_limit, cost=cost)(*args)
    except Exception:
        # Fallback for environments where pl.Buffered(1) (single buffering) is not
        # accepted: weights go back to default double buffering.
        out = _build_pallas_call(B, H, W, Cp, act_dtype,
                                 single_buffer_weights=False,
                                 vmem_limit=vmem_limit, cost=cost)(*args)
    if pc:
        out = out[..., :C]
    return out


def resnet_block(x_nchw, w1, b1, w2, b2, act_dtype=jnp.float32):
    """PyTorch-facing NCHW entry point.  Prefer resnet_block_nhwc when the caller
    can supply NHWC: the two transposes cost extra full-activation HBM trips."""
    out = resnet_block_nhwc(jnp.transpose(x_nchw, (0, 2, 3, 1)), w1, b1, w2, b2,
                            act_dtype=act_dtype)
    return jnp.transpose(out, (0, 3, 1, 2)).astype(x_nchw.dtype)


# ------------------------- pure-JAX reference (check) --------------------------

def resnet_block_ref(x_nchw, w1, b1, w2, b2):
    x = jnp.transpose(x_nchw, (0, 2, 3, 1)).astype(jnp.float32)

    def conv(xp, w, b):
        y = lax.conv_general_dilated(
            xp, w, (1, 1), 'VALID',
            dimension_numbers=('NHWC', 'HWIO', 'NHWC'))
        return y + b.reshape(1, 1, 1, -1)

    def inorm(y):
        mu = jnp.mean(y, axis=(1, 2), keepdims=True)
        var = jnp.mean(jnp.square(y - mu), axis=(1, 2), keepdims=True)
        return (y - mu) * lax.rsqrt(var + EPS)

    pad = lambda z: jnp.pad(z, ((0, 0), (1, 1), (1, 1), (0, 0)), mode='reflect')
    h = jnp.maximum(inorm(conv(pad(x), w1, b1)), 0.0)
    h = inorm(conv(pad(h), w2, b2))
    return jnp.transpose(x + h, (0, 3, 1, 2)).astype(x_nchw.dtype)


if __name__ == "__main__":
    B, C, H, W = 2, 4, 16, 16
    key = jax.random.PRNGKey(0)
    kx, k1, k2, kb1, kb2 = jax.random.split(key, 5)

    x = jax.random.normal(kx, (B, C, H, W), jnp.float32)
    # Deterministic synthetic parameters (Conv2d(dim, dim, 3) x 2), HWIO layout.
    w1 = jax.random.normal(k1, (3, 3, C, C), jnp.float32) * 0.1
    b1 = jax.random.normal(kb1, (1, C), jnp.float32) * 0.1
    w2 = jax.random.normal(k2, (3, 3, C, C), jnp.float32) * 0.1
    b2 = jax.random.normal(kb2, (1, C), jnp.float32) * 0.1

    out = jax.block_until_ready(resnet_block(x, w1, b1, w2, b2))
    ref = resnet_block_ref(x, w1, b1, w2, b2)

    assert out.shape == (B, C, H, W)
    err = float(jnp.max(jnp.abs(out - ref)))
    # bf16 MXU inputs (f32 accumulation) vs. the pure-f32 reference -> looser tol.
    assert jnp.allclose(out, ref, atol=5e-2, rtol=5e-2), err
    print("KERNEL_OK")
</pallas_src>

<mosaic_0001>
module attributes {stable_mosaic.version = 11 : i64} {
  func.func @resnet_block_kernel(%arg0: i32, %arg1: memref<1x16x16x128xf32, #tpu.memory_space<vmem>>, %arg2: memref<3x384x128xbf16, #tpu.memory_space<vmem>>, %arg3: memref<1x128xf32, #tpu.memory_space<vmem>>, %arg4: memref<3x384x128xbf16, #tpu.memory_space<vmem>>, %arg5: memref<1x128xf32, #tpu.memory_space<vmem>>, %arg6: memref<1x16x16x128xf32, #tpu.memory_space<vmem>>) attributes {dimension_semantics = [#tpu.dimension_semantics<parallel>], iteration_bounds = array<i64: 2>, scalar_prefetch = 0 : i64, scratch_operands = 0 : i64, tpu.core_type = #tpu.core_type<tc>, window_params = [{transform_indices = @transform_0, window_bounds = array<i64: 1, 16, 16, 128>}, {pipeline_mode = #tpu.pipeline_mode<synchronous>, transform_indices = @transform_1, window_bounds = array<i64: 3, 384, 128>}, {pipeline_mode = #tpu.pipeline_mode<synchronous>, transform_indices = @transform_2, window_bounds = array<i64: 1, 128>}, {pipeline_mode = #tpu.pipeline_mode<synchronous>, transform_indices = @transform_3, window_bounds = array<i64: 3, 384, 128>}, {pipeline_mode = #tpu.pipeline_mode<synchronous>, transform_indices = @transform_4, window_bounds = array<i64: 1, 128>}, {transform_indices = @transform_5, window_bounds = array<i64: 1, 16, 16, 128>}]} {
    %c0 = arith.constant 0 : index
    %c0_0 = arith.constant 0 : index
    %c0_1 = arith.constant 0 : index
    %c0_2 = arith.constant 0 : index
    %0 = vector.load %arg1[%c0, %c0_0, %c0_1, %c0_2] : memref<1x16x16x128xf32, #tpu.memory_space<vmem>>, vector<1x16x16x128xf32>
    %1 = vector.shape_cast %0 : vector<1x16x16x128xf32> to vector<16x16x128xf32>
    %c0_3 = arith.constant 0 : index
    %c0_4 = arith.constant 0 : index
    %2 = vector.load %arg3[%c0_3, %c0_4] : memref<1x128xf32, #tpu.memory_space<vmem>>, vector<1x128xf32>
    %3 = arith.truncf %1 : vector<16x16x128xf32> to vector<16x16x128xbf16>
    %4 = vector.extract_strided_slice %3 {offsets = [1, 0, 0], sizes = [1, 16, 128], strides = [1, 1, 1]} : vector<16x16x128xbf16> to vector<1x16x128xbf16>
    %5 = vector.extract_strided_slice %3 {offsets = [14, 0, 0], sizes = [1, 16, 128], strides = [1, 1, 1]} : vector<16x16x128xbf16> to vector<1x16x128xbf16>
    %6 = tpu.concatenate %4, %3, %5 in 0 : vector<1x16x128xbf16>, vector<16x16x128xbf16>, vector<1x16x128xbf16> -> vector<18x16x128xbf16>
    %7 = vector.extract_strided_slice %6 {offsets = [0, 1, 0], sizes = [18, 1, 128], strides = [1, 1, 1]} : vector<18x16x128xbf16> to vector<18x1x128xbf16>
    %8 = vector.extract_strided_slice %6 {offsets = [0, 0, 0], sizes = [18, 15, 128], strides = [1, 1, 1]} : vector<18x16x128xbf16> to vector<18x15x128xbf16>
    %9 = tpu.concatenate %7, %8 in 1 : vector<18x1x128xbf16>, vector<18x15x128xbf16> -> vector<18x16x128xbf16>
    %10 = vector.extract_strided_slice %6 {offsets = [0, 1, 0], sizes = [18, 15, 128], strides = [1, 1, 1]} : vector<18x16x128xbf16> to vector<18x15x128xbf16>
    %11 = vector.extract_strided_slice %6 {offsets = [0, 14, 0], sizes = [18, 1, 128], strides = [1, 1, 1]} : vector<18x16x128xbf16> to vector<18x1x128xbf16>
    %12 = tpu.concatenate %10, %11 in 1 : vector<18x15x128xbf16>, vector<18x1x128xbf16> -> vector<18x16x128xbf16>
    %13 = tpu.concatenate %9, %6, %12 in 2 : vector<18x16x128xbf16>, vector<18x16x128xbf16>, vector<18x16x128xbf16> -> vector<18x16x384xbf16>
    %14 = vector.shape_cast %13 : vector<18x16x384xbf16> to vector<288x384xbf16>
    %15 = vector.extract_strided_slice %14 {offsets = [0, 0], sizes = [256, 384], strides = [1, 1]} : vector<288x384xbf16> to vector<256x384xbf16>
    %c0_5 = arith.constant 0 : index
    %c0_6 = arith.constant 0 : index
    %c0_7 = arith.constant 0 : index
    %16 = vector.load %arg2[%c0_5, %c0_6, %c0_7] : memref<3x384x128xbf16, #tpu.memory_space<vmem>>, vector<1x384x128xbf16>
    %17 = vector.shape_cast %16 : vector<1x384x128xbf16> to vector<384x128xbf16>
    %cst = arith.constant dense<0.000000e+00> : vector<256x128xf32>
    %18 = tpu.matmul %15, %17, %cst {dimension_numbers = #tpu.dot_dimension_numbers<[1], [0], [0], [1], [0, 0, 1, 1], [], []>} : vector<256x384xbf16>, vector<384x128xbf16>, vector<256x128xf32> -> vector<256x128xf32>
    %19 = vector.extract_strided_slice %14 {offsets = [16, 0], sizes = [256, 384], strides = [1, 1]} : vector<288x384xbf16> to vector<256x384xbf16>
    %c1 = arith.constant 1 : index
    %c0_8 = arith.constant 0 : index
    %c0_9 = arith.constant 0 : index
    %20 = vector.load %arg2[%c1, %c0_8, %c0_9] : memref<3x384x128xbf16, #tpu.memory_space<vmem>>, vector<1x384x128xbf16>
    %21 = vector.shape_cast %20 : vector<1x384x128xbf16> to vector<384x128xbf16>
    %cst_10 = arith.constant dense<0.000000e+00> : vector<256x128xf32>
    %22 = tpu.matmul %19, %21, %cst_10 {dimension_numbers = #tpu.dot_dimension_numbers<[1], [0], [0], [1], [0, 0, 1, 1], [], []>} : vector<256x384xbf16>, vector<384x128xbf16>, vector<256x128xf32> -> vector<256x128xf32>
    %23 = arith.addf %18, %22 : vector<256x128xf32>
    %24 = vector.extract_strided_slice %14 {offsets = [32, 0], sizes = [256, 384], strides = [1, 1]} : vector<288x384xbf16> to vector<256x384xbf16>
    %c2 = arith.constant 2 : index
    %c0_11 = arith.constant 0 : index
    %c0_12 = arith.constant 0 : index
    %25 = vector.load %arg2[%c2, %c0_11, %c0_12] : memref<3x384x128xbf16, #tpu.memory_space<vmem>>, vector<1x384x128xbf16>
    %26 = vector.shape_cast %25 : vector<1x384x128xbf16> to vector<384x128xbf16>
    %cst_13 = arith.constant dense<0.000000e+00> : vector<256x128xf32>
    %27 = tpu.matmul %24, %26, %cst_13 {dimension_numbers = #tpu.dot_dimension_numbers<[1], [0], [0], [1], [0, 0, 1, 1], [], []>} : vector<256x384xbf16>, vector<384x128xbf16>, vector<256x128xf32> -> vector<256x128xf32>
    %28 = arith.addf %23, %27 : vector<256x128xf32>
    %29 = vector.shape_cast %28 : vector<256x128xf32> to vector<16x16x128xf32>
    %30 = vector.shape_cast %2 : vector<1x128xf32> to vector<1x1x128xf32>
    %31 = vector.broadcast %30 : vector<1x1x128xf32> to vector<16x16x128xf32>
    %32 = arith.addf %29, %31 : vector<16x16x128xf32>
    %cst_14 = arith.constant dense<0.000000e+00> : vector<128xf32>
    %33 = vector.multi_reduction <add>, %32, %cst_14 [0, 1] : vector<16x16x128xf32> to vector<128xf32>
    %34 = vector.shape_cast %33 : vector<128xf32> to vector<1x1x128xf32>
    %cst_15 = arith.constant 2.560000e+02 : f32
    %35 = vector.broadcast %cst_15 : f32 to vector<1x1x128xf32>
    %36 = arith.divf %34, %35 : vector<1x1x128xf32>
    %37 = vector.broadcast %36 : vector<1x1x128xf32> to vector<16x16x128xf32>
    %38 = arith.subf %32, %37 : vector<16x16x128xf32>
    %39 = arith.mulf %38, %38 : vector<16x16x128xf32>
    %cst_16 = arith.constant dense<0.000000e+00> : vector<128xf32>
    %40 = vector.multi_reduction <add>, %39, %cst_16 [0, 1] : vector<16x16x128xf32> to vector<128xf32>
    %41 = vector.shape_cast %40 : vector<128xf32> to vector<1x1x128xf32>
    %cst_17 = arith.constant 2.560000e+02 : f32
    %42 = vector.broadcast %cst_17 : f32 to vector<1x1x128xf32>
    %43 = arith.divf %41, %42 : vector<1x1x128xf32>
    %cst_18 = arith.constant 9.99999974E-6 : f32
    %44 = vector.broadcast %cst_18 : f32 to vector<1x1x128xf32>
    %45 = arith.addf %43, %44 : vector<1x1x128xf32>
    %46 = math.rsqrt %45 : vector<1x1x128xf32>
    %47 = vector.broadcast %46 : vector<1x1x128xf32> to vector<16x16x128xf32>
    %48 = arith.mulf %38, %47 : vector<16x16x128xf32>
    %cst_19 = arith.constant 0.000000e+00 : f32
    %49 = vector.broadcast %cst_19 : f32 to vector<16x16x128xf32>
    %50 = arith.maximumf %48, %49 : vector<16x16x128xf32>
    %c0_20 = arith.constant 0 : index
    %c0_21 = arith.constant 0 : index
    %51 = vector.load %arg5[%c0_20, %c0_21] : memref<1x128xf32, #tpu.memory_space<vmem>>, vector<1x128xf32>
    %52 = arith.truncf %50 : vector<16x16x128xf32> to vector<16x16x128xbf16>
    %53 = vector.extract_strided_slice %52 {offsets = [1, 0, 0], sizes = [1, 16, 128], strides = [1, 1, 1]} : vector<16x16x128xbf16> to vector<1x16x128xbf16>
    %54 = vector.extract_strided_slice %52 {offsets = [14, 0, 0], sizes = [1, 16, 128], strides = [1, 1, 1]} : vector<16x16x128xbf16> to vector<1x16x128xbf16>
    %55 = tpu.concatenate %53, %52, %54 in 0 : vector<1x16x128xbf16>, vector<16x16x128xbf16>, vector<1x16x128xbf16> -> vector<18x16x128xbf16>
    %56 = vector.extract_strided_slice %55 {offsets = [0, 1, 0], sizes = [18, 1, 128], strides = [1, 1, 1]} : vector<18x16x128xbf16> to vector<18x1x128xbf16>
    %57 = vector.extract_strided_slice %55 {offsets = [0, 0, 0], sizes = [18, 15, 128], strides = [1, 1, 1]} : vector<18x16x128xbf16> to vector<18x15x128xbf16>
    %58 = tpu.concatenate %56, %57 in 1 : vector<18x1x128xbf16>, vector<18x15x128xbf16> -> vector<18x16x128xbf16>
    %59 = vector.extract_strided_slice %55 {offsets = [0, 1, 0], sizes = [18, 15, 128], strides = [1, 1, 1]} : vector<18x16x128xbf16> to vector<18x15x128xbf16>
    %60 = vector.extract_strided_slice %55 {offsets = [0, 14, 0], sizes = [18, 1, 128], strides = [1, 1, 1]} : vector<18x16x128xbf16> to vector<18x1x128xbf16>
    %61 = tpu.concatenate %59, %60 in 1 : vector<18x15x128xbf16>, vector<18x1x128xbf16> -> vector<18x16x128xbf16>
    %62 = tpu.concatenate %58, %55, %61 in 2 : vector<18x16x128xbf16>, vector<18x16x128xbf16>, vector<18x16x128xbf16> -> vector<18x16x384xbf16>
    %63 = vector.shape_cast %62 : vector<18x16x384xbf16> to vector<288x384xbf16>
    %64 = vector.extract_strided_slice %63 {offsets = [0, 0], sizes = [256, 384], strides = [1, 1]} : vector<288x384xbf16> to vector<256x384xbf16>
    %c0_22 = arith.constant 0 : index
    %c0_23 = arith.constant 0 : index
    %c0_24 = arith.constant 0 : index
    %65 = vector.load %arg4[%c0_22, %c0_23, %c0_24] : memref<3x384x128xbf16, #tpu.memory_space<vmem>>, vector<1x384x128xbf16>
    %66 = vector.shape_cast %65 : vector<1x384x128xbf16> to vector<384x128xbf16>
    %cst_25 = arith.constant dense<0.000000e+00> : vector<256x128xf32>
    %67 = tpu.matmul %64, %66, %cst_25 {dimension_numbers = #tpu.dot_dimension_numbers<[1], [0], [0], [1], [0, 0, 1, 1], [], []>} : vector<256x384xbf16>, vector<384x128xbf16>, vector<256x128xf32> -> vector<256x128xf32>
    %68 = vector.extract_strided_slice %63 {offsets = [16, 0], sizes = [256, 384], strides = [1, 1]} : vector<288x384xbf16> to vector<256x384xbf16>
    %c1_26 = arith.constant 1 : index
    %c0_27 = arith.constant 0 : index
    %c0_28 = arith.constant 0 : index
    %69 = vector.load %arg4[%c1_26, %c0_27, %c0_28] : memref<3x384x128xbf16, #tpu.memory_space<vmem>>, vector<1x384x128xbf16>
    %70 = vector.shape_cast %69 : vector<1x384x128xbf16> to vector<384x128xbf16>
    %cst_29 = arith.constant dense<0.000000e+00> : vector<256x128xf32>
    %71 = tpu.matmul %68, %70, %cst_29 {dimension_numbers = #tpu.dot_dimension_numbers<[1], [0], [0], [1], [0, 0, 1, 1], [], []>} : vector<256x384xbf16>, vector<384x128xbf16>, vector<256x128xf32> -> vector<256x128xf32>
    %72 = arith.addf %67, %71 : vector<256x128xf32>
    %73 = vector.extract_strided_slice %63 {offsets = [32, 0], sizes = [256, 384], strides = [1, 1]} : vector<288x384xbf16> to vector<256x384xbf16>
    %c2_30 = arith.constant 2 : index
    %c0_31 = arith.constant 0 : index
    %c0_32 = arith.constant 0 : index
    %74 = vector.load %arg4[%c2_30, %c0_31, %c0_32] : memref<3x384x128xbf16, #tpu.memory_space<vmem>>, vector<1x384x128xbf16>
    %75 = vector.shape_cast %74 : vector<1x384x128xbf16> to vector<384x128xbf16>
    %cst_33 = arith.constant dense<0.000000e+00> : vector<256x128xf32>
    %76 = tpu.matmul %73, %75, %cst_33 {dimension_numbers = #tpu.dot_dimension_numbers<[1], [0], [0], [1], [0, 0, 1, 1], [], []>} : vector<256x384xbf16>, vector<384x128xbf16>, vector<256x128xf32> -> vector<256x128xf32>
    %77 = arith.addf %72, %76 : vector<256x128xf32>
    %78 = vector.shape_cast %77 : vector<256x128xf32> to vector<16x16x128xf32>
    %79 = vector.shape_cast %51 : vector<1x128xf32> to vector<1x1x128xf32>
    %80 = vector.broadcast %79 : vector<1x1x128xf32> to vector<16x16x128xf32>
    %81 = arith.addf %78, %80 : vector<16x16x128xf32>
    %cst_34 = arith.constant dense<0.000000e+00> : vector<128xf32>
    %82 = vector.multi_reduction <add>, %81, %cst_34 [0, 1] : vector<16x16x128xf32> to vector<128xf32>
    %83 = vector.shape_cast %82 : vector<128xf32> to vector<1x1x128xf32>
    %cst_35 = arith.constant 2.560000e+02 : f32
    %84 = vector.broadcast %cst_35 : f32 to vector<1x1x128xf32>
    %85 = arith.divf %83, %84 : vector<1x1x128xf32>
    %86 = vector.broadcast %85 : vector<1x1x128xf32> to vector<16x16x128xf32>
    %87 = arith.subf %81, %86 : vector<16x16x128xf32>
    %88 = arith.mulf %87, %87 : vector<16x16x128xf32>
    %cst_36 = arith.constant dense<0.000000e+00> : vector<128xf32>
    %89 = vector.multi_reduction <add>, %88, %cst_36 [0, 1] : vector<16x16x128xf32> to vector<128xf32>
    %90 = vector.shape_cast %89 : vector<128xf32> to vector<1x1x128xf32>
    %cst_37 = arith.constant 2.560000e+02 : f32
    %91 = vector.broadcast %cst_37 : f32 to vector<1x1x128xf32>
    %92 = arith.divf %90, %91 : vector<1x1x128xf32>
    %cst_38 = arith.constant 9.99999974E-6 : f32
    %93 = vector.broadcast %cst_38 : f32 to vector<1x1x128xf32>
    %94 = arith.addf %92, %93 : vector<1x1x128xf32>
    %95 = math.rsqrt %94 : vector<1x1x128xf32>
    %96 = vector.broadcast %95 : vector<1x1x128xf32> to vector<16x16x128xf32>
    %97 = arith.mulf %87, %96 : vector<16x16x128xf32>
    %c0_39 = arith.constant 0 : index
    %c0_40 = arith.constant 0 : index
    %c0_41 = arith.constant 0 : index
    %c0_42 = arith.constant 0 : index
    %98 = vector.load %arg1[%c0_39, %c0_40, %c0_41, %c0_42] : memref<1x16x16x128xf32, #tpu.memory_space<vmem>>, vector<1x16x16x128xf32>
    %99 = vector.shape_cast %98 : vector<1x16x16x128xf32> to vector<16x16x128xf32>
    %100 = arith.addf %99, %97 : vector<16x16x128xf32>
    %c0_43 = arith.constant 0 : index
    %c0_44 = arith.constant 0 : index
    %c0_45 = arith.constant 0 : index
    %c0_46 = arith.constant 0 : index
    %101 = vector.load %arg6[%c0_43, %c0_44, %c0_45, %c0_46] : memref<1x16x16x128xf32, #tpu.memory_space<vmem>>, vector<1x16x16x128xf32>
    %102 = vector.shape_cast %101 : vector<1x16x16x128xf32> to vector<16x16x128xf32>
    %103 = vector.shape_cast %100 : vector<16x16x128xf32> to vector<1x16x16x128xf32>
    tpu.vector_store %arg6[%c0_43, %c0_44, %c0_45, %c0_46], %103 {strides = array<i32>} : memref<1x16x16x128xf32, #tpu.memory_space<vmem>>, vector<1x16x16x128xf32>,
    return
  }
  func.func @transform_0(%arg0: i32) -> (i32, i32, i32, i32) {
    %c0_i32 = arith.constant 0 : i32
    %c0_i32_0 = arith.constant 0 : i32
    %c0_i32_1 = arith.constant 0 : i32
    %c0_i32_2 = arith.constant 0 : i32
    return %arg0, %c0_i32, %c0_i32_0, %c0_i32_1 : i32, i32, i32, i32
  }
  func.func @transform_1(%arg0: i32) -> (i32, i32, i32) {
    %c0_i32 = arith.constant 0 : i32
    %c0_i32_0 = arith.constant 0 : i32
    %c0_i32_1 = arith.constant 0 : i32
    %c0_i32_2 = arith.constant 0 : i32
    return %c0_i32, %c0_i32_0, %c0_i32_1 : i32, i32, i32
  }
  func.func @transform_2(%arg0: i32) -> (i32, i32) {
    %c0_i32 = arith.constant 0 : i32
    %c0_i32_0 = arith.constant 0 : i32
    %c0_i32_1 = arith.constant 0 : i32
    return %c0_i32, %c0_i32_0 : i32, i32
  }
  func.func @transform_3(%arg0: i32) -> (i32, i32, i32) {
    %c0_i32 = arith.constant 0 : i32
    %c0_i32_0 = arith.constant 0 : i32
    %c0_i32_1 = arith.constant 0 : i32
    %c0_i32_2 = arith.constant 0 : i32
    return %c0_i32, %c0_i32_0, %c0_i32_1 : i32, i32, i32
  }
  func.func @transform_4(%arg0: i32) -> (i32, i32) {
    %c0_i32 = arith.constant 0 : i32
    %c0_i32_0 = arith.constant 0 : i32
    %c0_i32_1 = arith.constant 0 : i32
    return %c0_i32, %c0_i32_0 : i32, i32
  }
  func.func @transform_5(%arg0: i32) -> (i32, i32, i32, i32) {
    %c0_i32 = arith.constant 0 : i32
    %c0_i32_0 = arith.constant 0 : i32
    %c0_i32_1 = arith.constant 0 : i32
    %c0_i32_2 = arith.constant 0 : i32
    return %arg0, %c0_i32, %c0_i32_0, %c0_i32_1 : i32, i32, i32, i32
  }
}

module attributes {stable_mosaic.version = 11 : i64} {
  func.func @resnet_block_kernel(%arg0: i32, %arg1: memref<1x16x16x128xf32, #tpu.memory_space<vmem>>, %arg2: memref<3x384x128xbf16, #tpu.memory_space<vmem>>, %arg3: memref<1x128xf32, #tpu.memory_space<vmem>>, %arg4: memref<3x384x128xbf16, #tpu.memory_space<vmem>>, %arg5: memref<1x128xf32, #tpu.memory_space<vmem>>, %arg6: memref<1x16x16x128xf32, #tpu.memory_space<vmem>>) attributes {dimension_semantics = [#tpu.dimension_semantics<parallel>], iteration_bounds = array<i64: 2>, scalar_prefetch = 0 : i64, scratch_operands = 0 : i64, tpu.core_type = #tpu.core_type<tc>, window_params = [{transform_indices = @transform_0, window_bounds = array<i64: 1, 16, 16, 128>}, {pipeline_mode = #tpu.pipeline_mode<synchronous>, transform_indices = @transform_1, window_bounds = array<i64: 3, 384, 128>}, {pipeline_mode = #tpu.pipeline_mode<synchronous>, transform_indices = @transform_2, window_bounds = array<i64: 1, 128>}, {pipeline_mode = #tpu.pipeline_mode<synchronous>, transform_indices = @transform_3, window_bounds = array<i64: 3, 384, 128>}, {pipeline_mode = #tpu.pipeline_mode<synchronous>, transform_indices = @transform_4, window_bounds = array<i64: 1, 128>}, {transform_indices = @transform_5, window_bounds = array<i64: 1, 16, 16, 128>}]} {
    %c0 = arith.constant 0 : index
    %c0_0 = arith.constant 0 : index
    %c0_1 = arith.constant 0 : index
    %c0_2 = arith.constant 0 : index
    %0 = vector.load %arg1[%c0, %c0_0, %c0_1, %c0_2] : memref<1x16x16x128xf32, #tpu.memory_space<vmem>>, vector<1x16x16x128xf32>
    %1 = vector.shape_cast %0 : vector<1x16x16x128xf32> to vector<16x16x128xf32>
    %c0_3 = arith.constant 0 : index
    %c0_4 = arith.constant 0 : index
    %2 = vector.load %arg3[%c0_3, %c0_4] : memref<1x128xf32, #tpu.memory_space<vmem>>, vector<1x128xf32>
    %3 = arith.truncf %1 : vector<16x16x128xf32> to vector<16x16x128xbf16>
    %4 = vector.extract_strided_slice %3 {offsets = [1, 0, 0], sizes = [1, 16, 128], strides = [1, 1, 1]} : vector<16x16x128xbf16> to vector<1x16x128xbf16>
    %5 = vector.extract_strided_slice %3 {offsets = [14, 0, 0], sizes = [1, 16, 128], strides = [1, 1, 1]} : vector<16x16x128xbf16> to vector<1x16x128xbf16>
    %6 = tpu.concatenate %4, %3, %5 in 0 : vector<1x16x128xbf16>, vector<16x16x128xbf16>, vector<1x16x128xbf16> -> vector<18x16x128xbf16>
    %7 = vector.extract_strided_slice %6 {offsets = [0, 1, 0], sizes = [18, 1, 128], strides = [1, 1, 1]} : vector<18x16x128xbf16> to vector<18x1x128xbf16>
    %8 = vector.extract_strided_slice %6 {offsets = [0, 0, 0], sizes = [18, 15, 128], strides = [1, 1, 1]} : vector<18x16x128xbf16> to vector<18x15x128xbf16>
    %9 = tpu.concatenate %7, %8 in 1 : vector<18x1x128xbf16>, vector<18x15x128xbf16> -> vector<18x16x128xbf16>
    %10 = vector.extract_strided_slice %6 {offsets = [0, 1, 0], sizes = [18, 15, 128], strides = [1, 1, 1]} : vector<18x16x128xbf16> to vector<18x15x128xbf16>
    %11 = vector.extract_strided_slice %6 {offsets = [0, 14, 0], sizes = [18, 1, 128], strides = [1, 1, 1]} : vector<18x16x128xbf16> to vector<18x1x128xbf16>
    %12 = tpu.concatenate %10, %11 in 1 : vector<18x15x128xbf16>, vector<18x1x128xbf16> -> vector<18x16x128xbf16>
    %13 = tpu.concatenate %9, %6, %12 in 2 : vector<18x16x128xbf16>, vector<18x16x128xbf16>, vector<18x16x128xbf16> -> vector<18x16x384xbf16>
    %14 = vector.shape_cast %13 : vector<18x16x384xbf16> to vector<288x384xbf16>
    %15 = vector.extract_strided_slice %14 {offsets = [0, 0], sizes = [256, 384], strides = [1, 1]} : vector<288x384xbf16> to vector<256x384xbf16>
    %c0_5 = arith.constant 0 : index
    %c0_6 = arith.constant 0 : index
    %c0_7 = arith.constant 0 : index
    %16 = vector.load %arg2[%c0_5, %c0_6, %c0_7] : memref<3x384x128xbf16, #tpu.memory_space<vmem>>, vector<1x384x128xbf16>
    %17 = vector.shape_cast %16 : vector<1x384x128xbf16> to vector<384x128xbf16>
    %cst = arith.constant dense<0.000000e+00> : vector<256x128xf32>
    %18 = tpu.matmul %15, %17, %cst {dimension_numbers = #tpu.dot_dimension_numbers<[1], [0], [0], [1], [0, 0, 1, 1], [], []>} : vector<256x384xbf16>, vector<384x128xbf16>, vector<256x128xf32> -> vector<256x128xf32>
    %19 = vector.extract_strided_slice %14 {offsets = [16, 0], sizes = [256, 384], strides = [1, 1]} : vector<288x384xbf16> to vector<256x384xbf16>
    %c1 = arith.constant 1 : index
    %c0_8 = arith.constant 0 : index
    %c0_9 = arith.constant 0 : index
    %20 = vector.load %arg2[%c1, %c0_8, %c0_9] : memref<3x384x128xbf16, #tpu.memory_space<vmem>>, vector<1x384x128xbf16>
    %21 = vector.shape_cast %20 : vector<1x384x128xbf16> to vector<384x128xbf16>
    %cst_10 = arith.constant dense<0.000000e+00> : vector<256x128xf32>
    %22 = tpu.matmul %19, %21, %cst_10 {dimension_numbers = #tpu.dot_dimension_numbers<[1], [0], [0], [1], [0, 0, 1, 1], [], []>} : vector<256x384xbf16>, vector<384x128xbf16>, vector<256x128xf32> -> vector<256x128xf32>
    %23 = arith.addf %18, %22 : vector<256x128xf32>
    %24 = vector.extract_strided_slice %14 {offsets = [32, 0], sizes = [256, 384], strides = [1, 1]} : vector<288x384xbf16> to vector<256x384xbf16>
    %c2 = arith.constant 2 : index
    %c0_11 = arith.constant 0 : index
    %c0_12 = arith.constant 0 : index
    %25 = vector.load %arg2[%c2, %c0_11, %c0_12] : memref<3x384x128xbf16, #tpu.memory_space<vmem>>, vector<1x384x128xbf16>
    %26 = vector.shape_cast %25 : vector<1x384x128xbf16> to vector<384x128xbf16>
    %cst_13 = arith.constant dense<0.000000e+00> : vector<256x128xf32>
    %27 = tpu.matmul %24, %26, %cst_13 {dimension_numbers = #tpu.dot_dimension_numbers<[1], [0], [0], [1], [0, 0, 1, 1], [], []>} : vector<256x384xbf16>, vector<384x128xbf16>, vector<256x128xf32> -> vector<256x128xf32>
    %28 = arith.addf %23, %27 : vector<256x128xf32>
    %29 = vector.shape_cast %28 : vector<256x128xf32> to vector<16x16x128xf32>
    %30 = vector.shape_cast %2 : vector<1x128xf32> to vector<1x1x128xf32>
    %31 = vector.broadcast %30 : vector<1x1x128xf32> to vector<16x16x128xf32>
    %32 = arith.addf %29, %31 : vector<16x16x128xf32>
    %cst_14 = arith.constant dense<0.000000e+00> : vector<128xf32>
    %33 = vector.multi_reduction <add>, %32, %cst_14 [0, 1] : vector<16x16x128xf32> to vector<128xf32>
    %34 = vector.shape_cast %33 : vector<128xf32> to vector<1x1x128xf32>
    %cst_15 = arith.constant 2.560000e+02 : f32
    %35 = vector.broadcast %cst_15 : f32 to vector<1x1x128xf32>
    %36 = arith.divf %34, %35 : vector<1x1x128xf32>
    %37 = vector.broadcast %36 : vector<1x1x128xf32> to vector<16x16x128xf32>
    %38 = arith.subf %32, %37 : vector<16x16x128xf32>
    %39 = arith.mulf %38, %38 : vector<16x16x128xf32>
    %cst_16 = arith.constant dense<0.000000e+00> : vector<128xf32>
    %40 = vector.multi_reduction <add>, %39, %cst_16 [0, 1] : vector<16x16x128xf32> to vector<128xf32>
    %41 = vector.shape_cast %40 : vector<128xf32> to vector<1x1x128xf32>
    %cst_17 = arith.constant 2.560000e+02 : f32
    %42 = vector.broadcast %cst_17 : f32 to vector<1x1x128xf32>
    %43 = arith.divf %41, %42 : vector<1x1x128xf32>
    %cst_18 = arith.constant 9.99999974E-6 : f32
    %44 = vector.broadcast %cst_18 : f32 to vector<1x1x128xf32>
    %45 = arith.addf %43, %44 : vector<1x1x128xf32>
    %46 = math.rsqrt %45 : vector<1x1x128xf32>
    %47 = vector.broadcast %46 : vector<1x1x128xf32> to vector<16x16x128xf32>
    %48 = arith.mulf %38, %47 : vector<16x16x128xf32>
    %cst_19 = arith.constant 0.000000e+00 : f32
    %49 = vector.broadcast %cst_19 : f32 to vector<16x16x128xf32>
    %50 = arith.maximumf %48, %49 : vector<16x16x128xf32>
    %c0_20 = arith.constant 0 : index
    %c0_21 = arith.constant 0 : index
    %51 = vector.load %arg5[%c0_20, %c0_21] : memref<1x128xf32, #tpu.memory_space<vmem>>, vector<1x128xf32>
    %52 = arith.truncf %50 : vector<16x16x128xf32> to vector<16x16x128xbf16>
    %53 = vector.extract_strided_slice %52 {offsets = [1, 0, 0], sizes = [1, 16, 128], strides = [1, 1, 1]} : vector<16x16x128xbf16> to vector<1x16x128xbf16>
    %54 = vector.extract_strided_slice %52 {offsets = [14, 0, 0], sizes = [1, 16, 128], strides = [1, 1, 1]} : vector<16x16x128xbf16> to vector<1x16x128xbf16>
    %55 = tpu.concatenate %53, %52, %54 in 0 : vector<1x16x128xbf16>, vector<16x16x128xbf16>, vector<1x16x128xbf16> -> vector<18x16x128xbf16>
    %56 = vector.extract_strided_slice %55 {offsets = [0, 1, 0], sizes = [18, 1, 128], strides = [1, 1, 1]} : vector<18x16x128xbf16> to vector<18x1x128xbf16>
    %57 = vector.extract_strided_slice %55 {offsets = [0, 0, 0], sizes = [18, 15, 128], strides = [1, 1, 1]} : vector<18x16x128xbf16> to vector<18x15x128xbf16>
    %58 = tpu.concatenate %56, %57 in 1 : vector<18x1x128xbf16>, vector<18x15x128xbf16> -> vector<18x16x128xbf16>
    %59 = vector.extract_strided_slice %55 {offsets = [0, 1, 0], sizes = [18, 15, 128], strides = [1, 1, 1]} : vector<18x16x128xbf16> to vector<18x15x128xbf16>
    %60 = vector.extract_strided_slice %55 {offsets = [0, 14, 0], sizes = [18, 1, 128], strides = [1, 1, 1]} : vector<18x16x128xbf16> to vector<18x1x128xbf16>
    %61 = tpu.concatenate %59, %60 in 1 : vector<18x15x128xbf16>, vector<18x1x128xbf16> -> vector<18x16x128xbf16>
    %62 = tpu.concatenate %58, %55, %61 in 2 : vector<18x16x128xbf16>, vector<18x16x128xbf16>, vector<18x16x128xbf16> -> vector<18x16x384xbf16>
    %63 = vector.shape_cast %62 : vector<18x16x384xbf16> to vector<288x384xbf16>
    %64 = vector.extract_strided_slice %63 {offsets = [0, 0], sizes = [256, 384], strides = [1, 1]} : vector<288x384xbf16> to vector<256x384xbf16>
    %c0_22 = arith.constant 0 : index
    %c0_23 = arith.constant 0 : index
    %c0_24 = arith.constant 0 : index
    %65 = vector.load %arg4[%c0_22, %c0_23, %c0_24] : memref<3x384x128xbf16, #tpu.memory_space<vmem>>, vector<1x384x128xbf16>
    %66 = vector.shape_cast %65 : vector<1x384x128xbf16> to vector<384x128xbf16>
    %cst_25 = arith.constant dense<0.000000e+00> : vector<256x128xf32>
    %67 = tpu.matmul %64, %66, %cst_25 {dimension_numbers = #tpu.dot_dimension_numbers<[1], [0], [0], [1], [0, 0, 1, 1], [], []>} : vector<256x384xbf16>, vector<384x128xbf16>, vector<256x128xf32> -> vector<256x128xf32>
    %68 = vector.extract_strided_slice %63 {offsets = [16, 0], sizes = [256, 384], strides = [1, 1]} : vector<288x384xbf16> to vector<256x384xbf16>
    %c1_26 = arith.constant 1 : index
    %c0_27 = arith.constant 0 : index
    %c0_28 = arith.constant 0 : index
    %69 = vector.load %arg4[%c1_26, %c0_27, %c0_28] : memref<3x384x128xbf16, #tpu.memory_space<vmem>>, vector<1x384x128xbf16>
    %70 = vector.shape_cast %69 : vector<1x384x128xbf16> to vector<384x128xbf16>
    %cst_29 = arith.constant dense<0.000000e+00> : vector<256x128xf32>
    %71 = tpu.matmul %68, %70, %cst_29 {dimension_numbers = #tpu.dot_dimension_numbers<[1], [0], [0], [1], [0, 0, 1, 1], [], []>} : vector<256x384xbf16>, vector<384x128xbf16>, vector<256x128xf32> -> vector<256x128xf32>
    %72 = arith.addf %67, %71 : vector<256x128xf32>
    %73 = vector.extract_strided_slice %63 {offsets = [32, 0], sizes = [256, 384], strides = [1, 1]} : vector<288x384xbf16> to vector<256x384xbf16>
    %c2_30 = arith.constant 2 : index
    %c0_31 = arith.constant 0 : index
    %c0_32 = arith.constant 0 : index
    %74 = vector.load %arg4[%c2_30, %c0_31, %c0_32] : memref<3x384x128xbf16, #tpu.memory_space<vmem>>, vector<1x384x128xbf16>
    %75 = vector.shape_cast %74 : vector<1x384x128xbf16> to vector<384x128xbf16>
    %cst_33 = arith.constant dense<0.000000e+00> : vector<256x128xf32>
    %76 = tpu.matmul %73, %75, %cst_33 {dimension_numbers = #tpu.dot_dimension_numbers<[1], [0], [0], [1], [0, 0, 1, 1], [], []>} : vector<256x384xbf16>, vector<384x128xbf16>, vector<256x128xf32> -> vector<256x128xf32>
    %77 = arith.addf %72, %76 : vector<256x128xf32>
    %78 = vector.shape_cast %77 : vector<256x128xf32> to vector<16x16x128xf32>
    %79 = vector.shape_cast %51 : vector<1x128xf32> to vector<1x1x128xf32>
    %80 = vector.broadcast %79 : vector<1x1x128xf32> to vector<16x16x128xf32>
    %81 = arith.addf %78, %80 : vector<16x16x128xf32>
    %cst_34 = arith.constant dense<0.000000e+00> : vector<128xf32>
    %82 = vector.multi_reduction <add>, %81, %cst_34 [0, 1] : vector<16x16x128xf32> to vector<128xf32>
    %83 = vector.shape_cast %82 : vector<128xf32> to vector<1x1x128xf32>
    %cst_35 = arith.constant 2.560000e+02 : f32
    %84 = vector.broadcast %cst_35 : f32 to vector<1x1x128xf32>
    %85 = arith.divf %83, %84 : vector<1x1x128xf32>
    %86 = vector.broadcast %85 : vector<1x1x128xf32> to vector<16x16x128xf32>
    %87 = arith.subf %81, %86 : vector<16x16x128xf32>
    %88 = arith.mulf %87, %87 : vector<16x16x128xf32>
    %cst_36 = arith.constant dense<0.000000e+00> : vector<128xf32>
    %89 = vector.multi_reduction <add>, %88, %cst_36 [0, 1] : vector<16x16x128xf32> to vector<128xf32>
    %90 = vector.shape_cast %89 : vector<128xf32> to vector<1x1x128xf32>
    %cst_37 = arith.constant 2.560000e+02 : f32
    %91 = vector.broadcast %cst_37 : f32 to vector<1x1x128xf32>
    %92 = arith.divf %90, %91 : vector<1x1x128xf32>
    %cst_38 = arith.constant 9.99999974E-6 : f32
    %93 = vector.broadcast %cst_38 : f32 to vector<1x1x128xf32>
    %94 = arith.addf %92, %93 : vector<1x1x128xf32>
    %95 = math.rsqrt %94 : vector<1x1x128xf32>
    %96 = vector.broadcast %95 : vector<1x1x128xf32> to vector<16x16x128xf32>
    %97 = arith.mulf %87, %96 : vector<16x16x128xf32>
    %c0_39 = arith.constant 0 : index
    %c0_40 = arith.constant 0 : index
    %c0_41 = arith.constant 0 : index
    %c0_42 = arith.constant 0 : index
    %98 = vector.load %arg1[%c0_39, %c0_40, %c0_41, %c0_42] : memref<1x16x16x128xf32, #tpu.memory_space<vmem>>, vector<1x16x16x128xf32>
    %99 = vector.shape_cast %98 : vector<1x16x16x128xf32> to vector<16x16x128xf32>
    %100 = arith.addf %99, %97 : vector<16x16x128xf32>
    %c0_43 = arith.constant 0 : index
    %c0_44 = arith.constant 0 : index
    %c0_45 = arith.constant 0 : index
    %c0_46 = arith.constant 0 : index
    %101 = vector.load %arg6[%c0_43, %c0_44, %c0_45, %c0_46] : memref<1x16x16x128xf32, #tpu.memory_space<vmem>>, vector<1x16x16x128xf32>
    %102 = vector.shape_cast %101 : vector<1x16x16x128xf32> to vector<16x16x128xf32>
    %103 = vector.shape_cast %100 : vector<16x16x128xf32> to vector<1x16x16x128xf32>
    tpu.vector_store %arg6[%c0_43, %c0_44, %c0_45, %c0_46], %103 {strides = array<i32>} : memref<1x16x16x128xf32, #tpu.memory_space<vmem>>, vector<1x16x16x128xf32>,
    return
  }
  func.func @transform_0(%arg0: i32) -> (i32, i32, i32, i32) {
    %c0_i32 = arith.constant 0 : i32
    %c0_i32_0 = arith.constant 0 : i32
    %c0_i32_1 = arith.constant 0 : i32
    %c0_i32_2 = arith.constant 0 : i32
    return %arg0, %c0_i32, %c0_i32_0, %c0_i32_1 : i32, i32, i32, i32
  }
  func.func @transform_1(%arg0: i32) -> (i32, i32, i32) {
    %c0_i32 = arith.constant 0 : i32
    %c0_i32_0 = arith.constant 0 : i32
    %c0_i32_1 = arith.constant 0 : i32
    %c0_i32_2 = arith.constant 0 : i32
    return %c0_i32, %c0_i32_0, %c0_i32_1 : i32, i32, i32
  }
  func.func @transform_2(%arg0: i32) -> (i32, i32) {
    %c0_i32 = arith.constant 0 : i32
    %c0_i32_0 = arith.constant 0 : i32
    %c0_i32_1 = arith.constant 0 : i32
    return %c0_i32, %c0_i32_0 : i32, i32
  }
  func.func @transform_3(%arg0: i32) -> (i32, i32, i32) {
    %c0_i32 = arith.constant 0 : i32
    %c0_i32_0 = arith.constant 0 : i32
    %c0_i32_1 = arith.constant 0 : i32
    %c0_i32_2 = arith.constant 0 : i32
    return %c0_i32, %c0_i32_0, %c0_i32_1 : i32, i32, i32
  }
  func.func @transform_4(%arg0: i32) -> (i32, i32) {
    %c0_i32 = arith.constant 0 : i32
    %c0_i32_0 = arith.constant 0 : i32
    %c0_i32_1 = arith.constant 0 : i32
    return %c0_i32, %c0_i32_0 : i32, i32
  }
  func.func @transform_5(%arg0: i32) -> (i32, i32, i32, i32) {
    %c0_i32 = arith.constant 0 : i32
    %c0_i32_0 = arith.constant 0 : i32
    %c0_i32_1 = arith.constant 0 : i32
    %c0_i32_2 = arith.constant 0 : i32
    return %arg0, %c0_i32, %c0_i32_0, %c0_i32_1 : i32, i32, i32, i32
  }
}

</mosaic_0001>

<bundles_post_ra>
// kernel: tpu_custom_call.1
= control target key start
LH: loop header
LB: loop body
LE: loop exit
PB: predicated region body
PF: predicated region fallthrough
CT: control target
= control target key end

     0   :  { %10 = vsyncpa [#allocation3], 0  ;;  %s9218_s0 = inlined_call_operand.hbm [shape: f32[2,16,16,128], index: 0, kind: input, shape index: {}, may-alias: {0,5}]   ;;  %s9219_s1 = inlined_call_operand.vmem [shape: bf16[3,384,128], index: 1, kind: input, shape index: {}]   ;;  %s9220_s2 = inlined_call_operand.vmem [shape: f32[1,128], index: 2, kind: input, shape index: {}]   ;;  %s9221_s3 = inlined_call_operand.hbm [shape: bf16[3,384,128], index: 3, kind: input, shape index: {}]   ;;  %s9222_s4 = inlined_call_operand.vmem [shape: f32[1,128], index: 4, kind: input, shape index: {}]   ;;  %s9223_s5 = inlined_call_operand.hbm [shape: f32[2,16,16,128], index: 5, kind: output, shape index: {}, may-alias: {0,5}]  }
   0x1   :  { %12 = vsyncpa [#allocation3 + $0x1], 0 }
   0x2   :  { %13 = vsyncpa [#allocation6], 0 }
   0x3   :  { %14 = vsyncpa [#allocation4], 0 }
   0x4   :  { %16 = vsyncpa [#allocation4 + $0x1], 0  ;;  %s6351_s18 = smov 0   ;;  %s6353_s19 = smov 0  }
   0x5   :  { %s6355_s20 = smov 0   ;;  %s6357_s21 = smov 0  }
   0x6 LB: > { %s6372_s22 = sadd.s32 4294967295, %s6310_s21   ;;  %s4581_s23 = sadd.s32 4294967294, %s6310_s21   ;;  %s6310_s21 = sphi %s6357_s21, %s9371_s21   ;;  %s6306_s20 = sphi %s6355_s20, %s9370_s20   ;;  %s6302_s19 = sphi %s6353_s19, %s9369_s19   ;;  %s6298_s18 = sphi %s6351_s18, %s9368_s18  }
   0x7   : > { %p42_p0 = scmp.ne.s32.totalorder %s6302_s19, %s6298_s18  ;;  %p9224_p1 = scmp.eq.s32.totalorder %s6372_s22, 0 }
   0x8   : > { %p156_p3 = scmp.eq.s32.totalorder %s4581_s23, 1  ;;  %p4582_p5 = scmp.ge.s32.totalorder %s6310_s21, 1 }
   0x9   : > { %p6381_p4 = por %p9224_p1, %p42_p0  ;;  %p163_p7 = scmp.lt.s32.totalorder %s6310_s21, 3 }
   0xa   : > { %p6386_p6 = por %p156_p3, %p42_p0  ;;  %s6312_s27 = smov [#allocation5]  }
   0xb   : > { %s9256_s24 = scalar_select %p6381_p4, 1, 0 }
   0xc   : > { %s9257_s25 = scalar_select %p6386_p6, 1, 0 }
   0xd   : > { %p6391_p8 = pnand %p4582_p5, %p163_p7  ;;  %s181_s28 = sshll.u32 %s6312_s27, 4  ;;  %s182_s28 = int_to_ptr.vmem [resolvable:$true] %s181_s28 }
   0xe   : > { %s6405_s30 = sadd.s32 1, %s6310_s21   ;;  %s29_s6 = sadd.s32 1, %s6306_s20 }
   0xf   : > { %s9258_s26 = scalar_select %p6391_p8, 1, 0 }
  0x10   : > { %p5953_p9 = pneg %p6391_p8  ;;  %s26_s7 = ssub.s32 %s6310_s21, %s6405_s30 }
  0x11   : > { %s6199_s8 = scalar_lea.vmem %s182_s28, 9216  ;;  %p6207_p5 = scmp.lt.s32.totalorder %s182_s28, %s182_s28 }
  0x12   : > { %p6400_p11 = pnand %p5953_p9, %p9224_p1  ;;  %p6200_p13 = scmp.ne.s32.totalorder %s182_s28, %s6199_s8 }
  0x13   : > { %p6208_p7 = scmp.lt.s32.totalorder %s6199_s8, %s6199_s8 }
  0x14   : > { %p6190_p12 = pneg %p6400_p11 }
  0x15   : > { %p6209_p10 = por %p6208_p7, %p6207_p5 }
  0x16   : > { %p6202_p0 = pnand %p6200_p13, %p6190_p12 }
  0x18   : > { %p6203_p3 = pneg %p6202_p0 }
  0x1a   : > { %p6210_p2 = pnand %p6209_p10, %p6203_p3 }
  0x1c   : > { %6213 = shalt.err (!%p6210_p2)
}
  0x1d   : > { %s6313_s9 = smov 64   ;;  %s6314_s10 = smov 4  }
  0x1e   : > { %5956 = dma.hbm_to_vmem [thread:$0]  (!%p6400_p11), %s9221_s3, 9216, %s182_s28, [#allocation6], %s6313_s9, %s6313_s9, %s6314_s10  }
  0x1f   : > { %p27_p9 = scmp.eq.s32.totalorder %s26_s7, 0  ;;  %p36_p12 = scmp.ne.s32.totalorder %s6306_s20, %s6302_s19 }
  0x20   : > { %p37_p10 = scmp.eq.s32.totalorder %s6310_s21, 0  ;;  %p5966_p2 = scmp.lt.s32.totalorder %s6310_s21, 2 }
  0x21   : > { %s6422_s13 = scalar_select %p27_p9, %s6306_s20, %s29_s6  }
  0x22   : > { %p38_p13 = por %p37_p10, %p36_p12  ;;  %p9260_p0 = scmp.eq.s32.totalorder %s6372_s22, 1 }
  0x23   : > { %s198_s15 = sand.u32 1, %s6306_s20   ;;  %s4839_s16 = sshll.u32 %s6310_s21, 12 }
  0x24   : > { %p6426_p3 = por %p9260_p0, %p36_p12  ;;  %s4585_s17 = sshll.u32 %s198_s15, 8 }
  0x25   : > { %s6435_s29 = scalar_lea.hbm %s9218_s0, %s4839_s16  ;;  %s202_s28 = scalar_lea.vmem [#allocation2], %s4585_s17 }
  0x26   : > { %s9261_s14 = scalar_select %p6426_p3, 1, 0 }
  0x27   : > { %s209_s6 = sshll.u32 %s202_s28, 4  ;;  %p6437_p11 = pnand %p5966_p2, %p38_p13  ;;  %s6441_s6 = int_to_ptr.vmem [resolvable:$true] %s209_s6 }
  0x28   : > { %s6443_s8 = scalar_lea.sflag [#allocation3], %s198_s15  ;;  %s6214_s9 = scalar_lea.hbm %s6435_s29, 4096 }
  0x29   : > { %p6215_p5 = scmp.ne.s32.totalorder %s6435_s29, %s6214_s9  ;;  %p6216_p7 = pneg %p6437_p11 }
  0x2a   : > { %s6219_s12 = scalar_lea.hbm %s9218_s0, 8192  ;;  %p6220_p10 = scmp.lt.s32.totalorder %s6435_s29, %s9218_s0 }
  0x2b   : > { %p6217_p9 = pnand %p6216_p7, %p6215_p5  ;;  %p6221_p2 = scmp.lt.s32.totalorder %s6219_s12, %s6214_s9 }
  0x2d   : > { %p6218_p12 = pneg %p6217_p9  ;;  %p6222_p13 = por %p6221_p2, %p6220_p10 }
  0x2f   : > { %p6223_p0 = pnand %p6222_p13, %p6218_p12 }
  0x31   : > { %6226 = shalt.err (!%p6223_p0)
}
  0x32   : > { %s6227_s15 = scalar_lea.vmem %s6441_s6, 4096  ;;  %s6315_s23 = smov [#allocation2]  }
  0x33   : > { %p6228_p1 = scmp.ne.s32.totalorder %s6441_s6, %s6227_s15  ;;  %s6232_s27 = sshll.u32 %s6315_s23, 4  ;;  %s6233_s27 = int_to_ptr.vmem [resolvable:$false] %s6232_s27 }
  0x34   : > { %s6234_s28 = scalar_lea.vmem %s6233_s27, 8192  ;;  %p6235_p9 = scmp.lt.s32.totalorder %s6441_s6, %s6233_s27 }
  0x35   : > { %p6230_p6 = pnand %p6228_p1, %p6216_p7  ;;  %p6236_p3 = scmp.lt.s32.totalorder %s6234_s28, %s6227_s15 }
  0x37   : > { %p6231_p5 = pneg %p6230_p6  ;;  %p6237_p4 = por %p6236_p3, %p6235_p9 }
  0x39   : > { %p6238_p8 = pnand %p6237_p4, %p6231_p5 }
  0x3b   : > { %6241 = shalt.err (!%p6238_p8)
}
  0x3c   : > { %s6316_s9 = smov 128   ;;  %s6317_s10 = smov 8  }
  0x3d   : > { %5960 = dma.hbm_to_vmem [thread:$0]  (!%p6437_p11), %s6435_s29, 4096, %s6441_s6, %s6443_s8, %s6316_s9, %s6316_s9, %s6317_s10  }
  0x3e   : > { %p9263_p1 = scmp.ne.s32.totalorder %s9258_s26, 0 }
  0x40   : > { %221 = sbr.rel (%p9263_p1) target bundleno = 1432 (0x598), region = 40 }
  0x45   : > { %s6467_s11 = sand.u32 1, %s6302_s19   ;;  %p9264_p4 = scmp.ne.s32.totalorder %s9256_s24, 0 }
  0x46   : > { %s4589_s12 = sshll.u32 %s6467_s11, 8  ;;  %s224_s16 = scalar_lea.sflag [#allocation3], %s6467_s11 }
  0x47   : > { %s6473_s17 = scalar_lea.vmem [#allocation2], %s4589_s12 }
  0x48   : > { %6285 = dma.done.wait (%p9264_p4), %s224_s16, 4096  }
  0x49   : > { %6287 = vsyncadd (%p9264_p4), %s224_s16, 4294963200  ;;  %p9265_p6 = scmp.eq.s32.totalorder %s6372_s22, 0 }
  0x4b   : > { %6289 = dma.done.wait (%p9265_p6), [#allocation6], 9216   ;;  %p9266_p8 = pmov %p9265_p6 }
  0x4c   : > { %v6008_v0 = vld [vmem:[%s9219_s1 + $0x138] sm:$0xff]   ;;  %v6011_v3 = vld [vmem:[%s9219_s1 + $0x130] sm:$0xff]   ;;  %v6014_v6 = vld [vmem:[%s9219_s1 + $0x128] sm:$0xff]   ;;  %vm535_vm0 = vcmask 1047552   ;;  %vm536_vm1 = vsmask.f32 7424 }
  0x4d   : > { %6291 = vsyncadd (%p9266_p8), [#allocation6], 4294958080  ;;  %v6009_v1 = vld [vmem:[%s9219_s1 + $0x178] sm:$0xff]   ;;  %4841 = vmatprep.subr.bf16.mxu0 %v6008_v0  ;;  %v6012_v4 = vld [vmem:[%s9219_s1 + $0x170] sm:$0xff]   ;;  %vm453_vm2 = vsmask.f32 256 }
  0x4e   : > { %v6010_v2 = vld [vmem:[%s9219_s1 + $0xf8] sm:$0xff]   ;;  %5657 = vmatprep.subr.bf16.mxu1 %v6009_v1  ;;  %v6013_v5 = vld [vmem:[%s9219_s1 + $0xf0] sm:$0xff]   ;;  %v6015_v7 = vld [vmem:[%s9219_s1 + $0x168] sm:$0xff]   ;;  %vm452_vm3 = vcmask 1040384   ;;  %v9267_v44 = vmov 0  ;;  %v9270_v48 = vmov 0 }
  0x4f   : > { %4842 = vmatpush3.bf16.msra.mxu0 %v6010_v2  ;;  %5658 = vmatpush3.bf16.msra.mxu1 %v6009_v1  ;;  %v6016_v8 = vld [vmem:[%s9219_s1 + $0xe8] sm:$0xff]   ;;  %v6017_v9 = vld [vmem:[%s9219_s1 + $0x120] sm:$0xff]   ;;  %v6020_v12 = vld [vmem:[%s9219_s1 + $0x118] sm:$0xff]   ;;  %s9046_s15 = scalar_lea.vmem [#allocation7], %s4589_s12  ;;  %s4840_s12 = sshll.u32 %s6372_s22, 12 }
  0x50   : > { %4843 = vmatprep.subr.bf16.mxu0 %v6011_v3  ;;  %5659 = vmatprep.subr.bf16.mxu1 %v6012_v4  ;;  %v6018_v10 = vld [vmem:[%s9219_s1 + $0x160] sm:$0xff]   ;;  %v6021_v13 = vld [vmem:[%s9219_s1 + $0x158] sm:$0xff]   ;;  %v6023_v15 = vld [vmem:[%s9219_s1 + $0x110] sm:$0xff]   ;;  %s4498_s24 = sshll.u32 %s9046_s15, 4  ;;  %s9151_s28 = scalar_lea.hbm %s9223_s5, %s4840_s12  ;;  %s9155_s24 = int_to_ptr.vmem [resolvable:$true] %s4498_s24 }
  0x51   : > { %v6019_v11 = vld [vmem:[%s9219_s1 + $0xe0] sm:$0xff]   ;;  %v6022_v14 = vld [vmem:[%s9219_s1 + $0xd8] sm:$0xff]   ;;  %v6024_v16 = vld [vmem:[%s9219_s1 + $0x150] sm:$0xff]   ;;  %s4485_s22 = scalar_lea.sflag [#allocation4], %s6467_s11  ;;  %s6242_s9 = scalar_lea.vmem %s9155_s24, 4096 }
  0x52   : > { %v6025_v17 = vld [vmem:[%s9219_s1 + $0xd0] sm:$0xff]   ;;  %v6026_v18 = vld [vmem:[%s9219_s1 + $0x108] sm:$0xff]   ;;  %v6029_v21 = vld [vmem:[%s9219_s1 + $0x100] sm:$0xff]   ;;  %p6243_p3 = scmp.ne.s32.totalorder %s9155_s24, %s6242_s9  ;;  %p9365_p11 = scmp.ne.s32.totalorder %s9261_s14, 0 }
  0x53   : > { %4844 = vmatpush3.bf16.msra.mxu0 %v6013_v5  ;;  %5660 = vmatpush3.bf16.msra.mxu1 %v6012_v4  ;;  %v6027_v19 = vld [vmem:[%s9219_s1 + $0x148] sm:$0xff]   ;;  %v6030_v22 = vld [vmem:[%s9219_s1 + $0x140] sm:$0xff]   ;;  %v261_v25 = vld [vmem:[%s6473_s17 + $0x10] sm:$0xff] }
  0x54   : > { %4845 = vmatprep.subr.bf16.mxu0 %v6014_v6  ;;  %5661 = vmatprep.subr.bf16.mxu1 %v6015_v7  ;;  %v6028_v20 = vld [vmem:[%s9219_s1 + $0xc8] sm:$0xff]   ;;  %v259_v23 = vld [vmem:[%s6473_s17] sm:$0xff]  ;;  %v262_v27 = vld [vmem:[%s6473_s17 + $0x18] sm:$0xff]  ;;  %p6244_p7 = pnand %p6243_p3, %p9365_p11 }
  0x55   : > { %v260_v24 = vld [vmem:[%s6473_s17 + $0x8] sm:$0xff]  ;;  %v6558_v28 = vpack.c.bf16 %v262_v27, %v261_v25  ;;  %v263_v29 = vld [vmem:[%s6473_s17 + $0x20] sm:$0xff]  ;;  %v265_v35 = vld [vmem:[%s6473_s17 + $0x30] sm:$0xff] }
  0x56   : > { %v6555_v26 = vpack.c.bf16 %v260_v24, %v259_v23  ;;  %v264_v30 = vld [vmem:[%s6473_s17 + $0x28] sm:$0xff]  ;;  %v6031_v31 = vld [vmem:[%s9219_s1 + $0xc0] sm:$0xff]   ;;  %v266_v36 = vld [vmem:[%s6473_s17 + $0x38] sm:$0xff]  ;;  %p6245_p12 = pneg %p6244_p7 }
  0x57   : > { %4846 = vmatpush3.bf16.msra.mxu0 %v6016_v8  ;;  %5662 = vmatpush3.bf16.msra.mxu1 %v6015_v7  ;;  %v6568_v34 = vpack.c.bf16 %v264_v30, %v263_v29  ;;  %v6573_v37 = vshrl.u32 %v6558_v28, 16  ;;  %v373_v38 = vshll.u32 %v6558_v28, 16  ;;  %v6032_v39 = vld [vmem:[%s9219_s1 + $0xb8] sm:$0xff]   ;;  %v6579_v40 = vpack.c.bf16 %v266_v36, %v265_v35  ;;  %v267_v41 = vld [vmem:[%s6473_s17 + $0x40] sm:$0xff]  ;;  %v268_v42 = vld [vmem:[%s6473_s17 + $0x48] sm:$0xff] }
  0x58   : > { %4847 = vmatprep.subr.bf16.mxu0 %v6017_v9  ;;  %5663 = vmatprep.subr.bf16.mxu1 %v6018_v10  ;;  %v312_v32 = vshrl.u32 %v6555_v26, 16  ;;  %v377_v33 = vshll.u32 %v6555_v26, 16  ;;  %vm6585_vm4 = vmand %vm535_vm0, %vm536_vm1  ;;  %v6606_v55 = vpack.c.bf16 %v268_v42, %v267_v41  ;;  %v269_v59 = vld [vmem:[%s6473_s17 + $0x50] sm:$0xff]  ;;  %v270_v60 = vld [vmem:[%s6473_s17 + $0x58] sm:$0xff] }
  0x59   : > { %827 = vmatprep.mubr.bf16.mxu0 %v6555_v26  ;;  %v9268_v44 = vsel %vm6585_vm4, 4294967295, %v9267_v44  ;;  %v6590_v46 = vshrl.u32 %v6568_v34, 16  ;;  %v6593_v47 = vshll.u32 %v6568_v34, 16  ;;  %vm6597_vm5 = vmand %vm452_vm3, %vm453_vm2  ;;  %v471_v49 = vrot.slane %v373_v38, 1  ;;  %v6033_v1 = vld [vmem:[%s9219_s1 + $0xb0] sm:$0xff]   ;;  %v271_v2 = vld [vmem:[%s6473_s17 + $0x60] sm:$0xff] }
  0x5a   : > { %v473_v43 = vrot.slane %v377_v33, 1  ;;  %9269 = vst [vmem:[#allocation11_spill] sm:$0xff] %v9268_v44  ;;  %v376_v45 = vrot.slane %v312_v32, 7  ;;  %v9271_v48 = vsel %vm6597_vm5, 4294967295, %v9270_v48  ;;  %v372_v50 = vrot.slane %v6573_v37, 7  ;;  %v272_v3 = vld [vmem:[%s6473_s17 + $0x68] sm:$0xff] }
  0x5b   : > { %4848 = vmatpush3.bf16.msra.mxu0 %v6019_v11  ;;  %5664 = vmatpush3.bf16.msra.mxu1 %v6018_v10  ;;  %9272 = vst [vmem:[#allocation12_spill] sm:$0xff] %v9271_v48  ;;  %v6603_v51 = vshll.u32 %v6579_v40, 16  ;;  %v475_v54 = vrot.slane %v6593_v47, 1  ;;  %v472_v56 = vor.u32 %v471_v49, %v6573_v37  ;;  %v6610_v57 = vshrl.u32 %v6579_v40, 16  ;;  %v6034_v6 = vld [vmem:[%s9219_s1 + $0x78] sm:$0xff]   ;;  %v273_v10 = vld [vmem:[%s6473_s17 + $0x70] sm:$0xff] }
  0x5c   : > { %4849 = vmatprep.subr.bf16.mxu0 %v6020_v12  ;;  %5665 = vmatprep.subr.bf16.mxu1 %v6021_v13  ;;  %v474_v52 = vor.u32 %v473_v43, %v312_v32  ;;  %v379_v53 = vor.u32 %v377_v33, %v376_v45  ;;  %v6625_v0 = vshrl.u32 %v6606_v55, 16  ;;  %v6638_v5 = vshll.u32 %v6606_v55, 16  ;;  %v274_v11 = vld [vmem:[%s6473_s17 + $0x78] sm:$0xff]  ;;  %v6038_v36 = vld [vmem:[%s9219_s1 + $0x30] sm:$0xff]  }
  0x5d   : > { %v477_v58 = vrot.slane %v6603_v51, 1  ;;  %v476_v63 = vor.u32 %v475_v54, %v6590_v46  ;;  %v6635_v4 = vsel %vm6585_vm4, %v472_v56, %v373_v38  ;;  %v375_v8 = vor.u32 %v373_v38, %v372_v50  ;;  %v277_v42 = vld [vmem:[%s6473_s17 + $0x90] sm:$0xff]  ;;  %v278_v43 = vld [vmem:[%s6473_s17 + $0x98] sm:$0xff]  ;;  %v279_v50 = vld [vmem:[%s6473_s17 + $0xa0] sm:$0xff] }
  0x5e   : > { %v6617_v61 = vsel %vm6585_vm4, %v474_v52, %v377_v33  ;;  %v6621_v62 = vsel %vm6597_vm5, %v312_v32, %v379_v53  ;;  %v6650_v9 = vpack.c.bf16 %v270_v60, %v269_v59  ;;  %v380_v24 = vrot.slane %v6590_v46, 7  ;;  %v280_v52 = vld [vmem:[%s6473_s17 + $0xa8] sm:$0xff]  ;;  %v6041_v53 = vld [vmem:[%s9219_s1 + $0x60] sm:$0xff]  }
  0x5f   : > { %4850 = vmatpush3.bf16.msra.mxu0 %v6022_v14  ;;  %5666 = vmatpush3.bf16.msra.mxu1 %v6021_v13  ;;  %v6648_v7 = vsel %vm6585_vm4, %v476_v63, %v6593_v47  ;;  %v478_v12 = vor.u32 %v477_v58, %v6610_v57  ;;  %v479_v13 = vrot.slane %v6638_v5, 1  ;;  %v6657_v14 = vpack.c.bf16 %v272_v3, %v271_v2 }
  0x60   : > { %4851 = vmatprep.subr.bf16.mxu0 %v6023_v15  ;;  %5667 = vmatprep.subr.bf16.mxu1 %v6024_v16  ;;  %v275_v15 = vld [vmem:[%s6473_s17 + $0x80] sm:$0xff]  ;;  %v6681_v23 = vsel %vm6597_vm5, %v6573_v37, %v375_v8  ;;  %v6690_v27 = vshrl.u32 %v6650_v9, 16  ;;  %v6693_v30 = vpack.c.bf16 %v274_v11, %v273_v10  ;;  %v6039_v37 = vld [vmem:[%s9219_s1 + $0x68] sm:$0xff]   ;;  %v383_v38 = vor.u32 %v6593_v47, %v380_v24  ;;  %v281_v8 = vld [vmem:[%s6473_s17 + $0xb0] sm:$0xff] }
  0x61   : > { %5673 = vmatprep.mubr.bf16.mxu1 %v6617_v61  ;;  %v6687_v25 = vsel %vm6585_vm4, %v478_v12, %v6603_v51  ;;  %v6701_v32 = vshrl.u32 %v6657_v14, 16  ;;  %v6040_v47 = vld [vmem:[%s9219_s1 + $0x28] sm:$0xff]   ;;  %v384_v56 = vrot.slane %v6610_v57, 7  ;;  %v6741_v58 = vpack.c.bf16 %v278_v43, %v277_v42  ;;  %v282_v10 = vld [vmem:[%s6473_s17 + $0xb8] sm:$0xff]  ;;  %v6042_v11 = vld [vmem:[%s9219_s1 + $0x20] sm:$0xff]  }
  0x62   : > { %v6719_v41 = vshll.u32 %v6693_v30, 16  ;;  %v6738_v54 = vsel %vm6597_vm5, %v6590_v46, %v383_v38  ;;  %v6749_v60 = vshrl.u32 %v6693_v30, 16  ;;  %v6044_v46 = vld [vmem:[%s9219_s1 + $0xa0] sm:$0xff]   ;;  %v6043_v12 = vld [vmem:[%s9219_s1 + $0x58] sm:$0xff]   ;;  %v6801_v38 = vpack.c.bf16 %v282_v10, %v281_v8 }
  0x63   : > { %4852 = vmatpush3.bf16.msra.mxu0 %v6025_v17  ;;  %5668 = vmatpush3.bf16.msra.mxu1 %v6024_v16  ;;  %v6036_v16 = vld [vmem:[%s9219_s1 + $0x38] sm:$0xff]   ;;  %v6665_v17 = vshll.u32 %v6650_v9, 16 }
  0x64   : > { %4853 = vmatprep.subr.bf16.mxu0 %v6026_v18  ;;  %5669 = vmatprep.subr.bf16.mxu1 %v6027_v19  ;;  %v6035_v18 = vld [vmem:[%s9219_s1 + $0xa8] sm:$0xff]   ;;  %v485_v63 = vrot.slane %v6719_v41, 1  ;;  %v6837_v8 = vshll.u32 %v6801_v38, 16 }
  0x65   : > { %v481_v29 = vrot.slane %v6665_v17, 1 }
  0x67   : > { %4854 = vmatpush3.bf16.msra.mxu0 %v6028_v20  ;;  %5670 = vmatpush3.bf16.msra.mxu1 %v6027_v19  ;;  %v480_v19 = vor.u32 %v479_v13, %v6625_v0  ;;  %v6672_v20 = vshll.u32 %v6657_v14, 16  ;;  %v387_v13 = vor.u32 %v6603_v51, %v384_v56  ;;  %v388_v51 = vrot.slane %v6625_v0, 7 }
  0x68   : > { %4855 = vmatprep.subr.bf16.mxu0 %v6029_v21  ;;  %5671 = vmatprep.subr.bf16.mxu1 %v6030_v22  ;;  %v276_v21 = vld [vmem:[%s6473_s17 + $0x88] sm:$0xff] }
  0x69   : > { %v483_v33 = vrot.slane %v6672_v20, 1  ;;  %v6704_v35 = vpack.c.bf16 %v276_v21, %v275_v15  ;;  %v6778_v15 = vshll.u32 %v6741_v58, 16  ;;  %v6045_v21 = vld [vmem:[%s9219_s1 + $0x18] sm:$0xff]   ;;  %v6807_v42 = vsel %vm6597_vm5, %v6610_v57, %v387_v13  ;;  %v6047_v57 = vld [vmem:[%s9219_s1 + $0x10] sm:$0xff]  }
  0x6b   : > { %4856 = vmatpush3.bf16.msra.mxu0 %v6031_v31  ;;  %5672 = vmatpush3.bf16.msra.mxu1 %v6030_v22  ;;  %v6037_v22 = vld [vmem:[%s9219_s1 + $0x70] sm:$0xff]   ;;  %v6698_v31 = vsel %vm6585_vm4, %v480_v19, %v6638_v5  ;;  %v484_v45 = vor.u32 %v483_v33, %v6701_v32  ;;  %v6725_v49 = vshll.u32 %v6704_v35, 16  ;;  %v284_v19 = vld [vmem:[%s6473_s17 + $0xc8] sm:$0xff]  ;;  %v287_v33 = vld [vmem:[%s6473_s17 + $0xe0] sm:$0xff]  ;;  %v489_v43 = vrot.slane %v6778_v15, 1 }
  0x6c   : > { %5705 = vmatprep.subr.bf16.mxu0 %v6032_v39  ;;  %4977 = vmatprep.subr.bf16.mxu1 %v6034_v6  ;;  %v6764_v6 = vpack.c.bf16 %v280_v52, %v279_v50 }
  0x6d   : > { %v6761_v2 = vsel %vm6585_vm4, %v484_v45, %v6672_v20  ;;  %v487_v3 = vrot.slane %v6725_v49, 1 }
  0x6e   : > { %828 = vmatmul.mubr.bf16.vlgmr.msra.gmra.mxu0 %v6621_v62  ;;  %5674 = vmatmul.mubr.bf16.vlgmr.msra.gmra.mxu1 %v6635_v4  ;;  %9274 = vst [vmem:[#allocation14_spill] sm:$0xff] %v6761_v2  ;;  %v6791_v24 = vshll.u32 %v6764_v6, 16  ;;  %v6819_v52 = vshrl.u32 %v6764_v6, 16 }
  0x6f   : > { %5706 = vmatpush3.bf16.msra.mxu0 %v6032_v39  ;;  %835 = vmatprep.mubr.bf16.mxu0 %v6558_v28  ;;  %v482_v39 = vor.u32 %v481_v29, %v6690_v27  ;;  %v6046_v29 = vld [vmem:[%s9219_s1 + $0x50] sm:$0xff]  }
  0x70   : > { %5677 = vmatprep.mubr.bf16.mxu1 %v6648_v7  ;;  %5707 = vmatprep.subr.bf16.mxu0 %v6033_v1 }
  0x71   : > { %4978 = vmatpush3.bf16.msra.mxu1 %v6036_v16  ;;  %v6746_v59 = vsel %vm6585_vm4, %v482_v39, %v6665_v17  ;;  %v283_v16 = vld [vmem:[%s6473_s17 + $0xc0] sm:$0xff]  ;;  %v289_v39 = vld [vmem:[%s6473_s17 + $0xf0] sm:$0xff] }
  0x72   : > { %4979 = vmatprep.subr.bf16.mxu1 %v6037_v22  ;;  %9273 = vst [vmem:[#allocation13_spill] sm:$0xff] %v6746_v59  ;;  %v6810_v45 = vpack.c.bf16 %v284_v19, %v283_v16  ;;  %v285_v16 = vld [vmem:[%s6473_s17 + $0xd0] sm:$0xff] }
  0x73   : > { %5708 = vmatpush3.bf16.msra.mxu0 %v6033_v1  ;;  %v6753_v1 = vshrl.u32 %v6704_v35, 16 }
  0x74   : > { %5709 = vmatprep.subr.bf16.mxu0 %v6035_v18  ;;  %v6848_v13 = vshll.u32 %v6810_v45, 16 }
  0x75   : > { %4980 = vmatpush3.bf16.msra.mxu1 %v6038_v36  ;;  %v488_v22 = vor.u32 %v487_v3, %v6753_v1  ;;  %v288_v36 = vld [vmem:[%s6473_s17 + $0xe8] sm:$0xff] }
  0x76   : > { %836 = vmatmul.mubr.bf16.gmra.mxu0 %v6681_v23  ;;  %5678 = vmatmul.mubr.bf16.gmra.mxu1 %v6687_v25  ;;  %v6825_v56 = vpack.c.bf16 %v288_v36, %v287_v33  ;;  %v6048_v3 = vld [vmem:[%s9219_s1 + $0x48] sm:$0xff]   ;;  %v6050_v36 = vld [vmem:[%s9219_s1 + $0x40] sm:$0xff]  }
  0x77   : > { %843 = vmatprep.mubr.bf16.mxu0 %v6568_v34  ;;  %5681 = vmatprep.mubr.bf16.mxu1 %v6698_v31 }
  0x78   : > { %5710 = vmatpush3.bf16.msra.mxu0 %v6035_v18  ;;  %4981 = vmatprep.subr.bf16.mxu1 %v6039_v37  ;;  %v486_v18 = vor.u32 %v485_v63, %v6749_v60  ;;  %v6799_v37 = vshrl.u32 %v6741_v58, 16  ;;  %v6830_v63 = vsel %vm6585_vm4, %v488_v22, %v6725_v49  ;;  %v6853_v19 = vshrl.u32 %v6825_v56, 16 }
  0x79   : > { %4982 = vmatpush3.bf16.msra.mxu1 %v6040_v47  ;;  %5711 = vmatprep.subr.bf16.mxu0 %v6044_v46  ;;  %v290_v47 = vld [vmem:[%s6473_s17 + $0xf8] sm:$0xff]  ;;  %9276 = vst [vmem:[#allocation16_spill] sm:$0xff] %v6830_v63  ;;  %v6859_v22 = vshll.u32 %v6825_v56, 16 }
  0x7a   : > { %4983 = vmatprep.subr.bf16.mxu1 %v6041_v53  ;;  %v6816_v50 = vsel %vm6585_vm4, %v486_v18, %v6719_v41  ;;  %v392_v53 = vrot.slane %v6690_v27, 7  ;;  %v6839_v10 = vpack.c.bf16 %v290_v47, %v289_v39  ;;  %v286_v18 = vld [vmem:[%s6473_s17 + $0xd8] sm:$0xff]  ;;  %v428_v39 = vrot.slane %v6853_v19, 7 }
  0x7b   : > { %9275 = vst [vmem:[#allocation15_spill] sm:$0xff] %v6816_v50 }
  0x7c   : > { %5712 = vmatpush3.bf16.msra.mxu0 %v6044_v46  ;;  %v491_v46 = vrot.slane %v6791_v24, 1 }
  0x7d   : > { %4984 = vmatpush3.bf16.msra.mxu1 %v6042_v11  ;;  %v6052_v11 = vld [vmem:[%s9219_s1 + $0x98] sm:$0xff]  }
  0x7e   : > { %844 = vmatmul.mubr.bf16.gmra.mxu0 %v6738_v54  ;;  %5682 = vmatmul.mubr.bf16.gmra.mxu1 %v6746_v59  ;;  %v492_v33 = vor.u32 %v491_v46, %v6819_v52  ;;  %v6888_v46 = vshrl.u32 %v6810_v45, 16 }
  0x7f   : > { %851 = vmatprep.mubr.bf16.mxu0 %v6579_v40  ;;  %5685 = vmatprep.mubr.bf16.mxu1 %v6761_v2  ;;  %v6897_v2 = vpack.c.bf16 %v286_v18, %v285_v16 }
  0x80   : > { %4985 = vmatprep.subr.bf16.mxu1 %v6043_v12  ;;  %v391_v12 = vor.u32 %v6638_v5, %v388_v51  ;;  %v6049_v5 = vld [vmem:[%s9219_s1 + $0x8] sm:$0xff]   ;;  %v6053_v51 = vld [vmem:[%s9219_s1 + $0x90] sm:$0xff]   ;;  %5713 = vmatprep.subr.bf16.mxu0 %v6052_v11  ;;  %v6906_v59 = vsel %vm6585_vm4, %v492_v33, %v6791_v24 }
  0x81   : > { %4986 = vmatpush3.bf16.msra.mxu1 %v6045_v21  ;;  %v490_v21 = vor.u32 %v489_v43, %v6799_v37  ;;  %v6876_v43 = vshll.u32 %v6839_v10, 16  ;;  %5714 = vmatpush3.bf16.msra.mxu0 %v6052_v11  ;;  %v493_v11 = vrot.slane %v6837_v8, 1  ;;  %9278 = vst [vmem:[#allocation18_spill] sm:$0xff] %v6906_v59 }
  0x82   : > { %4987 = vmatprep.subr.bf16.mxu1 %v6046_v29  ;;  %v6862_v29 = vshrl.u32 %v6839_v10, 16  ;;  %5715 = vmatprep.subr.bf16.mxu0 %v6053_v51 }
  0x84   : > { %v432_v47 = vrot.slane %v6862_v29, 7 }
  0x85   : > { %4988 = vmatpush3.bf16.msra.mxu1 %v6047_v57  ;;  %v6885_v57 = vshrl.u32 %v6801_v38, 16  ;;  %5716 = vmatpush3.bf16.msra.mxu0 %v6053_v51  ;;  %v395_v51 = vor.u32 %v6665_v17, %v392_v53  ;;  %v6953_v53 = vshrl.u32 %v6897_v2, 16 }
  0x86   : > { %852 = vmatmul.mubr.bf16.gmra.mxu0 %v6807_v42  ;;  %5686 = vmatmul.mubr.bf16.gmra.mxu1 %v6816_v50  ;;  %v431_v50 = vor.u32 %v6859_v22, %v428_v39  ;;  %v495_v39 = vrot.slane %v6848_v13, 1 }
  0x87   : > { %859 = vmatprep.mubr.bf16.mxu0 %v6606_v55  ;;  %5689 = vmatprep.mubr.bf16.mxu1 %v6830_v63  ;;  %v6882_v63 = vsel %vm6597_vm5, %v6625_v0, %v391_v12  ;;  %v6051_v0 = vld [vmem:[%s9219_s1] sm:$0xff]   ;;  %v435_v12 = vor.u32 %v6876_v43, %v432_v47  ;;  %v494_v33 = vor.u32 %v493_v11, %v6885_v57 }
  0x88   : > { %4989 = vmatprep.subr.bf16.mxu1 %v6048_v3  ;;  %v6894_v3 = vsel %vm6585_vm4, %v490_v21, %v6778_v15  ;;  %v6054_v21 = vld [vmem:[%s9219_s1 + $0x88] sm:$0xff]   ;;  %v6915_v16 = vsel %vm6597_vm5, %v6853_v19, %v431_v50  ;;  %v6055_v50 = vld [vmem:[%s9219_s1 + $0x80] sm:$0xff]   ;;  %v496_v47 = vor.u32 %v495_v39, %v6888_v46  ;;  %v499_v39 = vrot.slane %v6859_v22, 1 }
  0x89   : > { %9277 = vst [vmem:[#allocation17_spill] sm:$0xff] %v6894_v3  ;;  %4990 = vmatpush3.bf16.msra.mxu1 %v6049_v5  ;;  %v6920_v18 = vsel %vm6597_vm5, %v6862_v29, %v435_v12  ;;  %v6925_v5 = vld [vmem:[%s9219_s1 + $0x238] sm:$0xff]   ;;  %5717 = vmatprep.subr.bf16.mxu0 %v6054_v21  ;;  %v396_v12 = vrot.slane %v6701_v32, 7  ;;  %v6950_v17 = vsel %vm6585_vm4, %v494_v33, %v6837_v8 }
  0x8a   : > { %4991 = vmatprep.subr.bf16.mxu1 %v6050_v36  ;;  %v6937_v36 = vshll.u32 %v6897_v2, 16  ;;  %5718 = vmatpush3.bf16.msra.mxu0 %v6054_v21  ;;  %v500_v33 = vor.u32 %v499_v39, %v6853_v19  ;;  %v420_v39 = vrot.slane %v6888_v46, 7 }
  0x8b   : > { %5719 = vmatprep.subr.bf16.mxu0 %v6055_v50  ;;  %v399_v21 = vor.u32 %v6672_v20, %v396_v12  ;;  %v404_v12 = vrot.slane %v6753_v1, 7 }
  0x8c   : > { %v497_v11 = vrot.slane %v6937_v36, 1  ;;  %v6987_v20 = vsel %vm6585_vm4, %v500_v33, %v6859_v22  ;;  %v6071_v33 = vld [vmem:[%s9219_s1 + $0x220] sm:$0xff]  }
  0x8d   : > { %4992 = vmatpush3.bf16.msra.mxu1 %v6051_v0  ;;  %v6959_v0 = vsel %vm6585_vm4, %v496_v47, %v6848_v13  ;;  %v400_v47 = vrot.slane %v6749_v60, 7 }
  0x8e   : > { %860 = vmatmul.mubr.bf16.gmra.mxu0 %v6882_v63  ;;  %5690 = vmatmul.mubr.bf16.gmra.mxu1 %v6894_v3  ;;  %9279 = vst [vmem:[#allocation19_spill] sm:$0xff] %v6959_v0  ;;  %v501_v3 = vrot.slane %v6876_v43, 1 }
  0x8f   : > { %867 = vmatprep.mubr.bf16.mxu0 %v6650_v9  ;;  %5693 = vmatprep.mubr.bf16.mxu1 %v6906_v59  ;;  %v6945_v59 = vsel %vm6597_vm5, %v6690_v27, %v395_v51  ;;  %v6057_v27 = vld [vmem:[%s9219_s1 + $0x1f8] sm:$0xff]   ;;  %v498_v51 = vor.u32 %v497_v11, %v6953_v53 }
  0x90   : > { %5753 = vmatprep.subr.bf16.mxu1 %v6925_v5  ;;  %5720 = vmatpush3.bf16.msra.mxu0 %v6055_v50  ;;  %v6977_v50 = vsel %vm6597_vm5, %v6701_v32, %v399_v21  ;;  %v403_v32 = vor.u32 %v6719_v41, %v400_v47  ;;  %v502_v19 = vor.u32 %v501_v3, %v6862_v29  ;;  %v408_v41 = vrot.slane %v6799_v37, 7  ;;  %v6061_v21 = vld [vmem:[%s9219_s1 + $0x230] sm:$0xff]   ;;  %v6079_v47 = vld [vmem:[%s9219_s1 + $0x200] sm:$0xff]  }
  0x91   : > { %5113 = vmatprep.subr.bf16.mxu0 %v6057_v27  ;;  %v412_v29 = vrot.slane %v6819_v52, 7  ;;  %v416_v3 = vrot.slane %v6885_v57, 7 }
  0x92   : > { %v6999_v11 = vsel %vm6597_vm5, %v6749_v60, %v403_v32  ;;  %v7004_v22 = vsel %vm6585_vm4, %v502_v19, %v6876_v43  ;;  %v407_v60 = vor.u32 %v6725_v49, %v404_v12  ;;  %v424_v43 = vrot.slane %v6953_v53, 7  ;;  %v6062_v19 = vld [vmem:[%s9219_s1 + $0x1e8] sm:$0xff]   ;;  %v6064_v12 = vld [vmem:[%s9219_s1 + $0x1e0] sm:$0xff]  }
  0x93   : > { %v411_v49 = vor.u32 %v6778_v15, %v408_v41  ;;  %v6074_v15 = vld [vmem:[%s9219_s1 + $0x218] sm:$0xff]   ;;  %v6065_v41 = vld [vmem:[%s9219_s1 + $0x1a0] sm:$0xff]  }
  0x94   : > { %v7019_v27 = vsel %vm6597_vm5, %v6753_v1, %v407_v60  ;;  %v427_v32 = vor.u32 %v6937_v36, %v424_v43  ;;  %v6069_v60 = vld [vmem:[%s9219_s1 + $0x1d0] sm:$0xff]  }
  0x95   : > { %v7036_v1 = vsel %vm6597_vm5, %v6799_v37, %v411_v49  ;;  %v6070_v43 = vld [vmem:[%s9219_s1 + $0x190] sm:$0xff]   ;;  %v6073_v49 = vld [vmem:[%s9219_s1 + $0x188] sm:$0xff]  }
  0x96   : > { %868 = vmatmul.mubr.bf16.gmra.mxu0 %v6945_v59  ;;  %5694 = vmatmul.mubr.bf16.gmra.mxu1 %v6950_v17 }
  0x97   : > { %875 = vmatprep.mubr.bf16.mxu0 %v6657_v14  ;;  %5697 = vmatprep.mubr.bf16.mxu1 %v6959_v0  ;;  %v6982_v0 = vsel %vm6585_vm4, %v498_v51, %v6937_v36  ;;  %v6066_v51 = vld [vmem:[%s9219_s1 + $0x228] sm:$0xff]   ;;  %v6059_v36 = vld [vmem:[%s9219_s1 + $0x1f0] sm:$0xff]  }
  0x9e   : > { %876 = vmatmul.mubr.bf16.gmra.mxu0 %v6977_v50  ;;  %5698 = vmatmul.mubr.bf16.gmra.mxu1 %v6982_v0 }
  0x9f   : > { %883 = vmatprep.mubr.bf16.mxu0 %v6693_v30  ;;  %5701 = vmatprep.mubr.bf16.mxu1 %v6987_v20 }
  0xa6   : > { %884 = vmatmul.mubr.bf16.gmra.mxu0 %v6999_v11  ;;  %5702 = vmatmul.mubr.bf16.gmra.mxu1 %v7004_v22 }
  0xa7   : > { %891 = vmatprep.mubr.bf16.mxu0 %v6704_v35  ;;  %1293 = vmatprep.mubr.bf16.mxu1 %v6558_v28 }
  0xae   : > { %892 = vmatmul.mubr.bf16.gmra.mxu0 %v7019_v27  ;;  %1294 = vmatmul.mubr.bf16.vlgmr.msra.gmra.mxu1 %v6681_v23 }
  0xaf   : > { %899 = vmatprep.mubr.bf16.mxu0 %v6741_v58  ;;  %1301 = vmatprep.mubr.bf16.mxu1 %v6555_v26  ;;  %v415_v26 = vor.u32 %v6791_v24, %v412_v29  ;;  %v419_v24 = vor.u32 %v6837_v8, %v416_v3  ;;  %v423_v8 = vor.u32 %v6848_v13, %v420_v39  ;;  %v6067_v29 = vld [vmem:[%s9219_s1 + $0x1d8] sm:$0xff]   ;;  %v9280_v39 = vld [vmem:[#allocation13_spill] sm:$0xff] }
  0xb0   : > { %5754 = vmatpush3.bf16.msra.mxu1 %v6925_v5  ;;  %v7091_v13 = vsel %vm6597_vm5, %v6953_v53, %v427_v32  ;;  %v6060_v53 = vld [vmem:[%s9219_s1 + $0x1b0] sm:$0xff]   ;;  %v6068_v3 = vld [vmem:[%s9219_s1 + $0x198] sm:$0xff]  }
  0xb1   : > { %5755 = vmatprep.subr.bf16.mxu1 %v6061_v21  ;;  %v7052_v37 = vsel %vm6597_vm5, %v6819_v52, %v415_v26  ;;  %v6078_v52 = vld [vmem:[%s9219_s1 + $0x208] sm:$0xff]   ;;  %v7068_v5 = vsel %vm6597_vm5, %v6885_v57, %v419_v24  ;;  %v7081_v57 = vsel %vm6597_vm5, %v6888_v46, %v423_v8  ;;  %v6058_v46 = vld [vmem:[%s9219_s1 + $0x1b8] sm:$0xff]   ;;  %v9282_v26 = vld [vmem:[#allocation15_spill] sm:$0xff] }
  0xb2   : > { %v9284_v24 = vld [vmem:[#allocation17_spill] sm:$0xff] }
  0xb4   : > { %5756 = vmatpush3.bf16.msra.mxu1 %v6061_v21  ;;  %v6072_v21 = vld [vmem:[%s9219_s1 + $0x1c8] sm:$0xff]  }
  0xb5   : > { %5757 = vmatprep.subr.bf16.mxu1 %v6066_v51 }
  0xb6   : > { %900 = vmatmul.mubr.bf16.gmra.mxu0 %v7036_v1  ;;  %1302 = vmatmul.mubr.bf16.gmra.mxu1 %v6621_v62  ;;  %v6075_v62 = vld [vmem:[%s9219_s1 + $0x210] sm:$0xff]  }
  0xb7   : > { %907 = vmatprep.mubr.bf16.mxu0 %v6764_v6  ;;  %1309 = vmatprep.mubr.bf16.mxu1 %v6558_v28 }
  0xb8   : > { %5758 = vmatpush3.bf16.msra.mxu1 %v6066_v51  ;;  %v6076_v51 = vld [vmem:[%s9219_s1 + $0x1c0] sm:$0xff]  }
  0xb9   : > { %5759 = vmatprep.subr.bf16.mxu1 %v6071_v33 }
  0xbc   : > { %5760 = vmatpush3.bf16.msra.mxu1 %v6071_v33  ;;  %v9281_v33 = vld [vmem:[#allocation14_spill] sm:$0xff] }
  0xbd   : > { %5761 = vmatprep.subr.bf16.mxu1 %v6074_v15 }
  0xbe   : > { %908 = vmatmul.mubr.bf16.gmra.mxu0 %v7052_v37  ;;  %1310 = vmatmul.mubr.bf16.gmra.mxu1 %v6681_v23 }
  0xbf   : > { %915 = vmatprep.mubr.bf16.mxu0 %v6801_v38  ;;  %1317 = vmatprep.mubr.bf16.mxu1 %v6568_v34 }
  0xc0   : > { %5762 = vmatpush3.bf16.msra.mxu1 %v6074_v15  ;;  %v6077_v15 = vld [vmem:[%s9219_s1 + $0x180] sm:$0xff]  }
  0xc1   : > { %5763 = vmatprep.subr.bf16.mxu1 %v6075_v62 }
  0xc4   : > { %5764 = vmatpush3.bf16.msra.mxu1 %v6075_v62  ;;  %v9283_v62 = vld [vmem:[#allocation16_spill] sm:$0xff] }
  0xc5   : > { %5765 = vmatprep.subr.bf16.mxu1 %v6078_v52 }
  0xc6   : > { %916 = vmatmul.mubr.bf16.gmra.mxu0 %v7068_v5  ;;  %1318 = vmatmul.mubr.bf16.gmra.mxu1 %v6738_v54 }
  0xc7   : > { %923 = vmatprep.mubr.bf16.mxu0 %v6810_v45  ;;  %1325 = vmatprep.mubr.bf16.mxu1 %v6579_v40 }
  0xc8   : > { %5766 = vmatpush3.bf16.msra.mxu1 %v6078_v52  ;;  %v9285_v52 = vld [vmem:[#allocation18_spill] sm:$0xff] }
  0xc9   : > { %5767 = vmatprep.subr.bf16.mxu1 %v6079_v47 }
  0xcc   : > { %5768 = vmatpush3.bf16.msra.mxu1 %v6079_v47  ;;  %v9286_v47 = vld [vmem:[#allocation19_spill] sm:$0xff] }
  0xce   : > { %924 = vmatmul.mubr.bf16.gmra.mxu0 %v7081_v57  ;;  %1326 = vmatmul.mubr.bf16.gmra.mxu1 %v6807_v42 }
  0xcf   : > { %931 = vmatprep.mubr.bf16.mxu0 %v6897_v2  ;;  %1333 = vmatprep.mubr.bf16.mxu1 %v6606_v55 }
  0xd6   : > { %932 = vmatmul.mubr.bf16.gmra.mxu0 %v7091_v13  ;;  %1334 = vmatmul.mubr.bf16.gmra.mxu1 %v6882_v63 }
  0xd7   : > { %939 = vmatprep.mubr.bf16.mxu0 %v6825_v56  ;;  %1341 = vmatprep.mubr.bf16.mxu1 %v6650_v9 }
  0xde   : > { %940 = vmatmul.mubr.bf16.gmra.mxu0 %v6915_v16  ;;  %1342 = vmatmul.mubr.bf16.gmra.mxu1 %v6945_v59 }
  0xdf   : > { %947 = vmatprep.mubr.bf16.mxu0 %v6839_v10  ;;  %1349 = vmatprep.mubr.bf16.mxu1 %v6657_v14 }
  0xe6   : > { %948 = vmatmul.mubr.bf16.gmra.mxu0 %v6920_v18  ;;  %1350 = vmatmul.mubr.bf16.gmra.mxu1 %v6977_v50 }
  0xe7   : > { %1357 = vmatprep.mubr.bf16.mxu1 %v6693_v30  ;;  %5721 = vmatprep.mubr.bf16.mxu0 %v6635_v4 }
  0xee   : > { %1358 = vmatmul.mubr.bf16.gmra.mxu1 %v6999_v11  ;;  %5722 = vmatmul.mubr.bf16.vlgmr.msra.gmra.mxu0 %v6617_v61  ;;  %v6063_v61 = vld [vmem:[%s9219_s1 + $0x1a8] sm:$0xff]  }
  0xef   : > { %5114 = vmatpush3.bf16.msra.mxu0 %v6058_v46  ;;  %1365 = vmatprep.mubr.bf16.mxu1 %v6704_v35 }
  0xf0   : > { %5725 = vmatprep.mubr.bf16.mxu0 %v6635_v4  ;;  %5115 = vmatprep.subr.bf16.mxu0 %v6059_v36 }
  0xf3   : > { %5116 = vmatpush3.bf16.msra.mxu0 %v6060_v53 }
  0xf4   : > { %5117 = vmatprep.subr.bf16.mxu0 %v6062_v19 }
  0xf6   : > { %1366 = vmatmul.mubr.bf16.gmra.mxu1 %v7019_v27  ;;  %5726 = vmatmul.mubr.bf16.gmra.mxu0 %v6648_v7 }
  0xf7   : > { %1373 = vmatprep.mubr.bf16.mxu1 %v6741_v58  ;;  %5729 = vmatprep.mubr.bf16.mxu0 %v6687_v25 }
  0xf8   : > { %5118 = vmatpush3.bf16.msra.mxu0 %v6063_v61 }
  0xf9   : > { %5119 = vmatprep.subr.bf16.mxu0 %v6064_v12 }
  0xfc   : > { %5120 = vmatpush3.bf16.msra.mxu0 %v6065_v41 }
  0xfd   : > { %5121 = vmatprep.subr.bf16.mxu0 %v6067_v29 }
  0xfe   : > { %1374 = vmatmul.mubr.bf16.gmra.mxu1 %v7036_v1  ;;  %5730 = vmatmul.mubr.bf16.gmra.mxu0 %v6698_v31 }
  0xff   : > { %1381 = vmatprep.mubr.bf16.mxu1 %v6764_v6  ;;  %5733 = vmatprep.mubr.bf16.mxu0 %v9280_v39 }
 0x100   : > { %5122 = vmatpush3.bf16.msra.mxu0 %v6068_v3 }
 0x101   : > { %5123 = vmatprep.subr.bf16.mxu0 %v6069_v60 }
 0x104   : > { %5124 = vmatpush3.bf16.msra.mxu0 %v6070_v43 }
 0x105   : > { %5125 = vmatprep.subr.bf16.mxu0 %v6072_v21 }
 0x106   : > { %1382 = vmatmul.mubr.bf16.gmra.mxu1 %v7052_v37  ;;  %5734 = vmatmul.mubr.bf16.gmra.mxu0 %v9281_v33 }
 0x107   : > { %1389 = vmatprep.mubr.bf16.mxu1 %v6801_v38  ;;  %5737 = vmatprep.mubr.bf16.mxu0 %v9282_v26 }
 0x108   : > { %5126 = vmatpush3.bf16.msra.mxu0 %v6073_v49 }
 0x109   : > { %5127 = vmatprep.subr.bf16.mxu0 %v6076_v51 }
 0x10c   : > { %5128 = vmatpush3.bf16.msra.mxu0 %v6077_v15 }
 0x10e   : > { %1390 = vmatmul.mubr.bf16.gmra.mxu1 %v7068_v5  ;;  %5738 = vmatmul.mubr.bf16.gmra.mxu0 %v9283_v62 }
 0x10f   : > { %1397 = vmatprep.mubr.bf16.mxu1 %v6810_v45  ;;  %5741 = vmatprep.mubr.bf16.mxu0 %v9284_v24 }
 0x116   : > { %1398 = vmatmul.mubr.bf16.gmra.mxu1 %v7081_v57  ;;  %5742 = vmatmul.mubr.bf16.gmra.mxu0 %v9285_v52 }
 0x117   : > { %1405 = vmatprep.mubr.bf16.mxu1 %v6897_v2  ;;  %5745 = vmatprep.mubr.bf16.mxu0 %v6950_v17 }
 0x11e   : > { %1406 = vmatmul.mubr.bf16.gmra.mxu1 %v7091_v13  ;;  %5746 = vmatmul.mubr.bf16.gmra.mxu0 %v9286_v47 }
 0x11f   : > { %1413 = vmatprep.mubr.bf16.mxu1 %v6825_v56  ;;  %5749 = vmatprep.mubr.bf16.mxu0 %v6982_v0 }
 0x126   : > { %1414 = vmatmul.mubr.bf16.gmra.mxu1 %v6915_v16  ;;  %5750 = vmatmul.mubr.bf16.gmra.mxu0 %v6987_v20 }
 0x127   : > { %1808 = vmatprep.mubr.bf16.mxu0 %v6558_v28  ;;  %5769 = vmatprep.mubr.bf16.mxu1 %v6635_v4 }
 0x12e   : > { %v4857_v8 = vpop.f32.mrf.mxu0  ;;  %v5675_v32 = vpop.f32.mrf.mxu1  ;;  %1809 = vmatmul.mubr.bf16.vlgmr.msra.gmra.mxu0 %v6681_v23  ;;  %5770 = vmatmul.mubr.bf16.vlgmr.msra.gmra.mxu1 %v6648_v7 }
 0x12f   : > { %1816 = vmatprep.mubr.bf16.mxu0 %v6568_v34  ;;  %5773 = vmatprep.mubr.bf16.mxu1 %v6687_v25 }
 0x130   : > { %v4858_v46 = vpop.f32.mrf.mxu0  ;;  %v990_v36 = vpop.f32.mrf.mxu1 }
 0x131   : > { %v4859_v53 = vadd.f32 %v4858_v46, %v4857_v8 }
 0x132   : > { %v4860_v19 = vpop.f32.mrf.mxu0  ;;  %v5676_v61 = vpop.f32.mrf.mxu1 }
 0x133   : > { %v7186_v12 = vadd.f32 %v4859_v53, %v990_v36 }
 0x134   : > { %v4861_v28 = vpop.f32.mrf.mxu0  ;;  %v993_v41 = vpop.f32.mrf.mxu1 }
 0x135   : > { %v4862_v4 = vadd.f32 %v4861_v28, %v4860_v19 }
 0x136   : > { %v4863_v29 = vpop.f32.mrf.mxu0  ;;  %v5679_v3 = vpop.f32.mrf.mxu1  ;;  %1817 = vmatmul.mubr.bf16.gmra.mxu0 %v6738_v54  ;;  %5774 = vmatmul.mubr.bf16.gmra.mxu1 %v6698_v31 }
 0x137   : > { %v7190_v7 = vadd.f32 %v4862_v4, %v993_v41  ;;  %1824 = vmatprep.mubr.bf16.mxu0 %v6579_v40  ;;  %5777 = vmatprep.mubr.bf16.mxu1 %v9280_v39 }
 0x138   : > { %v4864_v34 = vpop.f32.mrf.mxu0  ;;  %v1006_v23 = vpop.f32.mrf.mxu1 }
 0x139   : > { %v4865_v25 = vadd.f32 %v4864_v34, %v4863_v29 }
 0x13a   : > { %v4866_v60 = vpop.f32.mrf.mxu0  ;;  %v5680_v43 = vpop.f32.mrf.mxu1 }
 0x13b   : > { %v7194_v21 = vadd.f32 %v5675_v32, %v4865_v25 }
 0x13c   : > { %v4867_v49 = vpop.f32.mrf.mxu0  ;;  %v1009_v51 = vpop.f32.mrf.mxu1 }
 0x13d   : > { %v4868_v15 = vadd.f32 %v4867_v49, %v4866_v60 }
 0x13e   : > { %v4869_v8 = vpop.f32.mrf.mxu0  ;;  %v5683_v54 = vpop.f32.mrf.mxu1  ;;  %1825 = vmatmul.mubr.bf16.gmra.mxu0 %v6807_v42  ;;  %5778 = vmatmul.mubr.bf16.gmra.mxu1 %v9281_v33 }
 0x13f   : > { %v7198_v31 = vadd.f32 %v5676_v61, %v4868_v15  ;;  %1832 = vmatprep.mubr.bf16.mxu0 %v6606_v55  ;;  %5781 = vmatprep.mubr.bf16.mxu1 %v9282_v26 }
 0x140   : > { %v4870_v40 = vpop.f32.mrf.mxu0  ;;  %v1022_v39 = vpop.f32.mrf.mxu1 }
 0x141   : > { %v4871_v46 = vadd.f32 %v4870_v40, %v4869_v8 }
 0x142   : > { %v4872_v32 = vpop.f32.mrf.mxu0  ;;  %v5684_v36 = vpop.f32.mrf.mxu1 }
 0x143   : > { %v7202_v53 = vadd.f32 %v4871_v46, %v1006_v23 }
 0x144   : > { %v4873_v19 = vpop.f32.mrf.mxu0  ;;  %v1025_v28 = vpop.f32.mrf.mxu1 }
 0x145   : > { %v4874_v41 = vadd.f32 %v4873_v19, %v4872_v32 }
 0x146   : > { %v4875_v4 = vpop.f32.mrf.mxu0  ;;  %v7204_v42 = vpop.f32.mrf.mxu1  ;;  %1833 = vmatmul.mubr.bf16.gmra.mxu0 %v6882_v63  ;;  %5782 = vmatmul.mubr.bf16.gmra.mxu1 %v9283_v62 }
 0x147   : > { %v7208_v55 = vadd.f32 %v4874_v41, %v1009_v51  ;;  %1840 = vmatprep.mubr.bf16.mxu0 %v6650_v9  ;;  %5785 = vmatprep.mubr.bf16.mxu1 %v9284_v24 }
 0x148   : > { %v4876_v33 = vpop.f32.mrf.mxu0  ;;  %v1038_v26 = vpop.f32.mrf.mxu1 }
 0x149   : > { %v4877_v61 = vadd.f32 %v4876_v33, %v4875_v4 }
 0x14a   : > { %v4878_v29 = vpop.f32.mrf.mxu0  ;;  %v7212_v34 = vpop.f32.mrf.mxu1 }
 0x14b   : > { %v7214_v23 = vadd.f32 %v5679_v3, %v4877_v61 }
 0x14c   : > { %v4879_v25 = vpop.f32.mrf.mxu0  ;;  %v1041_v60 = vpop.f32.mrf.mxu1 }
 0x14d   : > { %v4880_v49 = vadd.f32 %v4879_v25, %v4878_v29 }
 0x14e   : > { %v4881_v63 = vpop.f32.mrf.mxu0  ;;  %v7216_v15 = vpop.f32.mrf.mxu1  ;;  %1841 = vmatmul.mubr.bf16.gmra.mxu0 %v6945_v59  ;;  %5786 = vmatmul.mubr.bf16.gmra.mxu1 %v9285_v52 }
 0x14f   : > { %v7220_v9 = vadd.f32 %v5680_v43, %v4880_v49  ;;  %1848 = vmatprep.mubr.bf16.mxu0 %v6657_v14  ;;  %5789 = vmatprep.mubr.bf16.mxu1 %v6950_v17 }
 0x150   : > { %v4882_v62 = vpop.f32.mrf.mxu0  ;;  %v7224_v24 = vpop.f32.mrf.mxu1 }
 0x151   : > { %v4883_v3 = vadd.f32 %v4882_v62, %v4881_v63 }
 0x152   : > { %v4884_v51 = vpop.f32.mrf.mxu0  ;;  %v7226_v8 = vpop.f32.mrf.mxu1 }
 0x153   : > { %v7228_v40 = vadd.f32 %v4883_v3, %v1022_v39 }
 0x154   : > { %v4885_v46 = vpop.f32.mrf.mxu0  ;;  %v7230_v32 = vpop.f32.mrf.mxu1 }
 0x155   : > { %v4886_v59 = vadd.f32 %v4885_v46, %v4884_v51 }
 0x156   : > { %v4887_v52 = vpop.f32.mrf.mxu0  ;;  %v7232_v43 = vpop.f32.mrf.mxu1  ;;  %1849 = vmatmul.mubr.bf16.gmra.mxu0 %v6977_v50  ;;  %5790 = vmatmul.mubr.bf16.gmra.mxu1 %v9286_v47 }
 0x157   : > { %v7236_v14 = vadd.f32 %v4886_v59, %v1025_v28  ;;  %1856 = vmatprep.mubr.bf16.mxu0 %v6693_v30  ;;  %5793 = vmatprep.mubr.bf16.mxu1 %v6982_v0 }
 0x158   : > { %v4888_v17 = vpop.f32.mrf.mxu0  ;;  %v7240_v39 = vpop.f32.mrf.mxu1 }
 0x159   : > { %v4889_v19 = vadd.f32 %v4888_v17, %v4887_v52 }
 0x15a   : > { %v4890_v41 = vpop.f32.mrf.mxu0  ;;  %v7242_v4 = vpop.f32.mrf.mxu1 }
 0x15b   : > { %v7244_v33 = vadd.f32 %v5683_v54, %v4889_v19 }
 0x15c   : > { %v4891_v61 = vpop.f32.mrf.mxu0  ;;  %v7246_v29 = vpop.f32.mrf.mxu1 }
 0x15d   : > { %v4892_v50 = vadd.f32 %v4891_v61, %v4890_v41 }
 0x15e   : > { %v4893_v47 = vpop.f32.mrf.mxu0  ;;  %v7248_v28 = vpop.f32.mrf.mxu1  ;;  %1857 = vmatmul.mubr.bf16.gmra.mxu0 %v6999_v11  ;;  %5794 = vmatmul.mubr.bf16.gmra.mxu1 %v6987_v20 }
 0x15f   : > { %v7252_v30 = vadd.f32 %v5684_v36, %v4892_v50  ;;  %1864 = vmatprep.mubr.bf16.mxu0 %v6704_v35  ;;  %5797 = vmatprep.mubr.bf16.mxu1 %v7004_v22 }
 0x160   : > { %v4894_v0 = vpop.f32.mrf.mxu0  ;;  %v7256_v54 = vpop.f32.mrf.mxu1 }
 0x161   : > { %v4895_v25 = vadd.f32 %v4894_v0, %v4893_v47 }
 0x162   : > { %v4896_v49 = vpop.f32.mrf.mxu0  ;;  %v7258_v63 = vpop.f32.mrf.mxu1 }
 0x163   : > { %v7260_v62 = vadd.f32 %v4895_v25, %v1038_v26 }
 0x164   : > { %v4897_v3 = vpop.f32.mrf.mxu0  ;;  %v7262_v51 = vpop.f32.mrf.mxu1 }
 0x165   : > { %v4898_v11 = vadd.f32 %v4897_v3, %v4896_v49 }
 0x166   : > { %v4899_v46 = vpop.f32.mrf.mxu0  ;;  %v7264_v36 = vpop.f32.mrf.mxu1  ;;  %1865 = vmatmul.mubr.bf16.gmra.mxu0 %v7019_v27  ;;  %5798 = vmatmul.mubr.bf16.gmra.mxu1 %v6987_v20 }
 0x167   : > { %v7268_v35 = vadd.f32 %v4898_v11, %v1041_v60  ;;  %1872 = vmatprep.mubr.bf16.mxu0 %v6741_v58 }
 0x168   : > { %v4900_v22 = vpop.f32.mrf.mxu0  ;;  %v7271_v59 = vpop.f32.mrf.mxu1 }
 0x169   : > { %v4901_v26 = vadd.f32 %v4900_v22, %v4899_v46 }
 0x16a   : > { %v4902_v52 = vpop.f32.mrf.mxu0  ;;  %v7273_v17 = vpop.f32.mrf.mxu1 }
 0x16b   : > { %v7276_v19 = vadd.f32 %v7204_v42, %v4901_v26 }
 0x16c   : > { %v4903_v41 = vpop.f32.mrf.mxu0  ;;  %v7278_v61 = vpop.f32.mrf.mxu1 }
 0x16d   : > { %v4904_v27 = vadd.f32 %v4903_v41, %v4902_v52 }
 0x16e   : > { %v4905_v50 = vpop.f32.mrf.mxu0  ;;  %v4993_v20 = vpop.f32.mrf.mxu1  ;;  %1873 = vmatmul.mubr.bf16.gmra.mxu0 %v7036_v1 }
 0x16f   : > { %v7282_v58 = vadd.f32 %v7212_v34, %v4904_v27  ;;  %1880 = vmatprep.mubr.bf16.mxu0 %v6764_v6 }
 0x170   : > { %v4906_v60 = vpop.f32.mrf.mxu0  ;;  %v4994_v47 = vpop.f32.mrf.mxu1 }
 0x171   : > { %v4907_v0 = vadd.f32 %v4906_v60, %v4905_v50  ;;  %v4995_v25 = vadd.f32 %v4994_v47, %v4993_v20 }
 0x172   : > { %v4908_v49 = vpop.f32.mrf.mxu0  ;;  %v4996_v42 = vpop.f32.mrf.mxu1 }
 0x173   : > { %v7286_v3 = vadd.f32 %v4907_v0, %v7224_v24  ;;  %v7289_v11 = vadd.f32 %v4995_v25, %v7186_v12 }
 0x174   : > { %v4909_v46 = vpop.f32.mrf.mxu0  ;;  %v4997_v22 = vpop.f32.mrf.mxu1 }
 0x175   : > { %v7291_v1 = vadd.f32 %v4909_v46, %v4908_v49  ;;  %v4998_v34 = vadd.f32 %v4997_v22, %v4996_v42 }
 0x176   : > { %v4911_v26 = vpop.f32.mrf.mxu0  ;;  %v4999_v52 = vpop.f32.mrf.mxu1  ;;  %1881 = vmatmul.mubr.bf16.gmra.mxu0 %v7052_v37 }
 0x177   : > { %1888 = vmatprep.mubr.bf16.mxu0 %v6801_v38  ;;  %v7296_v6 = vadd.f32 %v4998_v34, %v7190_v7 }
 0x178   : > { %v4912_v41 = vpop.f32.mrf.mxu0  ;;  %v5000_v24 = vpop.f32.mrf.mxu1 }
 0x179   : > { %v4913_v27 = vadd.f32 %v4912_v41, %v4911_v26  ;;  %v5001_v50 = vadd.f32 %v5000_v24, %v4999_v52 }
 0x17a   : > { %v4914_v12 = vpop.f32.mrf.mxu0  ;;  %v5002_v20 = vpop.f32.mrf.mxu1 }
 0x17b   : > { %v7299_v60 = vadd.f32 %v7216_v15, %v4913_v27  ;;  %v7302_v47 = vadd.f32 %v5001_v50, %v7194_v21 }
 0x17c   : > { %v4915_v0 = vpop.f32.mrf.mxu0  ;;  %v5003_v25 = vpop.f32.mrf.mxu1 }
 0x17d   : > { %v4916_v37 = vadd.f32 %v4915_v0, %v4914_v12  ;;  %v5004_v49 = vadd.f32 %v5003_v25, %v5002_v20 }
 0x17e   : > { %v4917_v38 = vpop.f32.mrf.mxu0  ;;  %v5005_v42 = vpop.f32.mrf.mxu1  ;;  %1889 = vmatmul.mubr.bf16.gmra.mxu0 %v7068_v5 }
 0x17f   : > { %v7306_v7 = vadd.f32 %v7226_v8, %v4916_v37  ;;  %1896 = vmatprep.mubr.bf16.mxu0 %v6810_v45  ;;  %v7310_v46 = vadd.f32 %v5004_v49, %v7198_v31 }
 0x180   : > { %v4918_v15 = vpop.f32.mrf.mxu0  ;;  %v5006_v22 = vpop.f32.mrf.mxu1 }
 0x181   : > { %v4919_v21 = vadd.f32 %v4918_v15, %v4917_v38  ;;  %v5007_v34 = vadd.f32 %v5006_v22, %v5005_v42 }
 0x182   : > { %v4920_v26 = vpop.f32.mrf.mxu0  ;;  %v5008_v52 = vpop.f32.mrf.mxu1 }
 0x183   : > { %v7313_v41 = vadd.f32 %v4919_v21, %v7240_v39  ;;  %v7316_v24 = vadd.f32 %v5007_v34, %v7202_v53 }
 0x184   : > { %v4921_v5 = vpop.f32.mrf.mxu0  ;;  %v5009_v8 = vpop.f32.mrf.mxu1 }
 0x185   : > { %v7318_v27 = vadd.f32 %v4921_v5, %v4920_v26  ;;  %v5010_v45 = vadd.f32 %v5009_v8, %v5008_v52 }
 0x186   : > { %v4923_v50 = vpop.f32.mrf.mxu0  ;;  %v5011_v31 = vpop.f32.mrf.mxu1  ;;  %1897 = vmatmul.mubr.bf16.gmra.mxu0 %v7081_v57 }
 0x187   : > { %1904 = vmatprep.mubr.bf16.mxu0 %v6897_v2  ;;  %v7323_v12 = vadd.f32 %v5010_v45, %v7208_v55 }
 0x188   : > { %v4924_v20 = vpop.f32.mrf.mxu0  ;;  %v5012_v39 = vpop.f32.mrf.mxu1 }
 0x189   : > { %v4925_v0 = vadd.f32 %v4924_v20, %v4923_v50  ;;  %v5013_v25 = vadd.f32 %v5012_v39, %v5011_v31 }
 0x18a   : > { %v4926_v53 = vpop.f32.mrf.mxu0  ;;  %v5014_v37 = vpop.f32.mrf.mxu1 }
 0x18b   : > { %v7326_v49 = vadd.f32 %v7232_v43, %v4925_v0  ;;  %v7329_v38 = vadd.f32 %v5013_v25, %v7214_v23 }
 0x18c   : > { %v4927_v42 = vpop.f32.mrf.mxu0  ;;  %v5015_v15 = vpop.f32.mrf.mxu1 }
 0x18d   : > { %v4928_v57 = vadd.f32 %v4927_v42, %v4926_v53  ;;  %v5016_v22 = vadd.f32 %v5015_v15, %v5014_v37 }
 0x18e   : > { %v4929_v2 = vpop.f32.mrf.mxu0  ;;  %v5017_v21 = vpop.f32.mrf.mxu1  ;;  %1905 = vmatmul.mubr.bf16.gmra.mxu0 %v7091_v13 }
 0x18f   : > { %v7333_v55 = vadd.f32 %v7242_v4, %v4928_v57  ;;  %1912 = vmatprep.mubr.bf16.mxu0 %v6825_v56  ;;  %v7337_v34 = vadd.f32 %v5016_v22, %v7220_v9 }
 0x190   : > { %v4930_v43 = vpop.f32.mrf.mxu0  ;;  %v5018_v26 = vpop.f32.mrf.mxu1 }
 0x191   : > { %v4931_v23 = vadd.f32 %v4930_v43, %v4929_v2  ;;  %v5019_v52 = vadd.f32 %v5018_v26, %v5017_v21 }
 0x192   : > { %v7339_v5 = vpop.f32.mrf.mxu0  ;;  %v5020_v8 = vpop.f32.mrf.mxu1 }
 0x193   : > { %v7342_v45 = vadd.f32 %v4931_v23, %v7256_v54  ;;  %v7345_v13 = vadd.f32 %v5019_v52, %v7228_v40 }
 0x194   : > { %v7347_v4 = vpop.f32.mrf.mxu0  ;;  %v5021_v50 = vpop.f32.mrf.mxu1 }
 0x195   : > { %v5022_v31 = vadd.f32 %v5021_v50, %v5020_v8 }
 0x196   : > { %v4935_v20 = vpop.f32.mrf.mxu0  ;;  %v5023_v9 = vpop.f32.mrf.mxu1  ;;  %1913 = vmatmul.mubr.bf16.gmra.mxu0 %v6915_v16 }
 0x197   : > { %1920 = vmatprep.mubr.bf16.mxu0 %v6839_v10  ;;  %v7352_v39 = vadd.f32 %v5022_v31, %v7236_v14 }
 0x198   : > { %v4936_v0 = vpop.f32.mrf.mxu0  ;;  %v5024_v25 = vpop.f32.mrf.mxu1 }
 0x199   : > { %v4937_v54 = vadd.f32 %v4936_v0, %v4935_v20  ;;  %v5025_v53 = vadd.f32 %v5024_v25, %v5023_v9 }
 0x19a   : > { %v4938_v37 = vpop.f32.mrf.mxu0  ;;  %v5026_v40 = vpop.f32.mrf.mxu1 }
 0x19b   : > { %v7355_v42 = vadd.f32 %v7248_v28, %v4937_v54  ;;  %v7358_v15 = vadd.f32 %v5025_v53, %v7244_v33 }
 0x19c   : > { %v4939_v57 = vpop.f32.mrf.mxu0  ;;  %v5027_v22 = vpop.f32.mrf.mxu1 }
 0x19d   : > { %v4940_v2 = vadd.f32 %v4939_v57, %v4938_v37  ;;  %v5028_v21 = vadd.f32 %v5027_v22, %v5026_v40 }
 0x19e   : > { %v4941_v10 = vpop.f32.mrf.mxu0  ;;  %v5029_v43 = vpop.f32.mrf.mxu1  ;;  %1921 = vmatmul.mubr.bf16.gmra.mxu0 %v6920_v18 }
 0x19f   : > { %v7362_v14 = vadd.f32 %v7258_v63, %v4940_v2  ;;  %1928 = vmatprep.mubr.bf16.mxu0 %v6825_v56  ;;  %v7366_v26 = vadd.f32 %v5028_v21, %v7252_v30 }
 0x1a0   : > { %v4942_v28 = vpop.f32.mrf.mxu0  ;;  %v5030_v23 = vpop.f32.mrf.mxu1 }
 0x1a1   : > { %v4943_v33 = vadd.f32 %v4942_v28, %v4941_v10  ;;  %v5031_v52 = vadd.f32 %v5030_v23, %v5029_v43 }
 0x1a2   : > { %v7368_v8 = vpop.f32.mrf.mxu0  ;;  %v5032_v50 = vpop.f32.mrf.mxu1 }
 0x1a3   : > { %v7371_v31 = vadd.f32 %v4943_v33, %v7271_v59  ;;  %v7374_v18 = vadd.f32 %v5031_v52, %v7260_v62 }
 0x1a4   : > { %v7376_v63 = vpop.f32.mrf.mxu0  ;;  %v5033_v20 = vpop.f32.mrf.mxu1 }
 0x1a5   : > { %v5034_v56 = vadd.f32 %v5033_v20, %v5032_v50 }
 0x1a6   : > { %v4947_v9 = vpop.f32.mrf.mxu0  ;;  %v5035_v30 = vpop.f32.mrf.mxu1  ;;  %1929 = vmatmul.mubr.bf16.gmra.mxu0 %v6915_v16 }
 0x1a7   : > { %v7380_v0 = vadd.f32 %v5034_v56, %v7268_v35 }
 0x1a8   : > { %v4948_v25 = vpop.f32.mrf.mxu0  ;;  %v5036_v54 = vpop.f32.mrf.mxu1 }
 0x1a9   : > { %v7382_v53 = vadd.f32 %v4948_v25, %v4947_v9  ;;  %v5037_v59 = vadd.f32 %v5036_v54, %v5035_v30 }
 0x1aa   : > { %v7384_v37 = vpop.f32.mrf.mxu0  ;;  %v5038_v62 = vpop.f32.mrf.mxu1 }
 0x1ab   : > { %v1352_v40 = vadd.f32 %v5037_v59, %v7276_v19 }
 0x1ac   : > { %v7387_v57 = vpop.f32.mrf.mxu0  ;;  %v5039_v22 = vpop.f32.mrf.mxu1 }
 0x1ad   : > { %v5040_v2 = vadd.f32 %v5039_v22, %v5038_v62 }
 0x1ae   : > { %v5041_v21 = vpop.f32.mrf.mxu1  ;;  %v5723_v10 = vpop.f32.mrf.mxu0 }
 0x1af   : > { %v7390_v16 = vadd.f32 %v5723_v10, %v7302_v47  ;;  %v1355_v35 = vadd.f32 %v5040_v2, %v7282_v58  ;;  %v1058_v47 = vadd.f32 %v7291_v1, %v7230_v32 }
 0x1b0   : > { %v5042_v43 = vpop.f32.mrf.mxu1  ;;  %v1456_v28 = vpop.f32.mrf.mxu0 }
 0x1b1   : > { %v5043_v23 = vadd.f32 %v5042_v43, %v5041_v21  ;;  %v7394_v33 = vadd.f32 %v1456_v28, %v7289_v11 }
 0x1b2   : > { %v5044_v52 = vpop.f32.mrf.mxu1  ;;  %v5724_v50 = vpop.f32.mrf.mxu0 }
 0x1b3   : > { %v7397_v19 = vadd.f32 %v5724_v50, %v7310_v46  ;;  %v1360_v20 = vadd.f32 %v5043_v23, %v7286_v3 }
 0x1b4   : > { %v5045_v56 = vpop.f32.mrf.mxu1  ;;  %v7400_v9 = vpop.f32.mrf.mxu0 }
 0x1b5   : > { %v5046_v58 = vadd.f32 %v5045_v56, %v5044_v52 }
 0x1b6   : > { %v5047_v30 = vpop.f32.mrf.mxu1  ;;  %v5727_v25 = vpop.f32.mrf.mxu0 }
 0x1b7   : > { %v7405_v54 = vadd.f32 %v5727_v25, %v7329_v38  ;;  %v7407_v11 = vadd.f32 %v5046_v58, %v1058_v47 }
 0x1b8   : > { %v5048_v59 = vpop.f32.mrf.mxu1  ;;  %v1472_v62 = vpop.f32.mrf.mxu0 }
 0x1b9   : > { %9287 = vst [vmem:[#allocation13_spill] sm:$0xff] %v7407_v11  ;;  %v5049_v46 = vadd.f32 %v5048_v59, %v5047_v30  ;;  %v7410_v22 = vadd.f32 %v1472_v62, %v7316_v24 }
 0x1ba   : > { %v5050_v3 = vpop.f32.mrf.mxu1  ;;  %v5728_v2 = vpop.f32.mrf.mxu0 }
 0x1bb   : > { %v7413_v21 = vadd.f32 %v5728_v2, %v7337_v34  ;;  %v1368_v32 = vadd.f32 %v5049_v46, %v7299_v60 }
 0x1bc   : > { %v5051_v1 = vpop.f32.mrf.mxu1  ;;  %v7416_v10 = vpop.f32.mrf.mxu0 }
 0x1bd   : > { %v5052_v38 = vadd.f32 %v5051_v1, %v5050_v3 }
 0x1be   : > { %v5053_v43 = vpop.f32.mrf.mxu1  ;;  %v5731_v28 = vpop.f32.mrf.mxu0 }
 0x1bf   : > { %v7419_v23 = vadd.f32 %v5731_v28, %v7358_v15  ;;  %v1371_v52 = vadd.f32 %v5052_v38, %v7306_v7  ;;  %v1074_v15 = vadd.f32 %v7318_v27, %v7246_v29 }
 0x1c0   : > { %v5054_v24 = vpop.f32.mrf.mxu1  ;;  %v1488_v50 = vpop.f32.mrf.mxu0 }
 0x1c1   : > { %v5055_v56 = vadd.f32 %v5054_v24, %v5053_v43  ;;  %v7423_v47 = vadd.f32 %v1488_v50, %v7345_v13 }
 0x1c2   : > { %v5056_v34 = vpop.f32.mrf.mxu1  ;;  %v5732_v58 = vpop.f32.mrf.mxu0 }
 0x1c3   : > { %v7426_v60 = vadd.f32 %v5732_v58, %v7366_v26  ;;  %v1376_v30 = vadd.f32 %v5055_v56, %v7313_v41 }
 0x1c4   : > { %v5057_v25 = vpop.f32.mrf.mxu1  ;;  %v7429_v59 = vpop.f32.mrf.mxu0 }
 0x1c5   : > { %v5058_v7 = vadd.f32 %v5057_v25, %v5056_v34 }
 0x1c6   : > { %v5059_v62 = vpop.f32.mrf.mxu1  ;;  %v5735_v46 = vpop.f32.mrf.mxu0 }
 0x1c7   : > { %v7433_v3 = vadd.f32 %v5735_v46, %v1352_v40  ;;  %v7435_v13 = vadd.f32 %v5058_v7, %v1074_v15 }
 0x1c8   : > { %v5060_v2 = vpop.f32.mrf.mxu1  ;;  %v1504_v1 = vpop.f32.mrf.mxu0 }
 0x1c9   : > { %9288 = vst [vmem:[#allocation14_spill] sm:$0xff] %v7435_v13  ;;  %v5061_v38 = vadd.f32 %v5060_v2, %v5059_v62  ;;  %v7438_v26 = vadd.f32 %v1504_v1, %v7374_v18  ;;  %v4934_v18 = vadd.f32 %v7347_v4, %v7339_v5 }
 0x1ca   : > { %v5062_v41 = vpop.f32.mrf.mxu1  ;;  %v5736_v43 = vpop.f32.mrf.mxu0 }
 0x1cb   : > { %v7440_v28 = vadd.f32 %v5736_v43, %v1355_v35  ;;  %v1384_v24 = vadd.f32 %v5061_v38, %v7326_v49 }
 0x1cc   : > { %v5063_v29 = vpop.f32.mrf.mxu1  ;;  %v7443_v27 = vpop.f32.mrf.mxu0 }
 0x1cd   : > { %v5064_v50 = vadd.f32 %v5063_v29, %v5062_v41 }
 0x1ce   : > { %v5065_v40 = vpop.f32.mrf.mxu1  ;;  %v5739_v56 = vpop.f32.mrf.mxu0 }
 0x1cf   : > { %v7445_v34 = vadd.f32 %v5739_v56, %v1368_v32  ;;  %v1387_v58 = vadd.f32 %v5064_v50, %v7333_v55  ;;  %v1090_v32 = vadd.f32 %v4934_v18, %v7262_v51 }
 0x1d0   : > { %v5066_v25 = vpop.f32.mrf.mxu1  ;;  %v1520_v15 = vpop.f32.mrf.mxu0 }
 0x1d1   : > { %9289 = vst [vmem:[#allocation15_spill] sm:$0xff] %v7445_v34  ;;  %v5067_v7 = vadd.f32 %v5066_v25, %v5065_v40  ;;  %v7450_v35 = vadd.f32 %v1520_v15, %v1360_v20 }
 0x1d2   : > { %v5068_v62 = vpop.f32.mrf.mxu1  ;;  %v5740_v49 = vpop.f32.mrf.mxu0 }
 0x1d3   : > { %9290 = vst [vmem:[#allocation16_spill] sm:$0xff] %v7450_v35  ;;  %v7452_v46 = vadd.f32 %v5740_v49, %v1371_v52  ;;  %v1392_v2 = vadd.f32 %v5067_v7, %v7342_v45 }
 0x1d4   : > { %v5069_v1 = vpop.f32.mrf.mxu1  ;;  %v7455_v38 = vpop.f32.mrf.mxu0 }
 0x1d5   : > { %9291 = vst [vmem:[#allocation17_spill] sm:$0xff] %v7452_v46  ;;  %9292 = vst [vmem:[#allocation18_spill] sm:$0xff] %v7455_v38  ;;  %v5070_v55 = vadd.f32 %v5069_v1, %v5068_v62 }
 0x1d6   : > { %v5071_v41 = vpop.f32.mrf.mxu1  ;;  %v5743_v43 = vpop.f32.mrf.mxu0 }
 0x1d7   : > { %v7458_v29 = vadd.f32 %v5743_v43, %v1384_v24  ;;  %v7460_v5 = vadd.f32 %v5070_v55, %v1090_v32 }
 0x1d8   : > { %v5072_v4 = vpop.f32.mrf.mxu1  ;;  %v1536_v20 = vpop.f32.mrf.mxu0 }
 0x1d9   : > { %9293 = vst [vmem:[#allocation19_spill] sm:$0xff] %v7458_v29  ;;  %9294 = vst [vmem:[#allocation20_spill] sm:$0xff] %v7460_v5  ;;  %v5073_v50 = vadd.f32 %v5072_v4, %v5071_v41  ;;  %v7462_v40 = vadd.f32 %v1536_v20, %v1376_v30  ;;  %v4946_v30 = vadd.f32 %v7376_v63, %v7368_v8 }
 0x1da   : > { %v5074_v52 = vpop.f32.mrf.mxu1  ;;  %v5744_v56 = vpop.f32.mrf.mxu0 }
 0x1db   : > { %9295 = vst [vmem:[#allocation21_spill] sm:$0xff] %v7462_v40  ;;  %v7464_v45 = vadd.f32 %v5744_v56, %v1387_v58  ;;  %v1400_v25 = vadd.f32 %v5073_v50, %v7355_v42 }
 0x1dc   : > { %v5075_v15 = vpop.f32.mrf.mxu1  ;;  %v7467_v51 = vpop.f32.mrf.mxu0 }
 0x1dd   : > { %9296 = vst [vmem:[#allocation22_spill] sm:$0xff] %v7464_v45  ;;  %9297 = vst [vmem:[#allocation23_spill] sm:$0xff] %v7467_v51  ;;  %v5076_v18 = vadd.f32 %v5075_v15, %v5074_v52  ;;  %v1106_v52 = vadd.f32 %v4946_v30, %v7278_v61  ;;  %v1460_v51 = vadd.f32 %v7400_v9, %v7296_v6 }
 0x1de   : > { %v5077_v7 = vpop.f32.mrf.mxu1  ;;  %v5747_v24 = vpop.f32.mrf.mxu0 }
 0x1df   : > { %v7469_v62 = vadd.f32 %v5747_v24, %v1400_v25  ;;  %v1403_v49 = vadd.f32 %v5076_v18, %v7362_v14  ;;  %v4952_v18 = vadd.f32 %v7387_v57, %v7384_v37 }
 0x1e0   : > { %v5078_v1 = vpop.f32.mrf.mxu1  ;;  %v1552_v32 = vpop.f32.mrf.mxu0 }
 0x1e1   : > { %9298 = vst [vmem:[#allocation24_spill] sm:$0xff] %v7469_v62  ;;  %v5079_v55 = vadd.f32 %v5078_v1, %v5077_v7  ;;  %v7474_v58 = vadd.f32 %v1552_v32, %v1392_v2  ;;  %v1111_v2 = vadd.f32 %v7264_v36, %v7382_v53  ;;  %v1114_v30 = vadd.f32 %v7273_v17, %v4952_v18 }
 0x1e2   : > { %v5080_v41 = vpop.f32.mrf.mxu1  ;;  %v5748_v42 = vpop.f32.mrf.mxu0 }
 0x1e3   : > { %9299 = vst [vmem:[#allocation25_spill] sm:$0xff] %v7474_v58  ;;  %v7476_v43 = vadd.f32 %v5748_v42, %v1403_v49  ;;  %v1408_v4 = vadd.f32 %v5079_v55, %v7371_v31 }
 0x1e4   : > { %v5081_v20 = vpop.f32.mrf.mxu1  ;;  %v7479_v50 = vpop.f32.mrf.mxu0 }
 0x1e5   : > { %9300 = vst [vmem:[#allocation26_spill] sm:$0xff] %v7476_v43  ;;  %9301 = vst [vmem:[#allocation27_spill] sm:$0xff] %v7479_v50  ;;  %v5082_v14 = vadd.f32 %v5081_v20, %v5080_v41 }
 0x1e6   : > { %v5083_v56 = vpop.f32.mrf.mxu1  ;;  %v5751_v25 = vpop.f32.mrf.mxu0 }
 0x1e7   : > { %v7482_v15 = vadd.f32 %v5082_v14, %v1106_v52 }
 0x1e8   : > { %v5084_v8 = vpop.f32.mrf.mxu1  ;;  %v1568_v63 = vpop.f32.mrf.mxu0 }
 0x1e9   : > { %9302 = vst [vmem:[#allocation28_spill] sm:$0xff] %v7482_v15  ;;  %v5085_v7 = vadd.f32 %v5084_v8, %v5083_v56  ;;  %v7488_v31 = vadd.f32 %v1568_v63, %v1408_v4 }
 0x1ea   : > { %v5086_v24 = vpop.f32.mrf.mxu1  ;;  %v5752_v49 = vpop.f32.mrf.mxu0 }
 0x1eb   : > { %9303 = vst [vmem:[#allocation29_spill] sm:$0xff] %v7488_v31  ;;  %v1416_v1 = vadd.f32 %v5085_v7, %v1111_v2 }
 0x1ec   : > { %v5087_v61 = vpop.f32.mrf.mxu1  ;;  %v7490_v32 = vpop.f32.mrf.mxu0 }
 0x1ed   : > { %9304 = vst [vmem:[#allocation30_spill] sm:$0xff] %v7490_v32  ;;  %v7493_v55 = vadd.f32 %v5751_v25, %v1416_v1  ;;  %v5088_v41 = vadd.f32 %v5087_v61, %v5086_v24 }
 0x1ee   : > { %v5129_v42 = vpop.f32.mrf.mxu0  ;;  %v5771_v20 = vpop.f32.mrf.mxu1 }
 0x1ef   : > { %9305 = vst [vmem:[#allocation31_spill] sm:$0xff] %v7493_v55  ;;  %v1419_v36 = vadd.f32 %v5088_v41, %v1114_v30 }
 0x1f0   : > { %v5130_v53 = vpop.f32.mrf.mxu0  ;;  %v1971_v52 = vpop.f32.mrf.mxu1 }
 0x1f1   : > { %v7495_v37 = vadd.f32 %v5752_v49, %v1419_v36  ;;  %v5131_v57 = vadd.f32 %v5130_v53, %v5129_v42 }
 0x1f2   : > { %v5132_v4 = vpop.f32.mrf.mxu0  ;;  %v5772_v7 = vpop.f32.mrf.mxu1 }
 0x1f3   : > { %9306 = vst [vmem:[#allocation32_spill] sm:$0xff] %v7495_v37  ;;  %v1972_v14 = vadd.f32 %v5131_v57, %v1971_v52 }
 0x1f4   : > { %v5133_v56 = vpop.f32.mrf.mxu0  ;;  %v1974_v18 = vpop.f32.mrf.mxu1 }
 0x1f5   : > { %v2098_v8 = vadd.f32 %v1972_v14, %v7394_v33  ;;  %v5134_v15 = vadd.f32 %v5133_v56, %v5132_v4 }
 0x1f6   : > { %v5135_v63 = vpop.f32.mrf.mxu0  ;;  %v5775_v61 = vpop.f32.mrf.mxu1 }
 0x1f7   : > { %v1975_v5 = vadd.f32 %v5134_v15, %v1974_v18  ;;  %v7510_v15 = vld [vmem:[%s9220_s2] ss:$0 sm:$0xff] }
 0x1f8   : > { %v5136_v2 = vpop.f32.mrf.mxu0  ;;  %v1987_v41 = vpop.f32.mrf.mxu1 }
 0x1f9   : > { %v5137_v62 = vadd.f32 %v5136_v2, %v5135_v63  ;;  %v2099_v35 = vadd.f32 %v1975_v5, %v1460_v51 }
 0x1fa   : > { %v5138_v17 = vpop.f32.mrf.mxu0  ;;  %v5776_v36 = vpop.f32.mrf.mxu1 }
 0x1fb   : > { %v1980_v13 = vadd.f32 %v5771_v20, %v5137_v62  ;;  %v7513_v9 = vadd.f32 %v7510_v15, %v2099_v35 }
 0x1fc   : > { %v5139_v25 = vpop.f32.mrf.mxu0  ;;  %v1990_v52 = vpop.f32.mrf.mxu1 }
 0x1fd   : > { %v5140_v58 = vadd.f32 %v5139_v25, %v5138_v17  ;;  %v2100_v11 = vadd.f32 %v1980_v13, %v7390_v16 }
 0x1fe   : > { %v5141_v24 = vpop.f32.mrf.mxu0  ;;  %v7498_v33 = vpop.f32.mrf.mxu1 }
 0x1ff   : > { %v1983_v38 = vadd.f32 %v5772_v7, %v5140_v58  ;;  %v7517_v58 = vadd.f32 %v7510_v15, %v2098_v8  ;;  %v7520_v16 = vadd.f32 %v7510_v15, %v2100_v11 }
 0x200   : > { %v5142_v1 = vpop.f32.mrf.mxu0  ;;  %v2003_v55 = vpop.f32.mrf.mxu1 }
 0x201   : > { %v5143_v40 = vadd.f32 %v5142_v1, %v5141_v24  ;;  %v2101_v62 = vadd.f32 %v1983_v38, %v7397_v19  ;;  %v2168_v19 = vadd.f32 %v7513_v9, %v7517_v58 }
 0x202   : > { %v5144_v30 = vpop.f32.mrf.mxu0  ;;  %v7500_v31 = vpop.f32.mrf.mxu1 }
 0x203   : > { %v1988_v63 = vadd.f32 %v5143_v40, %v1987_v41  ;;  %v1476_v40 = vadd.f32 %v7416_v10, %v7323_v12  ;;  %v7528_v38 = vadd.f32 %v7510_v15, %v2101_v62  ;;  %v2169_v1 = vadd.f32 %v2168_v19, %v7520_v16 }
 0x204   : > { %v5145_v48 = vpop.f32.mrf.mxu0  ;;  %v2006_v45 = vpop.f32.mrf.mxu1 }
 0x205   : > { %v5146_v4 = vadd.f32 %v5145_v48, %v5144_v30  ;;  %v2102_v13 = vadd.f32 %v1988_v63, %v7410_v22  ;;  %v2170_v41 = vadd.f32 %v2169_v1, %v7528_v38 }
 0x206   : > { %v5147_v49 = vpop.f32.mrf.mxu0  ;;  %v7504_v34 = vpop.f32.mrf.mxu1 }
 0x207   : > { %v1991_v5 = vadd.f32 %v5146_v4, %v1990_v52  ;;  %v7532_v22 = vadd.f32 %v7510_v15, %v2102_v13  ;;  %v1492_v52 = vadd.f32 %v7429_v59, %v7352_v39 }
 0x208   : > { %v5148_v42 = vpop.f32.mrf.mxu0  ;;  %v2019_v6 = vpop.f32.mrf.mxu1 }
 0x209   : > { %v5149_v2 = vadd.f32 %v5148_v42, %v5147_v49  ;;  %v2103_v8 = vadd.f32 %v1991_v5, %v1476_v40 }
 0x20a   : > { %v5150_v53 = vpop.f32.mrf.mxu0  ;;  %v5784_v25 = vpop.f32.mrf.mxu1 }
 0x20b   : > { %v1996_v20 = vadd.f32 %v5775_v61, %v5149_v2  ;;  %v7537_v49 = vadd.f32 %v7510_v15, %v2103_v8 }
 0x20c   : > { %v5151_v57 = vpop.f32.mrf.mxu0  ;;  %v2022_v61 = vpop.f32.mrf.mxu1 }
 0x20d   : > { %v5152_v51 = vadd.f32 %v5151_v57, %v5150_v53  ;;  %v2104_v12 = vadd.f32 %v1996_v20, %v7405_v54  ;;  %v2171_v54 = vadd.f32 %v2170_v41, %v7532_v22 }
 0x20e   : > { %v5153_v44 = vpop.f32.mrf.mxu0  ;;  %v5787_v53 = vpop.f32.mrf.mxu1 }
 0x20f   : > { %v1999_v18 = vadd.f32 %v5776_v36, %v5152_v51 }
 0x210   : > { %v5154_v14 = vpop.f32.mrf.mxu0  ;;  %v2035_v59 = vpop.f32.mrf.mxu1 }
 0x211   : > { %v5155_v7 = vadd.f32 %v5154_v14, %v5153_v44  ;;  %v2105_v36 = vadd.f32 %v1999_v18, %v7413_v21  ;;  %v2172_v21 = vadd.f32 %v2171_v54, %v7537_v49 }
 0x212   : > { %v5156_v37 = vpop.f32.mrf.mxu0  ;;  %v5788_v13 = vpop.f32.mrf.mxu1 }
 0x213   : > { %v2004_v44 = vadd.f32 %v5155_v7, %v2003_v55 }
 0x214   : > { %v5157_v32 = vpop.f32.mrf.mxu0 }
 0x215   : > { %v5158_v24 = vadd.f32 %v5157_v32, %v5156_v37 }
 0x216   : > { %v5159_v43 = vpop.f32.mrf.mxu0 }
 0x217   : > { %v2007_v32 = vadd.f32 %v5158_v24, %v2006_v45 }
 0x218   : > { %v5160_v50 = vpop.f32.mrf.mxu0 }
 0x219   : > { %v5161_v10 = vadd.f32 %v5160_v50, %v5159_v43  ;;  %v7544_v43 = vadd.f32 %v7510_v15, %v2104_v12  ;;  %v2106_v50 = vadd.f32 %v2004_v44, %v7423_v47 }
 0x21a   : > { %v5162_v29 = vpop.f32.mrf.mxu0 }
 0x21b   : > { %v2012_v55 = vadd.f32 %v7498_v33, %v5161_v10  ;;  %v2173_v63 = vadd.f32 %v2172_v21, %v7544_v43  ;;  %v7555_v2 = vadd.f32 %v7510_v15, %v2106_v50 }
 0x21c   : > { %v5163_v46 = vpop.f32.mrf.mxu0 }
 0x21d   : > { %v5164_v37 = vadd.f32 %v5163_v46, %v5162_v29  ;;  %v7550_v46 = vadd.f32 %v7510_v15, %v2105_v36  ;;  %v2107_v29 = vadd.f32 %v2007_v32, %v1492_v52  ;;  %v2108_v47 = vadd.f32 %v2012_v55, %v7419_v23  ;;  %v9308_v52 = vld [vmem:[#allocation18_spill] sm:$0xff] }
 0x21e   : > { %v5165_v56 = vpop.f32.mrf.mxu0 }
 0x21f   : > { %v2015_v45 = vadd.f32 %v7500_v31, %v5164_v37  ;;  %v2174_v62 = vadd.f32 %v2173_v63, %v7550_v46  ;;  %v7560_v5 = vadd.f32 %v7510_v15, %v2107_v29  ;;  %v7565_v7 = vadd.f32 %v7510_v15, %v2108_v47 }
 0x220   : > { %v5166_v17 = vpop.f32.mrf.mxu0 }
 0x221   : > { %v5167_v57 = vadd.f32 %v5166_v17, %v5165_v56  ;;  %v2109_v31 = vadd.f32 %v2015_v45, %v7426_v60  ;;  %v2175_v20 = vadd.f32 %v2174_v62, %v7555_v2  ;;  %v9310_v62 = vld [vmem:[#allocation15_spill] sm:$0xff] }
 0x222   : > { %v5168_v48 = vpop.f32.mrf.mxu0 }
 0x223   : > { %v2020_v33 = vadd.f32 %v5167_v57, %v2019_v6  ;;  %v2176_v60 = vadd.f32 %v2175_v20, %v7560_v5  ;;  %v7573_v18 = vadd.f32 %v7510_v15, %v2109_v31  ;;  %v9311_v20 = vld [vmem:[#allocation17_spill] sm:$0xff] }
 0x224   : > { %v5169_v35 = vpop.f32.mrf.mxu0 }
 0x225   : > { %v5170_v4 = vadd.f32 %v5169_v35, %v5168_v48  ;;  %v2110_v23 = vadd.f32 %v2020_v33, %v7438_v26  ;;  %v1508_v35 = vadd.f32 %v7443_v27, %v7380_v0  ;;  %v2177_v10 = vadd.f32 %v2176_v60, %v7565_v7  ;;  %v9312_v60 = vld [vmem:[#allocation21_spill] sm:$0xff] }
 0x226   : > { %v5171_v11 = vpop.f32.mrf.mxu0 }
 0x227   : > { %v2023_v48 = vadd.f32 %v5170_v4, %v2022_v61  ;;  %v7577_v26 = vadd.f32 %v7510_v15, %v2110_v23  ;;  %v2178_v41 = vadd.f32 %v2177_v10, %v7573_v18 }
 0x228   : > { %v5172_v30 = vpop.f32.mrf.mxu0 }
 0x229   : > { %v5173_v17 = vadd.f32 %v5172_v30, %v5171_v11  ;;  %v2038_v11 = vpop.f32.mrf.mxu1  ;;  %v2111_v1 = vadd.f32 %v2023_v48, %v1508_v35  ;;  %v2179_v50 = vadd.f32 %v2178_v41, %v7577_v26 }
 0x22a   : > { %v5174_v42 = vpop.f32.mrf.mxu0 }
 0x22b   : > { %v2028_v19 = vadd.f32 %v7504_v34, %v5173_v17  ;;  %v5791_v0 = vpop.f32.mrf.mxu1  ;;  %v7582_v32 = vadd.f32 %v7510_v15, %v2111_v1 }
 0x22c   : > { %v5175_v14 = vpop.f32.mrf.mxu0 }
 0x22d   : > { %v5176_v40 = vadd.f32 %v5175_v14, %v5174_v42  ;;  %v2112_v27 = vadd.f32 %v2028_v19, %v7433_v3  ;;  %v9307_v42 = vld [vmem:[#allocation13_spill] sm:$0xff]  ;;  %v2051_v57 = vpop.f32.mrf.mxu1  ;;  %v9309_v14 = vld [vmem:[#allocation16_spill] sm:$0xff] }
 0x22e   : > { %v5177_v39 = vpop.f32.mrf.mxu0  ;;  %v1524_v54 = vadd.f32 %v9308_v52, %v9307_v42 }
 0x22f   : > { %v2031_v12 = vadd.f32 %v5784_v25, %v5176_v40  ;;  %v7589_v3 = vadd.f32 %v7510_v15, %v2112_v27  ;;  %v5792_v33 = vpop.f32.mrf.mxu1 }
 0x230   : > { %v5178_v56 = vpop.f32.mrf.mxu0 }
 0x231   : > { %v5179_v8 = vadd.f32 %v5178_v56, %v5177_v39  ;;  %v2113_v25 = vadd.f32 %v2031_v12, %v7440_v28  ;;  %v2054_v35 = vpop.f32.mrf.mxu1  ;;  %v9313_v12 = vld [vmem:[#allocation14_spill] sm:$0xff] }
 0x232   : > { %v5180_v51 = vpop.f32.mrf.mxu0 }
 0x233   : > { %v2036_v34 = vadd.f32 %v5179_v8, %v2035_v59  ;;  %v2180_v59 = vadd.f32 %v2179_v50, %v7582_v32  ;;  %v7594_v28 = vadd.f32 %v7510_v15, %v2113_v25  ;;  %v5795_v41 = vpop.f32.mrf.mxu1 }
 0x234   : > { %v5181_v6 = vpop.f32.mrf.mxu0 }
 0x235   : > { %v5182_v44 = vadd.f32 %v5181_v6, %v5180_v51  ;;  %v2114_v21 = vadd.f32 %v2036_v34, %v9309_v14  ;;  %v2181_v56 = vadd.f32 %v2180_v59, %v7589_v3  ;;  %v2067_v14 = vpop.f32.mrf.mxu1 }
 0x236   : > { %v5183_v24 = vpop.f32.mrf.mxu0 }
 0x237   : > { %v2039_v37 = vadd.f32 %v5182_v44, %v2038_v11  ;;  %v7598_v17 = vadd.f32 %v7510_v15, %v2114_v21  ;;  %v2182_v48 = vadd.f32 %v2181_v56, %v7594_v28  ;;  %v9314_v44 = vld [vmem:[#allocation23_spill] sm:$0xff] }
 0x238   : > { %v5184_v61 = vpop.f32.mrf.mxu0  ;;  %v1540_v10 = vadd.f32 %v9314_v44, %v9313_v12 }
 0x239   : > { %v5185_v30 = vadd.f32 %v5184_v61, %v5183_v24  ;;  %v2115_v4 = vadd.f32 %v2039_v37, %v1524_v54  ;;  %v2183_v19 = vadd.f32 %v2182_v48, %v7598_v17 }
 0x23a   : > { %v5186_v36 = vpop.f32.mrf.mxu0 }
 0x23b   : > { %v2044_v29 = vadd.f32 %v5787_v53, %v5185_v30  ;;  %v7603_v40 = vadd.f32 %v7510_v15, %v2115_v4 }
 0x23c   : > { %v5187_v55 = vpop.f32.mrf.mxu0 }
 0x23d   : > { %v5188_v45 = vadd.f32 %v5187_v55, %v5186_v36  ;;  %v2116_v31 = vadd.f32 %v2044_v29, %v9310_v62  ;;  %v2184_v61 = vadd.f32 %v2183_v19, %v7603_v40  ;;  %v9315_v29 = vld [vmem:[#allocation19_spill] sm:$0xff]  ;;  %v5796_v62 = vpop.f32.mrf.mxu1 }
 0x23e   : > { %v5189_v39 = vpop.f32.mrf.mxu0 }
 0x23f   : > { %v2047_v63 = vadd.f32 %v5788_v13, %v5188_v45  ;;  %v7608_v8 = vadd.f32 %v7510_v15, %v2116_v31 }
 0x240   : > { %v5190_v47 = vpop.f32.mrf.mxu0 }
 0x241   : > { %v5191_v51 = vadd.f32 %v5190_v47, %v5189_v39  ;;  %v2117_v23 = vadd.f32 %v2047_v63, %v9311_v20  ;;  %v2185_v36 = vadd.f32 %v2184_v61, %v7608_v8 }
 0x242   : > { %v5192_v53 = vpop.f32.mrf.mxu0 }
 0x243   : > { %v2052_v6 = vadd.f32 %v5191_v51, %v2051_v57  ;;  %v7615_v27 = vadd.f32 %v7510_v15, %v2117_v23  ;;  %v9316_v51 = vld [vmem:[#allocation22_spill] sm:$0xff] }
 0x244   : > { %v5193_v13 = vpop.f32.mrf.mxu0 }
 0x245   : > { %v2118_v24 = vadd.f32 %v2052_v6, %v9312_v60  ;;  %v5194_v11 = vadd.f32 %v5193_v13, %v5192_v53  ;;  %v2186_v54 = vadd.f32 %v2185_v36, %v7615_v27  ;;  %v2070_v13 = vpop.f32.mrf.mxu1 }
 0x246   : > { %v5195_v1 = vpop.f32.mrf.mxu0 }
 0x247   : > { %v2055_v34 = vadd.f32 %v5194_v11, %v2054_v35  ;;  %v7619_v25 = vadd.f32 %v7510_v15, %v2118_v24  ;;  %v9317_v35 = vld [vmem:[#allocation25_spill] sm:$0xff]  ;;  %v9318_v11 = vld [vmem:[#allocation20_spill] sm:$0xff] }
 0x248   : > { %v5196_v30 = vpop.f32.mrf.mxu0 }
 0x249   : > { %v2119_v37 = vadd.f32 %v2055_v34, %v1540_v10  ;;  %v5197_v42 = vadd.f32 %v5196_v30, %v5195_v1  ;;  %v2187_v21 = vadd.f32 %v2186_v54, %v7619_v25  ;;  %v9319_v1 = vld [vmem:[#allocation27_spill] sm:$0xff] }
 0x24a   : > { %v5198_v52 = vpop.f32.mrf.mxu0  ;;  %v1556_v12 = vadd.f32 %v9319_v1, %v9318_v11  ;;  %v9323_v11 = vld [vmem:[#allocation28_spill] sm:$0xff]  ;;  %v9324_v1 = vld [vmem:[#allocation30_spill] sm:$0xff] }
 0x24b   : > { %v7623_v50 = vadd.f32 %v7510_v15, %v2119_v37  ;;  %v2060_v55 = vadd.f32 %v5791_v0, %v5197_v42  ;;  %v5799_v42 = vpop.f32.mrf.mxu1 }
 0x24c   : > { %v5199_v57 = vpop.f32.mrf.mxu0 }
 0x24d   : > { %v2120_v45 = vadd.f32 %v2060_v55, %v9315_v29  ;;  %v5200_v39 = vadd.f32 %v5199_v57, %v5198_v52  ;;  %v2188_v4 = vadd.f32 %v2187_v21, %v7623_v50 }
 0x24e   : > { %v5201_v59 = vpop.f32.mrf.mxu0 }
 0x24f   : > { %v7629_v63 = vadd.f32 %v7510_v15, %v2120_v45  ;;  %v2063_v47 = vadd.f32 %v5792_v33, %v5200_v39  ;;  %v2083_v39 = vpop.f32.mrf.mxu1 }
 0x250   : > { %v5202_v56 = vpop.f32.mrf.mxu0 }
 0x251   : > { %v2189_v31 = vadd.f32 %v2188_v4, %v7629_v63  ;;  %v2121_v0 = vadd.f32 %v2063_v47, %v9316_v51  ;;  %v5203_v53 = vadd.f32 %v5202_v56, %v5201_v59 }
 0x252   : > { %v5204_v48 = vpop.f32.mrf.mxu0 }
 0x253   : > { %v7634_v20 = vadd.f32 %v7510_v15, %v2121_v0  ;;  %v2068_v23 = vadd.f32 %v5203_v53, %v2067_v14  ;;  %v9320_v14 = vld [vmem:[#allocation24_spill] sm:$0xff] }
 0x254   : > { %v5205_v6 = vpop.f32.mrf.mxu0 }
 0x255   : > { %v2122_v19 = vadd.f32 %v2068_v23, %v9317_v35  ;;  %v2190_v60 = vadd.f32 %v2189_v31, %v7634_v20  ;;  %v5206_v24 = vadd.f32 %v5205_v6, %v5204_v48  ;;  %v9321_v31 = vld [vmem:[#allocation26_spill] sm:$0xff] }
 0x256   : > { %v5207_v33 = vpop.f32.mrf.mxu0 }
 0x257   : > { %v7641_v44 = vadd.f32 %v7510_v15, %v2122_v19  ;;  %v2071_v10 = vadd.f32 %v5206_v24, %v2070_v13  ;;  %v9322_v13 = vld [vmem:[#allocation29_spill] sm:$0xff]  ;;  %v6080_v24 = vld [vmem:[#allocation5 + $0x178] sm:$0xff]  }
 0x258   : > { %v5208_v61 = vpop.f32.mrf.mxu0  ;;  %5801 = vmatprep.subr.bf16.mxu0 %v6080_v24 }
 0x259   : > { %v2191_v34 = vadd.f32 %v2190_v60, %v7641_v44  ;;  %v2123_v30 = vadd.f32 %v2071_v10, %v1556_v12  ;;  %v5209_v36 = vadd.f32 %v5208_v61, %v5207_v33  ;;  %v1572_v12 = vadd.f32 %v9324_v1, %v9323_v11  ;;  %5802 = vmatpush3.bf16.msra.mxu0 %v6080_v24  ;;  %v6095_v11 = vld [vmem:[#allocation5 + $0x160] sm:$0xff]  }
 0x25a   : > { %v5210_v37 = vpop.f32.mrf.mxu0 }
 0x25b   : > { %v7645_v52 = vadd.f32 %v7510_v15, %v2123_v30  ;;  %v2076_v54 = vadd.f32 %v5795_v41, %v5209_v36  ;;  %v5800_v41 = vpop.f32.mrf.mxu1 }
 0x25c   : > { %v5211_v55 = vpop.f32.mrf.mxu0 }
 0x25d   : > { %v2192_v57 = vadd.f32 %v2191_v34, %v7645_v52  ;;  %v2124_v21 = vadd.f32 %v2076_v54, %v9320_v14  ;;  %v5212_v29 = vadd.f32 %v5211_v55, %v5210_v37  ;;  %v6081_v14 = vld [vmem:[#allocation5 + $0x138] sm:$0xff]  }
 0x25e   : > { %v5213_v45 = vpop.f32.mrf.mxu0  ;;  %5249 = vmatprep.subr.bf16.mxu1 %v6081_v14 }
 0x25f   : > { %v7650_v59 = vadd.f32 %v7510_v15, %v2124_v21  ;;  %v2079_v4 = vadd.f32 %v5796_v62, %v5212_v29  ;;  %v2086_v62 = vpop.f32.mrf.mxu1  ;;  %v6082_v29 = vld [vmem:[#allocation5 + $0xf8] sm:$0xff]  }
 0x260   : > { %v5214_v47 = vpop.f32.mrf.mxu0  ;;  %5250 = vmatpush3.bf16.msra.mxu1 %v6082_v29  ;;  %v6097_v29 = vld [vmem:[#allocation5 + $0xc8] sm:$0xff]  }
 0x261   : > { %v2193_v56 = vadd.f32 %v2192_v57, %v7650_v59  ;;  %v2125_v51 = vadd.f32 %v2079_v4, %v9321_v31  ;;  %v5215_v0 = vadd.f32 %v5214_v47, %v5213_v45 }
 0x262   : > { %v5216_v53 = vpop.f32.mrf.mxu0 }
 0x263   : > { %v7655_v48 = vadd.f32 %v7510_v15, %v2125_v51  ;;  %v2084_v23 = vadd.f32 %v5215_v0, %v2083_v39  ;;  %v9325_v39 = vld [vmem:[#allocation31_spill] sm:$0xff]  ;;  %v6083_v51 = vld [vmem:[#allocation5 + $0x130] sm:$0xff]  }
 0x264   : > { %v5217_v6 = vpop.f32.mrf.mxu0  ;;  %v6084_v0 = vld [vmem:[#allocation5 + $0xf0] sm:$0xff]   ;;  %5251 = vmatprep.subr.bf16.mxu1 %v6083_v51 }
 0x265   : > { %v2126_v35 = vadd.f32 %v2084_v23, %v9322_v13  ;;  %v2194_v19 = vadd.f32 %v2193_v56, %v7655_v48  ;;  %v5218_v60 = vadd.f32 %v5217_v6, %v5216_v53  ;;  %v6085_v53 = vld [vmem:[#allocation5 + $0x170] sm:$0xff]   ;;  %5252 = vmatpush3.bf16.msra.mxu1 %v6084_v0 }
 0x266   : > { %v5219_v33 = vpop.f32.mrf.mxu0  ;;  %5803 = vmatprep.subr.bf16.mxu0 %v6085_v53 }
 0x267   : > { %v7662_v10 = vadd.f32 %v7510_v15, %v2126_v35  ;;  %v2087_v61 = vadd.f32 %v5218_v60, %v2086_v62  ;;  %5804 = vmatpush3.bf16.msra.mxu0 %v6085_v53  ;;  %v6086_v35 = vld [vmem:[#allocation5 + $0x128] sm:$0xff]   ;;  %v6088_v62 = vld [vmem:[#allocation5 + $0x120] sm:$0xff]  }
 0x268   : > { %v5220_v34 = vpop.f32.mrf.mxu0  ;;  %v6090_v60 = vld [vmem:[#allocation5 + $0x168] sm:$0xff]   ;;  %5253 = vmatprep.subr.bf16.mxu1 %v6086_v35 }
 0x269   : > { %v2195_v30 = vadd.f32 %v2194_v19, %v7662_v10  ;;  %v2127_v36 = vadd.f32 %v2087_v61, %v1572_v12  ;;  %v5221_v37 = vadd.f32 %v5220_v34, %v5219_v33  ;;  %v6087_v19 = vld [vmem:[#allocation5 + $0xe8] sm:$0xff]   ;;  %5805 = vmatprep.subr.bf16.mxu0 %v6090_v60  ;;  %v6089_v33 = vld [vmem:[#allocation5 + $0xe0] sm:$0xff]   ;;  %v6091_v61 = vld [vmem:[#allocation5 + $0x118] sm:$0xff]  }
 0x26a   : > { %v5222_v54 = vpop.f32.mrf.mxu0  ;;  %5254 = vmatpush3.bf16.msra.mxu1 %v6087_v19  ;;  %v6098_v34 = vld [vmem:[#allocation5 + $0x158] sm:$0xff]  }
 0x26b   : > { %v7666_v55 = vadd.f32 %v7510_v15, %v2127_v36  ;;  %v2092_v57 = vadd.f32 %v5799_v42, %v5221_v37  ;;  %v9326_v42 = vld [vmem:[#allocation32_spill] sm:$0xff]  ;;  %5806 = vmatpush3.bf16.msra.mxu0 %v6090_v60  ;;  %5255 = vmatprep.subr.bf16.mxu1 %v6088_v62  ;;  %v6093_v37 = vld [vmem:[#allocation5 + $0x110] sm:$0xff]  }
 0x26c   : > { %v5223_v21 = vpop.f32.mrf.mxu0  ;;  %5807 = vmatprep.subr.bf16.mxu0 %v6095_v11 }
 0x26d   : > { %v2196_v45 = vadd.f32 %v2195_v30, %v7666_v55  ;;  %v2128_v4 = vadd.f32 %v2092_v57, %v9325_v39  ;;  %v5224_v47 = vadd.f32 %v5223_v21, %v5222_v54  ;;  %v6094_v54 = vld [vmem:[#allocation5 + $0xd0] sm:$0xff]   ;;  %v6096_v21 = vld [vmem:[#allocation5 + $0x108] sm:$0xff]  }
 0x26e   : > { %5256 = vmatpush3.bf16.msra.mxu1 %v6089_v33  ;;  %v6099_v57 = vld [vmem:[#allocation5 + $0x150] sm:$0xff]  }
 0x26f   : > { %v7671_v56 = vadd.f32 %v7510_v15, %v2128_v4  ;;  %v2095_v31 = vadd.f32 %v5800_v41, %v5224_v47  ;;  %5808 = vmatpush3.bf16.msra.mxu0 %v6095_v11  ;;  %5257 = vmatprep.subr.bf16.mxu1 %v6091_v61  ;;  %v6101_v4 = vld [vmem:[#allocation5 + $0xc0] sm:$0xff]   ;;  %v6102_v47 = vld [vmem:[#allocation5 + $0x148] sm:$0xff]  }
 0x270   : > { %5809 = vmatprep.subr.bf16.mxu0 %v6098_v34 }
 0x271   : > { %v2197_v23 = vadd.f32 %v2196_v45, %v7671_v56  ;;  %v2129_v6 = vadd.f32 %v2095_v31, %v9326_v42  ;;  %v6100_v45 = vld [vmem:[#allocation5 + $0x100] sm:$0xff]  }
 0x272   : > { %v6103_v31 = vld [vmem:[#allocation5 + $0x140] sm:$0xff]  }
 0x273   : > { %v2167_v13 = vadd.f32 %v7510_v15, %v2129_v6  ;;  %v6092_v15 = vld [vmem:[#allocation5 + $0xd8] sm:$0xff]   ;;  %5810 = vmatpush3.bf16.msra.mxu0 %v6098_v34 }
 0x274   : > { %5258 = vmatpush3.bf16.msra.mxu1 %v6092_v15  ;;  %5811 = vmatprep.subr.bf16.mxu0 %v6099_v57 }
 0x275   : > { %v2198_v24 = vadd.f32 %v2197_v23, %v2167_v13  ;;  %5259 = vmatprep.subr.bf16.mxu1 %v6093_v37 }
 0x277   : > { %v2199_v41 = vrot.slane %v2198_v24, 4  ;;  %5812 = vmatpush3.bf16.msra.mxu0 %v6099_v57 }
 0x278   : > { %5260 = vmatpush3.bf16.msra.mxu1 %v6094_v54  ;;  %5813 = vmatprep.subr.bf16.mxu0 %v6102_v47 }
 0x279   : > { %v2200_v1 = vadd.f32 %v2199_v41, %v2198_v24  ;;  %5261 = vmatprep.subr.bf16.mxu1 %v6096_v21 }
 0x27b   : > { %v2201_v12 = vrot.slane %v2200_v1, 2  ;;  %5814 = vmatpush3.bf16.msra.mxu0 %v6102_v47 }
 0x27c   : > { %5262 = vmatpush3.bf16.msra.mxu1 %v6097_v29  ;;  %5815 = vmatprep.subr.bf16.mxu0 %v6103_v31 }
 0x27d   : > { %v2202_v30 = vadd.f32 %v2201_v12, %v2200_v1  ;;  %5263 = vmatprep.subr.bf16.mxu1 %v6100_v45 }
 0x27f   : > { %v2203_v36 = vrot.slane %v2202_v30, 1  ;;  %5816 = vmatpush3.bf16.msra.mxu0 %v6103_v31 }
 0x280   : > { %5264 = vmatpush3.bf16.msra.mxu1 %v6101_v4 }
 0x281   : > { %v2204_v14 = vadd.f32 %v2203_v36, %v2202_v30 }
 0x283   : > { %v7676_v39 = vmul.f32 0.00390625, %v2204_v14 }
 0x285   : > { %v7680_v51 = vsub.f32 %v7623_v50, %v7676_v39  ;;  %v7684_v0 = vsub.f32 %v7629_v63, %v7676_v39  ;;  %v7688_v53 = vsub.f32 %v7634_v20, %v7676_v39  ;;  %v7692_v23 = vsub.f32 %v7641_v44, %v7676_v39 }
 0x286   : > { %v7696_v42 = vsub.f32 %v7645_v52, %v7676_v39  ;;  %v7700_v50 = vsub.f32 %v7650_v59, %v7676_v39  ;;  %v7704_v63 = vsub.f32 %v7655_v48, %v7676_v39  ;;  %v7708_v20 = vsub.f32 %v7662_v10, %v7676_v39  ;;  %v7729_v10 = vld [vmem:[#allocation5 + $0xb8] sm:$0xff]  }
 0x287   : > { %v7712_v44 = vsub.f32 %v7666_v55, %v7676_v39  ;;  %v7716_v52 = vsub.f32 %v7671_v56, %v7676_v39  ;;  %v7719_v59 = vsub.f32 %v2167_v13, %v7676_v39  ;;  %v7723_v48 = vsub.f32 %v7517_v58, %v7676_v39  ;;  %5849 = vmatprep.subr.bf16.mxu1 %v7729_v10 }
 0x288   : > { %v7727_v6 = vsub.f32 %v7513_v9, %v7676_v39  ;;  %v7733_v55 = vsub.f32 %v7520_v16, %v7676_v39  ;;  %v7742_v58 = vsub.f32 %v7528_v38, %v7676_v39  ;;  %v7746_v9 = vsub.f32 %v7532_v22, %v7676_v39 }
 0x289   : > { %v2239_v56 = vmul.f32 %v7723_v48, %v7723_v48  ;;  %v7752_v19 = vsub.f32 %v7537_v49, %v7676_v39  ;;  %v7758_v38 = vsub.f32 %v7544_v43, %v7676_v39  ;;  %v7764_v62 = vsub.f32 %v7550_v46, %v7676_v39 }
 0x28a   : > { %v2240_v13 = vmul.f32 %v7727_v6, %v7727_v6  ;;  %v2241_v16 = vmul.f32 %v7733_v55, %v7733_v55  ;;  %v2242_v60 = vmul.f32 %v7742_v58, %v7742_v58  ;;  %v2243_v22 = vmul.f32 %v7746_v9, %v7746_v9 }
 0x28b   : > { %v2244_v49 = vmul.f32 %v7752_v19, %v7752_v19  ;;  %v7770_v11 = vsub.f32 %v7555_v2, %v7676_v39  ;;  %v2245_v43 = vmul.f32 %v7758_v38, %v7758_v38  ;;  %v7776_v12 = vsub.f32 %v7560_v5, %v7676_v39 }
 0x28c   : > { %v2271_v35 = vadd.f32 %v2240_v13, %v2239_v56  ;;  %v2246_v46 = vmul.f32 %v7764_v62, %v7764_v62  ;;  %v7782_v15 = vsub.f32 %v7565_v7, %v7676_v39  ;;  %v7788_v30 = vsub.f32 %v7573_v18, %v7676_v39 }
 0x28d   : > { %v2247_v2 = vmul.f32 %v7770_v11, %v7770_v11  ;;  %v2248_v5 = vmul.f32 %v7776_v12, %v7776_v12  ;;  %v7794_v37 = vsub.f32 %v7577_v26, %v7676_v39  ;;  %v7800_v57 = vsub.f32 %v7582_v32, %v7676_v39 }
 0x28e   : > { %v2272_v24 = vadd.f32 %v2271_v35, %v2241_v16  ;;  %v2249_v7 = vmul.f32 %v7782_v15, %v7782_v15  ;;  %v2250_v18 = vmul.f32 %v7788_v30, %v7788_v30  ;;  %v7806_v21 = vsub.f32 %v7589_v3, %v7676_v39  ;;  %v6107_v16 = vld [vmem:[#allocation5 + $0x78] sm:$0xff]  }
 0x28f   : > { %v2251_v26 = vmul.f32 %v7794_v37, %v7794_v37  ;;  %v7812_v45 = vsub.f32 %v7594_v28, %v7676_v39  ;;  %v2252_v32 = vmul.f32 %v7800_v57, %v7800_v57  ;;  %v7818_v47 = vsub.f32 %v7598_v17, %v7676_v39  ;;  %5385 = vmatprep.subr.bf16.mxu0 %v6107_v16 }
 0x290   : > { %v2273_v41 = vadd.f32 %v2272_v24, %v2242_v60  ;;  %v2253_v3 = vmul.f32 %v7806_v21, %v7806_v21  ;;  %v7824_v56 = vsub.f32 %v7603_v40, %v7676_v39  ;;  %v7830_v35 = vsub.f32 %v7608_v8, %v7676_v39 }
 0x291   : > { %v2254_v28 = vmul.f32 %v7812_v45, %v7812_v45  ;;  %v2255_v17 = vmul.f32 %v7818_v47, %v7818_v47  ;;  %v7836_v24 = vsub.f32 %v7615_v27, %v7676_v39  ;;  %v2270_v16 = vmul.f32 %v7719_v59, %v7719_v59 }
 0x292   : > { %v2274_v33 = vadd.f32 %v2273_v41, %v2243_v22  ;;  %v2256_v40 = vmul.f32 %v7824_v56, %v7824_v56  ;;  %v7842_v41 = vsub.f32 %v7619_v25, %v7676_v39  ;;  %v2257_v8 = vmul.f32 %v7830_v35, %v7830_v35 }
 0x293   : > { %v2261_v25 = vmul.f32 %v7684_v0, %v7684_v0 }
 0x294   : > { %v2275_v1 = vadd.f32 %v2274_v33, %v2244_v49  ;;  %v2258_v33 = vmul.f32 %v7836_v24, %v7836_v24  ;;  %v2259_v27 = vmul.f32 %v7842_v41, %v7842_v41 }
 0x296   : > { %v2276_v61 = vadd.f32 %v2275_v1, %v2245_v43 }
 0x298   : > { %v2277_v34 = vadd.f32 %v2276_v61, %v2246_v46  ;;  %v2260_v46 = vmul.f32 %v7680_v51, %v7680_v51 }
 0x29a   : > { %v2278_v36 = vadd.f32 %v2277_v34, %v2247_v2  ;;  %v2262_v2 = vmul.f32 %v7688_v53, %v7688_v53 }
 0x29c   : > { %v2279_v54 = vadd.f32 %v2278_v36, %v2248_v5  ;;  %v2263_v5 = vmul.f32 %v7692_v23, %v7692_v23 }
 0x29e   : > { %v2280_v14 = vadd.f32 %v2279_v54, %v2249_v7  ;;  %v2264_v7 = vmul.f32 %v7696_v42, %v7696_v42 }
 0x2a0   : > { %v2281_v29 = vadd.f32 %v2280_v14, %v2250_v18  ;;  %v2265_v18 = vmul.f32 %v7700_v50, %v7700_v50 }
 0x2a2   : > { %v2282_v4 = vadd.f32 %v2281_v29, %v2251_v26  ;;  %v2266_v26 = vmul.f32 %v7704_v63, %v7704_v63 }
 0x2a4   : > { %v2283_v31 = vadd.f32 %v2282_v4, %v2252_v32  ;;  %v2267_v32 = vmul.f32 %v7708_v20, %v7708_v20 }
 0x2a6   : > { %v2284_v13 = vadd.f32 %v2283_v31, %v2253_v3  ;;  %v2268_v3 = vmul.f32 %v7712_v44, %v7712_v44 }
 0x2a8   : > { %v2285_v60 = vadd.f32 %v2284_v13, %v2254_v28  ;;  %v2269_v28 = vmul.f32 %v7716_v52, %v7716_v52 }
 0x2aa   : > { %v2286_v22 = vadd.f32 %v2285_v60, %v2255_v17 }
 0x2ac   : > { %v2287_v49 = vadd.f32 %v2286_v22, %v2256_v40 }
 0x2ae   : > { %v2288_v43 = vadd.f32 %v2287_v49, %v2257_v8 }
 0x2b0   : > { %v2289_v1 = vadd.f32 %v2288_v43, %v2258_v33 }
 0x2b2   : > { %v2290_v61 = vadd.f32 %v2289_v1, %v2259_v27 }
 0x2b4   : > { %v2291_v39 = vadd.f32 %v2290_v61, %v2260_v46 }
 0x2b6   : > { %v2292_v34 = vadd.f32 %v2291_v39, %v2261_v25 }
 0x2b8   : > { %v2293_v36 = vadd.f32 %v2292_v34, %v2262_v2 }
 0x2ba   : > { %v2294_v54 = vadd.f32 %v2293_v36, %v2263_v5 }
 0x2bc   : > { %v2295_v14 = vadd.f32 %v2294_v54, %v2264_v7 }
 0x2be   : > { %v2296_v29 = vadd.f32 %v2295_v14, %v2265_v18 }
 0x2c0   : > { %v2297_v4 = vadd.f32 %v2296_v29, %v2266_v26 }
 0x2c2   : > { %v2298_v31 = vadd.f32 %v2297_v4, %v2267_v32 }
 0x2c4   : > { %v2299_v13 = vadd.f32 %v2298_v31, %v2268_v3 }
 0x2c6   : > { %v2300_v17 = vadd.f32 %v2299_v13, %v2269_v28 }
 0x2c8   : > { %v2301_v60 = vadd.f32 %v2300_v17, %v2270_v16 }
 0x2ca   : > { %v2302_v40 = vrot.slane %v2301_v60, 4 }
 0x2cc   : > { %v2303_v22 = vadd.f32 %v2302_v40, %v2301_v60 }
 0x2ce   : > { %v2304_v8 = vrot.slane %v2303_v22, 2 }
 0x2d0   : > { %v2305_v49 = vadd.f32 %v2304_v8, %v2303_v22 }
 0x2d2   : > { %v2306_v33 = vrot.slane %v2305_v49, 1 }
 0x2d4   : > { %v2307_v43 = vadd.f32 %v2306_v33, %v2305_v49 }
 0x2d6   : > { %v2308_v27 = vmul.f32 0.00390625, %v2307_v43 }
 0x2d8   : > { %v2309_v1 = vadd.f32 1e-05, %v2308_v27 }
 0x2da   : > { %6152 = vrsqrt.f32 %v2309_v1 }
 0x2e7   : > { %v7872_v46 = vpop.eup %6152 }
 0x2e8   : > { %v2313_v61 = vmul.f32 %v7872_v46, %v7733_v55  ;;  %v2314_v25 = vmul.f32 %v7872_v46, %v7742_v58  ;;  %v2315_v39 = vmul.f32 %v7872_v46, %v7746_v9  ;;  %v2316_v2 = vmul.f32 %v7872_v46, %v7752_v19 }
 0x2e9   : > { %v2311_v54 = vmul.f32 %v7872_v46, %v7723_v48  ;;  %v2317_v18 = vmul.f32 %v7872_v46, %v7758_v38  ;;  %v2318_v55 = vmul.f32 %v7872_v46, %v7764_v62  ;;  %v2312_v58 = vmul.f32 %v7872_v46, %v7727_v6 }
 0x2ea   : > { %v2345_v34 = vmax.f32 %v2313_v61, 0.0  ;;  %v2346_v5 = vmax.f32 %v2314_v25, 0.0  ;;  %v2347_v36 = vmax.f32 %v2315_v39, 0.0  ;;  %v2348_v7 = vmax.f32 %v2316_v2, 0.0 }
 0x2eb   : > { %v2319_v9 = vmul.f32 %v7872_v46, %v7770_v11  ;;  %v2320_v19 = vmul.f32 %v7872_v46, %v7776_v12  ;;  %v2343_v48 = vmax.f32 %v2311_v54, 0.0  ;;  %v2349_v29 = vmax.f32 %v2317_v18, 0.0  ;;  %v6130_v18 = vld [vmem:[#allocation5 + $0x1b8] sm:$0xff]  }
 0x2ec   : > { %v7894_v14 = vpack.c.bf16 %v2346_v5, %v2345_v34  ;;  %v7896_v26 = vpack.c.bf16 %v2348_v7, %v2347_v36  ;;  %v2350_v32 = vmax.f32 %v2318_v55, 0.0  ;;  %v2344_v3 = vmax.f32 %v2312_v58, 0.0 }
 0x2ed   : > { %v2351_v38 = vmax.f32 %v2319_v9, 0.0  ;;  %v2352_v4 = vmax.f32 %v2320_v19, 0.0  ;;  %v2321_v11 = vmul.f32 %v7872_v46, %v7782_v15  ;;  %v2322_v12 = vmul.f32 %v7872_v46, %v7788_v30  ;;  %v6105_v19 = vld [vmem:[#allocation5 + $0xb0] sm:$0xff]  }
 0x2ee   : > { %v2457_v62 = vshll.u32 %v7894_v14, 16  ;;  %v7900_v6 = vshll.u32 %v7896_v26, 16  ;;  %v2323_v31 = vmul.f32 %v7872_v46, %v7794_v37  ;;  %v7908_v28 = vpack.c.bf16 %v2344_v3, %v2343_v48 }
 0x2ef   : > { %v2324_v13 = vmul.f32 %v7872_v46, %v7800_v57  ;;  %v7912_v16 = vpack.c.bf16 %v2350_v32, %v2349_v29  ;;  %v7915_v17 = vshrl.u32 %v7894_v14, 16  ;;  %v7917_v40 = vpack.c.bf16 %v2352_v4, %v2351_v38  ;;  %v6109_v38 = vld [vmem:[#allocation5 + $0x70] sm:$0xff]  }
 0x2f0   : > { %v2552_v60 = vrot.slane %v2457_v62, 1  ;;  %v2461_v15 = vshll.u32 %v7908_v28, 16  ;;  %2905 = vmatprep.mubr.bf16.mxu1 %v7908_v28  ;;  %v2396_v30 = vshrl.u32 %v7908_v28, 16  ;;  %v2556_v37 = vrot.slane %v7900_v6, 1 }
 0x2f1   : > { %v2353_v8 = vmax.f32 %v2321_v11, 0.0  ;;  %v7925_v33 = vshrl.u32 %v7896_v26, 16  ;;  %v2354_v43 = vmax.f32 %v2322_v12, 0.0  ;;  %v2355_v27 = vmax.f32 %v2323_v31, 0.0 }
 0x2f2   : > { %v2553_v22 = vor.u32 %v2552_v60, %v7915_v17  ;;  %v2460_v57 = vrot.slane %v2396_v30, 7  ;;  %v2554_v49 = vrot.slane %v2461_v15, 1  ;;  %v2356_v1 = vmax.f32 %v2324_v13, 0.0 }
 0x2f3   : > { %v7928_v61 = vshll.u32 %v7912_v16, 16  ;;  %v2557_v2 = vor.u32 %v2556_v37, %v7925_v33  ;;  %v7932_v34 = vshll.u32 %v7917_v40, 16  ;;  %v7936_v5 = vmul.f32 %v7872_v46, %v7716_v52  ;;  %v6108_v52 = vld [vmem:[#allocation5 + $0x38] sm:$0xff]  }
 0x2f4   : > { %v2463_v25 = vor.u32 %v2461_v15, %v2460_v57  ;;  %v2555_v39 = vor.u32 %v2554_v49, %v2396_v30  ;;  %v7940_v7 = vsel %vm6585_vm4, %v2553_v22, %v2457_v62  ;;  %v2325_v54 = vmul.f32 %v7872_v46, %v7806_v21 }
 0x2f5   : > { %v2456_v9 = vrot.slane %v7915_v17, 7  ;;  %v2326_v48 = vmul.f32 %v7872_v46, %v7812_v45  ;;  %v2327_v29 = vmul.f32 %v7872_v46, %v7818_v47  ;;  %v7957_v32 = vpack.c.bf16 %v2354_v43, %v2353_v8 }
 0x2f6   : > { %v7946_v55 = vsel %vm6597_vm5, %v2396_v30, %v2463_v25  ;;  %v7950_v58 = vsel %vm6585_vm4, %v2555_v39, %v2461_v15  ;;  %v2558_v21 = vrot.slane %v7928_v61, 1  ;;  %v2328_v4 = vmul.f32 %v7872_v46, %v7824_v56  ;;  %v6106_v15 = vld [vmem:[#allocation5 + $0xa8] sm:$0xff]  }
 0x2f7   : > { %2906 = vmatmul.mubr.bf16.vlgmr.msra.gmra.mxu1 %v7946_v55  ;;  %5817 = vmatprep.mubr.bf16.mxu0 %v7950_v58  ;;  %v7964_v3 = vpack.c.bf16 %v2356_v1, %v2355_v27  ;;  %v7971_v45 = vsel %vm6585_vm4, %v2557_v2, %v7900_v6  ;;  %v2560_v47 = vrot.slane %v7932_v34, 1  ;;  %v2342_v11 = vmul.f32 %v7872_v46, %v7719_v59  ;;  %v6110_v59 = vld [vmem:[#allocation5 + $0x30] sm:$0xff]  }
 0x2f8   : > { %2913 = vmatprep.mubr.bf16.mxu1 %v7894_v14  ;;  %5818 = vmatmul.mubr.bf16.vlgmr.msra.gmra.mxu0 %v7940_v7  ;;  %v2339_v12 = vmul.f32 %v7872_v46, %v7708_v20  ;;  %v2340_v56 = vmul.f32 %v7872_v46, %v7712_v44  ;;  %v7983_v31 = vshrl.u32 %v7912_v16, 16  ;;  %v2459_v13 = vor.u32 %v2457_v62, %v2456_v9  ;;  %v6115_v9 = vld [vmem:[#allocation5 + $0xa0] sm:$0xff]  }
 0x2f9   : > { %5850 = vmatpush3.bf16.msra.mxu1 %v7729_v10  ;;  %5821 = vmatprep.mubr.bf16.mxu0 %v7971_v45  ;;  %v7986_v60 = vshrl.u32 %v7917_v40, 16  ;;  %v2357_v30 = vmax.f32 %v2325_v54, 0.0  ;;  %v2358_v20 = vmax.f32 %v2326_v48, 0.0  ;;  %v7990_v44 = vshll.u32 %v7957_v32, 16  ;;  %v6111_v10 = vld [vmem:[#allocation5 + $0x68] sm:$0xff]  }
 0x2fa   : > { %5851 = vmatprep.subr.bf16.mxu1 %v6105_v19  ;;  %5386 = vmatpush3.bf16.msra.mxu0 %v6108_v52  ;;  %v2559_v37 = vor.u32 %v2558_v21, %v7983_v31  ;;  %v2359_v22 = vmax.f32 %v2327_v29, 0.0  ;;  %v2360_v8 = vmax.f32 %v2328_v4, 0.0  ;;  %v7994_v57 = vshll.u32 %v7964_v3, 16 }
 0x2fb   : > { %5387 = vmatprep.subr.bf16.mxu0 %v6109_v38  ;;  %v2561_v62 = vor.u32 %v2560_v47, %v7986_v60  ;;  %v2373_v49 = vmax.f32 %v7936_v5, 0.0  ;;  %v2374_v43 = vmax.f32 %v2342_v11, 0.0  ;;  %v2371_v27 = vmax.f32 %v2339_v12, 0.0  ;;  %v6112_v5 = vld [vmem:[#allocation5 + $0x28] sm:$0xff]  }
 0x2fc   : > { %v2372_v1 = vmax.f32 %v2340_v56, 0.0  ;;  %v2329_v25 = vmul.f32 %v7872_v46, %v7830_v35  ;;  %v2330_v39 = vmul.f32 %v7872_v46, %v7836_v24  ;;  %v8004_v2 = vsel %vm6597_vm5, %v7915_v17, %v2459_v13  ;;  %v6113_v17 = vld [vmem:[#allocation5 + $0x60] sm:$0xff]   ;;  %v6124_v13 = vld [vmem:[#allocation5 + $0x98] sm:$0xff]  }
 0x2fd   : > { %5852 = vmatpush3.bf16.msra.mxu1 %v6105_v19  ;;  %v2464_v54 = vrot.slane %v7925_v33, 7  ;;  %v2331_v19 = vmul.f32 %v7872_v46, %v7842_v41  ;;  %v8009_v52 = vpack.c.bf16 %v2358_v20, %v2357_v30  ;;  %v8015_v35 = vsel %vm6585_vm4, %v2559_v37, %v7928_v61  ;;  %v6114_v56 = vld [vmem:[#allocation5 + $0x20] sm:$0xff]   ;;  %v6116_v37 = vld [vmem:[#allocation5 + $0x58] sm:$0xff]  }
 0x2fe   : > { %5853 = vmatprep.subr.bf16.mxu1 %v6106_v15  ;;  %5388 = vmatpush3.bf16.msra.mxu0 %v6110_v59  ;;  %v2562_v24 = vrot.slane %v7990_v44, 1  ;;  %v2332_v48 = vmul.f32 %v7872_v46, %v7680_v51  ;;  %v8020_v29 = vpack.c.bf16 %v2360_v8, %v2359_v22  ;;  %v8027_v41 = vsel %vm6585_vm4, %v2561_v62, %v7932_v34 }
 0x2ff   : > { %2914 = vmatmul.mubr.bf16.gmra.mxu1 %v8004_v2  ;;  %5389 = vmatprep.subr.bf16.mxu0 %v6111_v10  ;;  %v2564_v21 = vrot.slane %v7994_v57, 1  ;;  %v8030_v38 = vpack.c.bf16 %v2372_v1, %v2371_v27  ;;  %v8034_v4 = vshrl.u32 %v7957_v32, 16  ;;  %v8036_v51 = vpack.c.bf16 %v2374_v43, %v2373_v49  ;;  %v6117_v1 = vld [vmem:[#allocation5 + $0x18] sm:$0xff]  }
 0x300   : > { %2921 = vmatprep.mubr.bf16.mxu1 %v7896_v26  ;;  %5822 = vmatmul.mubr.bf16.gmra.mxu0 %v8015_v35  ;;  %v8040_v47 = vmul.f32 %v7872_v46, %v7684_v0  ;;  %v2467_v11 = vor.u32 %v7900_v6, %v2464_v54  ;;  %v8044_v12 = vshrl.u32 %v7964_v3, 16  ;;  %v2361_v59 = vmax.f32 %v2329_v25, 0.0 }
 0x301   : > { %5825 = vmatprep.mubr.bf16.mxu0 %v8027_v41  ;;  %5854 = vmatpush3.bf16.msra.mxu1 %v6106_v15  ;;  %v2362_v30 = vmax.f32 %v2330_v39, 0.0  ;;  %v2563_v20 = vor.u32 %v2562_v24, %v8034_v4  ;;  %v8048_v15 = vshll.u32 %v8009_v52, 16  ;;  %v2363_v0 = vmax.f32 %v2331_v19, 0.0 }
 0x302   : > { %5390 = vmatpush3.bf16.msra.mxu0 %v6112_v5  ;;  %5855 = vmatprep.subr.bf16.mxu1 %v6115_v9  ;;  %v2364_v10 = vmax.f32 %v2332_v48, 0.0  ;;  %v2565_v6 = vor.u32 %v2564_v21, %v8044_v12  ;;  %v8052_v22 = vshll.u32 %v8020_v29, 16  ;;  %v2334_v8 = vmul.f32 %v7872_v46, %v7688_v53  ;;  %v6125_v53 = vld [vmem:[#allocation5 + $0x90] sm:$0xff]  }
 0x303   : > { %5391 = vmatprep.subr.bf16.mxu0 %v6113_v17  ;;  %v8057_v62 = vshrl.u32 %v8030_v38, 16  ;;  %v8061_v49 = vmul.f32 %v7872_v46, %v7692_v23  ;;  %v8066_v43 = vsel %vm6597_vm5, %v7925_v33, %v2467_v11  ;;  %v2468_v27 = vrot.slane %v7983_v31, 7  ;;  %v6118_v5 = vld [vmem:[#allocation5 + $0x50] sm:$0xff]  }
 0x304   : > { %v8070_v25 = vshrl.u32 %v8036_v51, 16  ;;  %v2336_v39 = vmul.f32 %v7872_v46, %v7696_v42  ;;  %v8074_v54 = vpack.c.bf16 %v2362_v30, %v2361_v59  ;;  %v8080_v23 = vsel %vm6585_vm4, %v2563_v20, %v7990_v44  ;;  %v6119_v59 = vld [vmem:[#allocation5 + $0x10] sm:$0xff]   ;;  %v6126_v20 = vld [vmem:[#allocation5 + $0x88] sm:$0xff]  }
 0x305   : > { %5856 = vmatpush3.bf16.msra.mxu1 %v6115_v9  ;;  %v2566_v33 = vrot.slane %v8048_v15, 1  ;;  %v2365_v9 = vmax.f32 %v8040_v47, 0.0  ;;  %v8084_v19 = vpack.c.bf16 %v2364_v10, %v2363_v0  ;;  %v8091_v42 = vsel %vm6585_vm4, %v2565_v6, %v7994_v57 }
 0x306   : > { %5392 = vmatpush3.bf16.msra.mxu0 %v6114_v56  ;;  %5857 = vmatprep.subr.bf16.mxu1 %v6124_v13  ;;  %9329 = vst [vmem:[#allocation13_spill] sm:$0xff] %v8091_v42  ;;  %v2568_v24 = vrot.slane %v8052_v22, 1  ;;  %v2366_v17 = vmax.f32 %v2334_v8, 0.0  ;;  %v8096_v48 = vshrl.u32 %v8009_v52, 16  ;;  %v8099_v21 = vshll.u32 %v8030_v38, 16 }
 0x307   : > { %2922 = vmatmul.mubr.bf16.gmra.mxu1 %v8066_v43  ;;  %5393 = vmatprep.subr.bf16.mxu0 %v6116_v37  ;;  %v2512_v47 = vrot.slane %v8057_v62, 7  ;;  %v2471_v11 = vor.u32 %v7928_v61, %v2468_v27  ;;  %v8104_v56 = vshrl.u32 %v8020_v29, 16  ;;  %v8107_v30 = vshll.u32 %v8036_v51, 16  ;;  %v6120_v61 = vld [vmem:[#allocation5 + $0x48] sm:$0xff]  }
 0x308   : > { %2929 = vmatprep.mubr.bf16.mxu1 %v7912_v16  ;;  %5826 = vmatmul.mubr.bf16.gmra.mxu0 %v8080_v23  ;;  %v2516_v37 = vrot.slane %v8070_v25, 7  ;;  %v2367_v0 = vmax.f32 %v8061_v49, 0.0  ;;  %v8113_v10 = vshll.u32 %v8074_v54, 16  ;;  %v2368_v8 = vmax.f32 %v2336_v39, 0.0 }
 0x309   : > { %5829 = vmatprep.mubr.bf16.mxu0 %v8091_v42  ;;  %5858 = vmatpush3.bf16.msra.mxu1 %v6124_v13  ;;  %v2567_v13 = vor.u32 %v2566_v33, %v8096_v48  ;;  %v2515_v6 = vor.u32 %v8099_v21, %v2512_v47  ;;  %v2569_v27 = vor.u32 %v2568_v24, %v8104_v56  ;;  %v6121_v24 = vld [vmem:[#allocation5 + $0x8] sm:$0xff]   ;;  %v6127_v47 = vld [vmem:[#allocation5 + $0x80] sm:$0xff]  }
 0x30a   : > { %5394 = vmatpush3.bf16.msra.mxu0 %v6117_v1  ;;  %5859 = vmatprep.subr.bf16.mxu1 %v6125_v53  ;;  %v8118_v1 = vshll.u32 %v8084_v19, 16  ;;  %v2519_v42 = vor.u32 %v8107_v30, %v2516_v37  ;;  %v2337_v33 = vmul.f32 %v7872_v46, %v7700_v50  ;;  %v8131_v39 = vsel %vm6597_vm5, %v7983_v31, %v2471_v11 }
 0x30b   : > { %5395 = vmatprep.subr.bf16.mxu0 %v6118_v5  ;;  %v8124_v49 = vsel %vm6597_vm5, %v8057_v62, %v2515_v6  ;;  %v2472_v5 = vrot.slane %v7986_v60, 7  ;;  %v2338_v37 = vmul.f32 %v7872_v46, %v7704_v63  ;;  %v8141_v50 = vpack.c.bf16 %v2366_v17, %v2365_v9 }
 0x30c   : > { %v8147_v31 = vsel %vm6585_vm4, %v2567_v13, %v8048_v15  ;;  %v2570_v11 = vrot.slane %v8113_v10, 1  ;;  %v8150_v6 = vpack.c.bf16 %v2368_v8, %v2367_v0  ;;  %v8157_v63 = vsel %vm6585_vm4, %v2569_v27, %v8052_v22  ;;  %v6123_v0 = vld [vmem:[#allocation5] sm:$0xff]   ;;  %v6129_v13 = vld [vmem:[#allocation5 + $0x1f8] sm:$0xff]  }
 0x30d   : > { %5860 = vmatpush3.bf16.msra.mxu1 %v6125_v53  ;;  %v8137_v53 = vsel %vm6597_vm5, %v8070_v25, %v2519_v42  ;;  %9330 = vst [vmem:[#allocation18_spill] sm:$0xff] %v8147_v31  ;;  %9331 = vst [vmem:[#allocation16_spill] sm:$0xff] %v8157_v63  ;;  %v2572_v46 = vrot.slane %v8118_v1, 1  ;;  %v8162_v9 = vshrl.u32 %v8074_v54, 16  ;;  %v2475_v42 = vor.u32 %v7932_v34, %v2472_v5 }
 0x30e   : > { %5396 = vmatpush3.bf16.msra.mxu0 %v6119_v59  ;;  %5861 = vmatprep.subr.bf16.mxu1 %v6126_v20  ;;  %v6122_v59 = vld [vmem:[#allocation5 + $0x40] sm:$0xff]   ;;  %v8166_v17 = vshrl.u32 %v8084_v19, 16  ;;  %v2370_v8 = vmax.f32 %v2338_v37, 0.0  ;;  %v8176_v34 = vshll.u32 %v8150_v6, 16 }
 0x30f   : > { %2930 = vmatmul.mubr.bf16.gmra.mxu1 %v8131_v39  ;;  %5397 = vmatprep.subr.bf16.mxu0 %v6120_v61  ;;  %v2369_v61 = vmax.f32 %v2337_v33, 0.0  ;;  %v2571_v27 = vor.u32 %v2570_v11, %v8162_v9  ;;  %v8181_v5 = vsel %vm6597_vm5, %v7986_v60, %v2475_v42  ;;  %v2476_v33 = vrot.slane %v8034_v4, 7 }
 0x310   : > { %2937 = vmatprep.mubr.bf16.mxu1 %v7917_v40  ;;  %5830 = vmatmul.mubr.bf16.gmra.mxu0 %v8147_v31  ;;  %v8170_v31 = vshll.u32 %v8141_v50, 16  ;;  %v2576_v11 = vrot.slane %v8176_v34, 1  ;;  %v8208_v42 = vshrl.u32 %v8150_v6, 16 }
 0x311   : > { %5833 = vmatprep.mubr.bf16.mxu0 %v8157_v63  ;;  %5862 = vmatpush3.bf16.msra.mxu1 %v6126_v20  ;;  %v8172_v63 = vld [vmem:[#allocation5 + $0x238] sm:$0xff]   ;;  %v2573_v20 = vor.u32 %v2572_v46, %v8166_v17  ;;  %v8190_v37 = vsel %vm6585_vm4, %v2571_v27, %v8113_v10  ;;  %v2479_v46 = vor.u32 %v7990_v44, %v2476_v33  ;;  %v2480_v27 = vrot.slane %v8044_v12, 7 }
 0x312   : > { %5398 = vmatpush3.bf16.msra.mxu0 %v6121_v24  ;;  %5863 = vmatprep.subr.bf16.mxu1 %v6127_v47  ;;  %v8184_v24 = vpack.c.bf16 %v2370_v8, %v2369_v61  ;;  %v2577_v61 = vor.u32 %v2576_v11, %v8208_v42  ;;  %v2580_v33 = vrot.slane %v8099_v21, 1 }
 0x313   : > { %5399 = vmatprep.subr.bf16.mxu0 %v6122_v59  ;;  %v8199_v60 = vsel %vm6585_vm4, %v2573_v20, %v8118_v1  ;;  %v8204_v59 = vshrl.u32 %v8141_v50, 16  ;;  %v8218_v8 = vsel %vm6597_vm5, %v8034_v4, %v2479_v46  ;;  %v2483_v11 = vor.u32 %v7994_v57, %v2480_v27 }
 0x314   : > { %v8233_v4 = vsel %vm6585_vm4, %v2577_v61, %v8176_v34  ;;  %v2484_v61 = vrot.slane %v8096_v48, 7  ;;  %v2582_v57 = vrot.slane %v8107_v30, 1 }
 0x315   : > { %5864 = vmatpush3.bf16.msra.mxu1 %v6127_v47  ;;  %v2574_v47 = vrot.slane %v8170_v31, 1  ;;  %9333 = vst [vmem:[#allocation17_spill] sm:$0xff] %v8233_v4 }
 0x316   : > { %5400 = vmatpush3.bf16.msra.mxu0 %v6123_v0  ;;  %5521 = vmatprep.subr.bf16.mxu1 %v6129_v13  ;;  %v8212_v13 = vshll.u32 %v8184_v24, 16  ;;  %v2583_v27 = vor.u32 %v2582_v57, %v8070_v25  ;;  %v6151_v57 = vld [vmem:[#allocation5 + $0x200] sm:$0xff]  }
 0x317   : > { %2938 = vmatmul.mubr.bf16.gmra.mxu1 %v8181_v5  ;;  %5897 = vmatprep.subr.bf16.mxu0 %v8172_v63  ;;  %v2575_v0 = vor.u32 %v2574_v47, %v8204_v59  ;;  %v8238_v47 = vshrl.u32 %v8184_v24, 16 }
 0x318   : > { %2945 = vmatprep.mubr.bf16.mxu1 %v7957_v32  ;;  %5834 = vmatmul.mubr.bf16.gmra.mxu0 %v8190_v37  ;;  %v2578_v20 = vrot.slane %v8212_v13, 1 }
 0x319   : > { %5837 = vmatprep.mubr.bf16.mxu0 %v8199_v60  ;;  %v8225_v44 = vsel %vm6585_vm4, %v2575_v0, %v8170_v31  ;;  %v2581_v0 = vor.u32 %v2580_v33, %v8057_v62  ;;  %v2487_v62 = vor.u32 %v8048_v15, %v2484_v61  ;;  %v2488_v33 = vrot.slane %v8104_v56, 7 }
 0x31a   : > { %9332 = vst [vmem:[#allocation15_spill] sm:$0xff] %v8225_v44  ;;  %v2579_v46 = vor.u32 %v2578_v20, %v8238_v47  ;;  %v2504_v61 = vrot.slane %v8208_v42, 7 }
 0x31b   : > { %v8269_v20 = vsel %vm6597_vm5, %v8096_v48, %v2487_v62  ;;  %v2491_v15 = vor.u32 %v8052_v22, %v2488_v33  ;;  %v2492_v48 = vrot.slane %v8162_v9, 7  ;;  %v6138_v22 = vld [vmem:[#allocation5 + $0x228] sm:$0xff]   ;;  %v2508_v62 = vrot.slane %v8238_v47, 7 }
 0x31c   : > { %v6135_v33 = vld [vmem:[#allocation5 + $0x1a8] sm:$0xff]  }
 0x31d   : > { %v8285_v25 = vsel %vm6597_vm5, %v8104_v56, %v2491_v15  ;;  %v2495_v36 = vor.u32 %v8113_v10, %v2492_v48  ;;  %v6146_v10 = vld [vmem:[#allocation5 + $0x218] sm:$0xff]   ;;  %v6136_v15 = vld [vmem:[#allocation5 + $0x1e0] sm:$0xff]  }
 0x31e   : > { %v6139_v48 = vld [vmem:[#allocation5 + $0x1d8] sm:$0xff]  }
 0x31f   : > { %2946 = vmatmul.mubr.bf16.gmra.mxu1 %v8218_v8  ;;  %v8297_v56 = vsel %vm6597_vm5, %v8162_v9, %v2495_v36  ;;  %v2500_v9 = vrot.slane %v8204_v59, 7  ;;  %v6141_v36 = vld [vmem:[#allocation5 + $0x1d0] sm:$0xff]  }
 0x320   : > { %2953 = vmatprep.mubr.bf16.mxu1 %v7964_v3  ;;  %5838 = vmatmul.mubr.bf16.gmra.mxu0 %v8225_v44  ;;  %v8246_v44 = vsel %vm6597_vm5, %v8044_v12, %v2483_v11  ;;  %v8261_v12 = vsel %vm6585_vm4, %v2581_v0, %v8099_v21  ;;  %v8276_v21 = vsel %vm6585_vm4, %v2583_v27, %v8107_v30  ;;  %v6133_v11 = vld [vmem:[#allocation5 + $0x230] sm:$0xff]   ;;  %v2496_v30 = vrot.slane %v8166_v17, 7 }
 0x321   : > { %5841 = vmatprep.mubr.bf16.mxu0 %v8233_v4  ;;  %v8253_v4 = vsel %vm6585_vm4, %v2579_v46, %v8212_v13  ;;  %v6143_v46 = vld [vmem:[#allocation5 + $0x220] sm:$0xff]   ;;  %v6147_v0 = vld [vmem:[#allocation5 + $0x210] sm:$0xff]   ;;  %v2511_v27 = vor.u32 %v8212_v13, %v2508_v62 }
 0x322   : > { %v6132_v13 = vld [vmem:[#allocation5 + $0x1b0] sm:$0xff]  }
 0x327   : > { %2954 = vmatmul.mubr.bf16.gmra.mxu1 %v8246_v44 }
 0x328   : > { %2961 = vmatprep.mubr.bf16.mxu1 %v8009_v52  ;;  %5842 = vmatmul.mubr.bf16.gmra.mxu0 %v8253_v4 }
 0x329   : > { %5845 = vmatprep.mubr.bf16.mxu0 %v8261_v12 }
 0x32f   : > { %2962 = vmatmul.mubr.bf16.gmra.mxu1 %v8269_v20 }
 0x330   : > { %2969 = vmatprep.mubr.bf16.mxu1 %v8020_v29  ;;  %5846 = vmatmul.mubr.bf16.gmra.mxu0 %v8276_v21 }
 0x331   : > { %3371 = vmatprep.mubr.bf16.mxu0 %v7894_v14 }
 0x337   : > { %2970 = vmatmul.mubr.bf16.gmra.mxu1 %v8285_v25 }
 0x338   : > { %2977 = vmatprep.mubr.bf16.mxu1 %v8074_v54  ;;  %3372 = vmatmul.mubr.bf16.vlgmr.msra.gmra.mxu0 %v8004_v2 }
 0x339   : > { %3379 = vmatprep.mubr.bf16.mxu0 %v7908_v28  ;;  %5898 = vmatpush3.bf16.msra.mxu0 %v8172_v63  ;;  %v2499_v28 = vor.u32 %v8118_v1, %v2496_v30  ;;  %v6150_v1 = vld [vmem:[#allocation5 + $0x208] sm:$0xff]  }
 0x33a   : > { %5899 = vmatprep.subr.bf16.mxu0 %v6133_v11  ;;  %v6144_v30 = vld [vmem:[#allocation5 + $0x1c8] sm:$0xff]  }
 0x33b   : > { %v8308_v63 = vsel %vm6597_vm5, %v8166_v17, %v2499_v28  ;;  %v6148_v28 = vld [vmem:[#allocation5 + $0x1c0] sm:$0xff]  }
 0x33d   : > { %5900 = vmatpush3.bf16.msra.mxu0 %v6133_v11  ;;  %v6140_v11 = vld [vmem:[#allocation5 + $0x198] sm:$0xff]  }
 0x33e   : > { %5901 = vmatprep.subr.bf16.mxu0 %v6138_v22 }
 0x33f   : > { %2978 = vmatmul.mubr.bf16.gmra.mxu1 %v8297_v56 }
 0x340   : > { %2985 = vmatprep.mubr.bf16.mxu1 %v8084_v19  ;;  %3380 = vmatmul.mubr.bf16.gmra.mxu0 %v7946_v55  ;;  %v2503_v55 = vor.u32 %v8170_v31, %v2500_v9  ;;  %v2507_v31 = vor.u32 %v8176_v34, %v2504_v61  ;;  %v8341_v34 = vsel %vm6597_vm5, %v8238_v47, %v2511_v27  ;;  %v6134_v47 = vld [vmem:[#allocation5 + $0x1e8] sm:$0xff]   ;;  %v9335_v9 = vld [vmem:[#allocation18_spill] sm:$0xff]  ;;  %v9338_v61 = vld [vmem:[#allocation17_spill] sm:$0xff] }
 0x341   : > { %3387 = vmatprep.mubr.bf16.mxu0 %v7894_v14  ;;  %5902 = vmatpush3.bf16.msra.mxu0 %v6138_v22  ;;  %v6142_v22 = vld [vmem:[#allocation5 + $0x190] sm:$0xff]  }
 0x342   : > { %5903 = vmatprep.subr.bf16.mxu0 %v6143_v46  ;;  %v8319_v17 = vsel %vm6597_vm5, %v8204_v59, %v2503_v55  ;;  %v8330_v59 = vsel %vm6597_vm5, %v8208_v42, %v2507_v31  ;;  %v6131_v42 = vld [vmem:[#allocation5 + $0x1f0] sm:$0xff]   ;;  %v9336_v55 = vld [vmem:[#allocation16_spill] sm:$0xff] }
 0x345   : > { %5904 = vmatpush3.bf16.msra.mxu0 %v6143_v46  ;;  %v6145_v46 = vld [vmem:[#allocation5 + $0x188] sm:$0xff]  }
 0x346   : > { %5905 = vmatprep.subr.bf16.mxu0 %v6146_v10 }
 0x347   : > { %2986 = vmatmul.mubr.bf16.gmra.mxu1 %v8308_v63 }
 0x348   : > { %2993 = vmatprep.mubr.bf16.mxu1 %v8141_v50  ;;  %3388 = vmatmul.mubr.bf16.gmra.mxu0 %v8004_v2 }
 0x349   : > { %3395 = vmatprep.mubr.bf16.mxu0 %v7896_v26  ;;  %5906 = vmatpush3.bf16.msra.mxu0 %v6146_v10  ;;  %v9334_v10 = vld [vmem:[#allocation13_spill] sm:$0xff] }
 0x34a   : > { %5907 = vmatprep.subr.bf16.mxu0 %v6147_v0 }
 0x34d   : > { %5908 = vmatpush3.bf16.msra.mxu0 %v6147_v0  ;;  %v6149_v0 = vld [vmem:[#allocation5 + $0x180] sm:$0xff]  }
 0x34e   : > { %5909 = vmatprep.subr.bf16.mxu0 %v6150_v1 }
 0x34f   : > { %2994 = vmatmul.mubr.bf16.gmra.mxu1 %v8319_v17 }
 0x350   : > { %3001 = vmatprep.mubr.bf16.mxu1 %v8150_v6  ;;  %3396 = vmatmul.mubr.bf16.gmra.mxu0 %v8066_v43 }
 0x351   : > { %3403 = vmatprep.mubr.bf16.mxu0 %v7912_v16  ;;  %5910 = vmatpush3.bf16.msra.mxu0 %v6150_v1  ;;  %v9337_v1 = vld [vmem:[#allocation15_spill] sm:$0xff] }
 0x352   : > { %5911 = vmatprep.subr.bf16.mxu0 %v6151_v57 }
 0x355   : > { %5912 = vmatpush3.bf16.msra.mxu0 %v6151_v57 }
 0x357   : > { %3002 = vmatmul.mubr.bf16.gmra.mxu1 %v8330_v59 }
 0x358   : > { %3009 = vmatprep.mubr.bf16.mxu1 %v8184_v24  ;;  %3404 = vmatmul.mubr.bf16.gmra.mxu0 %v8131_v39 }
 0x359   : > { %3411 = vmatprep.mubr.bf16.mxu0 %v7917_v40 }
 0x35f   : > { %3010 = vmatmul.mubr.bf16.gmra.mxu1 %v8341_v34 }
 0x360   : > { %3017 = vmatprep.mubr.bf16.mxu1 %v8030_v38  ;;  %3412 = vmatmul.mubr.bf16.gmra.mxu0 %v8181_v5 }
 0x361   : > { %3419 = vmatprep.mubr.bf16.mxu0 %v7957_v32 }
 0x367   : > { %3018 = vmatmul.mubr.bf16.gmra.mxu1 %v8124_v49 }
 0x368   : > { %3025 = vmatprep.mubr.bf16.mxu1 %v8036_v51  ;;  %3420 = vmatmul.mubr.bf16.gmra.mxu0 %v8218_v8 }
 0x369   : > { %3427 = vmatprep.mubr.bf16.mxu0 %v7964_v3 }
 0x36f   : > { %3026 = vmatmul.mubr.bf16.gmra.mxu1 %v8137_v53 }
 0x370   : > { %3428 = vmatmul.mubr.bf16.gmra.mxu0 %v8246_v44  ;;  %5865 = vmatprep.mubr.bf16.mxu1 %v7940_v7 }
 0x371   : > { %3435 = vmatprep.mubr.bf16.mxu0 %v8009_v52 }
 0x377   : > { %5866 = vmatmul.mubr.bf16.vlgmr.msra.gmra.mxu1 %v7950_v58  ;;  %v6137_v58 = vld [vmem:[#allocation5 + $0x1a0] sm:$0xff]  }
 0x378   : > { %3436 = vmatmul.mubr.bf16.gmra.mxu0 %v8269_v20  ;;  %5869 = vmatprep.mubr.bf16.mxu1 %v7940_v7 }
 0x379   : > { %5522 = vmatpush3.bf16.msra.mxu1 %v6130_v18  ;;  %3443 = vmatprep.mubr.bf16.mxu0 %v8020_v29 }
 0x37a   : > { %5523 = vmatprep.subr.bf16.mxu1 %v6131_v42 }
 0x37d   : > { %5524 = vmatpush3.bf16.msra.mxu1 %v6132_v13 }
 0x37e   : > { %5525 = vmatprep.subr.bf16.mxu1 %v6134_v47 }
 0x37f   : > { %5870 = vmatmul.mubr.bf16.gmra.mxu1 %v7971_v45 }
 0x380   : > { %3444 = vmatmul.mubr.bf16.gmra.mxu0 %v8285_v25  ;;  %5873 = vmatprep.mubr.bf16.mxu1 %v8015_v35 }
 0x381   : > { %3451 = vmatprep.mubr.bf16.mxu0 %v8074_v54  ;;  %5526 = vmatpush3.bf16.msra.mxu1 %v6135_v33 }
 0x382   : > { %5527 = vmatprep.subr.bf16.mxu1 %v6136_v15 }
 0x385   : > { %5528 = vmatpush3.bf16.msra.mxu1 %v6137_v58 }
 0x386   : > { %5529 = vmatprep.subr.bf16.mxu1 %v6139_v48 }
 0x387   : > { %5874 = vmatmul.mubr.bf16.gmra.mxu1 %v8027_v41 }
 0x388   : > { %3452 = vmatmul.mubr.bf16.gmra.mxu0 %v8297_v56  ;;  %5877 = vmatprep.mubr.bf16.mxu1 %v8080_v23 }
 0x389   : > { %3459 = vmatprep.mubr.bf16.mxu0 %v8084_v19  ;;  %5530 = vmatpush3.bf16.msra.mxu1 %v6140_v11 }
 0x38a   : > { %5531 = vmatprep.subr.bf16.mxu1 %v6141_v36 }
 0x38d   : > { %5532 = vmatpush3.bf16.msra.mxu1 %v6142_v22 }
 0x38e   : > { %5533 = vmatprep.subr.bf16.mxu1 %v6144_v30 }
 0x38f   : > { %5878 = vmatmul.mubr.bf16.gmra.mxu1 %v9334_v10 }
 0x390   : > { %3460 = vmatmul.mubr.bf16.gmra.mxu0 %v8308_v63  ;;  %5881 = vmatprep.mubr.bf16.mxu1 %v9335_v9 }
 0x391   : > { %3467 = vmatprep.mubr.bf16.mxu0 %v8141_v50  ;;  %5534 = vmatpush3.bf16.msra.mxu1 %v6145_v46 }
 0x392   : > { %5535 = vmatprep.subr.bf16.mxu1 %v6148_v28 }
 0x395   : > { %5536 = vmatpush3.bf16.msra.mxu1 %v6149_v0 }
 0x397   : > { %5882 = vmatmul.mubr.bf16.gmra.mxu1 %v9336_v55 }
 0x398   : > { %3468 = vmatmul.mubr.bf16.gmra.mxu0 %v8319_v17  ;;  %5885 = vmatprep.mubr.bf16.mxu1 %v8190_v37 }
 0x399   : > { %3475 = vmatprep.mubr.bf16.mxu0 %v8150_v6 }
 0x39f   : > { %5886 = vmatmul.mubr.bf16.gmra.mxu1 %v8199_v60 }
 0x3a0   : > { %3476 = vmatmul.mubr.bf16.gmra.mxu0 %v8330_v59  ;;  %5889 = vmatprep.mubr.bf16.mxu1 %v9337_v1 }
 0x3a1   : > { %3483 = vmatprep.mubr.bf16.mxu0 %v8184_v24 }
 0x3a7   : > { %5890 = vmatmul.mubr.bf16.gmra.mxu1 %v9338_v61 }
 0x3a8   : > { %3484 = vmatmul.mubr.bf16.gmra.mxu0 %v8341_v34  ;;  %5893 = vmatprep.mubr.bf16.mxu1 %v8253_v4 }
 0x3a9   : > { %3491 = vmatprep.mubr.bf16.mxu0 %v8030_v38 }
 0x3af   : > { %5894 = vmatmul.mubr.bf16.gmra.mxu1 %v8261_v12 }
 0x3b0   : > { %3492 = vmatmul.mubr.bf16.gmra.mxu0 %v8124_v49  ;;  %3886 = vmatprep.mubr.bf16.mxu1 %v7894_v14 }
 0x3b1   : > { %5913 = vmatprep.mubr.bf16.mxu0 %v7940_v7 }
 0x3b7   : > { %v5265_v57 = vpop.f32.mrf.mxu1  ;;  %3887 = vmatmul.mubr.bf16.vlgmr.msra.gmra.mxu1 %v8004_v2 }
 0x3b8   : > { %v5819_v31 = vpop.f32.mrf.mxu0  ;;  %3894 = vmatprep.mubr.bf16.mxu1 %v7896_v26  ;;  %5914 = vmatmul.mubr.bf16.vlgmr.msra.gmra.mxu0 %v7971_v45 }
 0x3b9   : > { %v5266_v62 = vpop.f32.mrf.mxu1  ;;  %5917 = vmatprep.mubr.bf16.mxu0 %v8015_v35 }
 0x3ba   : > { %v5267_v27 = vadd.f32 %v5266_v62, %v5265_v57  ;;  %v3068_v18 = vpop.f32.mrf.mxu0 }
 0x3bb   : > { %v5268_v42 = vpop.f32.mrf.mxu1 }
 0x3bc   : > { %v8391_v13 = vadd.f32 %v5267_v27, %v3068_v18  ;;  %v5820_v47 = vpop.f32.mrf.mxu0 }
 0x3bd   : > { %v5269_v14 = vpop.f32.mrf.mxu1 }
 0x3be   : > { %v5270_v33 = vadd.f32 %v5269_v14, %v5268_v42  ;;  %v3071_v7 = vpop.f32.mrf.mxu0 }
 0x3bf   : > { %v5271_v15 = vpop.f32.mrf.mxu1  ;;  %3895 = vmatmul.mubr.bf16.gmra.mxu1 %v8066_v43 }
 0x3c0   : > { %v8394_v2 = vadd.f32 %v5270_v33, %v3071_v7  ;;  %v5823_v26 = vpop.f32.mrf.mxu0  ;;  %3902 = vmatprep.mubr.bf16.mxu1 %v7912_v16  ;;  %5918 = vmatmul.mubr.bf16.gmra.mxu0 %v8027_v41 }
 0x3c1   : > { %v5272_v45 = vpop.f32.mrf.mxu1  ;;  %5921 = vmatprep.mubr.bf16.mxu0 %v8080_v23 }
 0x3c2   : > { %v5273_v35 = vadd.f32 %v5272_v45, %v5271_v15  ;;  %v3084_v58 = vpop.f32.mrf.mxu0 }
 0x3c3   : > { %v5274_v48 = vpop.f32.mrf.mxu1 }
 0x3c4   : > { %v8399_v11 = vadd.f32 %v5819_v31, %v5273_v35  ;;  %v5824_v36 = vpop.f32.mrf.mxu0 }
 0x3c5   : > { %v5275_v22 = vpop.f32.mrf.mxu1 }
 0x3c6   : > { %v5276_v30 = vadd.f32 %v5275_v22, %v5274_v48  ;;  %v3087_v46 = vpop.f32.mrf.mxu0 }
 0x3c7   : > { %v5277_v43 = vpop.f32.mrf.mxu1  ;;  %3903 = vmatmul.mubr.bf16.gmra.mxu1 %v8131_v39 }
 0x3c8   : > { %v8402_v28 = vadd.f32 %v5820_v47, %v5276_v30  ;;  %v5827_v16 = vpop.f32.mrf.mxu0  ;;  %3910 = vmatprep.mubr.bf16.mxu1 %v7917_v40  ;;  %5922 = vmatmul.mubr.bf16.gmra.mxu0 %v9334_v10 }
 0x3c9   : > { %v5278_v41 = vpop.f32.mrf.mxu1  ;;  %5925 = vmatprep.mubr.bf16.mxu0 %v9335_v9 }
 0x3ca   : > { %v5279_v23 = vadd.f32 %v5278_v41, %v5277_v43  ;;  %v3100_v0 = vpop.f32.mrf.mxu0 }
 0x3cb   : > { %v5280_v57 = vpop.f32.mrf.mxu1 }
 0x3cc   : > { %v8407_v31 = vadd.f32 %v5279_v23, %v3084_v58  ;;  %v5828_v62 = vpop.f32.mrf.mxu0 }
 0x3cd   : > { %v5281_v27 = vpop.f32.mrf.mxu1 }
 0x3ce   : > { %v5282_v18 = vadd.f32 %v5281_v27, %v5280_v57  ;;  %v3103_v42 = vpop.f32.mrf.mxu0 }
 0x3cf   : > { %v5283_v39 = vpop.f32.mrf.mxu1  ;;  %3911 = vmatmul.mubr.bf16.gmra.mxu1 %v8181_v5 }
 0x3d0   : > { %v8410_v47 = vadd.f32 %v5282_v18, %v3087_v46  ;;  %v8412_v40 = vpop.f32.mrf.mxu0  ;;  %3918 = vmatprep.mubr.bf16.mxu1 %v7957_v32  ;;  %5926 = vmatmul.mubr.bf16.gmra.mxu0 %v9336_v55 }
 0x3d1   : > { %v5284_v10 = vpop.f32.mrf.mxu1  ;;  %5929 = vmatprep.mubr.bf16.mxu0 %v8190_v37 }
 0x3d2   : > { %v5285_v9 = vadd.f32 %v5284_v10, %v5283_v39  ;;  %v3116_v14 = vpop.f32.mrf.mxu0 }
 0x3d3   : > { %v5286_v33 = vpop.f32.mrf.mxu1 }
 0x3d4   : > { %v8417_v7 = vadd.f32 %v5823_v26, %v5285_v9  ;;  %v8419_v15 = vpop.f32.mrf.mxu0 }
 0x3d5   : > { %v5287_v45 = vpop.f32.mrf.mxu1 }
 0x3d6   : > { %v5288_v5 = vadd.f32 %v5287_v45, %v5286_v33  ;;  %v3119_v35 = vpop.f32.mrf.mxu0 }
 0x3d7   : > { %v5289_v58 = vpop.f32.mrf.mxu1  ;;  %3919 = vmatmul.mubr.bf16.gmra.mxu1 %v8218_v8 }
 0x3d8   : > { %v8422_v48 = vadd.f32 %v5824_v36, %v5288_v5  ;;  %v8424_v32 = vpop.f32.mrf.mxu0  ;;  %3926 = vmatprep.mubr.bf16.mxu1 %v7964_v3  ;;  %5930 = vmatmul.mubr.bf16.gmra.mxu0 %v8199_v60 }
 0x3d9   : > { %v5290_v37 = vpop.f32.mrf.mxu1  ;;  %5933 = vmatprep.mubr.bf16.mxu0 %v9337_v1 }
 0x3da   : > { %v5291_v55 = vadd.f32 %v5290_v37, %v5289_v58  ;;  %v8429_v26 = vpop.f32.mrf.mxu0 }
 0x3db   : > { %v5292_v22 = vpop.f32.mrf.mxu1 }
 0x3dc   : > { %v8431_v30 = vadd.f32 %v5291_v55, %v3100_v0  ;;  %v8433_v46 = vpop.f32.mrf.mxu0 }
 0x3dd   : > { %v5293_v8 = vpop.f32.mrf.mxu1 }
 0x3de   : > { %v5294_v36 = vadd.f32 %v5293_v8, %v5292_v22  ;;  %v8435_v43 = vpop.f32.mrf.mxu0 }
 0x3df   : > { %v5295_v41 = vpop.f32.mrf.mxu1  ;;  %3927 = vmatmul.mubr.bf16.gmra.mxu1 %v8246_v44 }
 0x3e0   : > { %v8438_v3 = vadd.f32 %v5294_v36, %v3103_v42  ;;  %v8440_v60 = vpop.f32.mrf.mxu0  ;;  %3934 = vmatprep.mubr.bf16.mxu1 %v8009_v52  ;;  %5934 = vmatmul.mubr.bf16.gmra.mxu0 %v9338_v61 }
 0x3e1   : > { %v5296_v1 = vpop.f32.mrf.mxu1  ;;  %5937 = vmatprep.mubr.bf16.mxu0 %v8253_v4 }
 0x3e2   : > { %v5297_v23 = vadd.f32 %v5296_v1, %v5295_v41  ;;  %v8445_v0 = vpop.f32.mrf.mxu0 }
 0x3e3   : > { %v5298_v57 = vpop.f32.mrf.mxu1 }
 0x3e4   : > { %v8447_v27 = vadd.f32 %v5827_v16, %v5297_v23  ;;  %v8449_v18 = vpop.f32.mrf.mxu0 }
 0x3e5   : > { %v5299_v44 = vpop.f32.mrf.mxu1 }
 0x3e6   : > { %v5300_v42 = vadd.f32 %v5299_v44, %v5298_v57  ;;  %v8451_v39 = vpop.f32.mrf.mxu0 }
 0x3e7   : > { %v5301_v10 = vpop.f32.mrf.mxu1  ;;  %3935 = vmatmul.mubr.bf16.gmra.mxu1 %v8269_v20 }
 0x3e8   : > { %v8454_v52 = vadd.f32 %v5828_v62, %v5300_v42  ;;  %v8456_v61 = vpop.f32.mrf.mxu0  ;;  %3942 = vmatprep.mubr.bf16.mxu1 %v8020_v29  ;;  %5938 = vmatmul.mubr.bf16.gmra.mxu0 %v8261_v12 }
 0x3e9   : > { %v5302_v4 = vpop.f32.mrf.mxu1  ;;  %5941 = vmatprep.mubr.bf16.mxu0 %v8276_v21 }
 0x3ea   : > { %v5303_v16 = vadd.f32 %v5302_v4, %v5301_v10  ;;  %v8461_v9 = vpop.f32.mrf.mxu0 }
 0x3eb   : > { %v5304_v33 = vpop.f32.mrf.mxu1 }
 0x3ec   : > { %v8463_v45 = vadd.f32 %v5303_v16, %v3116_v14  ;;  %v8465_v5 = vpop.f32.mrf.mxu0 }
 0x3ed   : > { %v5305_v20 = vpop.f32.mrf.mxu1 }
 0x3ee   : > { %v5306_v62 = vadd.f32 %v5305_v20, %v5304_v33  ;;  %v8467_v58 = vpop.f32.mrf.mxu0 }
 0x3ef   : > { %v5307_v37 = vpop.f32.mrf.mxu1  ;;  %3943 = vmatmul.mubr.bf16.gmra.mxu1 %v8285_v25 }
 0x3f0   : > { %v8470_v29 = vadd.f32 %v5306_v62, %v3119_v35  ;;  %v8472_v55 = vpop.f32.mrf.mxu0  ;;  %3950 = vmatprep.mubr.bf16.mxu1 %v8074_v54  ;;  %5942 = vmatmul.mubr.bf16.gmra.mxu0 %v8261_v12 }
 0x3f1   : > { %v5308_v21 = vpop.f32.mrf.mxu1 }
 0x3f2   : > { %v5309_v14 = vadd.f32 %v5308_v21, %v5307_v37  ;;  %v8476_v22 = vpop.f32.mrf.mxu0 }
 0x3f3   : > { %v5310_v8 = vpop.f32.mrf.mxu1 }
 0x3f4   : > { %v8479_v36 = vadd.f32 %v8412_v40, %v5309_v14  ;;  %v8481_v41 = vpop.f32.mrf.mxu0 }
 0x3f5   : > { %v5311_v1 = vpop.f32.mrf.mxu1 }
 0x3f6   : > { %v5312_v25 = vadd.f32 %v5311_v1, %v5310_v8  ;;  %v8483_v35 = vpop.f32.mrf.mxu0 }
 0x3f7   : > { %v5313_v23 = vpop.f32.mrf.mxu1  ;;  %3951 = vmatmul.mubr.bf16.gmra.mxu1 %v8297_v56 }
 0x3f8   : > { %v8487_v54 = vadd.f32 %v8419_v15, %v5312_v25  ;;  %v5401_v12 = vpop.f32.mrf.mxu0  ;;  %3958 = vmatprep.mubr.bf16.mxu1 %v8084_v19 }
 0x3f9   : > { %v5314_v57 = vpop.f32.mrf.mxu1 }
 0x3fa   : > { %v5315_v44 = vadd.f32 %v5314_v57, %v5313_v23  ;;  %v5402_v42 = vpop.f32.mrf.mxu0 }
 0x3fb   : > { %v5403_v40 = vadd.f32 %v5402_v42, %v5401_v12  ;;  %v5316_v10 = vpop.f32.mrf.mxu1 }
 0x3fc   : > { %v8491_v4 = vadd.f32 %v5315_v44, %v8429_v26  ;;  %v5404_v16 = vpop.f32.mrf.mxu0 }
 0x3fd   : > { %v5317_v33 = vpop.f32.mrf.mxu1  ;;  %v8494_v20 = vadd.f32 %v5403_v40, %v8391_v13 }
 0x3fe   : > { %v5318_v56 = vadd.f32 %v5317_v33, %v5316_v10  ;;  %v5405_v62 = vpop.f32.mrf.mxu0 }
 0x3ff   : > { %v5406_v15 = vadd.f32 %v5405_v62, %v5404_v16  ;;  %v5319_v37 = vpop.f32.mrf.mxu1  ;;  %3959 = vmatmul.mubr.bf16.gmra.mxu1 %v8308_v63 }
 0x400   : > { %v8498_v19 = vadd.f32 %v5318_v56, %v8435_v43  ;;  %v5407_v21 = vpop.f32.mrf.mxu0  ;;  %3966 = vmatprep.mubr.bf16.mxu1 %v8141_v50 }
 0x401   : > { %v5320_v14 = vpop.f32.mrf.mxu1  ;;  %v8502_v26 = vadd.f32 %v5406_v15, %v8394_v2 }
 0x402   : > { %v5321_v8 = vadd.f32 %v5320_v14, %v5319_v37  ;;  %v5408_v1 = vpop.f32.mrf.mxu0 }
 0x403   : > { %v5409_v13 = vadd.f32 %v5408_v1, %v5407_v21  ;;  %v5322_v25 = vpop.f32.mrf.mxu1 }
 0x404   : > { %v8505_v23 = vadd.f32 %v8424_v32, %v5321_v8  ;;  %v5410_v12 = vpop.f32.mrf.mxu0 }
 0x405   : > { %v5323_v57 = vpop.f32.mrf.mxu1  ;;  %v8508_v63 = vadd.f32 %v5409_v13, %v8399_v11 }
 0x406   : > { %v5324_v43 = vadd.f32 %v5323_v57, %v5322_v25  ;;  %v5411_v44 = vpop.f32.mrf.mxu0 }
 0x407   : > { %v5412_v42 = vadd.f32 %v5411_v44, %v5410_v12  ;;  %v5325_v50 = vpop.f32.mrf.mxu1  ;;  %3967 = vmatmul.mubr.bf16.gmra.mxu1 %v8319_v17 }
 0x408   : > { %v8512_v2 = vadd.f32 %v8433_v46, %v5324_v43  ;;  %v5413_v40 = vpop.f32.mrf.mxu0  ;;  %3974 = vmatprep.mubr.bf16.mxu1 %v8150_v6 }
 0x409   : > { %v5326_v10 = vpop.f32.mrf.mxu1  ;;  %v8516_v32 = vadd.f32 %v5412_v42, %v8402_v28 }
 0x40a   : > { %v5327_v16 = vadd.f32 %v5326_v10, %v5325_v50  ;;  %v5414_v33 = vpop.f32.mrf.mxu0 }
 0x40b   : > { %v5415_v11 = vadd.f32 %v5414_v33, %v5413_v40  ;;  %v5328_v56 = vpop.f32.mrf.mxu1 }
 0x40c   : > { %v8519_v62 = vadd.f32 %v5327_v16, %v8445_v0  ;;  %v5416_v15 = vpop.f32.mrf.mxu0 }
 0x40d   : > { %v5329_v37 = vpop.f32.mrf.mxu1  ;;  %v8522_v17 = vadd.f32 %v5415_v11, %v8407_v31 }
 0x40e   : > { %v5330_v46 = vadd.f32 %v5329_v37, %v5328_v56  ;;  %v5417_v21 = vpop.f32.mrf.mxu0 }
 0x40f   : > { %v5418_v14 = vadd.f32 %v5417_v21, %v5416_v15  ;;  %v5331_v6 = vpop.f32.mrf.mxu1  ;;  %3975 = vmatmul.mubr.bf16.gmra.mxu1 %v8330_v59 }
 0x410   : > { %v8526_v28 = vadd.f32 %v5330_v46, %v8451_v39  ;;  %v5419_v8 = vpop.f32.mrf.mxu0  ;;  %3982 = vmatprep.mubr.bf16.mxu1 %v8184_v24 }
 0x411   : > { %v5332_v1 = vpop.f32.mrf.mxu1  ;;  %v8530_v0 = vadd.f32 %v5418_v14, %v8410_v47 }
 0x412   : > { %v5333_v13 = vadd.f32 %v5332_v1, %v5331_v6  ;;  %v5420_v25 = vpop.f32.mrf.mxu0 }
 0x413   : > { %v5421_v31 = vadd.f32 %v5420_v25, %v5419_v8  ;;  %v5334_v12 = vpop.f32.mrf.mxu1 }
 0x414   : > { %v8533_v57 = vadd.f32 %v8440_v60, %v5333_v13  ;;  %v5422_v43 = vpop.f32.mrf.mxu0 }
 0x415   : > { %v5335_v44 = vpop.f32.mrf.mxu1  ;;  %v8536_v59 = vadd.f32 %v5421_v31, %v8417_v7 }
 0x416   : > { %v5336_v39 = vadd.f32 %v5335_v44, %v5334_v12  ;;  %v5423_v42 = vpop.f32.mrf.mxu0 }
 0x417   : > { %v5424_v50 = vadd.f32 %v5423_v42, %v5422_v43  ;;  %v5337_v24 = vpop.f32.mrf.mxu1  ;;  %3983 = vmatmul.mubr.bf16.gmra.mxu1 %v8341_v34 }
 0x418   : > { %v8540_v47 = vadd.f32 %v8449_v18, %v5336_v39  ;;  %v5425_v40 = vpop.f32.mrf.mxu0  ;;  %3990 = vmatprep.mubr.bf16.mxu1 %v8030_v38 }
 0x419   : > { %v5338_v10 = vpop.f32.mrf.mxu1  ;;  %v8544_v60 = vadd.f32 %v5424_v50, %v8422_v48 }
 0x41a   : > { %v5339_v16 = vadd.f32 %v5338_v10, %v5337_v24  ;;  %v5426_v33 = vpop.f32.mrf.mxu0 }
 0x41b   : > { %v5427_v7 = vadd.f32 %v5426_v33, %v5425_v40  ;;  %v5340_v11 = vpop.f32.mrf.mxu1 }
 0x41c   : > { %v8547_v56 = vadd.f32 %v5339_v16, %v8461_v9  ;;  %v5428_v15 = vpop.f32.mrf.mxu0 }
 0x41d   : > { %v5341_v37 = vpop.f32.mrf.mxu1  ;;  %v8550_v34 = vadd.f32 %v5427_v7, %v8431_v30 }
 0x41e   : > { %v5342_v18 = vadd.f32 %v5341_v37, %v5340_v11  ;;  %v5429_v46 = vpop.f32.mrf.mxu0 }
 0x41f   : > { %v5430_v21 = vadd.f32 %v5429_v46, %v5428_v15  ;;  %v5343_v14 = vpop.f32.mrf.mxu1  ;;  %3991 = vmatmul.mubr.bf16.gmra.mxu1 %v8124_v49 }
 0x420   : > { %v8554_v48 = vadd.f32 %v5342_v18, %v8467_v58  ;;  %v5431_v6 = vpop.f32.mrf.mxu0  ;;  %3998 = vmatprep.mubr.bf16.mxu1 %v8036_v51 }
 0x421   : > { %v5344_v8 = vpop.f32.mrf.mxu1  ;;  %v8558_v9 = vadd.f32 %v5430_v21, %v8438_v3 }
 0x422   : > { %v5345_v1 = vadd.f32 %v5344_v8, %v5343_v14  ;;  %v5432_v13 = vpop.f32.mrf.mxu0 }
 0x423   : > { %v5433_v30 = vadd.f32 %v5432_v13, %v5431_v6  ;;  %v5346_v25 = vpop.f32.mrf.mxu1 }
 0x424   : > { %v8561_v31 = vadd.f32 %v8456_v61, %v5345_v1  ;;  %v5434_v12 = vpop.f32.mrf.mxu0 }
 0x425   : > { %v5347_v43 = vpop.f32.mrf.mxu1  ;;  %v8564_v44 = vadd.f32 %v5433_v30, %v8447_v27 }
 0x426   : > { %v5348_v58 = vadd.f32 %v5347_v43, %v5346_v25  ;;  %v5435_v39 = vpop.f32.mrf.mxu0 }
 0x427   : > { %v5436_v42 = vadd.f32 %v5435_v39, %v5434_v12  ;;  %v5349_v51 = vpop.f32.mrf.mxu1  ;;  %3999 = vmatmul.mubr.bf16.gmra.mxu1 %v8137_v53 }
 0x428   : > { %v8568_v3 = vadd.f32 %v8465_v5, %v5348_v58  ;;  %v5437_v50 = vpop.f32.mrf.mxu0  ;;  %4006 = vmatprep.mubr.bf16.mxu1 %v8030_v38 }
 0x429   : > { %v5350_v24 = vpop.f32.mrf.mxu1  ;;  %v8572_v61 = vadd.f32 %v5436_v42, %v8454_v52 }
 0x42a   : > { %v5351_v40 = vadd.f32 %v5350_v24, %v5349_v51  ;;  %v5438_v10 = vpop.f32.mrf.mxu0 }
 0x42b   : > { %v5439_v27 = vadd.f32 %v5438_v10, %v5437_v50  ;;  %v5352_v16 = vpop.f32.mrf.mxu1 }
 0x42c   : > { %v8575_v33 = vadd.f32 %v5351_v40, %v8476_v22  ;;  %v5440_v7 = vpop.f32.mrf.mxu0 }
 0x42d   : > { %v5353_v11 = vpop.f32.mrf.mxu1  ;;  %v8578_v53 = vadd.f32 %v5439_v27, %v8463_v45 }
 0x42e   : > { %v5354_v5 = vadd.f32 %v5353_v11, %v5352_v16  ;;  %v5441_v15 = vpop.f32.mrf.mxu0 }
 0x42f   : > { %v5442_v37 = vadd.f32 %v5441_v15, %v5440_v7  ;;  %v5355_v38 = vpop.f32.mrf.mxu1  ;;  %4007 = vmatmul.mubr.bf16.gmra.mxu1 %v8124_v49 }
 0x430   : > { %v8582_v52 = vadd.f32 %v5354_v5, %v8483_v35  ;;  %v5443_v18 = vpop.f32.mrf.mxu0 }
 0x431   : > { %v5356_v46 = vpop.f32.mrf.mxu1  ;;  %v8585_v21 = vadd.f32 %v5442_v37, %v8470_v29 }
 0x432   : > { %v8587_v22 = vadd.f32 %v5356_v46, %v5355_v38  ;;  %v5444_v14 = vpop.f32.mrf.mxu0 }
 0x433   : > { %v5445_v6 = vadd.f32 %v5444_v14, %v5443_v18  ;;  %v5358_v45 = vpop.f32.mrf.mxu1 }
 0x434   : > { %v5446_v8 = vpop.f32.mrf.mxu0 }
 0x435   : > { %v5359_v1 = vpop.f32.mrf.mxu1  ;;  %v3430_v13 = vadd.f32 %v5445_v6, %v8479_v36 }
 0x436   : > { %v8590_v30 = vadd.f32 %v5359_v1, %v5358_v45  ;;  %v5447_v49 = vpop.f32.mrf.mxu0 }
 0x437   : > { %v5448_v25 = vadd.f32 %v5447_v49, %v5446_v8  ;;  %v5867_v35 = vpop.f32.mrf.mxu1 }
 0x438   : > { %v8593_v12 = vadd.f32 %v5867_v35, %v8508_v63  ;;  %v5449_v43 = vpop.f32.mrf.mxu0 }
 0x439   : > { %v3534_v29 = vpop.f32.mrf.mxu1  ;;  %v3433_v58 = vadd.f32 %v5448_v25, %v8487_v54 }
 0x43a   : > { %v8597_v39 = vadd.f32 %v3534_v29, %v8494_v20  ;;  %v5450_v42 = vpop.f32.mrf.mxu0 }
 0x43b   : > { %v5451_v51 = vadd.f32 %v5450_v42, %v5449_v43  ;;  %v5868_v50 = vpop.f32.mrf.mxu1 }
 0x43c   : > { %v8600_v36 = vadd.f32 %v5868_v50, %v8516_v32  ;;  %v5452_v24 = vpop.f32.mrf.mxu0 }
 0x43d   : > { %v3537_v40 = vpop.f32.mrf.mxu1  ;;  %v3438_v10 = vadd.f32 %v5451_v51, %v8491_v4 }
 0x43e   : > { %v8604_v63 = vadd.f32 %v3537_v40, %v8502_v26  ;;  %v5453_v27 = vpop.f32.mrf.mxu0 }
 0x43f   : > { %v5454_v16 = vadd.f32 %v5453_v27, %v5452_v24  ;;  %v5871_v7 = vpop.f32.mrf.mxu1 }
 0x440   : > { %v8607_v54 = vadd.f32 %v5871_v7, %v8536_v59  ;;  %v5455_v20 = vpop.f32.mrf.mxu0 }
 0x441   : > { %v3550_v11 = vpop.f32.mrf.mxu1  ;;  %v3441_v5 = vadd.f32 %v5454_v16, %v8498_v19 }
 0x442   : > { %v8611_v32 = vadd.f32 %v3550_v11, %v8522_v17  ;;  %v5456_v15 = vpop.f32.mrf.mxu0 }
 0x443   : > { %v5457_v37 = vadd.f32 %v5456_v15, %v5455_v20  ;;  %v5872_v38 = vpop.f32.mrf.mxu1 }
 0x444   : > { %v8614_v4 = vadd.f32 %v5872_v38, %v8544_v60  ;;  %v5458_v26 = vpop.f32.mrf.mxu0 }
 0x445   : > { %v3553_v18 = vpop.f32.mrf.mxu1  ;;  %v3446_v46 = vadd.f32 %v5457_v37, %v8505_v23 }
 0x446   : > { %v8618_v59 = vadd.f32 %v3553_v18, %v8530_v0  ;;  %v5459_v14 = vpop.f32.mrf.mxu0 }
 0x447   : > { %v5460_v6 = vadd.f32 %v5459_v14, %v5458_v26  ;;  %v5875_v45 = vpop.f32.mrf.mxu1 }
 0x448   : > { %v8621_v19 = vadd.f32 %v5875_v45, %v8564_v44  ;;  %v5461_v17 = vpop.f32.mrf.mxu0 }
 0x449   : > { %v3566_v8 = vpop.f32.mrf.mxu1  ;;  %v3449_v1 = vadd.f32 %v5460_v6, %v8512_v2 }
 0x44a   : > { %v8625_v60 = vadd.f32 %v3566_v8, %v8550_v34  ;;  %v5462_v49 = vpop.f32.mrf.mxu0 }
 0x44b   : > { %v5463_v25 = vadd.f32 %v5462_v49, %v5461_v17  ;;  %v5876_v35 = vpop.f32.mrf.mxu1 }
 0x44c   : > { %v8628_v23 = vadd.f32 %v5876_v35, %v8572_v61  ;;  %v5464_v0 = vpop.f32.mrf.mxu0 }
 0x44d   : > { %v3569_v43 = vpop.f32.mrf.mxu1  ;;  %v3454_v29 = vadd.f32 %v5463_v25, %v8519_v62 }
 0x44e   : > { %v8632_v44 = vadd.f32 %v3569_v43, %v8558_v9  ;;  %v5465_v42 = vpop.f32.mrf.mxu0 }
 0x44f   : > { %v5466_v51 = vadd.f32 %v5465_v42, %v5464_v0  ;;  %v5879_v50 = vpop.f32.mrf.mxu1 }
 0x450   : > { %v8634_v2 = vadd.f32 %v5879_v50, %v3430_v13  ;;  %v5467_v34 = vpop.f32.mrf.mxu0 }
 0x451   : > { %v3582_v24 = vpop.f32.mrf.mxu1  ;;  %v3457_v40 = vadd.f32 %v5466_v51, %v8526_v28 }
 0x452   : > { %v8638_v27 = vadd.f32 %v3582_v24, %v8578_v53  ;;  %v5468_v61 = vpop.f32.mrf.mxu0 }
 0x453   : > { %v5469_v16 = vadd.f32 %v5468_v61, %v5467_v34  ;;  %v5880_v7 = vpop.f32.mrf.mxu1 }
 0x454   : > { %v8640_v20 = vadd.f32 %v5880_v7, %v3433_v58  ;;  %v5470_v62 = vpop.f32.mrf.mxu0 }
 0x455   : > { %v3585_v9 = vpop.f32.mrf.mxu1  ;;  %v3462_v11 = vadd.f32 %v5469_v16, %v8533_v57 }
 0x456   : > { %v8644_v15 = vadd.f32 %v3585_v9, %v8585_v21  ;;  %v5471_v13 = vpop.f32.mrf.mxu0 }
 0x457   : > { %v5472_v37 = vadd.f32 %v5471_v13, %v5470_v62  ;;  %v5883_v38 = vpop.f32.mrf.mxu1 }
 0x458   : > { %v8646_v26 = vadd.f32 %v5883_v38, %v3446_v46  ;;  %v5473_v28 = vpop.f32.mrf.mxu0 }
 0x459   : > { %v3598_v53 = vpop.f32.mrf.mxu1  ;;  %v3465_v18 = vadd.f32 %v5472_v37, %v8540_v47 }
 0x45a   : > { %v8649_v14 = vadd.f32 %v3598_v53, %v3438_v10  ;;  %v5474_v58 = vpop.f32.mrf.mxu0 }
 0x45b   : > { %v5475_v6 = vadd.f32 %v5474_v58, %v5473_v28  ;;  %v5884_v45 = vpop.f32.mrf.mxu1 }
 0x45c   : > { %v8651_v17 = vadd.f32 %v5884_v45, %v3449_v1  ;;  %v5476_v57 = vpop.f32.mrf.mxu0 }
 0x45d   : > { %v3601_v8 = vpop.f32.mrf.mxu1  ;;  %v3470_v21 = vadd.f32 %v5475_v6, %v8547_v56 }
 0x45e   : > { %9339 = vst [vmem:[#allocation21_spill] sm:$0xff] %v8651_v17  ;;  %v8654_v49 = vadd.f32 %v3601_v8, %v3441_v5  ;;  %v5477_v25 = vpop.f32.mrf.mxu0 }
 0x45f   : > { %v5478_v46 = vadd.f32 %v5477_v25, %v5476_v57  ;;  %v5887_v35 = vpop.f32.mrf.mxu1 }
 0x460   : > { %v8656_v0 = vadd.f32 %v5887_v35, %v3462_v11  ;;  %v5479_v43 = vpop.f32.mrf.mxu0  ;;  %v3189_v35 = vadd.f32 %v8472_v55, %v8587_v22 }
 0x461   : > { %v3614_v47 = vpop.f32.mrf.mxu1  ;;  %v3473_v10 = vadd.f32 %v5478_v46, %v8554_v48 }
 0x462   : > { %9340 = vst [vmem:[#allocation14_spill] sm:$0xff] %v8656_v0  ;;  %v8659_v42 = vadd.f32 %v3614_v47, %v3454_v29  ;;  %v5480_v51 = vpop.f32.mrf.mxu0 }
 0x463   : > { %v5481_v1 = vadd.f32 %v5480_v51, %v5479_v43  ;;  %v5888_v50 = vpop.f32.mrf.mxu1 }
 0x464   : > { %9341 = vst [vmem:[#allocation23_spill] sm:$0xff] %v8659_v42  ;;  %v8661_v34 = vadd.f32 %v5888_v50, %v3465_v18  ;;  %v5482_v24 = vpop.f32.mrf.mxu0 }
 0x465   : > { %v3617_v56 = vpop.f32.mrf.mxu1  ;;  %v3478_v5 = vadd.f32 %v5481_v1, %v8561_v31 }
 0x466   : > { %9342 = vst [vmem:[#allocation19_spill] sm:$0xff] %v8661_v34  ;;  %v8664_v61 = vadd.f32 %v3617_v56, %v3457_v40  ;;  %v5483_v16 = vpop.f32.mrf.mxu0 }
 0x467   : > { %v5484_v7 = vadd.f32 %v5483_v16, %v5482_v24  ;;  %v5891_v62 = vpop.f32.mrf.mxu1  ;;  %v3192_v24 = vadd.f32 %v8481_v41, %v8590_v30 }
 0x468   : > { %9343 = vst [vmem:[#allocation22_spill] sm:$0xff] %v8664_v61  ;;  %v8666_v9 = vadd.f32 %v5891_v62, %v3478_v5  ;;  %v5485_v11 = vpop.f32.mrf.mxu0 }
 0x469   : > { %v3630_v48 = vpop.f32.mrf.mxu1  ;;  %v3481_v29 = vadd.f32 %v5484_v7, %v8568_v3 }
 0x46a   : > { %9344 = vst [vmem:[#allocation25_spill] sm:$0xff] %v8666_v9  ;;  %v8669_v13 = vadd.f32 %v3630_v48, %v3470_v21  ;;  %v5486_v37 = vpop.f32.mrf.mxu0 }
 0x46b   : > { %v5487_v38 = vadd.f32 %v5486_v37, %v5485_v11  ;;  %v5892_v28 = vpop.f32.mrf.mxu1 }
 0x46c   : > { %9345 = vst [vmem:[#allocation20_spill] sm:$0xff] %v8669_v13  ;;  %v8671_v53 = vadd.f32 %v5892_v28, %v3481_v29  ;;  %v5488_v18 = vpop.f32.mrf.mxu0 }
 0x46d   : > { %v3633_v31 = vpop.f32.mrf.mxu1  ;;  %v3486_v40 = vadd.f32 %v5487_v38, %v8575_v33 }
 0x46e   : > { %9346 = vst [vmem:[#allocation27_spill] sm:$0xff] %v8671_v53  ;;  %v8674_v58 = vadd.f32 %v3633_v31, %v3473_v10  ;;  %v5489_v6 = vpop.f32.mrf.mxu0 }
 0x46f   : > { %v5490_v45 = vadd.f32 %v5489_v6, %v5488_v18  ;;  %v5895_v57 = vpop.f32.mrf.mxu1 }
 0x470   : > { %9347 = vst [vmem:[#allocation24_spill] sm:$0xff] %v8674_v58  ;;  %v5491_v8 = vpop.f32.mrf.mxu0 }
 0x471   : > { %v3646_v25 = vpop.f32.mrf.mxu1  ;;  %v3489_v3 = vadd.f32 %v5490_v45, %v8582_v52 }
 0x472   : > { %v8677_v21 = vadd.f32 %v3646_v25, %v3486_v40  ;;  %v5492_v46 = vpop.f32.mrf.mxu0 }
 0x473   : > { %v5493_v43 = vadd.f32 %v5492_v46, %v5491_v8  ;;  %v5896_v47 = vpop.f32.mrf.mxu1 }
 0x474   : > { %9348 = vst [vmem:[#allocation26_spill] sm:$0xff] %v8677_v21  ;;  %v5494_v51 = vpop.f32.mrf.mxu0 }
 0x475   : > { %v3494_v1 = vadd.f32 %v5493_v43, %v3189_v35  ;;  %v3649_v33 = vpop.f32.mrf.mxu1 }
 0x476   : > { %v8681_v10 = vadd.f32 %v3649_v33, %v3489_v3  ;;  %v5495_v50 = vpop.f32.mrf.mxu0 }
 0x477   : > { %v8685_v56 = vadd.f32 %v5895_v57, %v3494_v1  ;;  %v5496_v52 = vadd.f32 %v5495_v50, %v5494_v51  ;;  %v5537_v5 = vpop.f32.mrf.mxu1 }
 0x478   : > { %9349 = vst [vmem:[#allocation29_spill] sm:$0xff] %v8681_v10  ;;  %v5915_v16 = vpop.f32.mrf.mxu0 }
 0x479   : > { %9350 = vst [vmem:[#allocation28_spill] sm:$0xff] %v8685_v56  ;;  %v3497_v7 = vadd.f32 %v5496_v52, %v3192_v24  ;;  %v5538_v62 = vpop.f32.mrf.mxu1 }
 0x47a   : > { %v5539_v11 = vadd.f32 %v5538_v62, %v5537_v5  ;;  %v4049_v55 = vpop.f32.mrf.mxu0 }
 0x47b   : > { %v8687_v22 = vadd.f32 %v5896_v47, %v3497_v7  ;;  %v5540_v48 = vpop.f32.mrf.mxu1 }
 0x47c   : > { %v4050_v29 = vadd.f32 %v5539_v11, %v4049_v55  ;;  %v5916_v37 = vpop.f32.mrf.mxu0 }
 0x47d   : > { %9351 = vst [vmem:[#allocation30_spill] sm:$0xff] %v8687_v22  ;;  %v5541_v38 = vpop.f32.mrf.mxu1 }
 0x47e   : > { %v4176_v28 = vadd.f32 %v4050_v29, %v8597_v39  ;;  %v4052_v18 = vpop.f32.mrf.mxu0  ;;  %v5542_v62 = vadd.f32 %v5541_v38, %v5540_v48 }
 0x47f   : > { %v5543_v31 = vpop.f32.mrf.mxu1 }
 0x480   : > { %v5919_v30 = vpop.f32.mrf.mxu0  ;;  %v4053_v56 = vadd.f32 %v5542_v62, %v4052_v18  ;;  %v8701_v18 = vld [vmem:[%s9222_s4] ss:$0 sm:$0xff] }
 0x481   : > { %v5544_v41 = vpop.f32.mrf.mxu1 }
 0x482   : > { %v4065_v45 = vpop.f32.mrf.mxu0  ;;  %v5545_v29 = vadd.f32 %v5544_v41, %v5543_v31  ;;  %v4177_v34 = vadd.f32 %v4053_v56, %v8604_v63 }
 0x483   : > { %v5546_v40 = vpop.f32.mrf.mxu1 }
 0x484   : > { %v5920_v25 = vpop.f32.mrf.mxu0  ;;  %v4058_v9 = vadd.f32 %v5915_v16, %v5545_v29  ;;  %v8704_v16 = vadd.f32 %v8701_v18, %v4177_v34 }
 0x485   : > { %v5547_v6 = vpop.f32.mrf.mxu1 }
 0x486   : > { %v4068_v35 = vpop.f32.mrf.mxu0  ;;  %v5548_v10 = vadd.f32 %v5547_v6, %v5546_v40  ;;  %v4178_v48 = vadd.f32 %v4058_v9, %v8593_v12  ;;  %v8710_v12 = vadd.f32 %v8701_v18, %v4176_v28 }
 0x487   : > { %v5549_v57 = vpop.f32.mrf.mxu1 }
 0x488   : > { %v8690_v51 = vpop.f32.mrf.mxu0  ;;  %v4061_v0 = vadd.f32 %v5916_v37, %v5548_v10  ;;  %v8713_v9 = vadd.f32 %v8701_v18, %v4178_v48  ;;  %v4246_v34 = vadd.f32 %v8704_v16, %v8710_v12 }
 0x489   : > { %v5550_v8 = vpop.f32.mrf.mxu1 }
 0x48a   : > { %v4081_v39 = vpop.f32.mrf.mxu0  ;;  %v5551_v58 = vadd.f32 %v5550_v8, %v5549_v57  ;;  %v4179_v40 = vadd.f32 %v4061_v0, %v8600_v36 }
 0x48b   : > { %v5552_v3 = vpop.f32.mrf.mxu1 }
 0x48c   : > { %v8692_v52 = vpop.f32.mrf.mxu0  ;;  %v4066_v38 = vadd.f32 %v5551_v58, %v4065_v45  ;;  %v8719_v36 = vadd.f32 %v8701_v18, %v4179_v40 }
 0x48d   : > { %v5553_v46 = vpop.f32.mrf.mxu1 }
 0x48e   : > { %v4084_v11 = vpop.f32.mrf.mxu0  ;;  %v5554_v61 = vadd.f32 %v5553_v46, %v5552_v3  ;;  %v4180_v58 = vadd.f32 %v4066_v38, %v8611_v32  ;;  %v4247_v46 = vadd.f32 %v4246_v34, %v8713_v9 }
 0x48f   : > { %v5555_v43 = vpop.f32.mrf.mxu1 }
 0x490   : > { %v8694_v21 = vpop.f32.mrf.mxu0  ;;  %v4069_v63 = vadd.f32 %v5554_v61, %v4068_v35  ;;  %v8724_v35 = vadd.f32 %v8701_v18, %v4180_v58 }
 0x491   : > { %v5556_v47 = vpop.f32.mrf.mxu1 }
 0x492   : > { %v4097_v42 = vpop.f32.mrf.mxu0  ;;  %v5557_v31 = vadd.f32 %v5556_v47, %v5555_v43  ;;  %v4181_v0 = vadd.f32 %v4069_v63, %v8618_v59 }
 0x493   : > { %v5558_v1 = vpop.f32.mrf.mxu1 }
 0x494   : > { %v8707_v10 = vpop.f32.mrf.mxu0  ;;  %v4074_v6 = vadd.f32 %v5919_v30, %v5557_v31 }
 0x495   : > { %v5559_v33 = vpop.f32.mrf.mxu1 }
 0x496   : > { %v5560_v56 = vadd.f32 %v5559_v33, %v5558_v1  ;;  %v4100_v8 = vpop.f32.mrf.mxu0  ;;  %v4182_v32 = vadd.f32 %v4074_v6, %v8607_v54  ;;  %v4248_v1 = vadd.f32 %v4247_v46, %v8719_v36  ;;  %v8729_v33 = vadd.f32 %v8701_v18, %v4181_v0 }
 0x497   : > { %v5561_v50 = vpop.f32.mrf.mxu1 }
 0x498   : > { %v4077_v61 = vadd.f32 %v5920_v25, %v5560_v56  ;;  %v5931_v25 = vpop.f32.mrf.mxu0  ;;  %v8734_v62 = vadd.f32 %v8701_v18, %v4182_v32 }
 0x499   : > { %v5562_v24 = vpop.f32.mrf.mxu1 }
 0x49a   : > { %v5563_v45 = vadd.f32 %v5562_v24, %v5561_v50  ;;  %v4183_v59 = vadd.f32 %v4077_v61, %v8614_v4  ;;  %v4113_v4 = vpop.f32.mrf.mxu0 }
 0x49b   : > { %v5564_v5 = vpop.f32.mrf.mxu1 }
 0x49c   : > { %v4082_v30 = vadd.f32 %v5563_v45, %v4081_v39  ;;  %v8740_v48 = vadd.f32 %v8701_v18, %v4183_v59  ;;  %v5932_v56 = vpop.f32.mrf.mxu0 }
 0x49d   : > { %v5565_v7 = vpop.f32.mrf.mxu1 }
 0x49e   : > { %v5566_v28 = vadd.f32 %v5565_v7, %v5564_v5  ;;  %v4249_v7 = vadd.f32 %v4248_v1, %v8724_v35  ;;  %v4184_v54 = vadd.f32 %v4082_v30, %v8625_v60 }
 0x49f   : > { %v5567_v55 = vpop.f32.mrf.mxu1 }
 0x4a0   : > { %v4085_v50 = vadd.f32 %v5566_v28, %v4084_v11  ;;  %v4250_v29 = vadd.f32 %v4249_v7, %v8729_v33  ;;  %v8746_v60 = vadd.f32 %v8701_v18, %v4184_v54  ;;  %v4116_v28 = vpop.f32.mrf.mxu0 }
 0x4a1   : > { %v5568_v22 = vpop.f32.mrf.mxu1 }
 0x4a2   : > { %v5569_v43 = vadd.f32 %v5568_v22, %v5567_v55  ;;  %v4251_v31 = vadd.f32 %v4250_v29, %v8734_v62  ;;  %v5935_v59 = vpop.f32.mrf.mxu0 }
 0x4a3   : > { %v5570_v53 = vpop.f32.mrf.mxu1 }
 0x4a4   : > { %v4090_v22 = vadd.f32 %v8690_v51, %v5569_v43  ;;  %v4252_v63 = vadd.f32 %v4251_v31, %v8740_v48  ;;  %v4129_v29 = vpop.f32.mrf.mxu0 }
 0x4a5   : > { %v5571_v13 = vpop.f32.mrf.mxu1 }
 0x4a6   : > { %v5572_v24 = vadd.f32 %v5571_v13, %v5570_v53  ;;  %v4185_v13 = vadd.f32 %v4085_v50, %v8632_v44  ;;  %v4253_v45 = vadd.f32 %v4252_v63, %v8746_v60 }
 0x4a7   : > { %v5573_v17 = vpop.f32.mrf.mxu1 }
 0x4a8   : > { %v4093_v53 = vadd.f32 %v8692_v52, %v5572_v24  ;;  %v8751_v58 = vadd.f32 %v8701_v18, %v4185_v13 }
 0x4a9   : > { %v5574_v41 = vpop.f32.mrf.mxu1 }
 0x4aa   : > { %v5575_v39 = vadd.f32 %v5574_v41, %v5573_v17  ;;  %v4186_v17 = vadd.f32 %v4090_v22, %v8621_v19  ;;  %v4187_v44 = vadd.f32 %v4093_v53, %v8628_v23  ;;  %v4254_v61 = vadd.f32 %v4253_v45, %v8751_v58  ;;  %v9353_v45 = vld [vmem:[#allocation23_spill] sm:$0xff] }
 0x4ab   : > { %v5576_v37 = vpop.f32.mrf.mxu1 }
 0x4ac   : > { %v4098_v51 = vadd.f32 %v5575_v39, %v4097_v42 }
 0x4ad   : > { %v5577_v57 = vpop.f32.mrf.mxu1 }
 0x4ae   : > { %v5578_v38 = vadd.f32 %v5577_v57, %v5576_v37  ;;  %v8756_v57 = vadd.f32 %v8701_v18, %v4186_v17  ;;  %v4188_v19 = vadd.f32 %v4098_v51, %v8638_v27  ;;  %v5936_v51 = vpop.f32.mrf.mxu0 }
 0x4af   : > { %v5579_v3 = vpop.f32.mrf.mxu1 }
 0x4b0   : > { %v4101_v37 = vadd.f32 %v5578_v38, %v4100_v8  ;;  %v4255_v30 = vadd.f32 %v4254_v61, %v8756_v57  ;;  %v8768_v27 = vadd.f32 %v8701_v18, %v4188_v19 }
 0x4b1   : > { %v5580_v47 = vpop.f32.mrf.mxu1 }
 0x4b2   : > { %v5581_v40 = vadd.f32 %v5580_v47, %v5579_v3  ;;  %v8762_v3 = vadd.f32 %v8701_v18, %v4187_v44  ;;  %v4189_v8 = vadd.f32 %v4101_v37, %v8644_v15  ;;  %v9352_v44 = vld [vmem:[#allocation21_spill] sm:$0xff] }
 0x4b3   : > { %v5582_v5 = vpop.f32.mrf.mxu1 }
 0x4b4   : > { %v4106_v34 = vadd.f32 %v8694_v21, %v5581_v40  ;;  %v4256_v50 = vadd.f32 %v4255_v30, %v8762_v3 }
 0x4b5   : > { %v5583_v55 = vpop.f32.mrf.mxu1 }
 0x4b6   : > { %v5584_v6 = vadd.f32 %v5583_v55, %v5582_v5  ;;  %v4190_v21 = vadd.f32 %v4106_v34, %v8634_v2  ;;  %v8773_v5 = vadd.f32 %v8701_v18, %v4189_v8  ;;  %v4257_v7 = vadd.f32 %v4256_v50, %v8768_v27 }
 0x4b7   : > { %v5585_v11 = vpop.f32.mrf.mxu1 }
 0x4b8   : > { %v4109_v46 = vadd.f32 %v8707_v10, %v5584_v6  ;;  %v8778_v22 = vadd.f32 %v8701_v18, %v4190_v21  ;;  %v4258_v13 = vadd.f32 %v4257_v7, %v8773_v5  ;;  %v9355_v7 = vld [vmem:[#allocation14_spill] sm:$0xff] }
 0x4b9   : > { %v5586_v41 = vpop.f32.mrf.mxu1 }
 0x4ba   : > { %v5587_v0 = vadd.f32 %v5586_v41, %v5585_v11  ;;  %v4191_v15 = vadd.f32 %v4109_v46, %v8640_v20  ;;  %v4259_v31 = vadd.f32 %v4258_v13, %v8778_v22 }
 0x4bb   : > { %v5588_v52 = vpop.f32.mrf.mxu1 }
 0x4bc   : > { %v4114_v47 = vadd.f32 %v5587_v0, %v4113_v4  ;;  %v8783_v53 = vadd.f32 %v8701_v18, %v4191_v15 }
 0x4bd   : > { %v5589_v42 = vpop.f32.mrf.mxu1 }
 0x4be   : > { %v5590_v32 = vadd.f32 %v5589_v42, %v5588_v52  ;;  %v4192_v2 = vadd.f32 %v4114_v47, %v8649_v14  ;;  %v4260_v40 = vadd.f32 %v4259_v31, %v8783_v53  ;;  %v4132_v42 = vpop.f32.mrf.mxu0 }
 0x4bf   : > { %v5591_v23 = vpop.f32.mrf.mxu1 }
 0x4c0   : > { %v4117_v10 = vadd.f32 %v5590_v32, %v4116_v28  ;;  %v8788_v17 = vadd.f32 %v8701_v18, %v4192_v2  ;;  %v9354_v32 = vld [vmem:[#allocation22_spill] sm:$0xff]  ;;  %v5939_v21 = vpop.f32.mrf.mxu0 }
 0x4c1   : > { %v5592_v43 = vpop.f32.mrf.mxu1 }
 0x4c2   : > { %v5593_v1 = vadd.f32 %v5592_v43, %v5591_v23  ;;  %v4193_v20 = vadd.f32 %v4117_v10, %v8654_v49  ;;  %v4261_v37 = vadd.f32 %v4260_v40, %v8788_v17 }
 0x4c3   : > { %v5594_v24 = vpop.f32.mrf.mxu1 }
 0x4c4   : > { %v4122_v39 = vadd.f32 %v5931_v25, %v5593_v1  ;;  %v8793_v63 = vadd.f32 %v8701_v18, %v4193_v20 }
 0x4c5   : > { %v5595_v54 = vpop.f32.mrf.mxu1 }
 0x4c6   : > { %v5596_v55 = vadd.f32 %v5595_v54, %v5594_v24  ;;  %v4194_v14 = vadd.f32 %v4122_v39, %v8646_v26  ;;  %v4262_v0 = vadd.f32 %v4261_v37, %v8793_v63  ;;  %v4145_v39 = vpop.f32.mrf.mxu0 }
 0x4c7   : > { %v5597_v4 = vpop.f32.mrf.mxu1 }
 0x4c8   : > { %v4125_v11 = vadd.f32 %v5932_v56, %v5596_v55  ;;  %v8798_v6 = vadd.f32 %v8701_v18, %v4194_v14  ;;  %v5940_v14 = vpop.f32.mrf.mxu0 }
 0x4c9   : > { %v5598_v38 = vpop.f32.mrf.mxu1 }
 0x4ca   : > { %v5599_v25 = vadd.f32 %v5598_v38, %v5597_v4  ;;  %v4195_v52 = vadd.f32 %v4125_v11, %v9352_v44  ;;  %v4263_v8 = vadd.f32 %v4262_v0, %v8798_v6  ;;  %v9356_v38 = vld [vmem:[#allocation19_spill] sm:$0xff]  ;;  %v9358_v0 = vld [vmem:[#allocation24_spill] sm:$0xff] }
 0x4cb   : > { %v5600_v41 = vpop.f32.mrf.mxu1 }
 0x4cc   : > { %v4130_v49 = vadd.f32 %v5599_v25, %v4129_v29  ;;  %v8803_v61 = vadd.f32 %v8701_v18, %v4195_v52 }
 0x4cd   : > { %v5601_v56 = vpop.f32.mrf.mxu1 }
 0x4ce   : > { %v4196_v19 = vadd.f32 %v4130_v49, %v9353_v45  ;;  %v5602_v26 = vadd.f32 %v5601_v56, %v5600_v41  ;;  %v4264_v1 = vadd.f32 %v4263_v8, %v8803_v61  ;;  %v9357_v49 = vld [vmem:[#allocation20_spill] sm:$0xff]  ;;  %v4148_v45 = vpop.f32.mrf.mxu0 }
 0x4cf   : > { %v5603_v34 = vpop.f32.mrf.mxu1 }
 0x4d0   : > { %v4133_v28 = vadd.f32 %v5602_v26, %v4132_v42  ;;  %v8807_v46 = vadd.f32 %v8701_v18, %v4196_v19  ;;  %v5943_v8 = vpop.f32.mrf.mxu0 }
 0x4d1   : > { %v5604_v23 = vpop.f32.mrf.mxu1 }
 0x4d2   : > { %v4197_v30 = vadd.f32 %v4133_v28, %v9354_v32  ;;  %v5605_v43 = vadd.f32 %v5604_v23, %v5603_v34  ;;  %v4265_v10 = vadd.f32 %v4264_v1, %v8807_v46 }
 0x4d3   : > { %v5606_v47 = vpop.f32.mrf.mxu1 }
 0x4d4   : > { %v8812_v50 = vadd.f32 %v8701_v18, %v4197_v30  ;;  %v4138_v24 = vadd.f32 %v5935_v59, %v5605_v43 }
 0x4d5   : > { %v5607_v15 = vpop.f32.mrf.mxu1 }
 0x4d6   : > { %v4198_v54 = vadd.f32 %v4138_v24, %v9355_v7  ;;  %v5608_v2 = vadd.f32 %v5607_v15, %v5606_v47  ;;  %v4266_v29 = vadd.f32 %v4265_v10, %v8812_v50  ;;  %v9359_v24 = vld [vmem:[#allocation25_spill] sm:$0xff]  ;;  %v4161_v7 = vpop.f32.mrf.mxu0 }
 0x4d7   : > { %v5609_v55 = vpop.f32.mrf.mxu1 }
 0x4d8   : > { %v8818_v4 = vadd.f32 %v8701_v18, %v4198_v54  ;;  %v4141_v13 = vadd.f32 %v5936_v51, %v5608_v2 }
 0x4d9   : > { %v5610_v20 = vpop.f32.mrf.mxu1 }
 0x4da   : > { %v4267_v11 = vadd.f32 %v4266_v29, %v8818_v4  ;;  %v4199_v31 = vadd.f32 %v4141_v13, %v9356_v38  ;;  %v5611_v59 = vadd.f32 %v5610_v20, %v5609_v55  ;;  %v9360_v13 = vld [vmem:[#allocation27_spill] sm:$0xff]  ;;  %v5944_v38 = vpop.f32.mrf.mxu0 }
 0x4db   : > { %v5612_v25 = vpop.f32.mrf.mxu1 }
 0x4dc   : > { %v8823_v41 = vadd.f32 %v8701_v18, %v4199_v31  ;;  %v4146_v40 = vadd.f32 %v5611_v59, %v4145_v39 }
 0x4dd   : > { %v5613_v44 = vpop.f32.mrf.mxu1 }
 0x4de   : > { %v4268_v52 = vadd.f32 %v4267_v11, %v8823_v41  ;;  %v4200_v56 = vadd.f32 %v4146_v40, %v9357_v49  ;;  %v5614_v37 = vadd.f32 %v5613_v44, %v5612_v25  ;;  %v9361_v44 = vld [vmem:[#allocation26_spill] sm:$0xff] }
 0x4df   : > { %v5615_v51 = vpop.f32.mrf.mxu1 }
 0x4e0   : > { %v4238_v19 = vadd.f32 %v8701_v18, %v4200_v56  ;;  %v4149_v26 = vadd.f32 %v5614_v37, %v4148_v45  ;;  %v4164_v56 = vpop.f32.mrf.mxu0 }
 0x4e1   : > { %v5616_v42 = vpop.f32.mrf.mxu1 }
 0x4e2   : > { %v4269_v34 = vadd.f32 %v4268_v52, %v4238_v19  ;;  %v4201_v28 = vadd.f32 %v4149_v26, %v9358_v0  ;;  %v5617_v23 = vadd.f32 %v5616_v42, %v5615_v51  ;;  %v9362_v42 = vld [vmem:[#allocation29_spill] sm:$0xff] }
 0x4e3   : > { %v5618_v32 = vpop.f32.mrf.mxu1 }
 0x4e4   : > { %v4239_v30 = vadd.f32 %v8701_v18, %v4201_v28  ;;  %v4154_v43 = vadd.f32 %v5939_v21, %v5617_v23 }
 0x4e5   : > { %v5619_v47 = vpop.f32.mrf.mxu1 }
 0x4e6   : > { %v4270_v1 = vadd.f32 %v4269_v34, %v4239_v30  ;;  %v4202_v15 = vadd.f32 %v4154_v43, %v9359_v24  ;;  %v5620_v10 = vadd.f32 %v5619_v47, %v5618_v32 }
 0x4e7   : > { %v5621_v54 = vpop.f32.mrf.mxu1 }
 0x4e8   : > { %v4240_v2 = vadd.f32 %v8701_v18, %v4202_v15  ;;  %v4157_v39 = vadd.f32 %v5940_v14, %v5620_v10 }
 0x4e9   : > { %v5622_v55 = vpop.f32.mrf.mxu1 }
 0x4ea   : > { %v4271_v29 = vadd.f32 %v4270_v1, %v4240_v2  ;;  %v4203_v20 = vadd.f32 %v4157_v39, %v9360_v13  ;;  %v5623_v11 = vadd.f32 %v5622_v55, %v5621_v54  ;;  %v9363_v1 = vld [vmem:[#allocation28_spill] sm:$0xff]  ;;  %v9364_v39 = vld [vmem:[#allocation30_spill] sm:$0xff] }
 0x4eb   : > { %v5624_v31 = vpop.f32.mrf.mxu1 }
 0x4ec   : > { %v4241_v59 = vadd.f32 %v8701_v18, %v4203_v20  ;;  %v4162_v21 = vadd.f32 %v5623_v11, %v4161_v7 }
 0x4ed   : > { %v5625_v25 = vpop.f32.mrf.mxu1 }
 0x4ee   : > { %v4272_v40 = vadd.f32 %v4271_v29, %v4241_v59  ;;  %v4204_v52 = vadd.f32 %v4162_v21, %v9361_v44  ;;  %v5626_v49 = vadd.f32 %v5625_v25, %v5624_v31 }
 0x4ef   : > { %v5627_v37 = vpop.f32.mrf.mxu1 }
 0x4f0   : > { %v4242_v45 = vadd.f32 %v8701_v18, %v4204_v52  ;;  %v4165_v14 = vadd.f32 %v5626_v49, %v4164_v56 }
 0x4f1   : > { %v5628_v51 = vpop.f32.mrf.mxu1 }
 0x4f2   : > { %v4273_v26 = vadd.f32 %v4272_v40, %v4242_v45  ;;  %v4205_v34 = vadd.f32 %v4165_v14, %v9362_v42  ;;  %v5629_v0 = vadd.f32 %v5628_v51, %v5627_v37 }
 0x4f3   : > { %v5630_v28 = vpop.f32.mrf.mxu1 }
 0x4f4   : > { %v4243_v23 = vadd.f32 %v8701_v18, %v4205_v34  ;;  %v4170_v32 = vadd.f32 %v5943_v8, %v5629_v0 }
 0x4f5   : > { %v5631_v43 = vpop.f32.mrf.mxu1 }
 0x4f6   : > { %v4274_v47 = vadd.f32 %v4273_v26, %v4243_v23  ;;  %v4206_v24 = vadd.f32 %v4170_v32, %v9363_v1  ;;  %v5632_v15 = vadd.f32 %v5631_v43, %v5630_v28 }
 0x4f8   : > { %v4244_v10 = vadd.f32 %v8701_v18, %v4206_v24  ;;  %v4173_v7 = vadd.f32 %v5944_v38, %v5632_v15 }
 0x4fa   : > { %v4275_v54 = vadd.f32 %v4274_v47, %v4244_v10  ;;  %v4207_v55 = vadd.f32 %v4173_v7, %v9364_v39 }
 0x4fc   : > { %v4245_v29 = vadd.f32 %v8701_v18, %v4207_v55 }
 0x4fe   : > { %v4276_v13 = vadd.f32 %v4275_v54, %v4245_v29 }
 0x500   : > { %v4277_v20 = vrot.slane %v4276_v13, 4 }
 0x502   : > { %v4278_v11 = vadd.f32 %v4277_v20, %v4276_v13 }
 0x504   : > { %v4279_v31 = vrot.slane %v4278_v11, 2 }
 0x506   : > { %v4280_v21 = vadd.f32 %v4279_v31, %v4278_v11 }
 0x508   : > { %v4281_v25 = vrot.slane %v4280_v21, 1 }
 0x50a   : > { %v4282_v8 = vadd.f32 %v4281_v25, %v4280_v21 }
 0x50c   : > { %v8842_v40 = vmul.f32 0.00390625, %v4282_v8 }
 0x50e   : > { %v8846_v44 = vsub.f32 %v8812_v50, %v8842_v40  ;;  %v8850_v38 = vsub.f32 %v8818_v4, %v8842_v40  ;;  %v8854_v18 = vsub.f32 %v8823_v41, %v8842_v40  ;;  %v8857_v52 = vsub.f32 %v4238_v19, %v8842_v40 }
 0x50f   : > { %v8860_v49 = vsub.f32 %v4239_v30, %v8842_v40  ;;  %v8863_v56 = vsub.f32 %v4240_v2, %v8842_v40  ;;  %v8866_v50 = vsub.f32 %v4241_v59, %v8842_v40  ;;  %v8869_v37 = vsub.f32 %v4242_v45, %v8842_v40 }
 0x510   : > { %v8872_v4 = vsub.f32 %v4243_v23, %v8842_v40  ;;  %v8875_v41 = vsub.f32 %v4244_v10, %v8842_v40  ;;  %v8878_v19 = vsub.f32 %v4245_v29, %v8842_v40  ;;  %v8882_v30 = vsub.f32 %v8710_v12, %v8842_v40 }
 0x511   : > { %v8886_v2 = vsub.f32 %v8704_v16, %v8842_v40  ;;  %v8890_v59 = vsub.f32 %v8713_v9, %v8842_v40  ;;  %v8898_v51 = vsub.f32 %v8719_v36, %v8842_v40  ;;  %v8902_v12 = vsub.f32 %v8724_v35, %v8842_v40 }
 0x512   : > { %v4316_v45 = vmul.f32 %v8882_v30, %v8882_v30  ;;  %v8908_v9 = vsub.f32 %v8729_v33, %v8842_v40  ;;  %v8914_v36 = vsub.f32 %v8734_v62, %v8842_v40  ;;  %v8920_v28 = vsub.f32 %v8740_v48, %v8842_v40 }
 0x513   : > { %v4317_v14 = vmul.f32 %v8886_v2, %v8886_v2  ;;  %v4318_v16 = vmul.f32 %v8890_v59, %v8890_v59  ;;  %v4319_v42 = vmul.f32 %v8898_v51, %v8898_v51  ;;  %v4320_v35 = vmul.f32 %v8902_v12, %v8902_v12 }
 0x514   : > { %v4321_v33 = vmul.f32 %v8908_v9, %v8908_v9  ;;  %v8926_v32 = vsub.f32 %v8746_v60, %v8842_v40  ;;  %v4322_v62 = vmul.f32 %v8914_v36, %v8914_v36  ;;  %v8932_v47 = vsub.f32 %v8751_v58, %v8842_v40 }
 0x515   : > { %v4348_v26 = vadd.f32 %v4317_v14, %v4316_v45  ;;  %v4323_v48 = vmul.f32 %v8920_v28, %v8920_v28  ;;  %v8938_v24 = vsub.f32 %v8756_v57, %v8842_v40  ;;  %v8944_v10 = vsub.f32 %v8762_v3, %v8842_v40 }
 0x516   : > { %v4324_v60 = vmul.f32 %v8926_v32, %v8926_v32  ;;  %v4325_v58 = vmul.f32 %v8932_v47, %v8932_v47  ;;  %v8950_v54 = vsub.f32 %v8768_v27, %v8842_v40  ;;  %v8956_v55 = vsub.f32 %v8773_v5, %v8842_v40 }
 0x517   : > { %v4349_v34 = vadd.f32 %v4348_v26, %v4318_v16  ;;  %v4326_v57 = vmul.f32 %v8938_v24, %v8938_v24  ;;  %v4327_v3 = vmul.f32 %v8944_v10, %v8944_v10  ;;  %v8962_v13 = vsub.f32 %v8778_v22, %v8842_v40 }
 0x518   : > { %v4328_v27 = vmul.f32 %v8950_v54, %v8950_v54  ;;  %v8968_v11 = vsub.f32 %v8783_v53, %v8842_v40  ;;  %v4329_v5 = vmul.f32 %v8956_v55, %v8956_v55  ;;  %v8974_v21 = vsub.f32 %v8788_v17, %v8842_v40 }
 0x519   : > { %v4350_v0 = vadd.f32 %v4349_v34, %v4319_v42  ;;  %v4330_v22 = vmul.f32 %v8962_v13, %v8962_v13  ;;  %v8980_v8 = vsub.f32 %v8793_v63, %v8842_v40  ;;  %v8986_v14 = vsub.f32 %v8798_v6, %v8842_v40 }
 0x51a   : > { %v4331_v53 = vmul.f32 %v8968_v11, %v8968_v11  ;;  %v4332_v17 = vmul.f32 %v8974_v21, %v8974_v21  ;;  %v8992_v26 = vsub.f32 %v8803_v61, %v8842_v40  ;;  %v8998_v34 = vsub.f32 %v8807_v46, %v8842_v40 }
 0x51b   : > { %v4351_v23 = vadd.f32 %v4350_v0, %v4320_v35  ;;  %v4333_v63 = vmul.f32 %v8980_v8, %v8980_v8  ;;  %v4334_v6 = vmul.f32 %v8986_v14, %v8986_v14  ;;  %v4338_v46 = vmul.f32 %v8850_v38, %v8850_v38 }
 0x51c   : > { %v4335_v0 = vmul.f32 %v8992_v26, %v8992_v26  ;;  %v4336_v61 = vmul.f32 %v8998_v34, %v8998_v34 }
 0x51d   : > { %v4352_v43 = vadd.f32 %v4351_v23, %v4321_v33 }
 0x51f   : > { %v4353_v1 = vadd.f32 %v4352_v43, %v4322_v62  ;;  %v4337_v62 = vmul.f32 %v8846_v44, %v8846_v44 }
 0x521   : > { %v4354_v15 = vadd.f32 %v4353_v1, %v4323_v48  ;;  %v4339_v48 = vmul.f32 %v8854_v18, %v8854_v18 }
 0x523   : > { %v4355_v7 = vadd.f32 %v4354_v15, %v4324_v60  ;;  %v4340_v60 = vmul.f32 %v8857_v52, %v8857_v52 }
 0x525   : > { %v4356_v39 = vadd.f32 %v4355_v7, %v4325_v58  ;;  %v4341_v58 = vmul.f32 %v8860_v49, %v8860_v49 }
 0x527   : > { %v4357_v29 = vadd.f32 %v4356_v39, %v4326_v57  ;;  %v4342_v57 = vmul.f32 %v8863_v56, %v8863_v56 }
 0x529   : > { %v4358_v20 = vadd.f32 %v4357_v29, %v4327_v3  ;;  %v4343_v3 = vmul.f32 %v8866_v50, %v8866_v50 }
 0x52b   : > { %v4359_v31 = vadd.f32 %v4358_v20, %v4328_v27  ;;  %v4344_v27 = vmul.f32 %v8869_v37, %v8869_v37 }
 0x52d   : > { %v4360_v25 = vadd.f32 %v4359_v31, %v4329_v5  ;;  %v4345_v5 = vmul.f32 %v8872_v4, %v8872_v4 }
 0x52f   : > { %v4361_v45 = vadd.f32 %v4360_v25, %v4330_v22  ;;  %v4346_v22 = vmul.f32 %v8875_v41, %v8875_v41 }
 0x531   : > { %v4362_v16 = vadd.f32 %v4361_v45, %v4331_v53  ;;  %v4347_v53 = vmul.f32 %v8878_v19, %v8878_v19 }
 0x533   : > { %v4363_v42 = vadd.f32 %v4362_v16, %v4332_v17 }
 0x535   : > { %v4364_v35 = vadd.f32 %v4363_v42, %v4333_v63 }
 0x537   : > { %v4365_v33 = vadd.f32 %v4364_v35, %v4334_v6 }
 0x539   : > { %v4366_v23 = vadd.f32 %v4365_v33, %v4335_v0 }
 0x53b   : > { %v4367_v43 = vadd.f32 %v4366_v23, %v4336_v61 }
 0x53d   : > { %v4368_v40 = vadd.f32 %v4367_v43, %v4337_v62 }
 0x53f   : > { %v4369_v1 = vadd.f32 %v4368_v40, %v4338_v46 }
 0x541   : > { %v4370_v15 = vadd.f32 %v4369_v1, %v4339_v48 }
 0x543   : > { %v4371_v7 = vadd.f32 %v4370_v15, %v4340_v60 }
 0x545   : > { %v4372_v39 = vadd.f32 %v4371_v7, %v4341_v58  ;;  %v6156_v58 = vld [vmem:[%s6473_s17 + $0xf8] sm:$0xff] }
 0x547   : > { %v4373_v29 = vadd.f32 %v4372_v39, %v4342_v57  ;;  %v6160_v39 = vld [vmem:[%s6473_s17 + $0x18] sm:$0xff] }
 0x549   : > { %v4374_v20 = vadd.f32 %v4373_v29, %v4343_v3  ;;  %v6161_v3 = vld [vmem:[%s6473_s17 + $0x20] sm:$0xff]  ;;  %v6162_v29 = vld [vmem:[%s6473_s17 + $0x28] sm:$0xff] }
 0x54b   : > { %v4375_v31 = vadd.f32 %v4374_v20, %v4344_v27  ;;  %v6163_v27 = vld [vmem:[%s6473_s17 + $0x30] sm:$0xff] }
 0x54d   : > { %v4376_v25 = vadd.f32 %v4375_v31, %v4345_v5  ;;  %v6164_v5 = vld [vmem:[%s6473_s17 + $0x38] sm:$0xff] }
 0x54f   : > { %v4377_v45 = vadd.f32 %v4376_v25, %v4346_v22  ;;  %v6165_v22 = vld [vmem:[%s6473_s17 + $0x40] sm:$0xff] }
 0x551   : > { %v4378_v17 = vadd.f32 %v4377_v45, %v4347_v53  ;;  %v6166_v53 = vld [vmem:[%s6473_s17 + $0x48] sm:$0xff] }
 0x553   : > { %v4379_v16 = vrot.slane %v4378_v17, 4 }
 0x555   : > { %v4380_v63 = vadd.f32 %v4379_v16, %v4378_v17  ;;  %v6167_v17 = vld [vmem:[%s6473_s17 + $0x50] sm:$0xff] }
 0x557   : > { %v4381_v42 = vrot.slane %v4380_v63, 2 }
 0x559   : > { %v4382_v6 = vadd.f32 %v4381_v42, %v4380_v63  ;;  %v6168_v63 = vld [vmem:[%s6473_s17 + $0x58] sm:$0xff] }
 0x55b   : > { %v4383_v35 = vrot.slane %v4382_v6, 1 }
 0x55d   : > { %v4384_v0 = vadd.f32 %v4383_v35, %v4382_v6  ;;  %v6169_v6 = vld [vmem:[%s6473_s17 + $0x60] sm:$0xff] }
 0x55f   : > { %v4385_v33 = vmul.f32 0.00390625, %v4384_v0  ;;  %v6170_v0 = vld [vmem:[%s6473_s17 + $0x68] sm:$0xff] }
 0x561   : > { %v4386_v61 = vadd.f32 1e-05, %v4385_v33 }
 0x563   : > { %6154 = vrsqrt.f32 %v4386_v61  ;;  %v6171_v61 = vld [vmem:[%s6473_s17 + $0x70] sm:$0xff] }
 0x570   : > { %v6155_v23 = vpop.eup %6154 }
 0x571   : > { %v4419_v62 = vmul.f32 %v6155_v23, %v8878_v19  ;;  %v4388_v43 = vmul.f32 %v6155_v23, %v8882_v30  ;;  %v4389_v46 = vmul.f32 %v6155_v23, %v8886_v2  ;;  %v4390_v40 = vmul.f32 %v6155_v23, %v8890_v59 }
 0x572   : > { %v4391_v48 = vmul.f32 %v6155_v23, %v8898_v51  ;;  %v4392_v1 = vmul.f32 %v6155_v23, %v8902_v12  ;;  %v4393_v60 = vmul.f32 %v6155_v23, %v8908_v9  ;;  %v4394_v15 = vmul.f32 %v6155_v23, %v8914_v36 }
 0x573   : > { %v4451_v7 = vadd.f32 %v6156_v58, %v4419_v62  ;;  %v4395_v57 = vmul.f32 %v6155_v23, %v8920_v28  ;;  %v4396_v19 = vmul.f32 %v6155_v23, %v8926_v32  ;;  %v4397_v30 = vmul.f32 %v6155_v23, %v8932_v47  ;;  %v6172_v62 = vld [vmem:[%s6473_s17 + $0x78] sm:$0xff] }
 0x574   : > { %v4398_v2 = vmul.f32 %v6155_v23, %v8938_v24  ;;  %v4399_v59 = vmul.f32 %v6155_v23, %v8944_v10  ;;  %v4400_v51 = vmul.f32 %v6155_v23, %v8950_v54  ;;  %v4401_v12 = vmul.f32 %v6155_v23, %v8956_v55  ;;  %v6176_v58 = vld [vmem:[%s6473_s17 + $0x98] sm:$0xff] }
 0x575   : > { %4483 = vst [vmem:[%s9046_s15 + $0xf8] sm:$0xff] %v4451_v7  ;;  %v4402_v9 = vmul.f32 %v6155_v23, %v8962_v13  ;;  %v4403_v36 = vmul.f32 %v6155_v23, %v8968_v11  ;;  %v4404_v28 = vmul.f32 %v6155_v23, %v8974_v21  ;;  %v4405_v32 = vmul.f32 %v6155_v23, %v8980_v8 }
 0x576   : > { %v4406_v47 = vmul.f32 %v6155_v23, %v8986_v14  ;;  %v9055_v24 = vmul.f32 %v6155_v23, %v8992_v26  ;;  %v9058_v10 = vmul.f32 %v6155_v23, %v8998_v34  ;;  %v9061_v54 = vmul.f32 %v6155_v23, %v8846_v44  ;;  %v6158_v26 = vld [vmem:[%s6473_s17 + $0x8] sm:$0xff]  ;;  %v6159_v34 = vld [vmem:[%s6473_s17 + $0x10] sm:$0xff] }
 0x577   : > { %v9064_v55 = vmul.f32 %v6155_v23, %v8850_v38  ;;  %v9067_v13 = vmul.f32 %v6155_v23, %v8854_v18  ;;  %v9070_v11 = vmul.f32 %v6155_v23, %v8857_v52  ;;  %v9073_v21 = vmul.f32 %v6155_v23, %v8860_v49  ;;  %v6157_v49 = vld [vmem:[%s6473_s17] sm:$0xff] }
 0x578   : > { %v9076_v8 = vmul.f32 %v6155_v23, %v8863_v56  ;;  %v9079_v44 = vmul.f32 %v6155_v23, %v8866_v50  ;;  %v9082_v38 = vmul.f32 %v6155_v23, %v8869_v37  ;;  %v9085_v18 = vmul.f32 %v6155_v23, %v8872_v4 }
 0x579   : > { %v9088_v52 = vmul.f32 %v6155_v23, %v8875_v41  ;;  %v4420_v14 = vadd.f32 %v6157_v49, %v4388_v43  ;;  %v4421_v56 = vadd.f32 %v6158_v26, %v4389_v46  ;;  %v4422_v50 = vadd.f32 %v6159_v34, %v4390_v40  ;;  %v6173_v46 = vld [vmem:[%s6473_s17 + $0x80] sm:$0xff]  ;;  %v6187_v49 = vld [vmem:[%s6473_s17 + $0xf0] sm:$0xff] }
 0x57a   : > { %v4423_v37 = vadd.f32 %v6160_v39, %v4391_v48  ;;  %v4424_v4 = vadd.f32 %v6161_v3, %v4392_v1  ;;  %v4425_v41 = vadd.f32 %v6162_v29, %v4393_v60  ;;  %v4426_v20 = vadd.f32 %v6163_v27, %v4394_v15  ;;  %v6174_v48 = vld [vmem:[%s6473_s17 + $0x88] sm:$0xff]  ;;  %v6175_v60 = vld [vmem:[%s6473_s17 + $0x90] sm:$0xff] }
 0x57b   : > { %v4427_v31 = vadd.f32 %v6164_v5, %v4395_v57  ;;  %v4428_v25 = vadd.f32 %v6165_v22, %v4396_v19  ;;  %v4429_v45 = vadd.f32 %v6166_v53, %v4397_v30  ;;  %v4430_v16 = vadd.f32 %v6167_v17, %v4398_v2  ;;  %4452 = vst [vmem:[%s9046_s15] sm:$0xff] %v4420_v14  ;;  %v6177_v57 = vld [vmem:[%s6473_s17 + $0xa0] sm:$0xff]  ;;  %v6178_v30 = vld [vmem:[%s6473_s17 + $0xa8] sm:$0xff] }
 0x57c   : > { %4453 = vst [vmem:[%s9046_s15 + $0x8] sm:$0xff] %v4421_v56  ;;  %4454 = vst [vmem:[%s9046_s15 + $0x10] sm:$0xff] %v4422_v50  ;;  %v4431_v42 = vadd.f32 %v6168_v63, %v4399_v59  ;;  %v4432_v35 = vadd.f32 %v6169_v6, %v4400_v51  ;;  %v4433_v33 = vadd.f32 %v6170_v0, %v4401_v12  ;;  %v6179_v59 = vld [vmem:[%s6473_s17 + $0xb0] sm:$0xff]  ;;  %v6180_v12 = vld [vmem:[%s6473_s17 + $0xb8] sm:$0xff] }
 0x57d   : > { %v4434_v23 = vadd.f32 %v6171_v61, %v4402_v9  ;;  %4455 = vst [vmem:[%s9046_s15 + $0x18] sm:$0xff] %v4423_v37  ;;  %4456 = vst [vmem:[%s9046_s15 + $0x20] sm:$0xff] %v4424_v4  ;;  %v4435_v43 = vadd.f32 %v6172_v62, %v4403_v36  ;;  %v4436_v40 = vadd.f32 %v6173_v46, %v4404_v28  ;;  %v6181_v36 = vld [vmem:[%s6473_s17 + $0xc0] sm:$0xff] }
 0x57e   : > { %4457 = vst [vmem:[%s9046_s15 + $0x28] sm:$0xff] %v4425_v41  ;;  %4458 = vst [vmem:[%s9046_s15 + $0x30] sm:$0xff] %v4426_v20  ;;  %v4437_v1 = vadd.f32 %v6174_v48, %v4405_v32  ;;  %v4438_v15 = vadd.f32 %v6175_v60, %v4406_v47  ;;  %v4439_v7 = vadd.f32 %v6176_v58, %v9055_v24  ;;  %v6182_v32 = vld [vmem:[%s6473_s17 + $0xc8] sm:$0xff]  ;;  %v6183_v24 = vld [vmem:[%s6473_s17 + $0xd0] sm:$0xff] }
 0x57f   : > { %4459 = vst [vmem:[%s9046_s15 + $0x38] sm:$0xff] %v4427_v31  ;;  %4460 = vst [vmem:[%s9046_s15 + $0x40] sm:$0xff] %v4428_v25  ;;  %v4440_v19 = vadd.f32 %v6177_v57, %v9058_v10  ;;  %v4441_v2 = vadd.f32 %v6178_v30, %v9061_v54  ;;  %v4442_v51 = vadd.f32 %v6179_v59, %v9064_v55  ;;  %v6184_v54 = vld [vmem:[%s6473_s17 + $0xd8] sm:$0xff] }
 0x580   : > { %4461 = vst [vmem:[%s9046_s15 + $0x48] sm:$0xff] %v4429_v45  ;;  %4462 = vst [vmem:[%s9046_s15 + $0x50] sm:$0xff] %v4430_v16  ;;  %v4443_v9 = vadd.f32 %v6180_v12, %v9067_v13  ;;  %v4444_v28 = vadd.f32 %v6181_v36, %v9070_v11  ;;  %v4445_v47 = vadd.f32 %v6182_v32, %v9073_v21  ;;  %v6185_v13 = vld [vmem:[%s6473_s17 + $0xe0] sm:$0xff]  ;;  %v6186_v21 = vld [vmem:[%s6473_s17 + $0xe8] sm:$0xff]  ;;  %s6318_s17 = smov [#allocation7]  }
 0x581   : > { %4463 = vst [vmem:[%s9046_s15 + $0x58] sm:$0xff] %v4431_v42  ;;  %4464 = vst [vmem:[%s9046_s15 + $0x60] sm:$0xff] %v4432_v35  ;;  %v4446_v10 = vadd.f32 %v6183_v24, %v9076_v8  ;;  %v4447_v55 = vadd.f32 %v6184_v54, %v9079_v44  ;;  %v4448_v11 = vadd.f32 %v6185_v13, %v9082_v38  ;;  %s6246_s10 = sshll.u32 %s6318_s17, 4  ;;  %s6247_s10 = int_to_ptr.vmem [resolvable:$false] %s6246_s10 }
 0x582   : > { %4465 = vst [vmem:[%s9046_s15 + $0x68] sm:$0xff] %v4433_v33  ;;  %4466 = vst [vmem:[%s9046_s15 + $0x70] sm:$0xff] %v4434_v23  ;;  %v4449_v8 = vadd.f32 %v6186_v21, %v9085_v18  ;;  %v4450_v14 = vadd.f32 %v6187_v49, %v9088_v52  ;;  %s6248_s16 = scalar_lea.vmem %s6247_s10, 8192  ;;  %p6249_p10 = scmp.lt.s32.totalorder %s9155_s24, %s6247_s10 }
 0x583   : > { %4467 = vst [vmem:[%s9046_s15 + $0x78] sm:$0xff] %v4435_v43  ;;  %4468 = vst [vmem:[%s9046_s15 + $0x80] sm:$0xff] %v4436_v40  ;;  %p6250_p2 = scmp.lt.s32.totalorder %s6248_s16, %s6242_s9 }
 0x584   : > { %4469 = vst [vmem:[%s9046_s15 + $0x88] sm:$0xff] %v4437_v1  ;;  %4470 = vst [vmem:[%s9046_s15 + $0x90] sm:$0xff] %v4438_v15 }
 0x585   : > { %4471 = vst [vmem:[%s9046_s15 + $0x98] sm:$0xff] %v4439_v7  ;;  %4472 = vst [vmem:[%s9046_s15 + $0xa0] sm:$0xff] %v4440_v19  ;;  %p6251_p13 = por %p6250_p2, %p6249_p10 }
 0x586   : > { %4473 = vst [vmem:[%s9046_s15 + $0xa8] sm:$0xff] %v4441_v2  ;;  %4474 = vst [vmem:[%s9046_s15 + $0xb0] sm:$0xff] %v4442_v51 }
 0x587   : > { %4475 = vst [vmem:[%s9046_s15 + $0xb8] sm:$0xff] %v4443_v9  ;;  %4476 = vst [vmem:[%s9046_s15 + $0xc0] sm:$0xff] %v4444_v28  ;;  %p6252_p0 = pnand %p6251_p13, %p6245_p12 }
 0x588   : > { %4477 = vst [vmem:[%s9046_s15 + $0xc8] sm:$0xff] %v4445_v47  ;;  %4478 = vst [vmem:[%s9046_s15 + $0xd0] sm:$0xff] %v4446_v10 }
 0x589   : > { %4479 = vst [vmem:[%s9046_s15 + $0xd8] sm:$0xff] %v4447_v55  ;;  %4480 = vst [vmem:[%s9046_s15 + $0xe0] sm:$0xff] %v4448_v11 }
 0x58a   : > { %4481 = vst [vmem:[%s9046_s15 + $0xe8] sm:$0xff] %v4449_v8  ;;  %4482 = vst [vmem:[%s9046_s15 + $0xf0] sm:$0xff] %v4450_v14 }
 0x58b   : > { %6255 = shalt.err (!%p6252_p0)
}
 0x58c   : > { %s6256_s26 = scalar_lea.hbm %s9151_s28, 4096  ;;  %s6260_s7 = scalar_lea.hbm %s9223_s5, 8192 }
 0x58d   : > { %p6257_p5 = scmp.ne.s32.totalorder %s9151_s28, %s6256_s26  ;;  %p6261_p4 = scmp.lt.s32.totalorder %s9151_s28, %s9223_s5 }
 0x58e   : > { %p6262_p6 = scmp.lt.s32.totalorder %s6260_s7, %s6256_s26 }
 0x58f   : > { %p6258_p9 = pnand %p6257_p5, %p9365_p11 }
 0x590   : > { %p6263_p8 = por %p6262_p6, %p6261_p4 }
 0x591   : > { %p6259_p1 = pneg %p6258_p9 }
 0x593   : > { %p6264_p3 = pnand %p6263_p8, %p6259_p1 }
 0x595   : > { %6267 = shalt.err (!%p6264_p3)
}
 0x596   : > { %s6319_s12 = smov 128   ;;  %s6320_s23 = smov 8  }
 0x597   : > { %5951 = dma.vmem_to_hbm [thread:$0]  (%p9365_p11), %s9155_s24, 4096, %s9151_s28, %s4485_s22, %s6319_s12, %s6319_s12, %s6320_s23  }
 0x598 PF: > { %s4513_s27 = sand.u32 1, %s6298_s18   ;;  %p9366_p7 = scmp.ne.s32.totalorder %s9257_s25, 0 }
 0x599   : > { %p9367_p12 = scmp.ge.s32.totalorder %s6310_s21, 2  ;;  %s4514_s9 = scalar_lea.sflag [#allocation4], %s4513_s27 }
 0x59b   : > { %p5962_p10 = pnand %p9367_p12, %p9366_p7 }
 0x59d   : > { %p5963_p2 = pneg %p5962_p10 }
 0x59f   : > { %6293 = dma.done.wait (%p5963_p2), %s4514_s9, 4096  }
 0x5a0   : > { %6295 = vsyncadd (%p5963_p2), %s4514_s9, 4294963200  ;;  %p19_p13 = scmp.ge.s32.totalorder %s6405_s30, 4   ;;  %s9368_s18 = smov %s6302_s19 }
 0x5a1   : > { %s9369_s19 = smov %s6306_s20  ;;  %s9370_s20 = smov %s6422_s13 }
 0x5a2   : > { %s9371_s21 = smov %s6405_s30  ;;  %21 = sbr.rel (!%p19_p13) target bundleno = 6 (0x6), region = 93 }
 0x5a7   :  { %4519 = vsyncpa [#allocation3], 1 }
 0x5a8   :  { %4521 = vsyncpa [#allocation3 + $0x1], 1 }
 0x5a9   :  { %4522 = vsyncpa [#allocation6], 1 }
 0x5aa   :  { %4523 = vsyncpa [#allocation4], 1 }
 0x5ab   :  { %4525 = vsyncpa [#allocation4 + $0x1], 1 }

// kernel: tpu_custom_call.1
= control target key start
LH: loop header
LB: loop body
LE: loop exit
PB: predicated region body
PF: predicated region fallthrough
CT: control target
= control target key end

     0   :  { %10 = vsyncpa [#allocation3], 0  ;;  %s9218_s0 = inlined_call_operand.hbm [shape: f32[2,16,16,128], index: 0, kind: input, shape index: {}, may-alias: {0,5}]   ;;  %s9219_s1 = inlined_call_operand.vmem [shape: bf16[3,384,128], index: 1, kind: input, shape index: {}]   ;;  %s9220_s2 = inlined_call_operand.vmem [shape: f32[1,128], index: 2, kind: input, shape index: {}]   ;;  %s9221_s3 = inlined_call_operand.hbm [shape: bf16[3,384,128], index: 3, kind: input, shape index: {}]   ;;  %s9222_s4 = inlined_call_operand.vmem [shape: f32[1,128], index: 4, kind: input, shape index: {}]   ;;  %s9223_s5 = inlined_call_operand.hbm [shape: f32[2,16,16,128], index: 5, kind: output, shape index: {}, may-alias: {0,5}]  }
   0x1   :  { %12 = vsyncpa [#allocation3 + $0x1], 0 }
   0x2   :  { %13 = vsyncpa [#allocation6], 0 }
   0x3   :  { %14 = vsyncpa [#allocation4], 0 }
   0x4   :  { %16 = vsyncpa [#allocation4 + $0x1], 0  ;;  %s6351_s18 = smov 0   ;;  %s6353_s19 = smov 0  }
   0x5   :  { %s6355_s20 = smov 0   ;;  %s6357_s21 = smov 0  }
   0x6 LB: > { %s6372_s22 = sadd.s32 4294967295, %s6310_s21   ;;  %s4581_s23 = sadd.s32 4294967294, %s6310_s21   ;;  %s6310_s21 = sphi %s6357_s21, %s9371_s21   ;;  %s6306_s20 = sphi %s6355_s20, %s9370_s20   ;;  %s6302_s19 = sphi %s6353_s19, %s9369_s19   ;;  %s6298_s18 = sphi %s6351_s18, %s9368_s18  }
   0x7   : > { %p42_p0 = scmp.ne.s32.totalorder %s6302_s19, %s6298_s18  ;;  %p9224_p1 = scmp.eq.s32.totalorder %s6372_s22, 0 }
   0x8   : > { %p156_p3 = scmp.eq.s32.totalorder %s4581_s23, 1  ;;  %p4582_p5 = scmp.ge.s32.totalorder %s6310_s21, 1 }
   0x9   : > { %p6381_p4 = por %p9224_p1, %p42_p0  ;;  %p163_p7 = scmp.lt.s32.totalorder %s6310_s21, 3 }
   0xa   : > { %p6386_p6 = por %p156_p3, %p42_p0  ;;  %s6312_s27 = smov [#allocation5]  }
   0xb   : > { %s9256_s24 = scalar_select %p6381_p4, 1, 0 }
   0xc   : > { %s9257_s25 = scalar_select %p6386_p6, 1, 0 }
   0xd   : > { %p6391_p8 = pnand %p4582_p5, %p163_p7  ;;  %s181_s28 = sshll.u32 %s6312_s27, 4  ;;  %s182_s28 = int_to_ptr.vmem [resolvable:$true] %s181_s28 }
   0xe   : > { %s6405_s30 = sadd.s32 1, %s6310_s21   ;;  %s29_s6 = sadd.s32 1, %s6306_s20 }
   0xf   : > { %s9258_s26 = scalar_select %p6391_p8, 1, 0 }
  0x10   : > { %p5953_p9 = pneg %p6391_p8  ;;  %s26_s7 = ssub.s32 %s6310_s21, %s6405_s30 }
  0x11   : > { %s6199_s8 = scalar_lea.vmem %s182_s28, 9216  ;;  %p6207_p5 = scmp.lt.s32.totalorder %s182_s28, %s182_s28 }
  0x12   : > { %p6400_p11 = pnand %p5953_p9, %p9224_p1  ;;  %p6200_p13 = scmp.ne.s32.totalorder %s182_s28, %s6199_s8 }
  0x13   : > { %p6208_p7 = scmp.lt.s32.totalorder %s6199_s8, %s6199_s8 }
  0x14   : > { %p6190_p12 = pneg %p6400_p11 }
  0x15   : > { %p6209_p10 = por %p6208_p7, %p6207_p5 }
  0x16   : > { %p6202_p0 = pnand %p6200_p13, %p6190_p12 }
  0x18   : > { %p6203_p3 = pneg %p6202_p0 }
  0x1a   : > { %p6210_p2 = pnand %p6209_p10, %p6203_p3 }
  0x1c   : > { %6213 = shalt.err (!%p6210_p2)
}
  0x1d   : > { %s6313_s9 = smov 64   ;;  %s6314_s10 = smov 4  }
  0x1e   : > { %5956 = dma.hbm_to_vmem [thread:$0]  (!%p6400_p11), %s9221_s3, 9216, %s182_s28, [#allocation6], %s6313_s9, %s6313_s9, %s6314_s10  }
  0x1f   : > { %p27_p9 = scmp.eq.s32.totalorder %s26_s7, 0  ;;  %p36_p12 = scmp.ne.s32.totalorder %s6306_s20, %s6302_s19 }
  0x20   : > { %p37_p10 = scmp.eq.s32.totalorder %s6310_s21, 0  ;;  %p5966_p2 = scmp.lt.s32.totalorder %s6310_s21, 2 }
  0x21   : > { %s6422_s13 = scalar_select %p27_p9, %s6306_s20, %s29_s6  }
  0x22   : > { %p38_p13 = por %p37_p10, %p36_p12  ;;  %p9260_p0 = scmp.eq.s32.totalorder %s6372_s22, 1 }
  0x23   : > { %s198_s15 = sand.u32 1, %s6306_s20   ;;  %s4839_s16 = sshll.u32 %s6310_s21, 12 }
  0x24   : > { %p6426_p3 = por %p9260_p0, %p36_p12  ;;  %s4585_s17 = sshll.u32 %s198_s15, 8 }
  0x25   : > { %s6435_s29 = scalar_lea.hbm %s9218_s0, %s4839_s16  ;;  %s202_s28 = scalar_lea.vmem [#allocation2], %s4585_s17 }
  0x26   : > { %s9261_s14 = scalar_select %p6426_p3, 1, 0 }
  0x27   : > { %s209_s6 = sshll.u32 %s202_s28, 4  ;;  %p6437_p11 = pnand %p5966_p2, %p38_p13  ;;  %s6441_s6 = int_to_ptr.vmem [resolvable:$true] %s209_s6 }
  0x28   : > { %s6443_s8 = scalar_lea.sflag [#allocation3], %s198_s15  ;;  %s6214_s9 = scalar_lea.hbm %s6435_s29, 4096 }
  0x29   : > { %p6215_p5 = scmp.ne.s32.totalorder %s6435_s29, %s6214_s9  ;;  %p6216_p7 = pneg %p6437_p11 }
  0x2a   : > { %s6219_s12 = scalar_lea.hbm %s9218_s0, 8192  ;;  %p6220_p10 = scmp.lt.s32.totalorder %s6435_s29, %s9218_s0 }
  0x2b   : > { %p6217_p9 = pnand %p6216_p7, %p6215_p5  ;;  %p6221_p2 = scmp.lt.s32.totalorder %s6219_s12, %s6214_s9 }
  0x2d   : > { %p6218_p12 = pneg %p6217_p9  ;;  %p6222_p13 = por %p6221_p2, %p6220_p10 }
  0x2f   : > { %p6223_p0 = pnand %p6222_p13, %p6218_p12 }
  0x31   : > { %6226 = shalt.err (!%p6223_p0)
}
  0x32   : > { %s6227_s15 = scalar_lea.vmem %s6441_s6, 4096  ;;  %s6315_s23 = smov [#allocation2]  }
  0x33   : > { %p6228_p1 = scmp.ne.s32.totalorder %s6441_s6, %s6227_s15  ;;  %s6232_s27 = sshll.u32 %s6315_s23, 4  ;;  %s6233_s27 = int_to_ptr.vmem [resolvable:$false] %s6232_s27 }
  0x34   : > { %s6234_s28 = scalar_lea.vmem %s6233_s27, 8192  ;;  %p6235_p9 = scmp.lt.s32.totalorder %s6441_s6, %s6233_s27 }
  0x35   : > { %p6230_p6 = pnand %p6228_p1, %p6216_p7  ;;  %p6236_p3 = scmp.lt.s32.totalorder %s6234_s28, %s6227_s15 }
  0x37   : > { %p6231_p5 = pneg %p6230_p6  ;;  %p6237_p4 = por %p6236_p3, %p6235_p9 }
  0x39   : > { %p6238_p8 = pnand %p6237_p4, %p6231_p5 }
  0x3b   : > { %6241 = shalt.err (!%p6238_p8)
}
  0x3c   : > { %s6316_s9 = smov 128   ;;  %s6317_s10 = smov 8  }
  0x3d   : > { %5960 = dma.hbm_to_vmem [thread:$0]  (!%p6437_p11), %s6435_s29, 4096, %s6441_s6, %s6443_s8, %s6316_s9, %s6316_s9, %s6317_s10  }
  0x3e   : > { %p9263_p1 = scmp.ne.s32.totalorder %s9258_s26, 0 }
  0x40   : > { %221 = sbr.rel (%p9263_p1) target bundleno = 1432 (0x598), region = 40 }
  0x45   : > { %s6467_s11 = sand.u32 1, %s6302_s19   ;;  %p9264_p4 = scmp.ne.s32.totalorder %s9256_s24, 0 }
  0x46   : > { %s4589_s12 = sshll.u32 %s6467_s11, 8  ;;  %s224_s16 = scalar_lea.sflag [#allocation3], %s6467_s11 }
  0x47   : > { %s6473_s17 = scalar_lea.vmem [#allocation2], %s4589_s12 }
  0x48   : > { %6285 = dma.done.wait (%p9264_p4), %s224_s16, 4096  }
  0x49   : > { %6287 = vsyncadd (%p9264_p4), %s224_s16, 4294963200  ;;  %p9265_p6 = scmp.eq.s32.totalorder %s6372_s22, 0 }
  0x4b   : > { %6289 = dma.done.wait (%p9265_p6), [#allocation6], 9216   ;;  %p9266_p8 = pmov %p9265_p6 }
  0x4c   : > { %v6008_v0 = vld [vmem:[%s9219_s1 + $0x138] sm:$0xff]   ;;  %v6011_v3 = vld [vmem:[%s9219_s1 + $0x130] sm:$0xff]   ;;  %v6014_v6 = vld [vmem:[%s9219_s1 + $0x128] sm:$0xff]   ;;  %vm535_vm0 = vcmask 1047552   ;;  %vm536_vm1 = vsmask.f32 7424 }
  0x4d   : > { %6291 = vsyncadd (%p9266_p8), [#allocation6], 4294958080  ;;  %v6009_v1 = vld [vmem:[%s9219_s1 + $0x178] sm:$0xff]   ;;  %4841 = vmatprep.subr.bf16.mxu0 %v6008_v0  ;;  %v6012_v4 = vld [vmem:[%s9219_s1 + $0x170] sm:$0xff]   ;;  %vm453_vm2 = vsmask.f32 256 }
  0x4e   : > { %v6010_v2 = vld [vmem:[%s9219_s1 + $0xf8] sm:$0xff]   ;;  %5657 = vmatprep.subr.bf16.mxu1 %v6009_v1  ;;  %v6013_v5 = vld [vmem:[%s9219_s1 + $0xf0] sm:$0xff]   ;;  %v6015_v7 = vld [vmem:[%s9219_s1 + $0x168] sm:$0xff]   ;;  %vm452_vm3 = vcmask 1040384   ;;  %v9267_v44 = vmov 0  ;;  %v9270_v48 = vmov 0 }
  0x4f   : > { %4842 = vmatpush3.bf16.msra.mxu0 %v6010_v2  ;;  %5658 = vmatpush3.bf16.msra.mxu1 %v6009_v1  ;;  %v6016_v8 = vld [vmem:[%s9219_s1 + $0xe8] sm:$0xff]   ;;  %v6017_v9 = vld [vmem:[%s9219_s1 + $0x120] sm:$0xff]   ;;  %v6020_v12 = vld [vmem:[%s9219_s1 + $0x118] sm:$0xff]   ;;  %s9046_s15 = scalar_lea.vmem [#allocation7], %s4589_s12  ;;  %s4840_s12 = sshll.u32 %s6372_s22, 12 }
  0x50   : > { %4843 = vmatprep.subr.bf16.mxu0 %v6011_v3  ;;  %5659 = vmatprep.subr.bf16.mxu1 %v6012_v4  ;;  %v6018_v10 = vld [vmem:[%s9219_s1 + $0x160] sm:$0xff]   ;;  %v6021_v13 = vld [vmem:[%s9219_s1 + $0x158] sm:$0xff]   ;;  %v6023_v15 = vld [vmem:[%s9219_s1 + $0x110] sm:$0xff]   ;;  %s4498_s24 = sshll.u32 %s9046_s15, 4  ;;  %s9151_s28 = scalar_lea.hbm %s9223_s5, %s4840_s12  ;;  %s9155_s24 = int_to_ptr.vmem [resolvable:$true] %s4498_s24 }
  0x51   : > { %v6019_v11 = vld [vmem:[%s9219_s1 + $0xe0] sm:$0xff]   ;;  %v6022_v14 = vld [vmem:[%s9219_s1 + $0xd8] sm:$0xff]   ;;  %v6024_v16 = vld [vmem:[%s9219_s1 + $0x150] sm:$0xff]   ;;  %s4485_s22 = scalar_lea.sflag [#allocation4], %s6467_s11  ;;  %s6242_s9 = scalar_lea.vmem %s9155_s24, 4096 }
  0x52   : > { %v6025_v17 = vld [vmem:[%s9219_s1 + $0xd0] sm:$0xff]   ;;  %v6026_v18 = vld [vmem:[%s9219_s1 + $0x108] sm:$0xff]   ;;  %v6029_v21 = vld [vmem:[%s9219_s1 + $0x100] sm:$0xff]   ;;  %p6243_p3 = scmp.ne.s32.totalorder %s9155_s24, %s6242_s9  ;;  %p9365_p11 = scmp.ne.s32.totalorder %s9261_s14, 0 }
  0x53   : > { %4844 = vmatpush3.bf16.msra.mxu0 %v6013_v5  ;;  %5660 = vmatpush3.bf16.msra.mxu1 %v6012_v4  ;;  %v6027_v19 = vld [vmem:[%s9219_s1 + $0x148] sm:$0xff]   ;;  %v6030_v22 = vld [vmem:[%s9219_s1 + $0x140] sm:$0xff]   ;;  %v261_v25 = vld [vmem:[%s6473_s17 + $0x10] sm:$0xff] }
  0x54   : > { %4845 = vmatprep.subr.bf16.mxu0 %v6014_v6  ;;  %5661 = vmatprep.subr.bf16.mxu1 %v6015_v7  ;;  %v6028_v20 = vld [vmem:[%s9219_s1 + $0xc8] sm:$0xff]   ;;  %v259_v23 = vld [vmem:[%s6473_s17] sm:$0xff]  ;;  %v262_v27 = vld [vmem:[%s6473_s17 + $0x18] sm:$0xff]  ;;  %p6244_p7 = pnand %p6243_p3, %p9365_p11 }
  0x55   : > { %v260_v24 = vld [vmem:[%s6473_s17 + $0x8] sm:$0xff]  ;;  %v6558_v28 = vpack.c.bf16 %v262_v27, %v261_v25  ;;  %v263_v29 = vld [vmem:[%s6473_s17 + $0x20] sm:$0xff]  ;;  %v265_v35 = vld [vmem:[%s6473_s17 + $0x30] sm:$0xff] }
  0x56   : > { %v6555_v26 = vpack.c.bf16 %v260_v24, %v259_v23  ;;  %v264_v30 = vld [vmem:[%s6473_s17 + $0x28] sm:$0xff]  ;;  %v6031_v31 = vld [vmem:[%s9219_s1 + $0xc0] sm:$0xff]   ;;  %v266_v36 = vld [vmem:[%s6473_s17 + $0x38] sm:$0xff]  ;;  %p6245_p12 = pneg %p6244_p7 }
  0x57   : > { %4846 = vmatpush3.bf16.msra.mxu0 %v6016_v8  ;;  %5662 = vmatpush3.bf16.msra.mxu1 %v6015_v7  ;;  %v6568_v34 = vpack.c.bf16 %v264_v30, %v263_v29  ;;  %v6573_v37 = vshrl.u32 %v6558_v28, 16  ;;  %v373_v38 = vshll.u32 %v6558_v28, 16  ;;  %v6032_v39 = vld [vmem:[%s9219_s1 + $0xb8] sm:$0xff]   ;;  %v6579_v40 = vpack.c.bf16 %v266_v36, %v265_v35  ;;  %v267_v41 = vld [vmem:[%s6473_s17 + $0x40] sm:$0xff]  ;;  %v268_v42 = vld [vmem:[%s6473_s17 + $0x48] sm:$0xff] }
  0x58   : > { %4847 = vmatprep.subr.bf16.mxu0 %v6017_v9  ;;  %5663 = vmatprep.subr.bf16.mxu1 %v6018_v10  ;;  %v312_v32 = vshrl.u32 %v6555_v26, 16  ;;  %v377_v33 = vshll.u32 %v6555_v26, 16  ;;  %vm6585_vm4 = vmand %vm535_vm0, %vm536_vm1  ;;  %v6606_v55 = vpack.c.bf16 %v268_v42, %v267_v41  ;;  %v269_v59 = vld [vmem:[%s6473_s17 + $0x50] sm:$0xff]  ;;  %v270_v60 = vld [vmem:[%s6473_s17 + $0x58] sm:$0xff] }
  0x59   : > { %827 = vmatprep.mubr.bf16.mxu0 %v6555_v26  ;;  %v9268_v44 = vsel %vm6585_vm4, 4294967295, %v9267_v44  ;;  %v6590_v46 = vshrl.u32 %v6568_v34, 16  ;;  %v6593_v47 = vshll.u32 %v6568_v34, 16  ;;  %vm6597_vm5 = vmand %vm452_vm3, %vm453_vm2  ;;  %v471_v49 = vrot.slane %v373_v38, 1  ;;  %v6033_v1 = vld [vmem:[%s9219_s1 + $0xb0] sm:$0xff]   ;;  %v271_v2 = vld [vmem:[%s6473_s17 + $0x60] sm:$0xff] }
  0x5a   : > { %v473_v43 = vrot.slane %v377_v33, 1  ;;  %9269 = vst [vmem:[#allocation11_spill] sm:$0xff] %v9268_v44  ;;  %v376_v45 = vrot.slane %v312_v32, 7  ;;  %v9271_v48 = vsel %vm6597_vm5, 4294967295, %v9270_v48  ;;  %v372_v50 = vrot.slane %v6573_v37, 7  ;;  %v272_v3 = vld [vmem:[%s6473_s17 + $0x68] sm:$0xff] }
  0x5b   : > { %4848 = vmatpush3.bf16.msra.mxu0 %v6019_v11  ;;  %5664 = vmatpush3.bf16.msra.mxu1 %v6018_v10  ;;  %9272 = vst [vmem:[#allocation12_spill] sm:$0xff] %v9271_v48  ;;  %v6603_v51 = vshll.u32 %v6579_v40, 16  ;;  %v475_v54 = vrot.slane %v6593_v47, 1  ;;  %v472_v56 = vor.u32 %v471_v49, %v6573_v37  ;;  %v6610_v57 = vshrl.u32 %v6579_v40, 16  ;;  %v6034_v6 = vld [vmem:[%s9219_s1 + $0x78] sm:$0xff]   ;;  %v273_v10 = vld [vmem:[%s6473_s17 + $0x70] sm:$0xff] }
  0x5c   : > { %4849 = vmatprep.subr.bf16.mxu0 %v6020_v12  ;;  %5665 = vmatprep.subr.bf16.mxu1 %v6021_v13  ;;  %v474_v52 = vor.u32 %v473_v43, %v312_v32  ;;  %v379_v53 = vor.u32 %v377_v33, %v376_v45  ;;  %v6625_v0 = vshrl.u32 %v6606_v55, 16  ;;  %v6638_v5 = vshll.u32 %v6606_v55, 16  ;;  %v274_v11 = vld [vmem:[%s6473_s17 + $0x78] sm:$0xff]  ;;  %v6038_v36 = vld [vmem:[%s9219_s1 + $0x30] sm:$0xff]  }
  0x5d   : > { %v477_v58 = vrot.slane %v6603_v51, 1  ;;  %v476_v63 = vor.u32 %v475_v54, %v6590_v46  ;;  %v6635_v4 = vsel %vm6585_vm4, %v472_v56, %v373_v38  ;;  %v375_v8 = vor.u32 %v373_v38, %v372_v50  ;;  %v277_v42 = vld [vmem:[%s6473_s17 + $0x90] sm:$0xff]  ;;  %v278_v43 = vld [vmem:[%s6473_s17 + $0x98] sm:$0xff]  ;;  %v279_v50 = vld [vmem:[%s6473_s17 + $0xa0] sm:$0xff] }
  0x5e   : > { %v6617_v61 = vsel %vm6585_vm4, %v474_v52, %v377_v33  ;;  %v6621_v62 = vsel %vm6597_vm5, %v312_v32, %v379_v53  ;;  %v6650_v9 = vpack.c.bf16 %v270_v60, %v269_v59  ;;  %v380_v24 = vrot.slane %v6590_v46, 7  ;;  %v280_v52 = vld [vmem:[%s6473_s17 + $0xa8] sm:$0xff]  ;;  %v6041_v53 = vld [vmem:[%s9219_s1 + $0x60] sm:$0xff]  }
  0x5f   : > { %4850 = vmatpush3.bf16.msra.mxu0 %v6022_v14  ;;  %5666 = vmatpush3.bf16.msra.mxu1 %v6021_v13  ;;  %v6648_v7 = vsel %vm6585_vm4, %v476_v63, %v6593_v47  ;;  %v478_v12 = vor.u32 %v477_v58, %v6610_v57  ;;  %v479_v13 = vrot.slane %v6638_v5, 1  ;;  %v6657_v14 = vpack.c.bf16 %v272_v3, %v271_v2 }
  0x60   : > { %4851 = vmatprep.subr.bf16.mxu0 %v6023_v15  ;;  %5667 = vmatprep.subr.bf16.mxu1 %v6024_v16  ;;  %v275_v15 = vld [vmem:[%s6473_s17 + $0x80] sm:$0xff]  ;;  %v6681_v23 = vsel %vm6597_vm5, %v6573_v37, %v375_v8  ;;  %v6690_v27 = vshrl.u32 %v6650_v9, 16  ;;  %v6693_v30 = vpack.c.bf16 %v274_v11, %v273_v10  ;;  %v6039_v37 = vld [vmem:[%s9219_s1 + $0x68] sm:$0xff]   ;;  %v383_v38 = vor.u32 %v6593_v47, %v380_v24  ;;  %v281_v8 = vld [vmem:[%s6473_s17 + $0xb0] sm:$0xff] }
  0x61   : > { %5673 = vmatprep.mubr.bf16.mxu1 %v6617_v61  ;;  %v6687_v25 = vsel %vm6585_vm4, %v478_v12, %v6603_v51  ;;  %v6701_v32 = vshrl.u32 %v6657_v14, 16  ;;  %v6040_v47 = vld [vmem:[%s9219_s1 + $0x28] sm:$0xff]   ;;  %v384_v56 = vrot.slane %v6610_v57, 7  ;;  %v6741_v58 = vpack.c.bf16 %v278_v43, %v277_v42  ;;  %v282_v10 = vld [vmem:[%s6473_s17 + $0xb8] sm:$0xff]  ;;  %v6042_v11 = vld [vmem:[%s9219_s1 + $0x20] sm:$0xff]  }
  0x62   : > { %v6719_v41 = vshll.u32 %v6693_v30, 16  ;;  %v6738_v54 = vsel %vm6597_vm5, %v6590_v46, %v383_v38  ;;  %v6749_v60 = vshrl.u32 %v6693_v30, 16  ;;  %v6044_v46 = vld [vmem:[%s9219_s1 + $0xa0] sm:$0xff]   ;;  %v6043_v12 = vld [vmem:[%s9219_s1 + $0x58] sm:$0xff]   ;;  %v6801_v38 = vpack.c.bf16 %v282_v10, %v281_v8 }
  0x63   : > { %4852 = vmatpush3.bf16.msra.mxu0 %v6025_v17  ;;  %5668 = vmatpush3.bf16.msra.mxu1 %v6024_v16  ;;  %v6036_v16 = vld [vmem:[%s9219_s1 + $0x38] sm:$0xff]   ;;  %v6665_v17 = vshll.u32 %v6650_v9, 16 }
  0x64   : > { %4853 = vmatprep.subr.bf16.mxu0 %v6026_v18  ;;  %5669 = vmatprep.subr.bf16.mxu1 %v6027_v19  ;;  %v6035_v18 = vld [vmem:[%s9219_s1 + $0xa8] sm:$0xff]   ;;  %v485_v63 = vrot.slane %v6719_v41, 1  ;;  %v6837_v8 = vshll.u32 %v6801_v38, 16 }
  0x65   : > { %v481_v29 = vrot.slane %v6665_v17, 1 }
  0x67   : > { %4854 = vmatpush3.bf16.msra.mxu0 %v6028_v20  ;;  %5670 = vmatpush3.bf16.msra.mxu1 %v6027_v19  ;;  %v480_v19 = vor.u32 %v479_v13, %v6625_v0  ;;  %v6672_v20 = vshll.u32 %v6657_v14, 16  ;;  %v387_v13 = vor.u32 %v6603_v51, %v384_v56  ;;  %v388_v51 = vrot.slane %v6625_v0, 7 }
  0x68   : > { %4855 = vmatprep.subr.bf16.mxu0 %v6029_v21  ;;  %5671 = vmatprep.subr.bf16.mxu1 %v6030_v22  ;;  %v276_v21 = vld [vmem:[%s6473_s17 + $0x88] sm:$0xff] }
  0x69   : > { %v483_v33 = vrot.slane %v6672_v20, 1  ;;  %v6704_v35 = vpack.c.bf16 %v276_v21, %v275_v15  ;;  %v6778_v15 = vshll.u32 %v6741_v58, 16  ;;  %v6045_v21 = vld [vmem:[%s9219_s1 + $0x18] sm:$0xff]   ;;  %v6807_v42 = vsel %vm6597_vm5, %v6610_v57, %v387_v13  ;;  %v6047_v57 = vld [vmem:[%s9219_s1 + $0x10] sm:$0xff]  }
  0x6b   : > { %4856 = vmatpush3.bf16.msra.mxu0 %v6031_v31  ;;  %5672 = vmatpush3.bf16.msra.mxu1 %v6030_v22  ;;  %v6037_v22 = vld [vmem:[%s9219_s1 + $0x70] sm:$0xff]   ;;  %v6698_v31 = vsel %vm6585_vm4, %v480_v19, %v6638_v5  ;;  %v484_v45 = vor.u32 %v483_v33, %v6701_v32  ;;  %v6725_v49 = vshll.u32 %v6704_v35, 16  ;;  %v284_v19 = vld [vmem:[%s6473_s17 + $0xc8] sm:$0xff]  ;;  %v287_v33 = vld [vmem:[%s6473_s17 + $0xe0] sm:$0xff]  ;;  %v489_v43 = vrot.slane %v6778_v15, 1 }
  0x6c   : > { %5705 = vmatprep.subr.bf16.mxu0 %v6032_v39  ;;  %4977 = vmatprep.subr.bf16.mxu1 %v6034_v6  ;;  %v6764_v6 = vpack.c.bf16 %v280_v52, %v279_v50 }
  0x6d   : > { %v6761_v2 = vsel %vm6585_vm4, %v484_v45, %v6672_v20  ;;  %v487_v3 = vrot.slane %v6725_v49, 1 }
  0x6e   : > { %828 = vmatmul.mubr.bf16.vlgmr.msra.gmra.mxu0 %v6621_v62  ;;  %5674 = vmatmul.mubr.bf16.vlgmr.msra.gmra.mxu1 %v6635_v4  ;;  %9274 = vst [vmem:[#allocation14_spill] sm:$0xff] %v6761_v2  ;;  %v6791_v24 = vshll.u32 %v6764_v6, 16  ;;  %v6819_v52 = vshrl.u32 %v6764_v6, 16 }
  0x6f   : > { %5706 = vmatpush3.bf16.msra.mxu0 %v6032_v39  ;;  %835 = vmatprep.mubr.bf16.mxu0 %v6558_v28  ;;  %v482_v39 = vor.u32 %v481_v29, %v6690_v27  ;;  %v6046_v29 = vld [vmem:[%s9219_s1 + $0x50] sm:$0xff]  }
  0x70   : > { %5677 = vmatprep.mubr.bf16.mxu1 %v6648_v7  ;;  %5707 = vmatprep.subr.bf16.mxu0 %v6033_v1 }
  0x71   : > { %4978 = vmatpush3.bf16.msra.mxu1 %v6036_v16  ;;  %v6746_v59 = vsel %vm6585_vm4, %v482_v39, %v6665_v17  ;;  %v283_v16 = vld [vmem:[%s6473_s17 + $0xc0] sm:$0xff]  ;;  %v289_v39 = vld [vmem:[%s6473_s17 + $0xf0] sm:$0xff] }
  0x72   : > { %4979 = vmatprep.subr.bf16.mxu1 %v6037_v22  ;;  %9273 = vst [vmem:[#allocation13_spill] sm:$0xff] %v6746_v59  ;;  %v6810_v45 = vpack.c.bf16 %v284_v19, %v283_v16  ;;  %v285_v16 = vld [vmem:[%s6473_s17 + $0xd0] sm:$0xff] }
  0x73   : > { %5708 = vmatpush3.bf16.msra.mxu0 %v6033_v1  ;;  %v6753_v1 = vshrl.u32 %v6704_v35, 16 }
  0x74   : > { %5709 = vmatprep.subr.bf16.mxu0 %v6035_v18  ;;  %v6848_v13 = vshll.u32 %v6810_v45, 16 }
  0x75   : > { %4980 = vmatpush3.bf16.msra.mxu1 %v6038_v36  ;;  %v488_v22 = vor.u32 %v487_v3, %v6753_v1  ;;  %v288_v36 = vld [vmem:[%s6473_s17 + $0xe8] sm:$0xff] }
  0x76   : > { %836 = vmatmul.mubr.bf16.gmra.mxu0 %v6681_v23  ;;  %5678 = vmatmul.mubr.bf16.gmra.mxu1 %v6687_v25  ;;  %v6825_v56 = vpack.c.bf16 %v288_v36, %v287_v33  ;;  %v6048_v3 = vld [vmem:[%s9219_s1 + $0x48] sm:$0xff]   ;;  %v6050_v36 = vld [vmem:[%s9219_s1 + $0x40] sm:$0xff]  }
  0x77   : > { %843 = vmatprep.mubr.bf16.mxu0 %v6568_v34  ;;  %5681 = vmatprep.mubr.bf16.mxu1 %v6698_v31 }
  0x78   : > { %5710 = vmatpush3.bf16.msra.mxu0 %v6035_v18  ;;  %4981 = vmatprep.subr.bf16.mxu1 %v6039_v37  ;;  %v486_v18 = vor.u32 %v485_v63, %v6749_v60  ;;  %v6799_v37 = vshrl.u32 %v6741_v58, 16  ;;  %v6830_v63 = vsel %vm6585_vm4, %v488_v22, %v6725_v49  ;;  %v6853_v19 = vshrl.u32 %v6825_v56, 16 }
  0x79   : > { %4982 = vmatpush3.bf16.msra.mxu1 %v6040_v47  ;;  %5711 = vmatprep.subr.bf16.mxu0 %v6044_v46  ;;  %v290_v47 = vld [vmem:[%s6473_s17 + $0xf8] sm:$0xff]  ;;  %9276 = vst [vmem:[#allocation16_spill] sm:$0xff] %v6830_v63  ;;  %v6859_v22 = vshll.u32 %v6825_v56, 16 }
  0x7a   : > { %4983 = vmatprep.subr.bf16.mxu1 %v6041_v53  ;;  %v6816_v50 = vsel %vm6585_vm4, %v486_v18, %v6719_v41  ;;  %v392_v53 = vrot.slane %v6690_v27, 7  ;;  %v6839_v10 = vpack.c.bf16 %v290_v47, %v289_v39  ;;  %v286_v18 = vld [vmem:[%s6473_s17 + $0xd8] sm:$0xff]  ;;  %v428_v39 = vrot.slane %v6853_v19, 7 }
  0x7b   : > { %9275 = vst [vmem:[#allocation15_spill] sm:$0xff] %v6816_v50 }
  0x7c   : > { %5712 = vmatpush3.bf16.msra.mxu0 %v6044_v46  ;;  %v491_v46 = vrot.slane %v6791_v24, 1 }
  0x7d   : > { %4984 = vmatpush3.bf16.msra.mxu1 %v6042_v11  ;;  %v6052_v11 = vld [vmem:[%s9219_s1 + $0x98] sm:$0xff]  }
  0x7e   : > { %844 = vmatmul.mubr.bf16.gmra.mxu0 %v6738_v54  ;;  %5682 = vmatmul.mubr.bf16.gmra.mxu1 %v6746_v59  ;;  %v492_v33 = vor.u32 %v491_v46, %v6819_v52  ;;  %v6888_v46 = vshrl.u32 %v6810_v45, 16 }
  0x7f   : > { %851 = vmatprep.mubr.bf16.mxu0 %v6579_v40  ;;  %5685 = vmatprep.mubr.bf16.mxu1 %v6761_v2  ;;  %v6897_v2 = vpack.c.bf16 %v286_v18, %v285_v16 }
  0x80   : > { %4985 = vmatprep.subr.bf16.mxu1 %v6043_v12  ;;  %v391_v12 = vor.u32 %v6638_v5, %v388_v51  ;;  %v6049_v5 = vld [vmem:[%s9219_s1 + $0x8] sm:$0xff]   ;;  %v6053_v51 = vld [vmem:[%s9219_s1 + $0x90] sm:$0xff]   ;;  %5713 = vmatprep.subr.bf16.mxu0 %v6052_v11  ;;  %v6906_v59 = vsel %vm6585_vm4, %v492_v33, %v6791_v24 }
  0x81   : > { %4986 = vmatpush3.bf16.msra.mxu1 %v6045_v21  ;;  %v490_v21 = vor.u32 %v489_v43, %v6799_v37  ;;  %v6876_v43 = vshll.u32 %v6839_v10, 16  ;;  %5714 = vmatpush3.bf16.msra.mxu0 %v6052_v11  ;;  %v493_v11 = vrot.slane %v6837_v8, 1  ;;  %9278 = vst [vmem:[#allocation18_spill] sm:$0xff] %v6906_v59 }
  0x82   : > { %4987 = vmatprep.subr.bf16.mxu1 %v6046_v29  ;;  %v6862_v29 = vshrl.u32 %v6839_v10, 16  ;;  %5715 = vmatprep.subr.bf16.mxu0 %v6053_v51 }
  0x84   : > { %v432_v47 = vrot.slane %v6862_v29, 7 }
  0x85   : > { %4988 = vmatpush3.bf16.msra.mxu1 %v6047_v57  ;;  %v6885_v57 = vshrl.u32 %v6801_v38, 16  ;;  %5716 = vmatpush3.bf16.msra.mxu0 %v6053_v51  ;;  %v395_v51 = vor.u32 %v6665_v17, %v392_v53  ;;  %v6953_v53 = vshrl.u32 %v6897_v2, 16 }
  0x86   : > { %852 = vmatmul.mubr.bf16.gmra.mxu0 %v6807_v42  ;;  %5686 = vmatmul.mubr.bf16.gmra.mxu1 %v6816_v50  ;;  %v431_v50 = vor.u32 %v6859_v22, %v428_v39  ;;  %v495_v39 = vrot.slane %v6848_v13, 1 }
  0x87   : > { %859 = vmatprep.mubr.bf16.mxu0 %v6606_v55  ;;  %5689 = vmatprep.mubr.bf16.mxu1 %v6830_v63  ;;  %v6882_v63 = vsel %vm6597_vm5, %v6625_v0, %v391_v12  ;;  %v6051_v0 = vld [vmem:[%s9219_s1] sm:$0xff]   ;;  %v435_v12 = vor.u32 %v6876_v43, %v432_v47  ;;  %v494_v33 = vor.u32 %v493_v11, %v6885_v57 }
  0x88   : > { %4989 = vmatprep.subr.bf16.mxu1 %v6048_v3  ;;  %v6894_v3 = vsel %vm6585_vm4, %v490_v21, %v6778_v15  ;;  %v6054_v21 = vld [vmem:[%s9219_s1 + $0x88] sm:$0xff]   ;;  %v6915_v16 = vsel %vm6597_vm5, %v6853_v19, %v431_v50  ;;  %v6055_v50 = vld [vmem:[%s9219_s1 + $0x80] sm:$0xff]   ;;  %v496_v47 = vor.u32 %v495_v39, %v6888_v46  ;;  %v499_v39 = vrot.slane %v6859_v22, 1 }
  0x89   : > { %9277 = vst [vmem:[#allocation17_spill] sm:$0xff] %v6894_v3  ;;  %4990 = vmatpush3.bf16.msra.mxu1 %v6049_v5  ;;  %v6920_v18 = vsel %vm6597_vm5, %v6862_v29, %v435_v12  ;;  %v6925_v5 = vld [vmem:[%s9219_s1 + $0x238] sm:$0xff]   ;;  %5717 = vmatprep.subr.bf16.mxu0 %v6054_v21  ;;  %v396_v12 = vrot.slane %v6701_v32, 7  ;;  %v6950_v17 = vsel %vm6585_vm4, %v494_v33, %v6837_v8 }
  0x8a   : > { %4991 = vmatprep.subr.bf16.mxu1 %v6050_v36  ;;  %v6937_v36 = vshll.u32 %v6897_v2, 16  ;;  %5718 = vmatpush3.bf16.msra.mxu0 %v6054_v21  ;;  %v500_v33 = vor.u32 %v499_v39, %v6853_v19  ;;  %v420_v39 = vrot.slane %v6888_v46, 7 }
  0x8b   : > { %5719 = vmatprep.subr.bf16.mxu0 %v6055_v50  ;;  %v399_v21 = vor.u32 %v6672_v20, %v396_v12  ;;  %v404_v12 = vrot.slane %v6753_v1, 7 }
  0x8c   : > { %v497_v11 = vrot.slane %v6937_v36, 1  ;;  %v6987_v20 = vsel %vm6585_vm4, %v500_v33, %v6859_v22  ;;  %v6071_v33 = vld [vmem:[%s9219_s1 + $0x220] sm:$0xff]  }
  0x8d   : > { %4992 = vmatpush3.bf16.msra.mxu1 %v6051_v0  ;;  %v6959_v0 = vsel %vm6585_vm4, %v496_v47, %v6848_v13  ;;  %v400_v47 = vrot.slane %v6749_v60, 7 }
  0x8e   : > { %860 = vmatmul.mubr.bf16.gmra.mxu0 %v6882_v63  ;;  %5690 = vmatmul.mubr.bf16.gmra.mxu1 %v6894_v3  ;;  %9279 = vst [vmem:[#allocation19_spill] sm:$0xff] %v6959_v0  ;;  %v501_v3 = vrot.slane %v6876_v43, 1 }
  0x8f   : > { %867 = vmatprep.mubr.bf16.mxu0 %v6650_v9  ;;  %5693 = vmatprep.mubr.bf16.mxu1 %v6906_v59  ;;  %v6945_v59 = vsel %vm6597_vm5, %v6690_v27, %v395_v51  ;;  %v6057_v27 = vld [vmem:[%s9219_s1 + $0x1f8] sm:$0xff]   ;;  %v498_v51 = vor.u32 %v497_v11, %v6953_v53 }
  0x90   : > { %5753 = vmatprep.subr.bf16.mxu1 %v6925_v5  ;;  %5720 = vmatpush3.bf16.msra.mxu0 %v6055_v50  ;;  %v6977_v50 = vsel %vm6597_vm5, %v6701_v32, %v399_v21  ;;  %v403_v32 = vor.u32 %v6719_v41, %v400_v47  ;;  %v502_v19 = vor.u32 %v501_v3, %v6862_v29  ;;  %v408_v41 = vrot.slane %v6799_v37, 7  ;;  %v6061_v21 = vld [vmem:[%s9219_s1 + $0x230] sm:$0xff]   ;;  %v6079_v47 = vld [vmem:[%s9219_s1 + $0x200] sm:$0xff]  }
  0x91   : > { %5113 = vmatprep.subr.bf16.mxu0 %v6057_v27  ;;  %v412_v29 = vrot.slane %v6819_v52, 7  ;;  %v416_v3 = vrot.slane %v6885_v57, 7 }
  0x92   : > { %v6999_v11 = vsel %vm6597_vm5, %v6749_v60, %v403_v32  ;;  %v7004_v22 = vsel %vm6585_vm4, %v502_v19, %v6876_v43  ;;  %v407_v60 = vor.u32 %v6725_v49, %v404_v12  ;;  %v424_v43 = vrot.slane %v6953_v53, 7  ;;  %v6062_v19 = vld [vmem:[%s9219_s1 + $0x1e8] sm:$0xff]   ;;  %v6064_v12 = vld [vmem:[%s9219_s1 + $0x1e0] sm:$0xff]  }
  0x93   : > { %v411_v49 = vor.u32 %v6778_v15, %v408_v41  ;;  %v6074_v15 = vld [vmem:[%s9219_s1 + $0x218] sm:$0xff]   ;;  %v6065_v41 = vld [vmem:[%s9219_s1 + $0x1a0] sm:$0xff]  }
  0x94   : > { %v7019_v27 = vsel %vm6597_vm5, %v6753_v1, %v407_v60  ;;  %v427_v32 = vor.u32 %v6937_v36, %v424_v43  ;;  %v6069_v60 = vld [vmem:[%s9219_s1 + $0x1d0] sm:$0xff]  }
  0x95   : > { %v7036_v1 = vsel %vm6597_vm5, %v6799_v37, %v411_v49  ;;  %v6070_v43 = vld [vmem:[%s9219_s1 + $0x190] sm:$0xff]   ;;  %v6073_v49 = vld [vmem:[%s9219_s1 + $0x188] sm:$0xff]  }
  0x96   : > { %868 = vmatmul.mubr.bf16.gmra.mxu0 %v6945_v59  ;;  %5694 = vmatmul.mubr.bf16.gmra.mxu1 %v6950_v17 }
  0x97   : > { %875 = vmatprep.mubr.bf16.mxu0 %v6657_v14  ;;  %5697 = vmatprep.mubr.bf16.mxu1 %v6959_v0  ;;  %v6982_v0 = vsel %vm6585_vm4, %v498_v51, %v6937_v36  ;;  %v6066_v51 = vld [vmem:[%s9219_s1 + $0x228] sm:$0xff]   ;;  %v6059_v36 = vld [vmem:[%s9219_s1 + $0x1f0] sm:$0xff]  }
  0x9e   : > { %876 = vmatmul.mubr.bf16.gmra.mxu0 %v6977_v50  ;;  %5698 = vmatmul.mubr.bf16.gmra.mxu1 %v6982_v0 }
  0x9f   : > { %883 = vmatprep.mubr.bf16.mxu0 %v6693_v30  ;;  %5701 = vmatprep.mubr.bf16.mxu1 %v6987_v20 }
  0xa6   : > { %884 = vmatmul.mubr.bf16.gmra.mxu0 %v6999_v11  ;;  %5702 = vmatmul.mubr.bf16.gmra.mxu1 %v7004_v22 }
  0xa7   : > { %891 = vmatprep.mubr.bf16.mxu0 %v6704_v35  ;;  %1293 = vmatprep.mubr.bf16.mxu1 %v6558_v28 }
  0xae   : > { %892 = vmatmul.mubr.bf16.gmra.mxu0 %v7019_v27  ;;  %1294 = vmatmul.mubr.bf16.vlgmr.msra.gmra.mxu1 %v6681_v23 }
  0xaf   : > { %899 = vmatprep.mubr.bf16.mxu0 %v6741_v58  ;;  %1301 = vmatprep.mubr.bf16.mxu1 %v6555_v26  ;;  %v415_v26 = vor.u32 %v6791_v24, %v412_v29  ;;  %v419_v24 = vor.u32 %v6837_v8, %v416_v3  ;;  %v423_v8 = vor.u32 %v6848_v13, %v420_v39  ;;  %v6067_v29 = vld [vmem:[%s9219_s1 + $0x1d8] sm:$0xff]   ;;  %v9280_v39 = vld [vmem:[#allocation13_spill] sm:$0xff] }
  0xb0   : > { %5754 = vmatpush3.bf16.msra.mxu1 %v6925_v5  ;;  %v7091_v13 = vsel %vm6597_vm5, %v6953_v53, %v427_v32  ;;  %v6060_v53 = vld [vmem:[%s9219_s1 + $0x1b0] sm:$0xff]   ;;  %v6068_v3 = vld [vmem:[%s9219_s1 + $0x198] sm:$0xff]  }
  0xb1   : > { %5755 = vmatprep.subr.bf16.mxu1 %v6061_v21  ;;  %v7052_v37 = vsel %vm6597_vm5, %v6819_v52, %v415_v26  ;;  %v6078_v52 = vld [vmem:[%s9219_s1 + $0x208] sm:$0xff]   ;;  %v7068_v5 = vsel %vm6597_vm5, %v6885_v57, %v419_v24  ;;  %v7081_v57 = vsel %vm6597_vm5, %v6888_v46, %v423_v8  ;;  %v6058_v46 = vld [vmem:[%s9219_s1 + $0x1b8] sm:$0xff]   ;;  %v9282_v26 = vld [vmem:[#allocation15_spill] sm:$0xff] }
  0xb2   : > { %v9284_v24 = vld [vmem:[#allocation17_spill] sm:$0xff] }
  0xb4   : > { %5756 = vmatpush3.bf16.msra.mxu1 %v6061_v21  ;;  %v6072_v21 = vld [vmem:[%s9219_s1 + $0x1c8] sm:$0xff]  }
  0xb5   : > { %5757 = vmatprep.subr.bf16.mxu1 %v6066_v51 }
  0xb6   : > { %900 = vmatmul.mubr.bf16.gmra.mxu0 %v7036_v1  ;;  %1302 = vmatmul.mubr.bf16.gmra.mxu1 %v6621_v62  ;;  %v6075_v62 = vld [vmem:[%s9219_s1 + $0x210] sm:$0xff]  }
  0xb7   : > { %907 = vmatprep.mubr.bf16.mxu0 %v6764_v6  ;;  %1309 = vmatprep.mubr.bf16.mxu1 %v6558_v28 }
  0xb8   : > { %5758 = vmatpush3.bf16.msra.mxu1 %v6066_v51  ;;  %v6076_v51 = vld [vmem:[%s9219_s1 + $0x1c0] sm:$0xff]  }
  0xb9   : > { %5759 = vmatprep.subr.bf16.mxu1 %v6071_v33 }
  0xbc   : > { %5760 = vmatpush3.bf16.msra.mxu1 %v6071_v33  ;;  %v9281_v33 = vld [vmem:[#allocation14_spill] sm:$0xff] }
  0xbd   : > { %5761 = vmatprep.subr.bf16.mxu1 %v6074_v15 }
  0xbe   : > { %908 = vmatmul.mubr.bf16.gmra.mxu0 %v7052_v37  ;;  %1310 = vmatmul.mubr.bf16.gmra.mxu1 %v6681_v23 }
  0xbf   : > { %915 = vmatprep.mubr.bf16.mxu0 %v6801_v38  ;;  %1317 = vmatprep.mubr.bf16.mxu1 %v6568_v34 }
  0xc0   : > { %5762 = vmatpush3.bf16.msra.mxu1 %v6074_v15  ;;  %v6077_v15 = vld [vmem:[%s9219_s1 + $0x180] sm:$0xff]  }
  0xc1   : > { %5763 = vmatprep.subr.bf16.mxu1 %v6075_v62 }
  0xc4   : > { %5764 = vmatpush3.bf16.msra.mxu1 %v6075_v62  ;;  %v9283_v62 = vld [vmem:[#allocation16_spill] sm:$0xff] }
  0xc5   : > { %5765 = vmatprep.subr.bf16.mxu1 %v6078_v52 }
  0xc6   : > { %916 = vmatmul.mubr.bf16.gmra.mxu0 %v7068_v5  ;;  %1318 = vmatmul.mubr.bf16.gmra.mxu1 %v6738_v54 }
  0xc7   : > { %923 = vmatprep.mubr.bf16.mxu0 %v6810_v45  ;;  %1325 = vmatprep.mubr.bf16.mxu1 %v6579_v40 }
  0xc8   : > { %5766 = vmatpush3.bf16.msra.mxu1 %v6078_v52  ;;  %v9285_v52 = vld [vmem:[#allocation18_spill] sm:$0xff] }
  0xc9   : > { %5767 = vmatprep.subr.bf16.mxu1 %v6079_v47 }
  0xcc   : > { %5768 = vmatpush3.bf16.msra.mxu1 %v6079_v47  ;;  %v9286_v47 = vld [vmem:[#allocation19_spill] sm:$0xff] }
  0xce   : > { %924 = vmatmul.mubr.bf16.gmra.mxu0 %v7081_v57  ;;  %1326 = vmatmul.mubr.bf16.gmra.mxu1 %v6807_v42 }
  0xcf   : > { %931 = vmatprep.mubr.bf16.mxu0 %v6897_v2  ;;  %1333 = vmatprep.mubr.bf16.mxu1 %v6606_v55 }
  0xd6   : > { %932 = vmatmul.mubr.bf16.gmra.mxu0 %v7091_v13  ;;  %1334 = vmatmul.mubr.bf16.gmra.mxu1 %v6882_v63 }
  0xd7   : > { %939 = vmatprep.mubr.bf16.mxu0 %v6825_v56  ;;  %1341 = vmatprep.mubr.bf16.mxu1 %v6650_v9 }
  0xde   : > { %940 = vmatmul.mubr.bf16.gmra.mxu0 %v6915_v16  ;;  %1342 = vmatmul.mubr.bf16.gmra.mxu1 %v6945_v59 }
  0xdf   : > { %947 = vmatprep.mubr.bf16.mxu0 %v6839_v10  ;;  %1349 = vmatprep.mubr.bf16.mxu1 %v6657_v14 }
  0xe6   : > { %948 = vmatmul.mubr.bf16.gmra.mxu0 %v6920_v18  ;;  %1350 = vmatmul.mubr.bf16.gmra.mxu1 %v6977_v50 }
  0xe7   : > { %1357 = vmatprep.mubr.bf16.mxu1 %v6693_v30  ;;  %5721 = vmatprep.mubr.bf16.mxu0 %v6635_v4 }
  0xee   : > { %1358 = vmatmul.mubr.bf16.gmra.mxu1 %v6999_v11  ;;  %5722 = vmatmul.mubr.bf16.vlgmr.msra.gmra.mxu0 %v6617_v61  ;;  %v6063_v61 = vld [vmem:[%s9219_s1 + $0x1a8] sm:$0xff]  }
  0xef   : > { %5114 = vmatpush3.bf16.msra.mxu0 %v6058_v46  ;;  %1365 = vmatprep.mubr.bf16.mxu1 %v6704_v35 }
  0xf0   : > { %5725 = vmatprep.mubr.bf16.mxu0 %v6635_v4  ;;  %5115 = vmatprep.subr.bf16.mxu0 %v6059_v36 }
  0xf3   : > { %5116 = vmatpush3.bf16.msra.mxu0 %v6060_v53 }
  0xf4   : > { %5117 = vmatprep.subr.bf16.mxu0 %v6062_v19 }
  0xf6   : > { %1366 = vmatmul.mubr.bf16.gmra.mxu1 %v7019_v27  ;;  %5726 = vmatmul.mubr.bf16.gmra.mxu0 %v6648_v7 }
  0xf7   : > { %1373 = vmatprep.mubr.bf16.mxu1 %v6741_v58  ;;  %5729 = vmatprep.mubr.bf16.mxu0 %v6687_v25 }
  0xf8   : > { %5118 = vmatpush3.bf16.msra.mxu0 %v6063_v61 }
  0xf9   : > { %5119 = vmatprep.subr.bf16.mxu0 %v6064_v12 }
  0xfc   : > { %5120 = vmatpush3.bf16.msra.mxu0 %v6065_v41 }
  0xfd   : > { %5121 = vmatprep.subr.bf16.mxu0 %v6067_v29 }
  0xfe   : > { %1374 = vmatmul.mubr.bf16.gmra.mxu1 %v7036_v1  ;;  %5730 = vmatmul.mubr.bf16.gmra.mxu0 %v6698_v31 }
  0xff   : > { %1381 = vmatprep.mubr.bf16.mxu1 %v6764_v6  ;;  %5733 = vmatprep.mubr.bf16.mxu0 %v9280_v39 }
 0x100   : > { %5122 = vmatpush3.bf16.msra.mxu0 %v6068_v3 }
 0x101   : > { %5123 = vmatprep.subr.bf16.mxu0 %v6069_v60 }
 0x104   : > { %5124 = vmatpush3.bf16.msra.mxu0 %v6070_v43 }
 0x105   : > { %5125 = vmatprep.subr.bf16.mxu0 %v6072_v21 }
 0x106   : > { %1382 = vmatmul.mubr.bf16.gmra.mxu1 %v7052_v37  ;;  %5734 = vmatmul.mubr.bf16.gmra.mxu0 %v9281_v33 }
 0x107   : > { %1389 = vmatprep.mubr.bf16.mxu1 %v6801_v38  ;;  %5737 = vmatprep.mubr.bf16.mxu0 %v9282_v26 }
 0x108   : > { %5126 = vmatpush3.bf16.msra.mxu0 %v6073_v49 }
 0x109   : > { %5127 = vmatprep.subr.bf16.mxu0 %v6076_v51 }
 0x10c   : > { %5128 = vmatpush3.bf16.msra.mxu0 %v6077_v15 }
 0x10e   : > { %1390 = vmatmul.mubr.bf16.gmra.mxu1 %v7068_v5  ;;  %5738 = vmatmul.mubr.bf16.gmra.mxu0 %v9283_v62 }
 0x10f   : > { %1397 = vmatprep.mubr.bf16.mxu1 %v6810_v45  ;;  %5741 = vmatprep.mubr.bf16.mxu0 %v9284_v24 }
 0x116   : > { %1398 = vmatmul.mubr.bf16.gmra.mxu1 %v7081_v57  ;;  %5742 = vmatmul.mubr.bf16.gmra.mxu0 %v9285_v52 }
 0x117   : > { %1405 = vmatprep.mubr.bf16.mxu1 %v6897_v2  ;;  %5745 = vmatprep.mubr.bf16.mxu0 %v6950_v17 }
 0x11e   : > { %1406 = vmatmul.mubr.bf16.gmra.mxu1 %v7091_v13  ;;  %5746 = vmatmul.mubr.bf16.gmra.mxu0 %v9286_v47 }
 0x11f   : > { %1413 = vmatprep.mubr.bf16.mxu1 %v6825_v56  ;;  %5749 = vmatprep.mubr.bf16.mxu0 %v6982_v0 }
 0x126   : > { %1414 = vmatmul.mubr.bf16.gmra.mxu1 %v6915_v16  ;;  %5750 = vmatmul.mubr.bf16.gmra.mxu0 %v6987_v20 }
 0x127   : > { %1808 = vmatprep.mubr.bf16.mxu0 %v6558_v28  ;;  %5769 = vmatprep.mubr.bf16.mxu1 %v6635_v4 }
 0x12e   : > { %v4857_v8 = vpop.f32.mrf.mxu0  ;;  %v5675_v32 = vpop.f32.mrf.mxu1  ;;  %1809 = vmatmul.mubr.bf16.vlgmr.msra.gmra.mxu0 %v6681_v23  ;;  %5770 = vmatmul.mubr.bf16.vlgmr.msra.gmra.mxu1 %v6648_v7 }
 0x12f   : > { %1816 = vmatprep.mubr.bf16.mxu0 %v6568_v34  ;;  %5773 = vmatprep.mubr.bf16.mxu1 %v6687_v25 }
 0x130   : > { %v4858_v46 = vpop.f32.mrf.mxu0  ;;  %v990_v36 = vpop.f32.mrf.mxu1 }
 0x131   : > { %v4859_v53 = vadd.f32 %v4858_v46, %v4857_v8 }
 0x132   : > { %v4860_v19 = vpop.f32.mrf.mxu0  ;;  %v5676_v61 = vpop.f32.mrf.mxu1 }
 0x133   : > { %v7186_v12 = vadd.f32 %v4859_v53, %v990_v36 }
 0x134   : > { %v4861_v28 = vpop.f32.mrf.mxu0  ;;  %v993_v41 = vpop.f32.mrf.mxu1 }
 0x135   : > { %v4862_v4 = vadd.f32 %v4861_v28, %v4860_v19 }
 0x136   : > { %v4863_v29 = vpop.f32.mrf.mxu0  ;;  %v5679_v3 = vpop.f32.mrf.mxu1  ;;  %1817 = vmatmul.mubr.bf16.gmra.mxu0 %v6738_v54  ;;  %5774 = vmatmul.mubr.bf16.gmra.mxu1 %v6698_v31 }
 0x137   : > { %v7190_v7 = vadd.f32 %v4862_v4, %v993_v41  ;;  %1824 = vmatprep.mubr.bf16.mxu0 %v6579_v40  ;;  %5777 = vmatprep.mubr.bf16.mxu1 %v9280_v39 }
 0x138   : > { %v4864_v34 = vpop.f32.mrf.mxu0  ;;  %v1006_v23 = vpop.f32.mrf.mxu1 }
 0x139   : > { %v4865_v25 = vadd.f32 %v4864_v34, %v4863_v29 }
 0x13a   : > { %v4866_v60 = vpop.f32.mrf.mxu0  ;;  %v5680_v43 = vpop.f32.mrf.mxu1 }
 0x13b   : > { %v7194_v21 = vadd.f32 %v5675_v32, %v4865_v25 }
 0x13c   : > { %v4867_v49 = vpop.f32.mrf.mxu0  ;;  %v1009_v51 = vpop.f32.mrf.mxu1 }
 0x13d   : > { %v4868_v15 = vadd.f32 %v4867_v49, %v4866_v60 }
 0x13e   : > { %v4869_v8 = vpop.f32.mrf.mxu0  ;;  %v5683_v54 = vpop.f32.mrf.mxu1  ;;  %1825 = vmatmul.mubr.bf16.gmra.mxu0 %v6807_v42  ;;  %5778 = vmatmul.mubr.bf16.gmra.mxu1 %v9281_v33 }
 0x13f   : > { %v7198_v31 = vadd.f32 %v5676_v61, %v4868_v15  ;;  %1832 = vmatprep.mubr.bf16.mxu0 %v6606_v55  ;;  %5781 = vmatprep.mubr.bf16.mxu1 %v9282_v26 }
 0x140   : > { %v4870_v40 = vpop.f32.mrf.mxu0  ;;  %v1022_v39 = vpop.f32.mrf.mxu1 }
 0x141   : > { %v4871_v46 = vadd.f32 %v4870_v40, %v4869_v8 }
 0x142   : > { %v4872_v32 = vpop.f32.mrf.mxu0  ;;  %v5684_v36 = vpop.f32.mrf.mxu1 }
 0x143   : > { %v7202_v53 = vadd.f32 %v4871_v46, %v1006_v23 }
 0x144   : > { %v4873_v19 = vpop.f32.mrf.mxu0  ;;  %v1025_v28 = vpop.f32.mrf.mxu1 }
 0x145   : > { %v4874_v41 = vadd.f32 %v4873_v19, %v4872_v32 }
 0x146   : > { %v4875_v4 = vpop.f32.mrf.mxu0  ;;  %v7204_v42 = vpop.f32.mrf.mxu1  ;;  %1833 = vmatmul.mubr.bf16.gmra.mxu0 %v6882_v63  ;;  %5782 = vmatmul.mubr.bf16.gmra.mxu1 %v9283_v62 }
 0x147   : > { %v7208_v55 = vadd.f32 %v4874_v41, %v1009_v51  ;;  %1840 = vmatprep.mubr.bf16.mxu0 %v6650_v9  ;;  %5785 = vmatprep.mubr.bf16.mxu1 %v9284_v24 }
 0x148   : > { %v4876_v33 = vpop.f32.mrf.mxu0  ;;  %v1038_v26 = vpop.f32.mrf.mxu1 }
 0x149   : > { %v4877_v61 = vadd.f32 %v4876_v33, %v4875_v4 }
 0x14a   : > { %v4878_v29 = vpop.f32.mrf.mxu0  ;;  %v7212_v34 = vpop.f32.mrf.mxu1 }
 0x14b   : > { %v7214_v23 = vadd.f32 %v5679_v3, %v4877_v61 }
 0x14c   : > { %v4879_v25 = vpop.f32.mrf.mxu0  ;;  %v1041_v60 = vpop.f32.mrf.mxu1 }
 0x14d   : > { %v4880_v49 = vadd.f32 %v4879_v25, %v4878_v29 }
 0x14e   : > { %v4881_v63 = vpop.f32.mrf.mxu0  ;;  %v7216_v15 = vpop.f32.mrf.mxu1  ;;  %1841 = vmatmul.mubr.bf16.gmra.mxu0 %v6945_v59  ;;  %5786 = vmatmul.mubr.bf16.gmra.mxu1 %v9285_v52 }
 0x14f   : > { %v7220_v9 = vadd.f32 %v5680_v43, %v4880_v49  ;;  %1848 = vmatprep.mubr.bf16.mxu0 %v6657_v14  ;;  %5789 = vmatprep.mubr.bf16.mxu1 %v6950_v17 }
 0x150   : > { %v4882_v62 = vpop.f32.mrf.mxu0  ;;  %v7224_v24 = vpop.f32.mrf.mxu1 }
 0x151   : > { %v4883_v3 = vadd.f32 %v4882_v62, %v4881_v63 }
 0x152   : > { %v4884_v51 = vpop.f32.mrf.mxu0  ;;  %v7226_v8 = vpop.f32.mrf.mxu1 }
 0x153   : > { %v7228_v40 = vadd.f32 %v4883_v3, %v1022_v39 }
 0x154   : > { %v4885_v46 = vpop.f32.mrf.mxu0  ;;  %v7230_v32 = vpop.f32.mrf.mxu1 }
 0x155   : > { %v4886_v59 = vadd.f32 %v4885_v46, %v4884_v51 }
 0x156   : > { %v4887_v52 = vpop.f32.mrf.mxu0  ;;  %v7232_v43 = vpop.f32.mrf.mxu1  ;;  %1849 = vmatmul.mubr.bf16.gmra.mxu0 %v6977_v50  ;;  %5790 = vmatmul.mubr.bf16.gmra.mxu1 %v9286_v47 }
 0x157   : > { %v7236_v14 = vadd.f32 %v4886_v59, %v1025_v28  ;;  %1856 = vmatprep.mubr.bf16.mxu0 %v6693_v30  ;;  %5793 = vmatprep.mubr.bf16.mxu1 %v6982_v0 }
 0x158   : > { %v4888_v17 = vpop.f32.mrf.mxu0  ;;  %v7240_v39 = vpop.f32.mrf.mxu1 }
 0x159   : > { %v4889_v19 = vadd.f32 %v4888_v17, %v4887_v52 }
 0x15a   : > { %v4890_v41 = vpop.f32.mrf.mxu0  ;;  %v7242_v4 = vpop.f32.mrf.mxu1 }
 0x15b   : > { %v7244_v33 = vadd.f32 %v5683_v54, %v4889_v19 }
 0x15c   : > { %v4891_v61 = vpop.f32.mrf.mxu0  ;;  %v7246_v29 = vpop.f32.mrf.mxu1 }
 0x15d   : > { %v4892_v50 = vadd.f32 %v4891_v61, %v4890_v41 }
 0x15e   : > { %v4893_v47 = vpop.f32.mrf.mxu0  ;;  %v7248_v28 = vpop.f32.mrf.mxu1  ;;  %1857 = vmatmul.mubr.bf16.gmra.mxu0 %v6999_v11  ;;  %5794 = vmatmul.mubr.bf16.gmra.mxu1 %v6987_v20 }
 0x15f   : > { %v7252_v30 = vadd.f32 %v5684_v36, %v4892_v50  ;;  %1864 = vmatprep.mubr.bf16.mxu0 %v6704_v35  ;;  %5797 = vmatprep.mubr.bf16.mxu1 %v7004_v22 }
 0x160   : > { %v4894_v0 = vpop.f32.mrf.mxu0  ;;  %v7256_v54 = vpop.f32.mrf.mxu1 }
 0x161   : > { %v4895_v25 = vadd.f32 %v4894_v0, %v4893_v47 }
 0x162   : > { %v4896_v49 = vpop.f32.mrf.mxu0  ;;  %v7258_v63 = vpop.f32.mrf.mxu1 }
 0x163   : > { %v7260_v62 = vadd.f32 %v4895_v25, %v1038_v26 }
 0x164   : > { %v4897_v3 = vpop.f32.mrf.mxu0  ;;  %v7262_v51 = vpop.f32.mrf.mxu1 }
 0x165   : > { %v4898_v11 = vadd.f32 %v4897_v3, %v4896_v49 }
 0x166   : > { %v4899_v46 = vpop.f32.mrf.mxu0  ;;  %v7264_v36 = vpop.f32.mrf.mxu1  ;;  %1865 = vmatmul.mubr.bf16.gmra.mxu0 %v7019_v27  ;;  %5798 = vmatmul.mubr.bf16.gmra.mxu1 %v6987_v20 }
 0x167   : > { %v7268_v35 = vadd.f32 %v4898_v11, %v1041_v60  ;;  %1872 = vmatprep.mubr.bf16.mxu0 %v6741_v58 }
 0x168   : > { %v4900_v22 = vpop.f32.mrf.mxu0  ;;  %v7271_v59 = vpop.f32.mrf.mxu1 }
 0x169   : > { %v4901_v26 = vadd.f32 %v4900_v22, %v4899_v46 }
 0x16a   : > { %v4902_v52 = vpop.f32.mrf.mxu0  ;;  %v7273_v17 = vpop.f32.mrf.mxu1 }
 0x16b   : > { %v7276_v19 = vadd.f32 %v7204_v42, %v4901_v26 }
 0x16c   : > { %v4903_v41 = vpop.f32.mrf.mxu0  ;;  %v7278_v61 = vpop.f32.mrf.mxu1 }
 0x16d   : > { %v4904_v27 = vadd.f32 %v4903_v41, %v4902_v52 }
 0x16e   : > { %v4905_v50 = vpop.f32.mrf.mxu0  ;;  %v4993_v20 = vpop.f32.mrf.mxu1  ;;  %1873 = vmatmul.mubr.bf16.gmra.mxu0 %v7036_v1 }
 0x16f   : > { %v7282_v58 = vadd.f32 %v7212_v34, %v4904_v27  ;;  %1880 = vmatprep.mubr.bf16.mxu0 %v6764_v6 }
 0x170   : > { %v4906_v60 = vpop.f32.mrf.mxu0  ;;  %v4994_v47 = vpop.f32.mrf.mxu1 }
 0x171   : > { %v4907_v0 = vadd.f32 %v4906_v60, %v4905_v50  ;;  %v4995_v25 = vadd.f32 %v4994_v47, %v4993_v20 }
 0x172   : > { %v4908_v49 = vpop.f32.mrf.mxu0  ;;  %v4996_v42 = vpop.f32.mrf.mxu1 }
 0x173   : > { %v7286_v3 = vadd.f32 %v4907_v0, %v7224_v24  ;;  %v7289_v11 = vadd.f32 %v4995_v25, %v7186_v12 }
 0x174   : > { %v4909_v46 = vpop.f32.mrf.mxu0  ;;  %v4997_v22 = vpop.f32.mrf.mxu1 }
 0x175   : > { %v7291_v1 = vadd.f32 %v4909_v46, %v4908_v49  ;;  %v4998_v34 = vadd.f32 %v4997_v22, %v4996_v42 }
 0x176   : > { %v4911_v26 = vpop.f32.mrf.mxu0  ;;  %v4999_v52 = vpop.f32.mrf.mxu1  ;;  %1881 = vmatmul.mubr.bf16.gmra.mxu0 %v7052_v37 }
 0x177   : > { %1888 = vmatprep.mubr.bf16.mxu0 %v6801_v38  ;;  %v7296_v6 = vadd.f32 %v4998_v34, %v7190_v7 }
 0x178   : > { %v4912_v41 = vpop.f32.mrf.mxu0  ;;  %v5000_v24 = vpop.f32.mrf.mxu1 }
 0x179   : > { %v4913_v27 = vadd.f32 %v4912_v41, %v4911_v26  ;;  %v5001_v50 = vadd.f32 %v5000_v24, %v4999_v52 }
 0x17a   : > { %v4914_v12 = vpop.f32.mrf.mxu0  ;;  %v5002_v20 = vpop.f32.mrf.mxu1 }
 0x17b   : > { %v7299_v60 = vadd.f32 %v7216_v15, %v4913_v27  ;;  %v7302_v47 = vadd.f32 %v5001_v50, %v7194_v21 }
 0x17c   : > { %v4915_v0 = vpop.f32.mrf.mxu0  ;;  %v5003_v25 = vpop.f32.mrf.mxu1 }
 0x17d   : > { %v4916_v37 = vadd.f32 %v4915_v0, %v4914_v12  ;;  %v5004_v49 = vadd.f32 %v5003_v25, %v5002_v20 }
 0x17e   : > { %v4917_v38 = vpop.f32.mrf.mxu0  ;;  %v5005_v42 = vpop.f32.mrf.mxu1  ;;  %1889 = vmatmul.mubr.bf16.gmra.mxu0 %v7068_v5 }
 0x17f   : > { %v7306_v7 = vadd.f32 %v7226_v8, %v4916_v37  ;;  %1896 = vmatprep.mubr.bf16.mxu0 %v6810_v45  ;;  %v7310_v46 = vadd.f32 %v5004_v49, %v7198_v31 }
 0x180   : > { %v4918_v15 = vpop.f32.mrf.mxu0  ;;  %v5006_v22 = vpop.f32.mrf.mxu1 }
 0x181   : > { %v4919_v21 = vadd.f32 %v4918_v15, %v4917_v38  ;;  %v5007_v34 = vadd.f32 %v5006_v22, %v5005_v42 }
 0x182   : > { %v4920_v26 = vpop.f32.mrf.mxu0  ;;  %v5008_v52 = vpop.f32.mrf.mxu1 }
 0x183   : > { %v7313_v41 = vadd.f32 %v4919_v21, %v7240_v39  ;;  %v7316_v24 = vadd.f32 %v5007_v34, %v7202_v53 }
 0x184   : > { %v4921_v5 = vpop.f32.mrf.mxu0  ;;  %v5009_v8 = vpop.f32.mrf.mxu1 }
 0x185   : > { %v7318_v27 = vadd.f32 %v4921_v5, %v4920_v26  ;;  %v5010_v45 = vadd.f32 %v5009_v8, %v5008_v52 }
 0x186   : > { %v4923_v50 = vpop.f32.mrf.mxu0  ;;  %v5011_v31 = vpop.f32.mrf.mxu1  ;;  %1897 = vmatmul.mubr.bf16.gmra.mxu0 %v7081_v57 }
 0x187   : > { %1904 = vmatprep.mubr.bf16.mxu0 %v6897_v2  ;;  %v7323_v12 = vadd.f32 %v5010_v45, %v7208_v55 }
 0x188   : > { %v4924_v20 = vpop.f32.mrf.mxu0  ;;  %v5012_v39 = vpop.f32.mrf.mxu1 }
 0x189   : > { %v4925_v0 = vadd.f32 %v4924_v20, %v4923_v50  ;;  %v5013_v25 = vadd.f32 %v5012_v39, %v5011_v31 }
 0x18a   : > { %v4926_v53 = vpop.f32.mrf.mxu0  ;;  %v5014_v37 = vpop.f32.mrf.mxu1 }
 0x18b   : > { %v7326_v49 = vadd.f32 %v7232_v43, %v4925_v0  ;;  %v7329_v38 = vadd.f32 %v5013_v25, %v7214_v23 }
 0x18c   : > { %v4927_v42 = vpop.f32.mrf.mxu0  ;;  %v5015_v15 = vpop.f32.mrf.mxu1 }
 0x18d   : > { %v4928_v57 = vadd.f32 %v4927_v42, %v4926_v53  ;;  %v5016_v22 = vadd.f32 %v5015_v15, %v5014_v37 }
 0x18e   : > { %v4929_v2 = vpop.f32.mrf.mxu0  ;;  %v5017_v21 = vpop.f32.mrf.mxu1  ;;  %1905 = vmatmul.mubr.bf16.gmra.mxu0 %v7091_v13 }
 0x18f   : > { %v7333_v55 = vadd.f32 %v7242_v4, %v4928_v57  ;;  %1912 = vmatprep.mubr.bf16.mxu0 %v6825_v56  ;;  %v7337_v34 = vadd.f32 %v5016_v22, %v7220_v9 }
 0x190   : > { %v4930_v43 = vpop.f32.mrf.mxu0  ;;  %v5018_v26 = vpop.f32.mrf.mxu1 }
 0x191   : > { %v4931_v23 = vadd.f32 %v4930_v43, %v4929_v2  ;;  %v5019_v52 = vadd.f32 %v5018_v26, %v5017_v21 }
 0x192   : > { %v7339_v5 = vpop.f32.mrf.mxu0  ;;  %v5020_v8 = vpop.f32.mrf.mxu1 }
 0x193   : > { %v7342_v45 = vadd.f32 %v4931_v23, %v7256_v54  ;;  %v7345_v13 = vadd.f32 %v5019_v52, %v7228_v40 }
 0x194   : > { %v7347_v4 = vpop.f32.mrf.mxu0  ;;  %v5021_v50 = vpop.f32.mrf.mxu1 }
 0x195   : > { %v5022_v31 = vadd.f32 %v5021_v50, %v5020_v8 }
 0x196   : > { %v4935_v20 = vpop.f32.mrf.mxu0  ;;  %v5023_v9 = vpop.f32.mrf.mxu1  ;;  %1913 = vmatmul.mubr.bf16.gmra.mxu0 %v6915_v16 }
 0x197   : > { %1920 = vmatprep.mubr.bf16.mxu0 %v6839_v10  ;;  %v7352_v39 = vadd.f32 %v5022_v31, %v7236_v14 }
 0x198   : > { %v4936_v0 = vpop.f32.mrf.mxu0  ;;  %v5024_v25 = vpop.f32.mrf.mxu1 }
 0x199   : > { %v4937_v54 = vadd.f32 %v4936_v0, %v4935_v20  ;;  %v5025_v53 = vadd.f32 %v5024_v25, %v5023_v9 }
 0x19a   : > { %v4938_v37 = vpop.f32.mrf.mxu0  ;;  %v5026_v40 = vpop.f32.mrf.mxu1 }
 0x19b   : > { %v7355_v42 = vadd.f32 %v7248_v28, %v4937_v54  ;;  %v7358_v15 = vadd.f32 %v5025_v53, %v7244_v33 }
 0x19c   : > { %v4939_v57 = vpop.f32.mrf.mxu0  ;;  %v5027_v22 = vpop.f32.mrf.mxu1 }
 0x19d   : > { %v4940_v2 = vadd.f32 %v4939_v57, %v4938_v37  ;;  %v5028_v21 = vadd.f32 %v5027_v22, %v5026_v40 }
 0x19e   : > { %v4941_v10 = vpop.f32.mrf.mxu0  ;;  %v5029_v43 = vpop.f32.mrf.mxu1  ;;  %1921 = vmatmul.mubr.bf16.gmra.mxu0 %v6920_v18 }
 0x19f   : > { %v7362_v14 = vadd.f32 %v7258_v63, %v4940_v2  ;;  %1928 = vmatprep.mubr.bf16.mxu0 %v6825_v56  ;;  %v7366_v26 = vadd.f32 %v5028_v21, %v7252_v30 }
 0x1a0   : > { %v4942_v28 = vpop.f32.mrf.mxu0  ;;  %v5030_v23 = vpop.f32.mrf.mxu1 }
 0x1a1   : > { %v4943_v33 = vadd.f32 %v4942_v28, %v4941_v10  ;;  %v5031_v52 = vadd.f32 %v5030_v23, %v5029_v43 }
 0x1a2   : > { %v7368_v8 = vpop.f32.mrf.mxu0  ;;  %v5032_v50 = vpop.f32.mrf.mxu1 }
 0x1a3   : > { %v7371_v31 = vadd.f32 %v4943_v33, %v7271_v59  ;;  %v7374_v18 = vadd.f32 %v5031_v52, %v7260_v62 }
 0x1a4   : > { %v7376_v63 = vpop.f32.mrf.mxu0  ;;  %v5033_v20 = vpop.f32.mrf.mxu1 }
 0x1a5   : > { %v5034_v56 = vadd.f32 %v5033_v20, %v5032_v50 }
 0x1a6   : > { %v4947_v9 = vpop.f32.mrf.mxu0  ;;  %v5035_v30 = vpop.f32.mrf.mxu1  ;;  %1929 = vmatmul.mubr.bf16.gmra.mxu0 %v6915_v16 }
 0x1a7   : > { %v7380_v0 = vadd.f32 %v5034_v56, %v7268_v35 }
 0x1a8   : > { %v4948_v25 = vpop.f32.mrf.mxu0  ;;  %v5036_v54 = vpop.f32.mrf.mxu1 }
 0x1a9   : > { %v7382_v53 = vadd.f32 %v4948_v25, %v4947_v9  ;;  %v5037_v59 = vadd.f32 %v5036_v54, %v5035_v30 }
 0x1aa   : > { %v7384_v37 = vpop.f32.mrf.mxu0  ;;  %v5038_v62 = vpop.f32.mrf.mxu1 }
 0x1ab   : > { %v1352_v40 = vadd.f32 %v5037_v59, %v7276_v19 }
 0x1ac   : > { %v7387_v57 = vpop.f32.mrf.mxu0  ;;  %v5039_v22 = vpop.f32.mrf.mxu1 }
 0x1ad   : > { %v5040_v2 = vadd.f32 %v5039_v22, %v5038_v62 }
 0x1ae   : > { %v5041_v21 = vpop.f32.mrf.mxu1  ;;  %v5723_v10 = vpop.f32.mrf.mxu0 }
 0x1af   : > { %v7390_v16 = vadd.f32 %v5723_v10, %v7302_v47  ;;  %v1355_v35 = vadd.f32 %v5040_v2, %v7282_v58  ;;  %v1058_v47 = vadd.f32 %v7291_v1, %v7230_v32 }
 0x1b0   : > { %v5042_v43 = vpop.f32.mrf.mxu1  ;;  %v1456_v28 = vpop.f32.mrf.mxu0 }
 0x1b1   : > { %v5043_v23 = vadd.f32 %v5042_v43, %v5041_v21  ;;  %v7394_v33 = vadd.f32 %v1456_v28, %v7289_v11 }
 0x1b2   : > { %v5044_v52 = vpop.f32.mrf.mxu1  ;;  %v5724_v50 = vpop.f32.mrf.mxu0 }
 0x1b3   : > { %v7397_v19 = vadd.f32 %v5724_v50, %v7310_v46  ;;  %v1360_v20 = vadd.f32 %v5043_v23, %v7286_v3 }
 0x1b4   : > { %v5045_v56 = vpop.f32.mrf.mxu1  ;;  %v7400_v9 = vpop.f32.mrf.mxu0 }
 0x1b5   : > { %v5046_v58 = vadd.f32 %v5045_v56, %v5044_v52 }
 0x1b6   : > { %v5047_v30 = vpop.f32.mrf.mxu1  ;;  %v5727_v25 = vpop.f32.mrf.mxu0 }
 0x1b7   : > { %v7405_v54 = vadd.f32 %v5727_v25, %v7329_v38  ;;  %v7407_v11 = vadd.f32 %v5046_v58, %v1058_v47 }
 0x1b8   : > { %v5048_v59 = vpop.f32.mrf.mxu1  ;;  %v1472_v62 = vpop.f32.mrf.mxu0 }
 0x1b9   : > { %9287 = vst [vmem:[#allocation13_spill] sm:$0xff] %v7407_v11  ;;  %v5049_v46 = vadd.f32 %v5048_v59, %v5047_v30  ;;  %v7410_v22 = vadd.f32 %v1472_v62, %v7316_v24 }
 0x1ba   : > { %v5050_v3 = vpop.f32.mrf.mxu1  ;;  %v5728_v2 = vpop.f32.mrf.mxu0 }
 0x1bb   : > { %v7413_v21 = vadd.f32 %v5728_v2, %v7337_v34  ;;  %v1368_v32 = vadd.f32 %v5049_v46, %v7299_v60 }
 0x1bc   : > { %v5051_v1 = vpop.f32.mrf.mxu1  ;;  %v7416_v10 = vpop.f32.mrf.mxu0 }
 0x1bd   : > { %v5052_v38 = vadd.f32 %v5051_v1, %v5050_v3 }
 0x1be   : > { %v5053_v43 = vpop.f32.mrf.mxu1  ;;  %v5731_v28 = vpop.f32.mrf.mxu0 }
 0x1bf   : > { %v7419_v23 = vadd.f32 %v5731_v28, %v7358_v15  ;;  %v1371_v52 = vadd.f32 %v5052_v38, %v7306_v7  ;;  %v1074_v15 = vadd.f32 %v7318_v27, %v7246_v29 }
 0x1c0   : > { %v5054_v24 = vpop.f32.mrf.mxu1  ;;  %v1488_v50 = vpop.f32.mrf.mxu0 }
 0x1c1   : > { %v5055_v56 = vadd.f32 %v5054_v24, %v5053_v43  ;;  %v7423_v47 = vadd.f32 %v1488_v50, %v7345_v13 }
 0x1c2   : > { %v5056_v34 = vpop.f32.mrf.mxu1  ;;  %v5732_v58 = vpop.f32.mrf.mxu0 }
 0x1c3   : > { %v7426_v60 = vadd.f32 %v5732_v58, %v7366_v26  ;;  %v1376_v30 = vadd.f32 %v5055_v56, %v7313_v41 }
 0x1c4   : > { %v5057_v25 = vpop.f32.mrf.mxu1  ;;  %v7429_v59 = vpop.f32.mrf.mxu0 }
 0x1c5   : > { %v5058_v7 = vadd.f32 %v5057_v25, %v5056_v34 }
 0x1c6   : > { %v5059_v62 = vpop.f32.mrf.mxu1  ;;  %v5735_v46 = vpop.f32.mrf.mxu0 }
 0x1c7   : > { %v7433_v3 = vadd.f32 %v5735_v46, %v1352_v40  ;;  %v7435_v13 = vadd.f32 %v5058_v7, %v1074_v15 }
 0x1c8   : > { %v5060_v2 = vpop.f32.mrf.mxu1  ;;  %v1504_v1 = vpop.f32.mrf.mxu0 }
 0x1c9   : > { %9288 = vst [vmem:[#allocation14_spill] sm:$0xff] %v7435_v13  ;;  %v5061_v38 = vadd.f32 %v5060_v2, %v5059_v62  ;;  %v7438_v26 = vadd.f32 %v1504_v1, %v7374_v18  ;;  %v4934_v18 = vadd.f32 %v7347_v4, %v7339_v5 }
 0x1ca   : > { %v5062_v41 = vpop.f32.mrf.mxu1  ;;  %v5736_v43 = vpop.f32.mrf.mxu0 }
 0x1cb   : > { %v7440_v28 = vadd.f32 %v5736_v43, %v1355_v35  ;;  %v1384_v24 = vadd.f32 %v5061_v38, %v7326_v49 }
 0x1cc   : > { %v5063_v29 = vpop.f32.mrf.mxu1  ;;  %v7443_v27 = vpop.f32.mrf.mxu0 }
 0x1cd   : > { %v5064_v50 = vadd.f32 %v5063_v29, %v5062_v41 }
 0x1ce   : > { %v5065_v40 = vpop.f32.mrf.mxu1  ;;  %v5739_v56 = vpop.f32.mrf.mxu0 }
 0x1cf   : > { %v7445_v34 = vadd.f32 %v5739_v56, %v1368_v32  ;;  %v1387_v58 = vadd.f32 %v5064_v50, %v7333_v55  ;;  %v1090_v32 = vadd.f32 %v4934_v18, %v7262_v51 }
 0x1d0   : > { %v5066_v25 = vpop.f32.mrf.mxu1  ;;  %v1520_v15 = vpop.f32.mrf.mxu0 }
 0x1d1   : > { %9289 = vst [vmem:[#allocation15_spill] sm:$0xff] %v7445_v34  ;;  %v5067_v7 = vadd.f32 %v5066_v25, %v5065_v40  ;;  %v7450_v35 = vadd.f32 %v1520_v15, %v1360_v20 }
 0x1d2   : > { %v5068_v62 = vpop.f32.mrf.mxu1  ;;  %v5740_v49 = vpop.f32.mrf.mxu0 }
 0x1d3   : > { %9290 = vst [vmem:[#allocation16_spill] sm:$0xff] %v7450_v35  ;;  %v7452_v46 = vadd.f32 %v5740_v49, %v1371_v52  ;;  %v1392_v2 = vadd.f32 %v5067_v7, %v7342_v45 }
 0x1d4   : > { %v5069_v1 = vpop.f32.mrf.mxu1  ;;  %v7455_v38 = vpop.f32.mrf.mxu0 }
 0x1d5   : > { %9291 = vst [vmem:[#allocation17_spill] sm:$0xff] %v7452_v46  ;;  %9292 = vst [vmem:[#allocation18_spill] sm:$0xff] %v7455_v38  ;;  %v5070_v55 = vadd.f32 %v5069_v1, %v5068_v62 }
 0x1d6   : > { %v5071_v41 = vpop.f32.mrf.mxu1  ;;  %v5743_v43 = vpop.f32.mrf.mxu0 }
 0x1d7   : > { %v7458_v29 = vadd.f32 %v5743_v43, %v1384_v24  ;;  %v7460_v5 = vadd.f32 %v5070_v55, %v1090_v32 }
 0x1d8   : > { %v5072_v4 = vpop.f32.mrf.mxu1  ;;  %v1536_v20 = vpop.f32.mrf.mxu0 }
 0x1d9   : > { %9293 = vst [vmem:[#allocation19_spill] sm:$0xff] %v7458_v29  ;;  %9294 = vst [vmem:[#allocation20_spill] sm:$0xff] %v7460_v5  ;;  %v5073_v50 = vadd.f32 %v5072_v4, %v5071_v41  ;;  %v7462_v40 = vadd.f32 %v1536_v20, %v1376_v30  ;;  %v4946_v30 = vadd.f32 %v7376_v63, %v7368_v8 }
 0x1da   : > { %v5074_v52 = vpop.f32.mrf.mxu1  ;;  %v5744_v56 = vpop.f32.mrf.mxu0 }
 0x1db   : > { %9295 = vst [vmem:[#allocation21_spill] sm:$0xff] %v7462_v40  ;;  %v7464_v45 = vadd.f32 %v5744_v56, %v1387_v58  ;;  %v1400_v25 = vadd.f32 %v5073_v50, %v7355_v42 }
 0x1dc   : > { %v5075_v15 = vpop.f32.mrf.mxu1  ;;  %v7467_v51 = vpop.f32.mrf.mxu0 }
 0x1dd   : > { %9296 = vst [vmem:[#allocation22_spill] sm:$0xff] %v7464_v45  ;;  %9297 = vst [vmem:[#allocation23_spill] sm:$0xff] %v7467_v51  ;;  %v5076_v18 = vadd.f32 %v5075_v15, %v5074_v52  ;;  %v1106_v52 = vadd.f32 %v4946_v30, %v7278_v61  ;;  %v1460_v51 = vadd.f32 %v7400_v9, %v7296_v6 }
 0x1de   : > { %v5077_v7 = vpop.f32.mrf.mxu1  ;;  %v5747_v24 = vpop.f32.mrf.mxu0 }
 0x1df   : > { %v7469_v62 = vadd.f32 %v5747_v24, %v1400_v25  ;;  %v1403_v49 = vadd.f32 %v5076_v18, %v7362_v14  ;;  %v4952_v18 = vadd.f32 %v7387_v57, %v7384_v37 }
 0x1e0   : > { %v5078_v1 = vpop.f32.mrf.mxu1  ;;  %v1552_v32 = vpop.f32.mrf.mxu0 }
 0x1e1   : > { %9298 = vst [vmem:[#allocation24_spill] sm:$0xff] %v7469_v62  ;;  %v5079_v55 = vadd.f32 %v5078_v1, %v5077_v7  ;;  %v7474_v58 = vadd.f32 %v1552_v32, %v1392_v2  ;;  %v1111_v2 = vadd.f32 %v7264_v36, %v7382_v53  ;;  %v1114_v30 = vadd.f32 %v7273_v17, %v4952_v18 }
 0x1e2   : > { %v5080_v41 = vpop.f32.mrf.mxu1  ;;  %v5748_v42 = vpop.f32.mrf.mxu0 }
 0x1e3   : > { %9299 = vst [vmem:[#allocation25_spill] sm:$0xff] %v7474_v58  ;;  %v7476_v43 = vadd.f32 %v5748_v42, %v1403_v49  ;;  %v1408_v4 = vadd.f32 %v5079_v55, %v7371_v31 }
 0x1e4   : > { %v5081_v20 = vpop.f32.mrf.mxu1  ;;  %v7479_v50 = vpop.f32.mrf.mxu0 }
 0x1e5   : > { %9300 = vst [vmem:[#allocation26_spill] sm:$0xff] %v7476_v43  ;;  %9301 = vst [vmem:[#allocation27_spill] sm:$0xff] %v7479_v50  ;;  %v5082_v14 = vadd.f32 %v5081_v20, %v5080_v41 }
 0x1e6   : > { %v5083_v56 = vpop.f32.mrf.mxu1  ;;  %v5751_v25 = vpop.f32.mrf.mxu0 }
 0x1e7   : > { %v7482_v15 = vadd.f32 %v5082_v14, %v1106_v52 }
 0x1e8   : > { %v5084_v8 = vpop.f32.mrf.mxu1  ;;  %v1568_v63 = vpop.f32.mrf.mxu0 }
 0x1e9   : > { %9302 = vst [vmem:[#allocation28_spill] sm:$0xff] %v7482_v15  ;;  %v5085_v7 = vadd.f32 %v5084_v8, %v5083_v56  ;;  %v7488_v31 = vadd.f32 %v1568_v63, %v1408_v4 }
 0x1ea   : > { %v5086_v24 = vpop.f32.mrf.mxu1  ;;  %v5752_v49 = vpop.f32.mrf.mxu0 }
 0x1eb   : > { %9303 = vst [vmem:[#allocation29_spill] sm:$0xff] %v7488_v31  ;;  %v1416_v1 = vadd.f32 %v5085_v7, %v1111_v2 }
 0x1ec   : > { %v5087_v61 = vpop.f32.mrf.mxu1  ;;  %v7490_v32 = vpop.f32.mrf.mxu0 }
 0x1ed   : > { %9304 = vst [vmem:[#allocation30_spill] sm:$0xff] %v7490_v32  ;;  %v7493_v55 = vadd.f32 %v5751_v25, %v1416_v1  ;;  %v5088_v41 = vadd.f32 %v5087_v61, %v5086_v24 }
 0x1ee   : > { %v5129_v42 = vpop.f32.mrf.mxu0  ;;  %v5771_v20 = vpop.f32.mrf.mxu1 }
 0x1ef   : > { %9305 = vst [vmem:[#allocation31_spill] sm:$0xff] %v7493_v55  ;;  %v1419_v36 = vadd.f32 %v5088_v41, %v1114_v30 }
 0x1f0   : > { %v5130_v53 = vpop.f32.mrf.mxu0  ;;  %v1971_v52 = vpop.f32.mrf.mxu1 }
 0x1f1   : > { %v7495_v37 = vadd.f32 %v5752_v49, %v1419_v36  ;;  %v5131_v57 = vadd.f32 %v5130_v53, %v5129_v42 }
 0x1f2   : > { %v5132_v4 = vpop.f32.mrf.mxu0  ;;  %v5772_v7 = vpop.f32.mrf.mxu1 }
 0x1f3   : > { %9306 = vst [vmem:[#allocation32_spill] sm:$0xff] %v7495_v37  ;;  %v1972_v14 = vadd.f32 %v5131_v57, %v1971_v52 }
 0x1f4   : > { %v5133_v56 = vpop.f32.mrf.mxu0  ;;  %v1974_v18 = vpop.f32.mrf.mxu1 }
 0x1f5   : > { %v2098_v8 = vadd.f32 %v1972_v14, %v7394_v33  ;;  %v5134_v15 = vadd.f32 %v5133_v56, %v5132_v4 }
 0x1f6   : > { %v5135_v63 = vpop.f32.mrf.mxu0  ;;  %v5775_v61 = vpop.f32.mrf.mxu1 }
 0x1f7   : > { %v1975_v5 = vadd.f32 %v5134_v15, %v1974_v18  ;;  %v7510_v15 = vld [vmem:[%s9220_s2] ss:$0 sm:$0xff] }
 0x1f8   : > { %v5136_v2 = vpop.f32.mrf.mxu0  ;;  %v1987_v41 = vpop.f32.mrf.mxu1 }
 0x1f9   : > { %v5137_v62 = vadd.f32 %v5136_v2, %v5135_v63  ;;  %v2099_v35 = vadd.f32 %v1975_v5, %v1460_v51 }
 0x1fa   : > { %v5138_v17 = vpop.f32.mrf.mxu0  ;;  %v5776_v36 = vpop.f32.mrf.mxu1 }
 0x1fb   : > { %v1980_v13 = vadd.f32 %v5771_v20, %v5137_v62  ;;  %v7513_v9 = vadd.f32 %v7510_v15, %v2099_v35 }
 0x1fc   : > { %v5139_v25 = vpop.f32.mrf.mxu0  ;;  %v1990_v52 = vpop.f32.mrf.mxu1 }
 0x1fd   : > { %v5140_v58 = vadd.f32 %v5139_v25, %v5138_v17  ;;  %v2100_v11 = vadd.f32 %v1980_v13, %v7390_v16 }
 0x1fe   : > { %v5141_v24 = vpop.f32.mrf.mxu0  ;;  %v7498_v33 = vpop.f32.mrf.mxu1 }
 0x1ff   : > { %v1983_v38 = vadd.f32 %v5772_v7, %v5140_v58  ;;  %v7517_v58 = vadd.f32 %v7510_v15, %v2098_v8  ;;  %v7520_v16 = vadd.f32 %v7510_v15, %v2100_v11 }
 0x200   : > { %v5142_v1 = vpop.f32.mrf.mxu0  ;;  %v2003_v55 = vpop.f32.mrf.mxu1 }
 0x201   : > { %v5143_v40 = vadd.f32 %v5142_v1, %v5141_v24  ;;  %v2101_v62 = vadd.f32 %v1983_v38, %v7397_v19  ;;  %v2168_v19 = vadd.f32 %v7513_v9, %v7517_v58 }
 0x202   : > { %v5144_v30 = vpop.f32.mrf.mxu0  ;;  %v7500_v31 = vpop.f32.mrf.mxu1 }
 0x203   : > { %v1988_v63 = vadd.f32 %v5143_v40, %v1987_v41  ;;  %v1476_v40 = vadd.f32 %v7416_v10, %v7323_v12  ;;  %v7528_v38 = vadd.f32 %v7510_v15, %v2101_v62  ;;  %v2169_v1 = vadd.f32 %v2168_v19, %v7520_v16 }
 0x204   : > { %v5145_v48 = vpop.f32.mrf.mxu0  ;;  %v2006_v45 = vpop.f32.mrf.mxu1 }
 0x205   : > { %v5146_v4 = vadd.f32 %v5145_v48, %v5144_v30  ;;  %v2102_v13 = vadd.f32 %v1988_v63, %v7410_v22  ;;  %v2170_v41 = vadd.f32 %v2169_v1, %v7528_v38 }
 0x206   : > { %v5147_v49 = vpop.f32.mrf.mxu0  ;;  %v7504_v34 = vpop.f32.mrf.mxu1 }
 0x207   : > { %v1991_v5 = vadd.f32 %v5146_v4, %v1990_v52  ;;  %v7532_v22 = vadd.f32 %v7510_v15, %v2102_v13  ;;  %v1492_v52 = vadd.f32 %v7429_v59, %v7352_v39 }
 0x208   : > { %v5148_v42 = vpop.f32.mrf.mxu0  ;;  %v2019_v6 = vpop.f32.mrf.mxu1 }
 0x209   : > { %v5149_v2 = vadd.f32 %v5148_v42, %v5147_v49  ;;  %v2103_v8 = vadd.f32 %v1991_v5, %v1476_v40 }
 0x20a   : > { %v5150_v53 = vpop.f32.mrf.mxu0  ;;  %v5784_v25 = vpop.f32.mrf.mxu1 }
 0x20b   : > { %v1996_v20 = vadd.f32 %v5775_v61, %v5149_v2  ;;  %v7537_v49 = vadd.f32 %v7510_v15, %v2103_v8 }
 0x20c   : > { %v5151_v57 = vpop.f32.mrf.mxu0  ;;  %v2022_v61 = vpop.f32.mrf.mxu1 }
 0x20d   : > { %v5152_v51 = vadd.f32 %v5151_v57, %v5150_v53  ;;  %v2104_v12 = vadd.f32 %v1996_v20, %v7405_v54  ;;  %v2171_v54 = vadd.f32 %v2170_v41, %v7532_v22 }
 0x20e   : > { %v5153_v44 = vpop.f32.mrf.mxu0  ;;  %v5787_v53 = vpop.f32.mrf.mxu1 }
 0x20f   : > { %v1999_v18 = vadd.f32 %v5776_v36, %v5152_v51 }
 0x210   : > { %v5154_v14 = vpop.f32.mrf.mxu0  ;;  %v2035_v59 = vpop.f32.mrf.mxu1 }
 0x211   : > { %v5155_v7 = vadd.f32 %v5154_v14, %v5153_v44  ;;  %v2105_v36 = vadd.f32 %v1999_v18, %v7413_v21  ;;  %v2172_v21 = vadd.f32 %v2171_v54, %v7537_v49 }
 0x212   : > { %v5156_v37 = vpop.f32.mrf.mxu0  ;;  %v5788_v13 = vpop.f32.mrf.mxu1 }
 0x213   : > { %v2004_v44 = vadd.f32 %v5155_v7, %v2003_v55 }
 0x214   : > { %v5157_v32 = vpop.f32.mrf.mxu0 }
 0x215   : > { %v5158_v24 = vadd.f32 %v5157_v32, %v5156_v37 }
 0x216   : > { %v5159_v43 = vpop.f32.mrf.mxu0 }
 0x217   : > { %v2007_v32 = vadd.f32 %v5158_v24, %v2006_v45 }
 0x218   : > { %v5160_v50 = vpop.f32.mrf.mxu0 }
 0x219   : > { %v5161_v10 = vadd.f32 %v5160_v50, %v5159_v43  ;;  %v7544_v43 = vadd.f32 %v7510_v15, %v2104_v12  ;;  %v2106_v50 = vadd.f32 %v2004_v44, %v7423_v47 }
 0x21a   : > { %v5162_v29 = vpop.f32.mrf.mxu0 }
 0x21b   : > { %v2012_v55 = vadd.f32 %v7498_v33, %v5161_v10  ;;  %v2173_v63 = vadd.f32 %v2172_v21, %v7544_v43  ;;  %v7555_v2 = vadd.f32 %v7510_v15, %v2106_v50 }
 0x21c   : > { %v5163_v46 = vpop.f32.mrf.mxu0 }
 0x21d   : > { %v5164_v37 = vadd.f32 %v5163_v46, %v5162_v29  ;;  %v7550_v46 = vadd.f32 %v7510_v15, %v2105_v36  ;;  %v2107_v29 = vadd.f32 %v2007_v32, %v1492_v52  ;;  %v2108_v47 = vadd.f32 %v2012_v55, %v7419_v23  ;;  %v9308_v52 = vld [vmem:[#allocation18_spill] sm:$0xff] }
 0x21e   : > { %v5165_v56 = vpop.f32.mrf.mxu0 }
 0x21f   : > { %v2015_v45 = vadd.f32 %v7500_v31, %v5164_v37  ;;  %v2174_v62 = vadd.f32 %v2173_v63, %v7550_v46  ;;  %v7560_v5 = vadd.f32 %v7510_v15, %v2107_v29  ;;  %v7565_v7 = vadd.f32 %v7510_v15, %v2108_v47 }
 0x220   : > { %v5166_v17 = vpop.f32.mrf.mxu0 }
 0x221   : > { %v5167_v57 = vadd.f32 %v5166_v17, %v5165_v56  ;;  %v2109_v31 = vadd.f32 %v2015_v45, %v7426_v60  ;;  %v2175_v20 = vadd.f32 %v2174_v62, %v7555_v2  ;;  %v9310_v62 = vld [vmem:[#allocation15_spill] sm:$0xff] }
 0x222   : > { %v5168_v48 = vpop.f32.mrf.mxu0 }
 0x223   : > { %v2020_v33 = vadd.f32 %v5167_v57, %v2019_v6  ;;  %v2176_v60 = vadd.f32 %v2175_v20, %v7560_v5  ;;  %v7573_v18 = vadd.f32 %v7510_v15, %v2109_v31  ;;  %v9311_v20 = vld [vmem:[#allocation17_spill] sm:$0xff] }
 0x224   : > { %v5169_v35 = vpop.f32.mrf.mxu0 }
 0x225   : > { %v5170_v4 = vadd.f32 %v5169_v35, %v5168_v48  ;;  %v2110_v23 = vadd.f32 %v2020_v33, %v7438_v26  ;;  %v1508_v35 = vadd.f32 %v7443_v27, %v7380_v0  ;;  %v2177_v10 = vadd.f32 %v2176_v60, %v7565_v7  ;;  %v9312_v60 = vld [vmem:[#allocation21_spill] sm:$0xff] }
 0x226   : > { %v5171_v11 = vpop.f32.mrf.mxu0 }
 0x227   : > { %v2023_v48 = vadd.f32 %v5170_v4, %v2022_v61  ;;  %v7577_v26 = vadd.f32 %v7510_v15, %v2110_v23  ;;  %v2178_v41 = vadd.f32 %v2177_v10, %v7573_v18 }
 0x228   : > { %v5172_v30 = vpop.f32.mrf.mxu0 }
 0x229   : > { %v5173_v17 = vadd.f32 %v5172_v30, %v5171_v11  ;;  %v2038_v11 = vpop.f32.mrf.mxu1  ;;  %v2111_v1 = vadd.f32 %v2023_v48, %v1508_v35  ;;  %v2179_v50 = vadd.f32 %v2178_v41, %v7577_v26 }
 0x22a   : > { %v5174_v42 = vpop.f32.mrf.mxu0 }
 0x22b   : > { %v2028_v19 = vadd.f32 %v7504_v34, %v5173_v17  ;;  %v5791_v0 = vpop.f32.mrf.mxu1  ;;  %v7582_v32 = vadd.f32 %v7510_v15, %v2111_v1 }
 0x22c   : > { %v5175_v14 = vpop.f32.mrf.mxu0 }
 0x22d   : > { %v5176_v40 = vadd.f32 %v5175_v14, %v5174_v42  ;;  %v2112_v27 = vadd.f32 %v2028_v19, %v7433_v3  ;;  %v9307_v42 = vld [vmem:[#allocation13_spill] sm:$0xff]  ;;  %v2051_v57 = vpop.f32.mrf.mxu1  ;;  %v9309_v14 = vld [vmem:[#allocation16_spill] sm:$0xff] }
 0x22e   : > { %v5177_v39 = vpop.f32.mrf.mxu0  ;;  %v1524_v54 = vadd.f32 %v9308_v52, %v9307_v42 }
 0x22f   : > { %v2031_v12 = vadd.f32 %v5784_v25, %v5176_v40  ;;  %v7589_v3 = vadd.f32 %v7510_v15, %v2112_v27  ;;  %v5792_v33 = vpop.f32.mrf.mxu1 }
 0x230   : > { %v5178_v56 = vpop.f32.mrf.mxu0 }
 0x231   : > { %v5179_v8 = vadd.f32 %v5178_v56, %v5177_v39  ;;  %v2113_v25 = vadd.f32 %v2031_v12, %v7440_v28  ;;  %v2054_v35 = vpop.f32.mrf.mxu1  ;;  %v9313_v12 = vld [vmem:[#allocation14_spill] sm:$0xff] }
 0x232   : > { %v5180_v51 = vpop.f32.mrf.mxu0 }
 0x233   : > { %v2036_v34 = vadd.f32 %v5179_v8, %v2035_v59  ;;  %v2180_v59 = vadd.f32 %v2179_v50, %v7582_v32  ;;  %v7594_v28 = vadd.f32 %v7510_v15, %v2113_v25  ;;  %v5795_v41 = vpop.f32.mrf.mxu1 }
 0x234   : > { %v5181_v6 = vpop.f32.mrf.mxu0 }
 0x235   : > { %v5182_v44 = vadd.f32 %v5181_v6, %v5180_v51  ;;  %v2114_v21 = vadd.f32 %v2036_v34, %v9309_v14  ;;  %v2181_v56 = vadd.f32 %v2180_v59, %v7589_v3  ;;  %v2067_v14 = vpop.f32.mrf.mxu1 }
 0x236   : > { %v5183_v24 = vpop.f32.mrf.mxu0 }
 0x237   : > { %v2039_v37 = vadd.f32 %v5182_v44, %v2038_v11  ;;  %v7598_v17 = vadd.f32 %v7510_v15, %v2114_v21  ;;  %v2182_v48 = vadd.f32 %v2181_v56, %v7594_v28  ;;  %v9314_v44 = vld [vmem:[#allocation23_spill] sm:$0xff] }
 0x238   : > { %v5184_v61 = vpop.f32.mrf.mxu0  ;;  %v1540_v10 = vadd.f32 %v9314_v44, %v9313_v12 }
 0x239   : > { %v5185_v30 = vadd.f32 %v5184_v61, %v5183_v24  ;;  %v2115_v4 = vadd.f32 %v2039_v37, %v1524_v54  ;;  %v2183_v19 = vadd.f32 %v2182_v48, %v7598_v17 }
 0x23a   : > { %v5186_v36 = vpop.f32.mrf.mxu0 }
 0x23b   : > { %v2044_v29 = vadd.f32 %v5787_v53, %v5185_v30  ;;  %v7603_v40 = vadd.f32 %v7510_v15, %v2115_v4 }
 0x23c   : > { %v5187_v55 = vpop.f32.mrf.mxu0 }
 0x23d   : > { %v5188_v45 = vadd.f32 %v5187_v55, %v5186_v36  ;;  %v2116_v31 = vadd.f32 %v2044_v29, %v9310_v62  ;;  %v2184_v61 = vadd.f32 %v2183_v19, %v7603_v40  ;;  %v9315_v29 = vld [vmem:[#allocation19_spill] sm:$0xff]  ;;  %v5796_v62 = vpop.f32.mrf.mxu1 }
 0x23e   : > { %v5189_v39 = vpop.f32.mrf.mxu0 }
 0x23f   : > { %v2047_v63 = vadd.f32 %v5788_v13, %v5188_v45  ;;  %v7608_v8 = vadd.f32 %v7510_v15, %v2116_v31 }
 0x240   : > { %v5190_v47 = vpop.f32.mrf.mxu0 }
 0x241   : > { %v5191_v51 = vadd.f32 %v5190_v47, %v5189_v39  ;;  %v2117_v23 = vadd.f32 %v2047_v63, %v9311_v20  ;;  %v2185_v36 = vadd.f32 %v2184_v61, %v7608_v8 }
 0x242   : > { %v5192_v53 = vpop.f32.mrf.mxu0 }
 0x243   : > { %v2052_v6 = vadd.f32 %v5191_v51, %v2051_v57  ;;  %v7615_v27 = vadd.f32 %v7510_v15, %v2117_v23  ;;  %v9316_v51 = vld [vmem:[#allocation22_spill] sm:$0xff] }
 0x244   : > { %v5193_v13 = vpop.f32.mrf.mxu0 }
 0x245   : > { %v2118_v24 = vadd.f32 %v2052_v6, %v9312_v60  ;;  %v5194_v11 = vadd.f32 %v5193_v13, %v5192_v53  ;;  %v2186_v54 = vadd.f32 %v2185_v36, %v7615_v27  ;;  %v2070_v13 = vpop.f32.mrf.mxu1 }
 0x246   : > { %v5195_v1 = vpop.f32.mrf.mxu0 }
 0x247   : > { %v2055_v34 = vadd.f32 %v5194_v11, %v2054_v35  ;;  %v7619_v25 = vadd.f32 %v7510_v15, %v2118_v24  ;;  %v9317_v35 = vld [vmem:[#allocation25_spill] sm:$0xff]  ;;  %v9318_v11 = vld [vmem:[#allocation20_spill] sm:$0xff] }
 0x248   : > { %v5196_v30 = vpop.f32.mrf.mxu0 }
 0x249   : > { %v2119_v37 = vadd.f32 %v2055_v34, %v1540_v10  ;;  %v5197_v42 = vadd.f32 %v5196_v30, %v5195_v1  ;;  %v2187_v21 = vadd.f32 %v2186_v54, %v7619_v25  ;;  %v9319_v1 = vld [vmem:[#allocation27_spill] sm:$0xff] }
 0x24a   : > { %v5198_v52 = vpop.f32.mrf.mxu0  ;;  %v1556_v12 = vadd.f32 %v9319_v1, %v9318_v11  ;;  %v9323_v11 = vld [vmem:[#allocation28_spill] sm:$0xff]  ;;  %v9324_v1 = vld [vmem:[#allocation30_spill] sm:$0xff] }
 0x24b   : > { %v7623_v50 = vadd.f32 %v7510_v15, %v2119_v37  ;;  %v2060_v55 = vadd.f32 %v5791_v0, %v5197_v42  ;;  %v5799_v42 = vpop.f32.mrf.mxu1 }
 0x24c   : > { %v5199_v57 = vpop.f32.mrf.mxu0 }
 0x24d   : > { %v2120_v45 = vadd.f32 %v2060_v55, %v9315_v29  ;;  %v5200_v39 = vadd.f32 %v5199_v57, %v5198_v52  ;;  %v2188_v4 = vadd.f32 %v2187_v21, %v7623_v50 }
 0x24e   : > { %v5201_v59 = vpop.f32.mrf.mxu0 }
 0x24f   : > { %v7629_v63 = vadd.f32 %v7510_v15, %v2120_v45  ;;  %v2063_v47 = vadd.f32 %v5792_v33, %v5200_v39  ;;  %v2083_v39 = vpop.f32.mrf.mxu1 }
 0x250   : > { %v5202_v56 = vpop.f32.mrf.mxu0 }
 0x251   : > { %v2189_v31 = vadd.f32 %v2188_v4, %v7629_v63  ;;  %v2121_v0 = vadd.f32 %v2063_v47, %v9316_v51  ;;  %v5203_v53 = vadd.f32 %v5202_v56, %v5201_v59 }
 0x252   : > { %v5204_v48 = vpop.f32.mrf.mxu0 }
 0x253   : > { %v7634_v20 = vadd.f32 %v7510_v15, %v2121_v0  ;;  %v2068_v23 = vadd.f32 %v5203_v53, %v2067_v14  ;;  %v9320_v14 = vld [vmem:[#allocation24_spill] sm:$0xff] }
 0x254   : > { %v5205_v6 = vpop.f32.mrf.mxu0 }
 0x255   : > { %v2122_v19 = vadd.f32 %v2068_v23, %v9317_v35  ;;  %v2190_v60 = vadd.f32 %v2189_v31, %v7634_v20  ;;  %v5206_v24 = vadd.f32 %v5205_v6, %v5204_v48  ;;  %v9321_v31 = vld [vmem:[#allocation26_spill] sm:$0xff] }
 0x256   : > { %v5207_v33 = vpop.f32.mrf.mxu0 }
 0x257   : > { %v7641_v44 = vadd.f32 %v7510_v15, %v2122_v19  ;;  %v2071_v10 = vadd.f32 %v5206_v24, %v2070_v13  ;;  %v9322_v13 = vld [vmem:[#allocation29_spill] sm:$0xff]  ;;  %v6080_v24 = vld [vmem:[#allocation5 + $0x178] sm:$0xff]  }
 0x258   : > { %v5208_v61 = vpop.f32.mrf.mxu0  ;;  %5801 = vmatprep.subr.bf16.mxu0 %v6080_v24 }
 0x259   : > { %v2191_v34 = vadd.f32 %v2190_v60, %v7641_v44  ;;  %v2123_v30 = vadd.f32 %v2071_v10, %v1556_v12  ;;  %v5209_v36 = vadd.f32 %v5208_v61, %v5207_v33  ;;  %v1572_v12 = vadd.f32 %v9324_v1, %v9323_v11  ;;  %5802 = vmatpush3.bf16.msra.mxu0 %v6080_v24  ;;  %v6095_v11 = vld [vmem:[#allocation5 + $0x160] sm:$0xff]  }
 0x25a   : > { %v5210_v37 = vpop.f32.mrf.mxu0 }
 0x25b   : > { %v7645_v52 = vadd.f32 %v7510_v15, %v2123_v30  ;;  %v2076_v54 = vadd.f32 %v5795_v41, %v5209_v36  ;;  %v5800_v41 = vpop.f32.mrf.mxu1 }
 0x25c   : > { %v5211_v55 = vpop.f32.mrf.mxu0 }
 0x25d   : > { %v2192_v57 = vadd.f32 %v2191_v34, %v7645_v52  ;;  %v2124_v21 = vadd.f32 %v2076_v54, %v9320_v14  ;;  %v5212_v29 = vadd.f32 %v5211_v55, %v5210_v37  ;;  %v6081_v14 = vld [vmem:[#allocation5 + $0x138] sm:$0xff]  }
 0x25e   : > { %v5213_v45 = vpop.f32.mrf.mxu0  ;;  %5249 = vmatprep.subr.bf16.mxu1 %v6081_v14 }
 0x25f   : > { %v7650_v59 = vadd.f32 %v7510_v15, %v2124_v21  ;;  %v2079_v4 = vadd.f32 %v5796_v62, %v5212_v29  ;;  %v2086_v62 = vpop.f32.mrf.mxu1  ;;  %v6082_v29 = vld [vmem:[#allocation5 + $0xf8] sm:$0xff]  }
 0x260   : > { %v5214_v47 = vpop.f32.mrf.mxu0  ;;  %5250 = vmatpush3.bf16.msra.mxu1 %v6082_v29  ;;  %v6097_v29 = vld [vmem:[#allocation5 + $0xc8] sm:$0xff]  }
 0x261   : > { %v2193_v56 = vadd.f32 %v2192_v57, %v7650_v59  ;;  %v2125_v51 = vadd.f32 %v2079_v4, %v9321_v31  ;;  %v5215_v0 = vadd.f32 %v5214_v47, %v5213_v45 }
 0x262   : > { %v5216_v53 = vpop.f32.mrf.mxu0 }
 0x263   : > { %v7655_v48 = vadd.f32 %v7510_v15, %v2125_v51  ;;  %v2084_v23 = vadd.f32 %v5215_v0, %v2083_v39  ;;  %v9325_v39 = vld [vmem:[#allocation31_spill] sm:$0xff]  ;;  %v6083_v51 = vld [vmem:[#allocation5 + $0x130] sm:$0xff]  }
 0x264   : > { %v5217_v6 = vpop.f32.mrf.mxu0  ;;  %v6084_v0 = vld [vmem:[#allocation5 + $0xf0] sm:$0xff]   ;;  %5251 = vmatprep.subr.bf16.mxu1 %v6083_v51 }
 0x265   : > { %v2126_v35 = vadd.f32 %v2084_v23, %v9322_v13  ;;  %v2194_v19 = vadd.f32 %v2193_v56, %v7655_v48  ;;  %v5218_v60 = vadd.f32 %v5217_v6, %v5216_v53  ;;  %v6085_v53 = vld [vmem:[#allocation5 + $0x170] sm:$0xff]   ;;  %5252 = vmatpush3.bf16.msra.mxu1 %v6084_v0 }
 0x266   : > { %v5219_v33 = vpop.f32.mrf.mxu0  ;;  %5803 = vmatprep.subr.bf16.mxu0 %v6085_v53 }
 0x267   : > { %v7662_v10 = vadd.f32 %v7510_v15, %v2126_v35  ;;  %v2087_v61 = vadd.f32 %v5218_v60, %v2086_v62  ;;  %5804 = vmatpush3.bf16.msra.mxu0 %v6085_v53  ;;  %v6086_v35 = vld [vmem:[#allocation5 + $0x128] sm:$0xff]   ;;  %v6088_v62 = vld [vmem:[#allocation5 + $0x120] sm:$0xff]  }
 0x268   : > { %v5220_v34 = vpop.f32.mrf.mxu0  ;;  %v6090_v60 = vld [vmem:[#allocation5 + $0x168] sm:$0xff]   ;;  %5253 = vmatprep.subr.bf16.mxu1 %v6086_v35 }
 0x269   : > { %v2195_v30 = vadd.f32 %v2194_v19, %v7662_v10  ;;  %v2127_v36 = vadd.f32 %v2087_v61, %v1572_v12  ;;  %v5221_v37 = vadd.f32 %v5220_v34, %v5219_v33  ;;  %v6087_v19 = vld [vmem:[#allocation5 + $0xe8] sm:$0xff]   ;;  %5805 = vmatprep.subr.bf16.mxu0 %v6090_v60  ;;  %v6089_v33 = vld [vmem:[#allocation5 + $0xe0] sm:$0xff]   ;;  %v6091_v61 = vld [vmem:[#allocation5 + $0x118] sm:$0xff]  }
 0x26a   : > { %v5222_v54 = vpop.f32.mrf.mxu0  ;;  %5254 = vmatpush3.bf16.msra.mxu1 %v6087_v19  ;;  %v6098_v34 = vld [vmem:[#allocation5 + $0x158] sm:$0xff]  }
 0x26b   : > { %v7666_v55 = vadd.f32 %v7510_v15, %v2127_v36  ;;  %v2092_v57 = vadd.f32 %v5799_v42, %v5221_v37  ;;  %v9326_v42 = vld [vmem:[#allocation32_spill] sm:$0xff]  ;;  %5806 = vmatpush3.bf16.msra.mxu0 %v6090_v60  ;;  %5255 = vmatprep.subr.bf16.mxu1 %v6088_v62  ;;  %v6093_v37 = vld [vmem:[#allocation5 + $0x110] sm:$0xff]  }
 0x26c   : > { %v5223_v21 = vpop.f32.mrf.mxu0  ;;  %5807 = vmatprep.subr.bf16.mxu0 %v6095_v11 }
 0x26d   : > { %v2196_v45 = vadd.f32 %v2195_v30, %v7666_v55  ;;  %v2128_v4 = vadd.f32 %v2092_v57, %v9325_v39  ;;  %v5224_v47 = vadd.f32 %v5223_v21, %v5222_v54  ;;  %v6094_v54 = vld [vmem:[#allocation5 + $0xd0] sm:$0xff]   ;;  %v6096_v21 = vld [vmem:[#allocation5 + $0x108] sm:$0xff]  }
 0x26e   : > { %5256 = vmatpush3.bf16.msra.mxu1 %v6089_v33  ;;  %v6099_v57 = vld [vmem:[#allocation5 + $0x150] sm:$0xff]  }
 0x26f   : > { %v7671_v56 = vadd.f32 %v7510_v15, %v2128_v4  ;;  %v2095_v31 = vadd.f32 %v5800_v41, %v5224_v47  ;;  %5808 = vmatpush3.bf16.msra.mxu0 %v6095_v11  ;;  %5257 = vmatprep.subr.bf16.mxu1 %v6091_v61  ;;  %v6101_v4 = vld [vmem:[#allocation5 + $0xc0] sm:$0xff]   ;;  %v6102_v47 = vld [vmem:[#allocation5 + $0x148] sm:$0xff]  }
 0x270   : > { %5809 = vmatprep.subr.bf16.mxu0 %v6098_v34 }
 0x271   : > { %v2197_v23 = vadd.f32 %v2196_v45, %v7671_v56  ;;  %v2129_v6 = vadd.f32 %v2095_v31, %v9326_v42  ;;  %v6100_v45 = vld [vmem:[#allocation5 + $0x100] sm:$0xff]  }
 0x272   : > { %v6103_v31 = vld [vmem:[#allocation5 + $0x140] sm:$0xff]  }
 0x273   : > { %v2167_v13 = vadd.f32 %v7510_v15, %v2129_v6  ;;  %v6092_v15 = vld [vmem:[#allocation5 + $0xd8] sm:$0xff]   ;;  %5810 = vmatpush3.bf16.msra.mxu0 %v6098_v34 }
 0x274   : > { %5258 = vmatpush3.bf16.msra.mxu1 %v6092_v15  ;;  %5811 = vmatprep.subr.bf16.mxu0 %v6099_v57 }
 0x275   : > { %v2198_v24 = vadd.f32 %v2197_v23, %v2167_v13  ;;  %5259 = vmatprep.subr.bf16.mxu1 %v6093_v37 }
 0x277   : > { %v2199_v41 = vrot.slane %v2198_v24, 4  ;;  %5812 = vmatpush3.bf16.msra.mxu0 %v6099_v57 }
 0x278   : > { %5260 = vmatpush3.bf16.msra.mxu1 %v6094_v54  ;;  %5813 = vmatprep.subr.bf16.mxu0 %v6102_v47 }
 0x279   : > { %v2200_v1 = vadd.f32 %v2199_v41, %v2198_v24  ;;  %5261 = vmatprep.subr.bf16.mxu1 %v6096_v21 }
 0x27b   : > { %v2201_v12 = vrot.slane %v2200_v1, 2  ;;  %5814 = vmatpush3.bf16.msra.mxu0 %v6102_v47 }
 0x27c   : > { %5262 = vmatpush3.bf16.msra.mxu1 %v6097_v29  ;;  %5815 = vmatprep.subr.bf16.mxu0 %v6103_v31 }
 0x27d   : > { %v2202_v30 = vadd.f32 %v2201_v12, %v2200_v1  ;;  %5263 = vmatprep.subr.bf16.mxu1 %v6100_v45 }
 0x27f   : > { %v2203_v36 = vrot.slane %v2202_v30, 1  ;;  %5816 = vmatpush3.bf16.msra.mxu0 %v6103_v31 }
 0x280   : > { %5264 = vmatpush3.bf16.msra.mxu1 %v6101_v4 }
 0x281   : > { %v2204_v14 = vadd.f32 %v2203_v36, %v2202_v30 }
 0x283   : > { %v7676_v39 = vmul.f32 0.00390625, %v2204_v14 }
 0x285   : > { %v7680_v51 = vsub.f32 %v7623_v50, %v7676_v39  ;;  %v7684_v0 = vsub.f32 %v7629_v63, %v7676_v39  ;;  %v7688_v53 = vsub.f32 %v7634_v20, %v7676_v39  ;;  %v7692_v23 = vsub.f32 %v7641_v44, %v7676_v39 }
 0x286   : > { %v7696_v42 = vsub.f32 %v7645_v52, %v7676_v39  ;;  %v7700_v50 = vsub.f32 %v7650_v59, %v7676_v39  ;;  %v7704_v63 = vsub.f32 %v7655_v48, %v7676_v39  ;;  %v7708_v20 = vsub.f32 %v7662_v10, %v7676_v39  ;;  %v7729_v10 = vld [vmem:[#allocation5 + $0xb8] sm:$0xff]  }
 0x287   : > { %v7712_v44 = vsub.f32 %v7666_v55, %v7676_v39  ;;  %v7716_v52 = vsub.f32 %v7671_v56, %v7676_v39  ;;  %v7719_v59 = vsub.f32 %v2167_v13, %v7676_v39  ;;  %v7723_v48 = vsub.f32 %v7517_v58, %v7676_v39  ;;  %5849 = vmatprep.subr.bf16.mxu1 %v7729_v10 }
 0x288   : > { %v7727_v6 = vsub.f32 %v7513_v9, %v7676_v39  ;;  %v7733_v55 = vsub.f32 %v7520_v16, %v7676_v39  ;;  %v7742_v58 = vsub.f32 %v7528_v38, %v7676_v39  ;;  %v7746_v9 = vsub.f32 %v7532_v22, %v7676_v39 }
 0x289   : > { %v2239_v56 = vmul.f32 %v7723_v48, %v7723_v48  ;;  %v7752_v19 = vsub.f32 %v7537_v49, %v7676_v39  ;;  %v7758_v38 = vsub.f32 %v7544_v43, %v7676_v39  ;;  %v7764_v62 = vsub.f32 %v7550_v46, %v7676_v39 }
 0x28a   : > { %v2240_v13 = vmul.f32 %v7727_v6, %v7727_v6  ;;  %v2241_v16 = vmul.f32 %v7733_v55, %v7733_v55  ;;  %v2242_v60 = vmul.f32 %v7742_v58, %v7742_v58  ;;  %v2243_v22 = vmul.f32 %v7746_v9, %v7746_v9 }
 0x28b   : > { %v2244_v49 = vmul.f32 %v7752_v19, %v7752_v19  ;;  %v7770_v11 = vsub.f32 %v7555_v2, %v7676_v39  ;;  %v2245_v43 = vmul.f32 %v7758_v38, %v7758_v38  ;;  %v7776_v12 = vsub.f32 %v7560_v5, %v7676_v39 }
 0x28c   : > { %v2271_v35 = vadd.f32 %v2240_v13, %v2239_v56  ;;  %v2246_v46 = vmul.f32 %v7764_v62, %v7764_v62  ;;  %v7782_v15 = vsub.f32 %v7565_v7, %v7676_v39  ;;  %v7788_v30 = vsub.f32 %v7573_v18, %v7676_v39 }
 0x28d   : > { %v2247_v2 = vmul.f32 %v7770_v11, %v7770_v11  ;;  %v2248_v5 = vmul.f32 %v7776_v12, %v7776_v12  ;;  %v7794_v37 = vsub.f32 %v7577_v26, %v7676_v39  ;;  %v7800_v57 = vsub.f32 %v7582_v32, %v7676_v39 }
 0x28e   : > { %v2272_v24 = vadd.f32 %v2271_v35, %v2241_v16  ;;  %v2249_v7 = vmul.f32 %v7782_v15, %v7782_v15  ;;  %v2250_v18 = vmul.f32 %v7788_v30, %v7788_v30  ;;  %v7806_v21 = vsub.f32 %v7589_v3, %v7676_v39  ;;  %v6107_v16 = vld [vmem:[#allocation5 + $0x78] sm:$0xff]  }
 0x28f   : > { %v2251_v26 = vmul.f32 %v7794_v37, %v7794_v37  ;;  %v7812_v45 = vsub.f32 %v7594_v28, %v7676_v39  ;;  %v2252_v32 = vmul.f32 %v7800_v57, %v7800_v57  ;;  %v7818_v47 = vsub.f32 %v7598_v17, %v7676_v39  ;;  %5385 = vmatprep.subr.bf16.mxu0 %v6107_v16 }
 0x290   : > { %v2273_v41 = vadd.f32 %v2272_v24, %v2242_v60  ;;  %v2253_v3 = vmul.f32 %v7806_v21, %v7806_v21  ;;  %v7824_v56 = vsub.f32 %v7603_v40, %v7676_v39  ;;  %v7830_v35 = vsub.f32 %v7608_v8, %v7676_v39 }
 0x291   : > { %v2254_v28 = vmul.f32 %v7812_v45, %v7812_v45  ;;  %v2255_v17 = vmul.f32 %v7818_v47, %v7818_v47  ;;  %v7836_v24 = vsub.f32 %v7615_v27, %v7676_v39  ;;  %v2270_v16 = vmul.f32 %v7719_v59, %v7719_v59 }
 0x292   : > { %v2274_v33 = vadd.f32 %v2273_v41, %v2243_v22  ;;  %v2256_v40 = vmul.f32 %v7824_v56, %v7824_v56  ;;  %v7842_v41 = vsub.f32 %v7619_v25, %v7676_v39  ;;  %v2257_v8 = vmul.f32 %v7830_v35, %v7830_v35 }
 0x293   : > { %v2261_v25 = vmul.f32 %v7684_v0, %v7684_v0 }
 0x294   : > { %v2275_v1 = vadd.f32 %v2274_v33, %v2244_v49  ;;  %v2258_v33 = vmul.f32 %v7836_v24, %v7836_v24  ;;  %v2259_v27 = vmul.f32 %v7842_v41, %v7842_v41 }
 0x296   : > { %v2276_v61 = vadd.f32 %v2275_v1, %v2245_v43 }
 0x298   : > { %v2277_v34 = vadd.f32 %v2276_v61, %v2246_v46  ;;  %v2260_v46 = vmul.f32 %v7680_v51, %v7680_v51 }
 0x29a   : > { %v2278_v36 = vadd.f32 %v2277_v34, %v2247_v2  ;;  %v2262_v2 = vmul.f32 %v7688_v53, %v7688_v53 }
 0x29c   : > { %v2279_v54 = vadd.f32 %v2278_v36, %v2248_v5  ;;  %v2263_v5 = vmul.f32 %v7692_v23, %v7692_v23 }
 0x29e   : > { %v2280_v14 = vadd.f32 %v2279_v54, %v2249_v7  ;;  %v2264_v7 = vmul.f32 %v7696_v42, %v7696_v42 }
 0x2a0   : > { %v2281_v29 = vadd.f32 %v2280_v14, %v2250_v18  ;;  %v2265_v18 = vmul.f32 %v7700_v50, %v7700_v50 }
 0x2a2   : > { %v2282_v4 = vadd.f32 %v2281_v29, %v2251_v26  ;;  %v2266_v26 = vmul.f32 %v7704_v63, %v7704_v63 }
 0x2a4   : > { %v2283_v31 = vadd.f32 %v2282_v4, %v2252_v32  ;;  %v2267_v32 = vmul.f32 %v7708_v20, %v7708_v20 }
 0x2a6   : > { %v2284_v13 = vadd.f32 %v2283_v31, %v2253_v3  ;;  %v2268_v3 = vmul.f32 %v7712_v44, %v7712_v44 }
 0x2a8   : > { %v2285_v60 = vadd.f32 %v2284_v13, %v2254_v28  ;;  %v2269_v28 = vmul.f32 %v7716_v52, %v7716_v52 }
 0x2aa   : > { %v2286_v22 = vadd.f32 %v2285_v60, %v2255_v17 }
 0x2ac   : > { %v2287_v49 = vadd.f32 %v2286_v22, %v2256_v40 }
 0x2ae   : > { %v2288_v43 = vadd.f32 %v2287_v49, %v2257_v8 }
 0x2b0   : > { %v2289_v1 = vadd.f32 %v2288_v43, %v2258_v33 }
 0x2b2   : > { %v2290_v61 = vadd.f32 %v2289_v1, %v2259_v27 }
 0x2b4   : > { %v2291_v39 = vadd.f32 %v2290_v61, %v2260_v46 }
 0x2b6   : > { %v2292_v34 = vadd.f32 %v2291_v39, %v2261_v25 }
 0x2b8   : > { %v2293_v36 = vadd.f32 %v2292_v34, %v2262_v2 }
 0x2ba   : > { %v2294_v54 = vadd.f32 %v2293_v36, %v2263_v5 }
 0x2bc   : > { %v2295_v14 = vadd.f32 %v2294_v54, %v2264_v7 }
 0x2be   : > { %v2296_v29 = vadd.f32 %v2295_v14, %v2265_v18 }
 0x2c0   : > { %v2297_v4 = vadd.f32 %v2296_v29, %v2266_v26 }
 0x2c2   : > { %v2298_v31 = vadd.f32 %v2297_v4, %v2267_v32 }
 0x2c4   : > { %v2299_v13 = vadd.f32 %v2298_v31, %v2268_v3 }
 0x2c6   : > { %v2300_v17 = vadd.f32 %v2299_v13, %v2269_v28 }
 0x2c8   : > { %v2301_v60 = vadd.f32 %v2300_v17, %v2270_v16 }
 0x2ca   : > { %v2302_v40 = vrot.slane %v2301_v60, 4 }
 0x2cc   : > { %v2303_v22 = vadd.f32 %v2302_v40, %v2301_v60 }
 0x2ce   : > { %v2304_v8 = vrot.slane %v2303_v22, 2 }
 0x2d0   : > { %v2305_v49 = vadd.f32 %v2304_v8, %v2303_v22 }
 0x2d2   : > { %v2306_v33 = vrot.slane %v2305_v49, 1 }
 0x2d4   : > { %v2307_v43 = vadd.f32 %v2306_v33, %v2305_v49 }
 0x2d6   : > { %v2308_v27 = vmul.f32 0.00390625, %v2307_v43 }
 0x2d8   : > { %v2309_v1 = vadd.f32 1e-05, %v2308_v27 }
 0x2da   : > { %6152 = vrsqrt.f32 %v2309_v1 }
 0x2e7   : > { %v7872_v46 = vpop.eup %6152 }
 0x2e8   : > { %v2313_v61 = vmul.f32 %v7872_v46, %v7733_v55  ;;  %v2314_v25 = vmul.f32 %v7872_v46, %v7742_v58  ;;  %v2315_v39 = vmul.f32 %v7872_v46, %v7746_v9  ;;  %v2316_v2 = vmul.f32 %v7872_v46, %v7752_v19 }
 0x2e9   : > { %v2311_v54 = vmul.f32 %v7872_v46, %v7723_v48  ;;  %v2317_v18 = vmul.f32 %v7872_v46, %v7758_v38  ;;  %v2318_v55 = vmul.f32 %v7872_v46, %v7764_v62  ;;  %v2312_v58 = vmul.f32 %v7872_v46, %v7727_v6 }
 0x2ea   : > { %v2345_v34 = vmax.f32 %v2313_v61, 0.0  ;;  %v2346_v5 = vmax.f32 %v2314_v25, 0.0  ;;  %v2347_v36 = vmax.f32 %v2315_v39, 0.0  ;;  %v2348_v7 = vmax.f32 %v2316_v2, 0.0 }
 0x2eb   : > { %v2319_v9 = vmul.f32 %v7872_v46, %v7770_v11  ;;  %v2320_v19 = vmul.f32 %v7872_v46, %v7776_v12  ;;  %v2343_v48 = vmax.f32 %v2311_v54, 0.0  ;;  %v2349_v29 = vmax.f32 %v2317_v18, 0.0  ;;  %v6130_v18 = vld [vmem:[#allocation5 + $0x1b8] sm:$0xff]  }
 0x2ec   : > { %v7894_v14 = vpack.c.bf16 %v2346_v5, %v2345_v34  ;;  %v7896_v26 = vpack.c.bf16 %v2348_v7, %v2347_v36  ;;  %v2350_v32 = vmax.f32 %v2318_v55, 0.0  ;;  %v2344_v3 = vmax.f32 %v2312_v58, 0.0 }
 0x2ed   : > { %v2351_v38 = vmax.f32 %v2319_v9, 0.0  ;;  %v2352_v4 = vmax.f32 %v2320_v19, 0.0  ;;  %v2321_v11 = vmul.f32 %v7872_v46, %v7782_v15  ;;  %v2322_v12 = vmul.f32 %v7872_v46, %v7788_v30  ;;  %v6105_v19 = vld [vmem:[#allocation5 + $0xb0] sm:$0xff]  }
 0x2ee   : > { %v2457_v62 = vshll.u32 %v7894_v14, 16  ;;  %v7900_v6 = vshll.u32 %v7896_v26, 16  ;;  %v2323_v31 = vmul.f32 %v7872_v46, %v7794_v37  ;;  %v7908_v28 = vpack.c.bf16 %v2344_v3, %v2343_v48 }
 0x2ef   : > { %v2324_v13 = vmul.f32 %v7872_v46, %v7800_v57  ;;  %v7912_v16 = vpack.c.bf16 %v2350_v32, %v2349_v29  ;;  %v7915_v17 = vshrl.u32 %v7894_v14, 16  ;;  %v7917_v40 = vpack.c.bf16 %v2352_v4, %v2351_v38  ;;  %v6109_v38 = vld [vmem:[#allocation5 + $0x70] sm:$0xff]  }
 0x2f0   : > { %v2552_v60 = vrot.slane %v2457_v62, 1  ;;  %v2461_v15 = vshll.u32 %v7908_v28, 16  ;;  %2905 = vmatprep.mubr.bf16.mxu1 %v7908_v28  ;;  %v2396_v30 = vshrl.u32 %v7908_v28, 16  ;;  %v2556_v37 = vrot.slane %v7900_v6, 1 }
 0x2f1   : > { %v2353_v8 = vmax.f32 %v2321_v11, 0.0  ;;  %v7925_v33 = vshrl.u32 %v7896_v26, 16  ;;  %v2354_v43 = vmax.f32 %v2322_v12, 0.0  ;;  %v2355_v27 = vmax.f32 %v2323_v31, 0.0 }
 0x2f2   : > { %v2553_v22 = vor.u32 %v2552_v60, %v7915_v17  ;;  %v2460_v57 = vrot.slane %v2396_v30, 7  ;;  %v2554_v49 = vrot.slane %v2461_v15, 1  ;;  %v2356_v1 = vmax.f32 %v2324_v13, 0.0 }
 0x2f3   : > { %v7928_v61 = vshll.u32 %v7912_v16, 16  ;;  %v2557_v2 = vor.u32 %v2556_v37, %v7925_v33  ;;  %v7932_v34 = vshll.u32 %v7917_v40, 16  ;;  %v7936_v5 = vmul.f32 %v7872_v46, %v7716_v52  ;;  %v6108_v52 = vld [vmem:[#allocation5 + $0x38] sm:$0xff]  }
 0x2f4   : > { %v2463_v25 = vor.u32 %v2461_v15, %v2460_v57  ;;  %v2555_v39 = vor.u32 %v2554_v49, %v2396_v30  ;;  %v7940_v7 = vsel %vm6585_vm4, %v2553_v22, %v2457_v62  ;;  %v2325_v54 = vmul.f32 %v7872_v46, %v7806_v21 }
 0x2f5   : > { %v2456_v9 = vrot.slane %v7915_v17, 7  ;;  %v2326_v48 = vmul.f32 %v7872_v46, %v7812_v45  ;;  %v2327_v29 = vmul.f32 %v7872_v46, %v7818_v47  ;;  %v7957_v32 = vpack.c.bf16 %v2354_v43, %v2353_v8 }
 0x2f6   : > { %v7946_v55 = vsel %vm6597_vm5, %v2396_v30, %v2463_v25  ;;  %v7950_v58 = vsel %vm6585_vm4, %v2555_v39, %v2461_v15  ;;  %v2558_v21 = vrot.slane %v7928_v61, 1  ;;  %v2328_v4 = vmul.f32 %v7872_v46, %v7824_v56  ;;  %v6106_v15 = vld [vmem:[#allocation5 + $0xa8] sm:$0xff]  }
 0x2f7   : > { %2906 = vmatmul.mubr.bf16.vlgmr.msra.gmra.mxu1 %v7946_v55  ;;  %5817 = vmatprep.mubr.bf16.mxu0 %v7950_v58  ;;  %v7964_v3 = vpack.c.bf16 %v2356_v1, %v2355_v27  ;;  %v7971_v45 = vsel %vm6585_vm4, %v2557_v2, %v7900_v6  ;;  %v2560_v47 = vrot.slane %v7932_v34, 1  ;;  %v2342_v11 = vmul.f32 %v7872_v46, %v7719_v59  ;;  %v6110_v59 = vld [vmem:[#allocation5 + $0x30] sm:$0xff]  }
 0x2f8   : > { %2913 = vmatprep.mubr.bf16.mxu1 %v7894_v14  ;;  %5818 = vmatmul.mubr.bf16.vlgmr.msra.gmra.mxu0 %v7940_v7  ;;  %v2339_v12 = vmul.f32 %v7872_v46, %v7708_v20  ;;  %v2340_v56 = vmul.f32 %v7872_v46, %v7712_v44  ;;  %v7983_v31 = vshrl.u32 %v7912_v16, 16  ;;  %v2459_v13 = vor.u32 %v2457_v62, %v2456_v9  ;;  %v6115_v9 = vld [vmem:[#allocation5 + $0xa0] sm:$0xff]  }
 0x2f9   : > { %5850 = vmatpush3.bf16.msra.mxu1 %v7729_v10  ;;  %5821 = vmatprep.mubr.bf16.mxu0 %v7971_v45  ;;  %v7986_v60 = vshrl.u32 %v7917_v40, 16  ;;  %v2357_v30 = vmax.f32 %v2325_v54, 0.0  ;;  %v2358_v20 = vmax.f32 %v2326_v48, 0.0  ;;  %v7990_v44 = vshll.u32 %v7957_v32, 16  ;;  %v6111_v10 = vld [vmem:[#allocation5 + $0x68] sm:$0xff]  }
 0x2fa   : > { %5851 = vmatprep.subr.bf16.mxu1 %v6105_v19  ;;  %5386 = vmatpush3.bf16.msra.mxu0 %v6108_v52  ;;  %v2559_v37 = vor.u32 %v2558_v21, %v7983_v31  ;;  %v2359_v22 = vmax.f32 %v2327_v29, 0.0  ;;  %v2360_v8 = vmax.f32 %v2328_v4, 0.0  ;;  %v7994_v57 = vshll.u32 %v7964_v3, 16 }
 0x2fb   : > { %5387 = vmatprep.subr.bf16.mxu0 %v6109_v38  ;;  %v2561_v62 = vor.u32 %v2560_v47, %v7986_v60  ;;  %v2373_v49 = vmax.f32 %v7936_v5, 0.0  ;;  %v2374_v43 = vmax.f32 %v2342_v11, 0.0  ;;  %v2371_v27 = vmax.f32 %v2339_v12, 0.0  ;;  %v6112_v5 = vld [vmem:[#allocation5 + $0x28] sm:$0xff]  }
 0x2fc   : > { %v2372_v1 = vmax.f32 %v2340_v56, 0.0  ;;  %v2329_v25 = vmul.f32 %v7872_v46, %v7830_v35  ;;  %v2330_v39 = vmul.f32 %v7872_v46, %v7836_v24  ;;  %v8004_v2 = vsel %vm6597_vm5, %v7915_v17, %v2459_v13  ;;  %v6113_v17 = vld [vmem:[#allocation5 + $0x60] sm:$0xff]   ;;  %v6124_v13 = vld [vmem:[#allocation5 + $0x98] sm:$0xff]  }
 0x2fd   : > { %5852 = vmatpush3.bf16.msra.mxu1 %v6105_v19  ;;  %v2464_v54 = vrot.slane %v7925_v33, 7  ;;  %v2331_v19 = vmul.f32 %v7872_v46, %v7842_v41  ;;  %v8009_v52 = vpack.c.bf16 %v2358_v20, %v2357_v30  ;;  %v8015_v35 = vsel %vm6585_vm4, %v2559_v37, %v7928_v61  ;;  %v6114_v56 = vld [vmem:[#allocation5 + $0x20] sm:$0xff]   ;;  %v6116_v37 = vld [vmem:[#allocation5 + $0x58] sm:$0xff]  }
 0x2fe   : > { %5853 = vmatprep.subr.bf16.mxu1 %v6106_v15  ;;  %5388 = vmatpush3.bf16.msra.mxu0 %v6110_v59  ;;  %v2562_v24 = vrot.slane %v7990_v44, 1  ;;  %v2332_v48 = vmul.f32 %v7872_v46, %v7680_v51  ;;  %v8020_v29 = vpack.c.bf16 %v2360_v8, %v2359_v22  ;;  %v8027_v41 = vsel %vm6585_vm4, %v2561_v62, %v7932_v34 }
 0x2ff   : > { %2914 = vmatmul.mubr.bf16.gmra.mxu1 %v8004_v2  ;;  %5389 = vmatprep.subr.bf16.mxu0 %v6111_v10  ;;  %v2564_v21 = vrot.slane %v7994_v57, 1  ;;  %v8030_v38 = vpack.c.bf16 %v2372_v1, %v2371_v27  ;;  %v8034_v4 = vshrl.u32 %v7957_v32, 16  ;;  %v8036_v51 = vpack.c.bf16 %v2374_v43, %v2373_v49  ;;  %v6117_v1 = vld [vmem:[#allocation5 + $0x18] sm:$0xff]  }
 0x300   : > { %2921 = vmatprep.mubr.bf16.mxu1 %v7896_v26  ;;  %5822 = vmatmul.mubr.bf16.gmra.mxu0 %v8015_v35  ;;  %v8040_v47 = vmul.f32 %v7872_v46, %v7684_v0  ;;  %v2467_v11 = vor.u32 %v7900_v6, %v2464_v54  ;;  %v8044_v12 = vshrl.u32 %v7964_v3, 16  ;;  %v2361_v59 = vmax.f32 %v2329_v25, 0.0 }
 0x301   : > { %5825 = vmatprep.mubr.bf16.mxu0 %v8027_v41  ;;  %5854 = vmatpush3.bf16.msra.mxu1 %v6106_v15  ;;  %v2362_v30 = vmax.f32 %v2330_v39, 0.0  ;;  %v2563_v20 = vor.u32 %v2562_v24, %v8034_v4  ;;  %v8048_v15 = vshll.u32 %v8009_v52, 16  ;;  %v2363_v0 = vmax.f32 %v2331_v19, 0.0 }
 0x302   : > { %5390 = vmatpush3.bf16.msra.mxu0 %v6112_v5  ;;  %5855 = vmatprep.subr.bf16.mxu1 %v6115_v9  ;;  %v2364_v10 = vmax.f32 %v2332_v48, 0.0  ;;  %v2565_v6 = vor.u32 %v2564_v21, %v8044_v12  ;;  %v8052_v22 = vshll.u32 %v8020_v29, 16  ;;  %v2334_v8 = vmul.f32 %v7872_v46, %v7688_v53  ;;  %v6125_v53 = vld [vmem:[#allocation5 + $0x90] sm:$0xff]  }
 0x303   : > { %5391 = vmatprep.subr.bf16.mxu0 %v6113_v17  ;;  %v8057_v62 = vshrl.u32 %v8030_v38, 16  ;;  %v8061_v49 = vmul.f32 %v7872_v46, %v7692_v23  ;;  %v8066_v43 = vsel %vm6597_vm5, %v7925_v33, %v2467_v11  ;;  %v2468_v27 = vrot.slane %v7983_v31, 7  ;;  %v6118_v5 = vld [vmem:[#allocation5 + $0x50] sm:$0xff]  }
 0x304   : > { %v8070_v25 = vshrl.u32 %v8036_v51, 16  ;;  %v2336_v39 = vmul.f32 %v7872_v46, %v7696_v42  ;;  %v8074_v54 = vpack.c.bf16 %v2362_v30, %v2361_v59  ;;  %v8080_v23 = vsel %vm6585_vm4, %v2563_v20, %v7990_v44  ;;  %v6119_v59 = vld [vmem:[#allocation5 + $0x10] sm:$0xff]   ;;  %v6126_v20 = vld [vmem:[#allocation5 + $0x88] sm:$0xff]  }
 0x305   : > { %5856 = vmatpush3.bf16.msra.mxu1 %v6115_v9  ;;  %v2566_v33 = vrot.slane %v8048_v15, 1  ;;  %v2365_v9 = vmax.f32 %v8040_v47, 0.0  ;;  %v8084_v19 = vpack.c.bf16 %v2364_v10, %v2363_v0  ;;  %v8091_v42 = vsel %vm6585_vm4, %v2565_v6, %v7994_v57 }
 0x306   : > { %5392 = vmatpush3.bf16.msra.mxu0 %v6114_v56  ;;  %5857 = vmatprep.subr.bf16.mxu1 %v6124_v13  ;;  %9329 = vst [vmem:[#allocation13_spill] sm:$0xff] %v8091_v42  ;;  %v2568_v24 = vrot.slane %v8052_v22, 1  ;;  %v2366_v17 = vmax.f32 %v2334_v8, 0.0  ;;  %v8096_v48 = vshrl.u32 %v8009_v52, 16  ;;  %v8099_v21 = vshll.u32 %v8030_v38, 16 }
 0x307   : > { %2922 = vmatmul.mubr.bf16.gmra.mxu1 %v8066_v43  ;;  %5393 = vmatprep.subr.bf16.mxu0 %v6116_v37  ;;  %v2512_v47 = vrot.slane %v8057_v62, 7  ;;  %v2471_v11 = vor.u32 %v7928_v61, %v2468_v27  ;;  %v8104_v56 = vshrl.u32 %v8020_v29, 16  ;;  %v8107_v30 = vshll.u32 %v8036_v51, 16  ;;  %v6120_v61 = vld [vmem:[#allocation5 + $0x48] sm:$0xff]  }
 0x308   : > { %2929 = vmatprep.mubr.bf16.mxu1 %v7912_v16  ;;  %5826 = vmatmul.mubr.bf16.gmra.mxu0 %v8080_v23  ;;  %v2516_v37 = vrot.slane %v8070_v25, 7  ;;  %v2367_v0 = vmax.f32 %v8061_v49, 0.0  ;;  %v8113_v10 = vshll.u32 %v8074_v54, 16  ;;  %v2368_v8 = vmax.f32 %v2336_v39, 0.0 }
 0x309   : > { %5829 = vmatprep.mubr.bf16.mxu0 %v8091_v42  ;;  %5858 = vmatpush3.bf16.msra.mxu1 %v6124_v13  ;;  %v2567_v13 = vor.u32 %v2566_v33, %v8096_v48  ;;  %v2515_v6 = vor.u32 %v8099_v21, %v2512_v47  ;;  %v2569_v27 = vor.u32 %v2568_v24, %v8104_v56  ;;  %v6121_v24 = vld [vmem:[#allocation5 + $0x8] sm:$0xff]   ;;  %v6127_v47 = vld [vmem:[#allocation5 + $0x80] sm:$0xff]  }
 0x30a   : > { %5394 = vmatpush3.bf16.msra.mxu0 %v6117_v1  ;;  %5859 = vmatprep.subr.bf16.mxu1 %v6125_v53  ;;  %v8118_v1 = vshll.u32 %v8084_v19, 16  ;;  %v2519_v42 = vor.u32 %v8107_v30, %v2516_v37  ;;  %v2337_v33 = vmul.f32 %v7872_v46, %v7700_v50  ;;  %v8131_v39 = vsel %vm6597_vm5, %v7983_v31, %v2471_v11 }
 0x30b   : > { %5395 = vmatprep.subr.bf16.mxu0 %v6118_v5  ;;  %v8124_v49 = vsel %vm6597_vm5, %v8057_v62, %v2515_v6  ;;  %v2472_v5 = vrot.slane %v7986_v60, 7  ;;  %v2338_v37 = vmul.f32 %v7872_v46, %v7704_v63  ;;  %v8141_v50 = vpack.c.bf16 %v2366_v17, %v2365_v9 }
 0x30c   : > { %v8147_v31 = vsel %vm6585_vm4, %v2567_v13, %v8048_v15  ;;  %v2570_v11 = vrot.slane %v8113_v10, 1  ;;  %v8150_v6 = vpack.c.bf16 %v2368_v8, %v2367_v0  ;;  %v8157_v63 = vsel %vm6585_vm4, %v2569_v27, %v8052_v22  ;;  %v6123_v0 = vld [vmem:[#allocation5] sm:$0xff]   ;;  %v6129_v13 = vld [vmem:[#allocation5 + $0x1f8] sm:$0xff]  }
 0x30d   : > { %5860 = vmatpush3.bf16.msra.mxu1 %v6125_v53  ;;  %v8137_v53 = vsel %vm6597_vm5, %v8070_v25, %v2519_v42  ;;  %9330 = vst [vmem:[#allocation18_spill] sm:$0xff] %v8147_v31  ;;  %9331 = vst [vmem:[#allocation16_spill] sm:$0xff] %v8157_v63  ;;  %v2572_v46 = vrot.slane %v8118_v1, 1  ;;  %v8162_v9 = vshrl.u32 %v8074_v54, 16  ;;  %v2475_v42 = vor.u32 %v7932_v34, %v2472_v5 }
 0x30e   : > { %5396 = vmatpush3.bf16.msra.mxu0 %v6119_v59  ;;  %5861 = vmatprep.subr.bf16.mxu1 %v6126_v20  ;;  %v6122_v59 = vld [vmem:[#allocation5 + $0x40] sm:$0xff]   ;;  %v8166_v17 = vshrl.u32 %v8084_v19, 16  ;;  %v2370_v8 = vmax.f32 %v2338_v37, 0.0  ;;  %v8176_v34 = vshll.u32 %v8150_v6, 16 }
 0x30f   : > { %2930 = vmatmul.mubr.bf16.gmra.mxu1 %v8131_v39  ;;  %5397 = vmatprep.subr.bf16.mxu0 %v6120_v61  ;;  %v2369_v61 = vmax.f32 %v2337_v33, 0.0  ;;  %v2571_v27 = vor.u32 %v2570_v11, %v8162_v9  ;;  %v8181_v5 = vsel %vm6597_vm5, %v7986_v60, %v2475_v42  ;;  %v2476_v33 = vrot.slane %v8034_v4, 7 }
 0x310   : > { %2937 = vmatprep.mubr.bf16.mxu1 %v7917_v40  ;;  %5830 = vmatmul.mubr.bf16.gmra.mxu0 %v8147_v31  ;;  %v8170_v31 = vshll.u32 %v8141_v50, 16  ;;  %v2576_v11 = vrot.slane %v8176_v34, 1  ;;  %v8208_v42 = vshrl.u32 %v8150_v6, 16 }
 0x311   : > { %5833 = vmatprep.mubr.bf16.mxu0 %v8157_v63  ;;  %5862 = vmatpush3.bf16.msra.mxu1 %v6126_v20  ;;  %v8172_v63 = vld [vmem:[#allocation5 + $0x238] sm:$0xff]   ;;  %v2573_v20 = vor.u32 %v2572_v46, %v8166_v17  ;;  %v8190_v37 = vsel %vm6585_vm4, %v2571_v27, %v8113_v10  ;;  %v2479_v46 = vor.u32 %v7990_v44, %v2476_v33  ;;  %v2480_v27 = vrot.slane %v8044_v12, 7 }
 0x312   : > { %5398 = vmatpush3.bf16.msra.mxu0 %v6121_v24  ;;  %5863 = vmatprep.subr.bf16.mxu1 %v6127_v47  ;;  %v8184_v24 = vpack.c.bf16 %v2370_v8, %v2369_v61  ;;  %v2577_v61 = vor.u32 %v2576_v11, %v8208_v42  ;;  %v2580_v33 = vrot.slane %v8099_v21, 1 }
 0x313   : > { %5399 = vmatprep.subr.bf16.mxu0 %v6122_v59  ;;  %v8199_v60 = vsel %vm6585_vm4, %v2573_v20, %v8118_v1  ;;  %v8204_v59 = vshrl.u32 %v8141_v50, 16  ;;  %v8218_v8 = vsel %vm6597_vm5, %v8034_v4, %v2479_v46  ;;  %v2483_v11 = vor.u32 %v7994_v57, %v2480_v27 }
 0x314   : > { %v8233_v4 = vsel %vm6585_vm4, %v2577_v61, %v8176_v34  ;;  %v2484_v61 = vrot.slane %v8096_v48, 7  ;;  %v2582_v57 = vrot.slane %v8107_v30, 1 }
 0x315   : > { %5864 = vmatpush3.bf16.msra.mxu1 %v6127_v47  ;;  %v2574_v47 = vrot.slane %v8170_v31, 1  ;;  %9333 = vst [vmem:[#allocation17_spill] sm:$0xff] %v8233_v4 }
 0x316   : > { %5400 = vmatpush3.bf16.msra.mxu0 %v6123_v0  ;;  %5521 = vmatprep.subr.bf16.mxu1 %v6129_v13  ;;  %v8212_v13 = vshll.u32 %v8184_v24, 16  ;;  %v2583_v27 = vor.u32 %v2582_v57, %v8070_v25  ;;  %v6151_v57 = vld [vmem:[#allocation5 + $0x200] sm:$0xff]  }
 0x317   : > { %2938 = vmatmul.mubr.bf16.gmra.mxu1 %v8181_v5  ;;  %5897 = vmatprep.subr.bf16.mxu0 %v8172_v63  ;;  %v2575_v0 = vor.u32 %v2574_v47, %v8204_v59  ;;  %v8238_v47 = vshrl.u32 %v8184_v24, 16 }
 0x318   : > { %2945 = vmatprep.mubr.bf16.mxu1 %v7957_v32  ;;  %5834 = vmatmul.mubr.bf16.gmra.mxu0 %v8190_v37  ;;  %v2578_v20 = vrot.slane %v8212_v13, 1 }
 0x319   : > { %5837 = vmatprep.mubr.bf16.mxu0 %v8199_v60  ;;  %v8225_v44 = vsel %vm6585_vm4, %v2575_v0, %v8170_v31  ;;  %v2581_v0 = vor.u32 %v2580_v33, %v8057_v62  ;;  %v2487_v62 = vor.u32 %v8048_v15, %v2484_v61  ;;  %v2488_v33 = vrot.slane %v8104_v56, 7 }
 0x31a   : > { %9332 = vst [vmem:[#allocation15_spill] sm:$0xff] %v8225_v44  ;;  %v2579_v46 = vor.u32 %v2578_v20, %v8238_v47  ;;  %v2504_v61 = vrot.slane %v8208_v42, 7 }
 0x31b   : > { %v8269_v20 = vsel %vm6597_vm5, %v8096_v48, %v2487_v62  ;;  %v2491_v15 = vor.u32 %v8052_v22, %v2488_v33  ;;  %v2492_v48 = vrot.slane %v8162_v9, 7  ;;  %v6138_v22 = vld [vmem:[#allocation5 + $0x228] sm:$0xff]   ;;  %v2508_v62 = vrot.slane %v8238_v47, 7 }
 0x31c   : > { %v6135_v33 = vld [vmem:[#allocation5 + $0x1a8] sm:$0xff]  }
 0x31d   : > { %v8285_v25 = vsel %vm6597_vm5, %v8104_v56, %v2491_v15  ;;  %v2495_v36 = vor.u32 %v8113_v10, %v2492_v48  ;;  %v6146_v10 = vld [vmem:[#allocation5 + $0x218] sm:$0xff]   ;;  %v6136_v15 = vld [vmem:[#allocation5 + $0x1e0] sm:$0xff]  }
 0x31e   : > { %v6139_v48 = vld [vmem:[#allocation5 + $0x1d8] sm:$0xff]  }
 0x31f   : > { %2946 = vmatmul.mubr.bf16.gmra.mxu1 %v8218_v8  ;;  %v8297_v56 = vsel %vm6597_vm5, %v8162_v9, %v2495_v36  ;;  %v2500_v9 = vrot.slane %v8204_v59, 7  ;;  %v6141_v36 = vld [vmem:[#allocation5 + $0x1d0] sm:$0xff]  }
 0x320   : > { %2953 = vmatprep.mubr.bf16.mxu1 %v7964_v3  ;;  %5838 = vmatmul.mubr.bf16.gmra.mxu0 %v8225_v44  ;;  %v8246_v44 = vsel %vm6597_vm5, %v8044_v12, %v2483_v11  ;;  %v8261_v12 = vsel %vm6585_vm4, %v2581_v0, %v8099_v21  ;;  %v8276_v21 = vsel %vm6585_vm4, %v2583_v27, %v8107_v30  ;;  %v6133_v11 = vld [vmem:[#allocation5 + $0x230] sm:$0xff]   ;;  %v2496_v30 = vrot.slane %v8166_v17, 7 }
 0x321   : > { %5841 = vmatprep.mubr.bf16.mxu0 %v8233_v4  ;;  %v8253_v4 = vsel %vm6585_vm4, %v2579_v46, %v8212_v13  ;;  %v6143_v46 = vld [vmem:[#allocation5 + $0x220] sm:$0xff]   ;;  %v6147_v0 = vld [vmem:[#allocation5 + $0x210] sm:$0xff]   ;;  %v2511_v27 = vor.u32 %v8212_v13, %v2508_v62 }
 0x322   : > { %v6132_v13 = vld [vmem:[#allocation5 + $0x1b0] sm:$0xff]  }
 0x327   : > { %2954 = vmatmul.mubr.bf16.gmra.mxu1 %v8246_v44 }
 0x328   : > { %2961 = vmatprep.mubr.bf16.mxu1 %v8009_v52  ;;  %5842 = vmatmul.mubr.bf16.gmra.mxu0 %v8253_v4 }
 0x329   : > { %5845 = vmatprep.mubr.bf16.mxu0 %v8261_v12 }
 0x32f   : > { %2962 = vmatmul.mubr.bf16.gmra.mxu1 %v8269_v20 }
 0x330   : > { %2969 = vmatprep.mubr.bf16.mxu1 %v8020_v29  ;;  %5846 = vmatmul.mubr.bf16.gmra.mxu0 %v8276_v21 }
 0x331   : > { %3371 = vmatprep.mubr.bf16.mxu0 %v7894_v14 }
 0x337   : > { %2970 = vmatmul.mubr.bf16.gmra.mxu1 %v8285_v25 }
 0x338   : > { %2977 = vmatprep.mubr.bf16.mxu1 %v8074_v54  ;;  %3372 = vmatmul.mubr.bf16.vlgmr.msra.gmra.mxu0 %v8004_v2 }
 0x339   : > { %3379 = vmatprep.mubr.bf16.mxu0 %v7908_v28  ;;  %5898 = vmatpush3.bf16.msra.mxu0 %v8172_v63  ;;  %v2499_v28 = vor.u32 %v8118_v1, %v2496_v30  ;;  %v6150_v1 = vld [vmem:[#allocation5 + $0x208] sm:$0xff]  }
 0x33a   : > { %5899 = vmatprep.subr.bf16.mxu0 %v6133_v11  ;;  %v6144_v30 = vld [vmem:[#allocation5 + $0x1c8] sm:$0xff]  }
 0x33b   : > { %v8308_v63 = vsel %vm6597_vm5, %v8166_v17, %v2499_v28  ;;  %v6148_v28 = vld [vmem:[#allocation5 + $0x1c0] sm:$0xff]  }
 0x33d   : > { %5900 = vmatpush3.bf16.msra.mxu0 %v6133_v11  ;;  %v6140_v11 = vld [vmem:[#allocation5 + $0x198] sm:$0xff]  }
 0x33e   : > { %5901 = vmatprep.subr.bf16.mxu0 %v6138_v22 }
 0x33f   : > { %2978 = vmatmul.mubr.bf16.gmra.mxu1 %v8297_v56 }
 0x340   : > { %2985 = vmatprep.mubr.bf16.mxu1 %v8084_v19  ;;  %3380 = vmatmul.mubr.bf16.gmra.mxu0 %v7946_v55  ;;  %v2503_v55 = vor.u32 %v8170_v31, %v2500_v9  ;;  %v2507_v31 = vor.u32 %v8176_v34, %v2504_v61  ;;  %v8341_v34 = vsel %vm6597_vm5, %v8238_v47, %v2511_v27  ;;  %v6134_v47 = vld [vmem:[#allocation5 + $0x1e8] sm:$0xff]   ;;  %v9335_v9 = vld [vmem:[#allocation18_spill] sm:$0xff]  ;;  %v9338_v61 = vld [vmem:[#allocation17_spill] sm:$0xff] }
 0x341   : > { %3387 = vmatprep.mubr.bf16.mxu0 %v7894_v14  ;;  %5902 = vmatpush3.bf16.msra.mxu0 %v6138_v22  ;;  %v6142_v22 = vld [vmem:[#allocation5 + $0x190] sm:$0xff]  }
 0x342   : > { %5903 = vmatprep.subr.bf16.mxu0 %v6143_v46  ;;  %v8319_v17 = vsel %vm6597_vm5, %v8204_v59, %v2503_v55  ;;  %v8330_v59 = vsel %vm6597_vm5, %v8208_v42, %v2507_v31  ;;  %v6131_v42 = vld [vmem:[#allocation5 + $0x1f0] sm:$0xff]   ;;  %v9336_v55 = vld [vmem:[#allocation16_spill] sm:$0xff] }
 0x345   : > { %5904 = vmatpush3.bf16.msra.mxu0 %v6143_v46  ;;  %v6145_v46 = vld [vmem:[#allocation5 + $0x188] sm:$0xff]  }
 0x346   : > { %5905 = vmatprep.subr.bf16.mxu0 %v6146_v10 }
 0x347   : > { %2986 = vmatmul.mubr.bf16.gmra.mxu1 %v8308_v63 }
 0x348   : > { %2993 = vmatprep.mubr.bf16.mxu1 %v8141_v50  ;;  %3388 = vmatmul.mubr.bf16.gmra.mxu0 %v8004_v2 }
 0x349   : > { %3395 = vmatprep.mubr.bf16.mxu0 %v7896_v26  ;;  %5906 = vmatpush3.bf16.msra.mxu0 %v6146_v10  ;;  %v9334_v10 = vld [vmem:[#allocation13_spill] sm:$0xff] }
 0x34a   : > { %5907 = vmatprep.subr.bf16.mxu0 %v6147_v0 }
 0x34d   : > { %5908 = vmatpush3.bf16.msra.mxu0 %v6147_v0  ;;  %v6149_v0 = vld [vmem:[#allocation5 + $0x180] sm:$0xff]  }
 0x34e   : > { %5909 = vmatprep.subr.bf16.mxu0 %v6150_v1 }
 0x34f   : > { %2994 = vmatmul.mubr.bf16.gmra.mxu1 %v8319_v17 }
 0x350   : > { %3001 = vmatprep.mubr.bf16.mxu1 %v8150_v6  ;;  %3396 = vmatmul.mubr.bf16.gmra.mxu0 %v8066_v43 }
 0x351   : > { %3403 = vmatprep.mubr.bf16.mxu0 %v7912_v16  ;;  %5910 = vmatpush3.bf16.msra.mxu0 %v6150_v1  ;;  %v9337_v1 = vld [vmem:[#allocation15_spill] sm:$0xff] }
 0x352   : > { %5911 = vmatprep.subr.bf16.mxu0 %v6151_v57 }
 0x355   : > { %5912 = vmatpush3.bf16.msra.mxu0 %v6151_v57 }
 0x357   : > { %3002 = vmatmul.mubr.bf16.gmra.mxu1 %v8330_v59 }
 0x358   : > { %3009 = vmatprep.mubr.bf16.mxu1 %v8184_v24  ;;  %3404 = vmatmul.mubr.bf16.gmra.mxu0 %v8131_v39 }
 0x359   : > { %3411 = vmatprep.mubr.bf16.mxu0 %v7917_v40 }
 0x35f   : > { %3010 = vmatmul.mubr.bf16.gmra.mxu1 %v8341_v34 }
 0x360   : > { %3017 = vmatprep.mubr.bf16.mxu1 %v8030_v38  ;;  %3412 = vmatmul.mubr.bf16.gmra.mxu0 %v8181_v5 }
 0x361   : > { %3419 = vmatprep.mubr.bf16.mxu0 %v7957_v32 }
 0x367   : > { %3018 = vmatmul.mubr.bf16.gmra.mxu1 %v8124_v49 }
 0x368   : > { %3025 = vmatprep.mubr.bf16.mxu1 %v8036_v51  ;;  %3420 = vmatmul.mubr.bf16.gmra.mxu0 %v8218_v8 }
 0x369   : > { %3427 = vmatprep.mubr.bf16.mxu0 %v7964_v3 }
 0x36f   : > { %3026 = vmatmul.mubr.bf16.gmra.mxu1 %v8137_v53 }
 0x370   : > { %3428 = vmatmul.mubr.bf16.gmra.mxu0 %v8246_v44  ;;  %5865 = vmatprep.mubr.bf16.mxu1 %v7940_v7 }
 0x371   : > { %3435 = vmatprep.mubr.bf16.mxu0 %v8009_v52 }
 0x377   : > { %5866 = vmatmul.mubr.bf16.vlgmr.msra.gmra.mxu1 %v7950_v58  ;;  %v6137_v58 = vld [vmem:[#allocation5 + $0x1a0] sm:$0xff]  }
 0x378   : > { %3436 = vmatmul.mubr.bf16.gmra.mxu0 %v8269_v20  ;;  %5869 = vmatprep.mubr.bf16.mxu1 %v7940_v7 }
 0x379   : > { %5522 = vmatpush3.bf16.msra.mxu1 %v6130_v18  ;;  %3443 = vmatprep.mubr.bf16.mxu0 %v8020_v29 }
 0x37a   : > { %5523 = vmatprep.subr.bf16.mxu1 %v6131_v42 }
 0x37d   : > { %5524 = vmatpush3.bf16.msra.mxu1 %v6132_v13 }
 0x37e   : > { %5525 = vmatprep.subr.bf16.mxu1 %v6134_v47 }
 0x37f   : > { %5870 = vmatmul.mubr.bf16.gmra.mxu1 %v7971_v45 }
 0x380   : > { %3444 = vmatmul.mubr.bf16.gmra.mxu0 %v8285_v25  ;;  %5873 = vmatprep.mubr.bf16.mxu1 %v8015_v35 }
 0x381   : > { %3451 = vmatprep.mubr.bf16.mxu0 %v8074_v54  ;;  %5526 = vmatpush3.bf16.msra.mxu1 %v6135_v33 }
 0x382   : > { %5527 = vmatprep.subr.bf16.mxu1 %v6136_v15 }
 0x385   : > { %5528 = vmatpush3.bf16.msra.mxu1 %v6137_v58 }
 0x386   : > { %5529 = vmatprep.subr.bf16.mxu1 %v6139_v48 }
 0x387   : > { %5874 = vmatmul.mubr.bf16.gmra.mxu1 %v8027_v41 }
 0x388   : > { %3452 = vmatmul.mubr.bf16.gmra.mxu0 %v8297_v56  ;;  %5877 = vmatprep.mubr.bf16.mxu1 %v8080_v23 }
 0x389   : > { %3459 = vmatprep.mubr.bf16.mxu0 %v8084_v19  ;;  %5530 = vmatpush3.bf16.msra.mxu1 %v6140_v11 }
 0x38a   : > { %5531 = vmatprep.subr.bf16.mxu1 %v6141_v36 }
 0x38d   : > { %5532 = vmatpush3.bf16.msra.mxu1 %v6142_v22 }
 0x38e   : > { %5533 = vmatprep.subr.bf16.mxu1 %v6144_v30 }
 0x38f   : > { %5878 = vmatmul.mubr.bf16.gmra.mxu1 %v9334_v10 }
 0x390   : > { %3460 = vmatmul.mubr.bf16.gmra.mxu0 %v8308_v63  ;;  %5881 = vmatprep.mubr.bf16.mxu1 %v9335_v9 }
 0x391   : > { %3467 = vmatprep.mubr.bf16.mxu0 %v8141_v50  ;;  %5534 = vmatpush3.bf16.msra.mxu1 %v6145_v46 }
 0x392   : > { %5535 = vmatprep.subr.bf16.mxu1 %v6148_v28 }
 0x395   : > { %5536 = vmatpush3.bf16.msra.mxu1 %v6149_v0 }
 0x397   : > { %5882 = vmatmul.mubr.bf16.gmra.mxu1 %v9336_v55 }
 0x398   : > { %3468 = vmatmul.mubr.bf16.gmra.mxu0 %v8319_v17  ;;  %5885 = vmatprep.mubr.bf16.mxu1 %v8190_v37 }
 0x399   : > { %3475 = vmatprep.mubr.bf16.mxu0 %v8150_v6 }
 0x39f   : > { %5886 = vmatmul.mubr.bf16.gmra.mxu1 %v8199_v60 }
 0x3a0   : > { %3476 = vmatmul.mubr.bf16.gmra.mxu0 %v8330_v59  ;;  %5889 = vmatprep.mubr.bf16.mxu1 %v9337_v1 }
 0x3a1   : > { %3483 = vmatprep.mubr.bf16.mxu0 %v8184_v24 }
 0x3a7   : > { %5890 = vmatmul.mubr.bf16.gmra.mxu1 %v9338_v61 }
 0x3a8   : > { %3484 = vmatmul.mubr.bf16.gmra.mxu0 %v8341_v34  ;;  %5893 = vmatprep.mubr.bf16.mxu1 %v8253_v4 }
 0x3a9   : > { %3491 = vmatprep.mubr.bf16.mxu0 %v8030_v38 }
 0x3af   : > { %5894 = vmatmul.mubr.bf16.gmra.mxu1 %v8261_v12 }
 0x3b0   : > { %3492 = vmatmul.mubr.bf16.gmra.mxu0 %v8124_v49  ;;  %3886 = vmatprep.mubr.bf16.mxu1 %v7894_v14 }
 0x3b1   : > { %5913 = vmatprep.mubr.bf16.mxu0 %v7940_v7 }
 0x3b7   : > { %v5265_v57 = vpop.f32.mrf.mxu1  ;;  %3887 = vmatmul.mubr.bf16.vlgmr.msra.gmra.mxu1 %v8004_v2 }
 0x3b8   : > { %v5819_v31 = vpop.f32.mrf.mxu0  ;;  %3894 = vmatprep.mubr.bf16.mxu1 %v7896_v26  ;;  %5914 = vmatmul.mubr.bf16.vlgmr.msra.gmra.mxu0 %v7971_v45 }
 0x3b9   : > { %v5266_v62 = vpop.f32.mrf.mxu1  ;;  %5917 = vmatprep.mubr.bf16.mxu0 %v8015_v35 }
 0x3ba   : > { %v5267_v27 = vadd.f32 %v5266_v62, %v5265_v57  ;;  %v3068_v18 = vpop.f32.mrf.mxu0 }
 0x3bb   : > { %v5268_v42 = vpop.f32.mrf.mxu1 }
 0x3bc   : > { %v8391_v13 = vadd.f32 %v5267_v27, %v3068_v18  ;;  %v5820_v47 = vpop.f32.mrf.mxu0 }
 0x3bd   : > { %v5269_v14 = vpop.f32.mrf.mxu1 }
 0x3be   : > { %v5270_v33 = vadd.f32 %v5269_v14, %v5268_v42  ;;  %v3071_v7 = vpop.f32.mrf.mxu0 }
 0x3bf   : > { %v5271_v15 = vpop.f32.mrf.mxu1  ;;  %3895 = vmatmul.mubr.bf16.gmra.mxu1 %v8066_v43 }
 0x3c0   : > { %v8394_v2 = vadd.f32 %v5270_v33, %v3071_v7  ;;  %v5823_v26 = vpop.f32.mrf.mxu0  ;;  %3902 = vmatprep.mubr.bf16.mxu1 %v7912_v16  ;;  %5918 = vmatmul.mubr.bf16.gmra.mxu0 %v8027_v41 }
 0x3c1   : > { %v5272_v45 = vpop.f32.mrf.mxu1  ;;  %5921 = vmatprep.mubr.bf16.mxu0 %v8080_v23 }
 0x3c2   : > { %v5273_v35 = vadd.f32 %v5272_v45, %v5271_v15  ;;  %v3084_v58 = vpop.f32.mrf.mxu0 }
 0x3c3   : > { %v5274_v48 = vpop.f32.mrf.mxu1 }
 0x3c4   : > { %v8399_v11 = vadd.f32 %v5819_v31, %v5273_v35  ;;  %v5824_v36 = vpop.f32.mrf.mxu0 }
 0x3c5   : > { %v5275_v22 = vpop.f32.mrf.mxu1 }
 0x3c6   : > { %v5276_v30 = vadd.f32 %v5275_v22, %v5274_v48  ;;  %v3087_v46 = vpop.f32.mrf.mxu0 }
 0x3c7   : > { %v5277_v43 = vpop.f32.mrf.mxu1  ;;  %3903 = vmatmul.mubr.bf16.gmra.mxu1 %v8131_v39 }
 0x3c8   : > { %v8402_v28 = vadd.f32 %v5820_v47, %v5276_v30  ;;  %v5827_v16 = vpop.f32.mrf.mxu0  ;;  %3910 = vmatprep.mubr.bf16.mxu1 %v7917_v40  ;;  %5922 = vmatmul.mubr.bf16.gmra.mxu0 %v9334_v10 }
 0x3c9   : > { %v5278_v41 = vpop.f32.mrf.mxu1  ;;  %5925 = vmatprep.mubr.bf16.mxu0 %v9335_v9 }
 0x3ca   : > { %v5279_v23 = vadd.f32 %v5278_v41, %v5277_v43  ;;  %v3100_v0 = vpop.f32.mrf.mxu0 }
 0x3cb   : > { %v5280_v57 = vpop.f32.mrf.mxu1 }
 0x3cc   : > { %v8407_v31 = vadd.f32 %v5279_v23, %v3084_v58  ;;  %v5828_v62 = vpop.f32.mrf.mxu0 }
 0x3cd   : > { %v5281_v27 = vpop.f32.mrf.mxu1 }
 0x3ce   : > { %v5282_v18 = vadd.f32 %v5281_v27, %v5280_v57  ;;  %v3103_v42 = vpop.f32.mrf.mxu0 }
 0x3cf   : > { %v5283_v39 = vpop.f32.mrf.mxu1  ;;  %3911 = vmatmul.mubr.bf16.gmra.mxu1 %v8181_v5 }
 0x3d0   : > { %v8410_v47 = vadd.f32 %v5282_v18, %v3087_v46  ;;  %v8412_v40 = vpop.f32.mrf.mxu0  ;;  %3918 = vmatprep.mubr.bf16.mxu1 %v7957_v32  ;;  %5926 = vmatmul.mubr.bf16.gmra.mxu0 %v9336_v55 }
 0x3d1   : > { %v5284_v10 = vpop.f32.mrf.mxu1  ;;  %5929 = vmatprep.mubr.bf16.mxu0 %v8190_v37 }
 0x3d2   : > { %v5285_v9 = vadd.f32 %v5284_v10, %v5283_v39  ;;  %v3116_v14 = vpop.f32.mrf.mxu0 }
 0x3d3   : > { %v5286_v33 = vpop.f32.mrf.mxu1 }
 0x3d4   : > { %v8417_v7 = vadd.f32 %v5823_v26, %v5285_v9  ;;  %v8419_v15 = vpop.f32.mrf.mxu0 }
 0x3d5   : > { %v5287_v45 = vpop.f32.mrf.mxu1 }
 0x3d6   : > { %v5288_v5 = vadd.f32 %v5287_v45, %v5286_v33  ;;  %v3119_v35 = vpop.f32.mrf.mxu0 }
 0x3d7   : > { %v5289_v58 = vpop.f32.mrf.mxu1  ;;  %3919 = vmatmul.mubr.bf16.gmra.mxu1 %v8218_v8 }
 0x3d8   : > { %v8422_v48 = vadd.f32 %v5824_v36, %v5288_v5  ;;  %v8424_v32 = vpop.f32.mrf.mxu0  ;;  %3926 = vmatprep.mubr.bf16.mxu1 %v7964_v3  ;;  %5930 = vmatmul.mubr.bf16.gmra.mxu0 %v8199_v60 }
 0x3d9   : > { %v5290_v37 = vpop.f32.mrf.mxu1  ;;  %5933 = vmatprep.mubr.bf16.mxu0 %v9337_v1 }
 0x3da   : > { %v5291_v55 = vadd.f32 %v5290_v37, %v5289_v58  ;;  %v8429_v26 = vpop.f32.mrf.mxu0 }
 0x3db   : > { %v5292_v22 = vpop.f32.mrf.mxu1 }
 0x3dc   : > { %v8431_v30 = vadd.f32 %v5291_v55, %v3100_v0  ;;  %v8433_v46 = vpop.f32.mrf.mxu0 }
 0x3dd   : > { %v5293_v8 = vpop.f32.mrf.mxu1 }
 0x3de   : > { %v5294_v36 = vadd.f32 %v5293_v8, %v5292_v22  ;;  %v8435_v43 = vpop.f32.mrf.mxu0 }
 0x3df   : > { %v5295_v41 = vpop.f32.mrf.mxu1  ;;  %3927 = vmatmul.mubr.bf16.gmra.mxu1 %v8246_v44 }
 0x3e0   : > { %v8438_v3 = vadd.f32 %v5294_v36, %v3103_v42  ;;  %v8440_v60 = vpop.f32.mrf.mxu0  ;;  %3934 = vmatprep.mubr.bf16.mxu1 %v8009_v52  ;;  %5934 = vmatmul.mubr.bf16.gmra.mxu0 %v9338_v61 }
 0x3e1   : > { %v5296_v1 = vpop.f32.mrf.mxu1  ;;  %5937 = vmatprep.mubr.bf16.mxu0 %v8253_v4 }
 0x3e2   : > { %v5297_v23 = vadd.f32 %v5296_v1, %v5295_v41  ;;  %v8445_v0 = vpop.f32.mrf.mxu0 }
 0x3e3   : > { %v5298_v57 = vpop.f32.mrf.mxu1 }
 0x3e4   : > { %v8447_v27 = vadd.f32 %v5827_v16, %v5297_v23  ;;  %v8449_v18 = vpop.f32.mrf.mxu0 }
 0x3e5   : > { %v5299_v44 = vpop.f32.mrf.mxu1 }
 0x3e6   : > { %v5300_v42 = vadd.f32 %v5299_v44, %v5298_v57  ;;  %v8451_v39 = vpop.f32.mrf.mxu0 }
 0x3e7   : > { %v5301_v10 = vpop.f32.mrf.mxu1  ;;  %3935 = vmatmul.mubr.bf16.gmra.mxu1 %v8269_v20 }
 0x3e8   : > { %v8454_v52 = vadd.f32 %v5828_v62, %v5300_v42  ;;  %v8456_v61 = vpop.f32.mrf.mxu0  ;;  %3942 = vmatprep.mubr.bf16.mxu1 %v8020_v29  ;;  %5938 = vmatmul.mubr.bf16.gmra.mxu0 %v8261_v12 }
 0x3e9   : > { %v5302_v4 = vpop.f32.mrf.mxu1  ;;  %5941 = vmatprep.mubr.bf16.mxu0 %v8276_v21 }
 0x3ea   : > { %v5303_v16 = vadd.f32 %v5302_v4, %v5301_v10  ;;  %v8461_v9 = vpop.f32.mrf.mxu0 }
 0x3eb   : > { %v5304_v33 = vpop.f32.mrf.mxu1 }
 0x3ec   : > { %v8463_v45 = vadd.f32 %v5303_v16, %v3116_v14  ;;  %v8465_v5 = vpop.f32.mrf.mxu0 }
 0x3ed   : > { %v5305_v20 = vpop.f32.mrf.mxu1 }
 0x3ee   : > { %v5306_v62 = vadd.f32 %v5305_v20, %v5304_v33  ;;  %v8467_v58 = vpop.f32.mrf.mxu0 }
 0x3ef   : > { %v5307_v37 = vpop.f32.mrf.mxu1  ;;  %3943 = vmatmul.mubr.bf16.gmra.mxu1 %v8285_v25 }
 0x3f0   : > { %v8470_v29 = vadd.f32 %v5306_v62, %v3119_v35  ;;  %v8472_v55 = vpop.f32.mrf.mxu0  ;;  %3950 = vmatprep.mubr.bf16.mxu1 %v8074_v54  ;;  %5942 = vmatmul.mubr.bf16.gmra.mxu0 %v8261_v12 }
 0x3f1   : > { %v5308_v21 = vpop.f32.mrf.mxu1 }
 0x3f2   : > { %v5309_v14 = vadd.f32 %v5308_v21, %v5307_v37  ;;  %v8476_v22 = vpop.f32.mrf.mxu0 }
 0x3f3   : > { %v5310_v8 = vpop.f32.mrf.mxu1 }
 0x3f4   : > { %v8479_v36 = vadd.f32 %v8412_v40, %v5309_v14  ;;  %v8481_v41 = vpop.f32.mrf.mxu0 }
 0x3f5   : > { %v5311_v1 = vpop.f32.mrf.mxu1 }
 0x3f6   : > { %v5312_v25 = vadd.f32 %v5311_v1, %v5310_v8  ;;  %v8483_v35 = vpop.f32.mrf.mxu0 }
 0x3f7   : > { %v5313_v23 = vpop.f32.mrf.mxu1  ;;  %3951 = vmatmul.mubr.bf16.gmra.mxu1 %v8297_v56 }
 0x3f8   : > { %v8487_v54 = vadd.f32 %v8419_v15, %v5312_v25  ;;  %v5401_v12 = vpop.f32.mrf.mxu0  ;;  %3958 = vmatprep.mubr.bf16.mxu1 %v8084_v19 }
 0x3f9   : > { %v5314_v57 = vpop.f32.mrf.mxu1 }
 0x3fa   : > { %v5315_v44 = vadd.f32 %v5314_v57, %v5313_v23  ;;  %v5402_v42 = vpop.f32.mrf.mxu0 }
 0x3fb   : > { %v5403_v40 = vadd.f32 %v5402_v42, %v5401_v12  ;;  %v5316_v10 = vpop.f32.mrf.mxu1 }
 0x3fc   : > { %v8491_v4 = vadd.f32 %v5315_v44, %v8429_v26  ;;  %v5404_v16 = vpop.f32.mrf.mxu0 }
 0x3fd   : > { %v5317_v33 = vpop.f32.mrf.mxu1  ;;  %v8494_v20 = vadd.f32 %v5403_v40, %v8391_v13 }
 0x3fe   : > { %v5318_v56 = vadd.f32 %v5317_v33, %v5316_v10  ;;  %v5405_v62 = vpop.f32.mrf.mxu0 }
 0x3ff   : > { %v5406_v15 = vadd.f32 %v5405_v62, %v5404_v16  ;;  %v5319_v37 = vpop.f32.mrf.mxu1  ;;  %3959 = vmatmul.mubr.bf16.gmra.mxu1 %v8308_v63 }
 0x400   : > { %v8498_v19 = vadd.f32 %v5318_v56, %v8435_v43  ;;  %v5407_v21 = vpop.f32.mrf.mxu0  ;;  %3966 = vmatprep.mubr.bf16.mxu1 %v8141_v50 }
 0x401   : > { %v5320_v14 = vpop.f32.mrf.mxu1  ;;  %v8502_v26 = vadd.f32 %v5406_v15, %v8394_v2 }
 0x402   : > { %v5321_v8 = vadd.f32 %v5320_v14, %v5319_v37  ;;  %v5408_v1 = vpop.f32.mrf.mxu0 }
 0x403   : > { %v5409_v13 = vadd.f32 %v5408_v1, %v5407_v21  ;;  %v5322_v25 = vpop.f32.mrf.mxu1 }
 0x404   : > { %v8505_v23 = vadd.f32 %v8424_v32, %v5321_v8  ;;  %v5410_v12 = vpop.f32.mrf.mxu0 }
 0x405   : > { %v5323_v57 = vpop.f32.mrf.mxu1  ;;  %v8508_v63 = vadd.f32 %v5409_v13, %v8399_v11 }
 0x406   : > { %v5324_v43 = vadd.f32 %v5323_v57, %v5322_v25  ;;  %v5411_v44 = vpop.f32.mrf.mxu0 }
 0x407   : > { %v5412_v42 = vadd.f32 %v5411_v44, %v5410_v12  ;;  %v5325_v50 = vpop.f32.mrf.mxu1  ;;  %3967 = vmatmul.mubr.bf16.gmra.mxu1 %v8319_v17 }
 0x408   : > { %v8512_v2 = vadd.f32 %v8433_v46, %v5324_v43  ;;  %v5413_v40 = vpop.f32.mrf.mxu0  ;;  %3974 = vmatprep.mubr.bf16.mxu1 %v8150_v6 }
 0x409   : > { %v5326_v10 = vpop.f32.mrf.mxu1  ;;  %v8516_v32 = vadd.f32 %v5412_v42, %v8402_v28 }
 0x40a   : > { %v5327_v16 = vadd.f32 %v5326_v10, %v5325_v50  ;;  %v5414_v33 = vpop.f32.mrf.mxu0 }
 0x40b   : > { %v5415_v11 = vadd.f32 %v5414_v33, %v5413_v40  ;;  %v5328_v56 = vpop.f32.mrf.mxu1 }
 0x40c   : > { %v8519_v62 = vadd.f32 %v5327_v16, %v8445_v0  ;;  %v5416_v15 = vpop.f32.mrf.mxu0 }
 0x40d   : > { %v5329_v37 = vpop.f32.mrf.mxu1  ;;  %v8522_v17 = vadd.f32 %v5415_v11, %v8407_v31 }
 0x40e   : > { %v5330_v46 = vadd.f32 %v5329_v37, %v5328_v56  ;;  %v5417_v21 = vpop.f32.mrf.mxu0 }
 0x40f   : > { %v5418_v14 = vadd.f32 %v5417_v21, %v5416_v15  ;;  %v5331_v6 = vpop.f32.mrf.mxu1  ;;  %3975 = vmatmul.mubr.bf16.gmra.mxu1 %v8330_v59 }
 0x410   : > { %v8526_v28 = vadd.f32 %v5330_v46, %v8451_v39  ;;  %v5419_v8 = vpop.f32.mrf.mxu0  ;;  %3982 = vmatprep.mubr.bf16.mxu1 %v8184_v24 }
 0x411   : > { %v5332_v1 = vpop.f32.mrf.mxu1  ;;  %v8530_v0 = vadd.f32 %v5418_v14, %v8410_v47 }
 0x412   : > { %v5333_v13 = vadd.f32 %v5332_v1, %v5331_v6  ;;  %v5420_v25 = vpop.f32.mrf.mxu0 }
 0x413   : > { %v5421_v31 = vadd.f32 %v5420_v25, %v5419_v8  ;;  %v5334_v12 = vpop.f32.mrf.mxu1 }
 0x414   : > { %v8533_v57 = vadd.f32 %v8440_v60, %v5333_v13  ;;  %v5422_v43 = vpop.f32.mrf.mxu0 }
 0x415   : > { %v5335_v44 = vpop.f32.mrf.mxu1  ;;  %v8536_v59 = vadd.f32 %v5421_v31, %v8417_v7 }
 0x416   : > { %v5336_v39 = vadd.f32 %v5335_v44, %v5334_v12  ;;  %v5423_v42 = vpop.f32.mrf.mxu0 }
 0x417   : > { %v5424_v50 = vadd.f32 %v5423_v42, %v5422_v43  ;;  %v5337_v24 = vpop.f32.mrf.mxu1  ;;  %3983 = vmatmul.mubr.bf16.gmra.mxu1 %v8341_v34 }
 0x418   : > { %v8540_v47 = vadd.f32 %v8449_v18, %v5336_v39  ;;  %v5425_v40 = vpop.f32.mrf.mxu0  ;;  %3990 = vmatprep.mubr.bf16.mxu1 %v8030_v38 }
 0x419   : > { %v5338_v10 = vpop.f32.mrf.mxu1  ;;  %v8544_v60 = vadd.f32 %v5424_v50, %v8422_v48 }
 0x41a   : > { %v5339_v16 = vadd.f32 %v5338_v10, %v5337_v24  ;;  %v5426_v33 = vpop.f32.mrf.mxu0 }
 0x41b   : > { %v5427_v7 = vadd.f32 %v5426_v33, %v5425_v40  ;;  %v5340_v11 = vpop.f32.mrf.mxu1 }
 0x41c   : > { %v8547_v56 = vadd.f32 %v5339_v16, %v8461_v9  ;;  %v5428_v15 = vpop.f32.mrf.mxu0 }
 0x41d   : > { %v5341_v37 = vpop.f32.mrf.mxu1  ;;  %v8550_v34 = vadd.f32 %v5427_v7, %v8431_v30 }
 0x41e   : > { %v5342_v18 = vadd.f32 %v5341_v37, %v5340_v11  ;;  %v5429_v46 = vpop.f32.mrf.mxu0 }
 0x41f   : > { %v5430_v21 = vadd.f32 %v5429_v46, %v5428_v15  ;;  %v5343_v14 = vpop.f32.mrf.mxu1  ;;  %3991 = vmatmul.mubr.bf16.gmra.mxu1 %v8124_v49 }
 0x420   : > { %v8554_v48 = vadd.f32 %v5342_v18, %v8467_v58  ;;  %v5431_v6 = vpop.f32.mrf.mxu0  ;;  %3998 = vmatprep.mubr.bf16.mxu1 %v8036_v51 }
 0x421   : > { %v5344_v8 = vpop.f32.mrf.mxu1  ;;  %v8558_v9 = vadd.f32 %v5430_v21, %v8438_v3 }
 0x422   : > { %v5345_v1 = vadd.f32 %v5344_v8, %v5343_v14  ;;  %v5432_v13 = vpop.f32.mrf.mxu0 }
 0x423   : > { %v5433_v30 = vadd.f32 %v5432_v13, %v5431_v6  ;;  %v5346_v25 = vpop.f32.mrf.mxu1 }
 0x424   : > { %v8561_v31 = vadd.f32 %v8456_v61, %v5345_v1  ;;  %v5434_v12 = vpop.f32.mrf.mxu0 }
 0x425   : > { %v5347_v43 = vpop.f32.mrf.mxu1  ;;  %v8564_v44 = vadd.f32 %v5433_v30, %v8447_v27 }
 0x426   : > { %v5348_v58 = vadd.f32 %v5347_v43, %v5346_v25  ;;  %v5435_v39 = vpop.f32.mrf.mxu0 }
 0x427   : > { %v5436_v42 = vadd.f32 %v5435_v39, %v5434_v12  ;;  %v5349_v51 = vpop.f32.mrf.mxu1  ;;  %3999 = vmatmul.mubr.bf16.gmra.mxu1 %v8137_v53 }
 0x428   : > { %v8568_v3 = vadd.f32 %v8465_v5, %v5348_v58  ;;  %v5437_v50 = vpop.f32.mrf.mxu0  ;;  %4006 = vmatprep.mubr.bf16.mxu1 %v8030_v38 }
 0x429   : > { %v5350_v24 = vpop.f32.mrf.mxu1  ;;  %v8572_v61 = vadd.f32 %v5436_v42, %v8454_v52 }
 0x42a   : > { %v5351_v40 = vadd.f32 %v5350_v24, %v5349_v51  ;;  %v5438_v10 = vpop.f32.mrf.mxu0 }
 0x42b   : > { %v5439_v27 = vadd.f32 %v5438_v10, %v5437_v50  ;;  %v5352_v16 = vpop.f32.mrf.mxu1 }
 0x42c   : > { %v8575_v33 = vadd.f32 %v5351_v40, %v8476_v22  ;;  %v5440_v7 = vpop.f32.mrf.mxu0 }
 0x42d   : > { %v5353_v11 = vpop.f32.mrf.mxu1  ;;  %v8578_v53 = vadd.f32 %v5439_v27, %v8463_v45 }
 0x42e   : > { %v5354_v5 = vadd.f32 %v5353_v11, %v5352_v16  ;;  %v5441_v15 = vpop.f32.mrf.mxu0 }
 0x42f   : > { %v5442_v37 = vadd.f32 %v5441_v15, %v5440_v7  ;;  %v5355_v38 = vpop.f32.mrf.mxu1  ;;  %4007 = vmatmul.mubr.bf16.gmra.mxu1 %v8124_v49 }
 0x430   : > { %v8582_v52 = vadd.f32 %v5354_v5, %v8483_v35  ;;  %v5443_v18 = vpop.f32.mrf.mxu0 }
 0x431   : > { %v5356_v46 = vpop.f32.mrf.mxu1  ;;  %v8585_v21 = vadd.f32 %v5442_v37, %v8470_v29 }
 0x432   : > { %v8587_v22 = vadd.f32 %v5356_v46, %v5355_v38  ;;  %v5444_v14 = vpop.f32.mrf.mxu0 }
 0x433   : > { %v5445_v6 = vadd.f32 %v5444_v14, %v5443_v18  ;;  %v5358_v45 = vpop.f32.mrf.mxu1 }
 0x434   : > { %v5446_v8 = vpop.f32.mrf.mxu0 }
 0x435   : > { %v5359_v1 = vpop.f32.mrf.mxu1  ;;  %v3430_v13 = vadd.f32 %v5445_v6, %v8479_v36 }
 0x436   : > { %v8590_v30 = vadd.f32 %v5359_v1, %v5358_v45  ;;  %v5447_v49 = vpop.f32.mrf.mxu0 }
 0x437   : > { %v5448_v25 = vadd.f32 %v5447_v49, %v5446_v8  ;;  %v5867_v35 = vpop.f32.mrf.mxu1 }
 0x438   : > { %v8593_v12 = vadd.f32 %v5867_v35, %v8508_v63  ;;  %v5449_v43 = vpop.f32.mrf.mxu0 }
 0x439   : > { %v3534_v29 = vpop.f32.mrf.mxu1  ;;  %v3433_v58 = vadd.f32 %v5448_v25, %v8487_v54 }
 0x43a   : > { %v8597_v39 = vadd.f32 %v3534_v29, %v8494_v20  ;;  %v5450_v42 = vpop.f32.mrf.mxu0 }
 0x43b   : > { %v5451_v51 = vadd.f32 %v5450_v42, %v5449_v43  ;;  %v5868_v50 = vpop.f32.mrf.mxu1 }
 0x43c   : > { %v8600_v36 = vadd.f32 %v5868_v50, %v8516_v32  ;;  %v5452_v24 = vpop.f32.mrf.mxu0 }
 0x43d   : > { %v3537_v40 = vpop.f32.mrf.mxu1  ;;  %v3438_v10 = vadd.f32 %v5451_v51, %v8491_v4 }
 0x43e   : > { %v8604_v63 = vadd.f32 %v3537_v40, %v8502_v26  ;;  %v5453_v27 = vpop.f32.mrf.mxu0 }
 0x43f   : > { %v5454_v16 = vadd.f32 %v5453_v27, %v5452_v24  ;;  %v5871_v7 = vpop.f32.mrf.mxu1 }
 0x440   : > { %v8607_v54 = vadd.f32 %v5871_v7, %v8536_v59  ;;  %v5455_v20 = vpop.f32.mrf.mxu0 }
 0x441   : > { %v3550_v11 = vpop.f32.mrf.mxu1  ;;  %v3441_v5 = vadd.f32 %v5454_v16, %v8498_v19 }
 0x442   : > { %v8611_v32 = vadd.f32 %v3550_v11, %v8522_v17  ;;  %v5456_v15 = vpop.f32.mrf.mxu0 }
 0x443   : > { %v5457_v37 = vadd.f32 %v5456_v15, %v5455_v20  ;;  %v5872_v38 = vpop.f32.mrf.mxu1 }
 0x444   : > { %v8614_v4 = vadd.f32 %v5872_v38, %v8544_v60  ;;  %v5458_v26 = vpop.f32.mrf.mxu0 }
 0x445   : > { %v3553_v18 = vpop.f32.mrf.mxu1  ;;  %v3446_v46 = vadd.f32 %v5457_v37, %v8505_v23 }
 0x446   : > { %v8618_v59 = vadd.f32 %v3553_v18, %v8530_v0  ;;  %v5459_v14 = vpop.f32.mrf.mxu0 }
 0x447   : > { %v5460_v6 = vadd.f32 %v5459_v14, %v5458_v26  ;;  %v5875_v45 = vpop.f32.mrf.mxu1 }
 0x448   : > { %v8621_v19 = vadd.f32 %v5875_v45, %v8564_v44  ;;  %v5461_v17 = vpop.f32.mrf.mxu0 }
 0x449   : > { %v3566_v8 = vpop.f32.mrf.mxu1  ;;  %v3449_v1 = vadd.f32 %v5460_v6, %v8512_v2 }
 0x44a   : > { %v8625_v60 = vadd.f32 %v3566_v8, %v8550_v34  ;;  %v5462_v49 = vpop.f32.mrf.mxu0 }
 0x44b   : > { %v5463_v25 = vadd.f32 %v5462_v49, %v5461_v17  ;;  %v5876_v35 = vpop.f32.mrf.mxu1 }
 0x44c   : > { %v8628_v23 = vadd.f32 %v5876_v35, %v8572_v61  ;;  %v5464_v0 = vpop.f32.mrf.mxu0 }
 0x44d   : > { %v3569_v43 = vpop.f32.mrf.mxu1  ;;  %v3454_v29 = vadd.f32 %v5463_v25, %v8519_v62 }
 0x44e   : > { %v8632_v44 = vadd.f32 %v3569_v43, %v8558_v9  ;;  %v5465_v42 = vpop.f32.mrf.mxu0 }
 0x44f   : > { %v5466_v51 = vadd.f32 %v5465_v42, %v5464_v0  ;;  %v5879_v50 = vpop.f32.mrf.mxu1 }
 0x450   : > { %v8634_v2 = vadd.f32 %v5879_v50, %v3430_v13  ;;  %v5467_v34 = vpop.f32.mrf.mxu0 }
 0x451   : > { %v3582_v24 = vpop.f32.mrf.mxu1  ;;  %v3457_v40 = vadd.f32 %v5466_v51, %v8526_v28 }
 0x452   : > { %v8638_v27 = vadd.f32 %v3582_v24, %v8578_v53  ;;  %v5468_v61 = vpop.f32.mrf.mxu0 }
 0x453   : > { %v5469_v16 = vadd.f32 %v5468_v61, %v5467_v34  ;;  %v5880_v7 = vpop.f32.mrf.mxu1 }
 0x454   : > { %v8640_v20 = vadd.f32 %v5880_v7, %v3433_v58  ;;  %v5470_v62 = vpop.f32.mrf.mxu0 }
 0x455   : > { %v3585_v9 = vpop.f32.mrf.mxu1  ;;  %v3462_v11 = vadd.f32 %v5469_v16, %v8533_v57 }
 0x456   : > { %v8644_v15 = vadd.f32 %v3585_v9, %v8585_v21  ;;  %v5471_v13 = vpop.f32.mrf.mxu0 }
 0x457   : > { %v5472_v37 = vadd.f32 %v5471_v13, %v5470_v62  ;;  %v5883_v38 = vpop.f32.mrf.mxu1 }
 0x458   : > { %v8646_v26 = vadd.f32 %v5883_v38, %v3446_v46  ;;  %v5473_v28 = vpop.f32.mrf.mxu0 }
 0x459   : > { %v3598_v53 = vpop.f32.mrf.mxu1  ;;  %v3465_v18 = vadd.f32 %v5472_v37, %v8540_v47 }
 0x45a   : > { %v8649_v14 = vadd.f32 %v3598_v53, %v3438_v10  ;;  %v5474_v58 = vpop.f32.mrf.mxu0 }
 0x45b   : > { %v5475_v6 = vadd.f32 %v5474_v58, %v5473_v28  ;;  %v5884_v45 = vpop.f32.mrf.mxu1 }
 0x45c   : > { %v8651_v17 = vadd.f32 %v5884_v45, %v3449_v1  ;;  %v5476_v57 = vpop.f32.mrf.mxu0 }
 0x45d   : > { %v3601_v8 = vpop.f32.mrf.mxu1  ;;  %v3470_v21 = vadd.f32 %v5475_v6, %v8547_v56 }
 0x45e   : > { %9339 = vst [vmem:[#allocation21_spill] sm:$0xff] %v8651_v17  ;;  %v8654_v49 = vadd.f32 %v3601_v8, %v3441_v5  ;;  %v5477_v25 = vpop.f32.mrf.mxu0 }
 0x45f   : > { %v5478_v46 = vadd.f32 %v5477_v25, %v5476_v57  ;;  %v5887_v35 = vpop.f32.mrf.mxu1 }
 0x460   : > { %v8656_v0 = vadd.f32 %v5887_v35, %v3462_v11  ;;  %v5479_v43 = vpop.f32.mrf.mxu0  ;;  %v3189_v35 = vadd.f32 %v8472_v55, %v8587_v22 }
 0x461   : > { %v3614_v47 = vpop.f32.mrf.mxu1  ;;  %v3473_v10 = vadd.f32 %v5478_v46, %v8554_v48 }
 0x462   : > { %9340 = vst [vmem:[#allocation14_spill] sm:$0xff] %v8656_v0  ;;  %v8659_v42 = vadd.f32 %v3614_v47, %v3454_v29  ;;  %v5480_v51 = vpop.f32.mrf.mxu0 }
 0x463   : > { %v5481_v1 = vadd.f32 %v5480_v51, %v5479_v43  ;;  %v5888_v50 = vpop.f32.mrf.mxu1 }
 0x464   : > { %9341 = vst [vmem:[#allocation23_spill] sm:$0xff] %v8659_v42  ;;  %v8661_v34 = vadd.f32 %v5888_v50, %v3465_v18  ;;  %v5482_v24 = vpop.f32.mrf.mxu0 }
 0x465   : > { %v3617_v56 = vpop.f32.mrf.mxu1  ;;  %v3478_v5 = vadd.f32 %v5481_v1, %v8561_v31 }
 0x466   : > { %9342 = vst [vmem:[#allocation19_spill] sm:$0xff] %v8661_v34  ;;  %v8664_v61 = vadd.f32 %v3617_v56, %v3457_v40  ;;  %v5483_v16 = vpop.f32.mrf.mxu0 }
 0x467   : > { %v5484_v7 = vadd.f32 %v5483_v16, %v5482_v24  ;;  %v5891_v62 = vpop.f32.mrf.mxu1  ;;  %v3192_v24 = vadd.f32 %v8481_v41, %v8590_v30 }
 0x468   : > { %9343 = vst [vmem:[#allocation22_spill] sm:$0xff] %v8664_v61  ;;  %v8666_v9 = vadd.f32 %v5891_v62, %v3478_v5  ;;  %v5485_v11 = vpop.f32.mrf.mxu0 }
 0x469   : > { %v3630_v48 = vpop.f32.mrf.mxu1  ;;  %v3481_v29 = vadd.f32 %v5484_v7, %v8568_v3 }
 0x46a   : > { %9344 = vst [vmem:[#allocation25_spill] sm:$0xff] %v8666_v9  ;;  %v8669_v13 = vadd.f32 %v3630_v48, %v3470_v21  ;;  %v5486_v37 = vpop.f32.mrf.mxu0 }
 0x46b   : > { %v5487_v38 = vadd.f32 %v5486_v37, %v5485_v11  ;;  %v5892_v28 = vpop.f32.mrf.mxu1 }
 0x46c   : > { %9345 = vst [vmem:[#allocation20_spill] sm:$0xff] %v8669_v13  ;;  %v8671_v53 = vadd.f32 %v5892_v28, %v3481_v29  ;;  %v5488_v18 = vpop.f32.mrf.mxu0 }
 0x46d   : > { %v3633_v31 = vpop.f32.mrf.mxu1  ;;  %v3486_v40 = vadd.f32 %v5487_v38, %v8575_v33 }
 0x46e   : > { %9346 = vst [vmem:[#allocation27_spill] sm:$0xff] %v8671_v53  ;;  %v8674_v58 = vadd.f32 %v3633_v31, %v3473_v10  ;;  %v5489_v6 = vpop.f32.mrf.mxu0 }
 0x46f   : > { %v5490_v45 = vadd.f32 %v5489_v6, %v5488_v18  ;;  %v5895_v57 = vpop.f32.mrf.mxu1 }
 0x470   : > { %9347 = vst [vmem:[#allocation24_spill] sm:$0xff] %v8674_v58  ;;  %v5491_v8 = vpop.f32.mrf.mxu0 }
 0x471   : > { %v3646_v25 = vpop.f32.mrf.mxu1  ;;  %v3489_v3 = vadd.f32 %v5490_v45, %v8582_v52 }
 0x472   : > { %v8677_v21 = vadd.f32 %v3646_v25, %v3486_v40  ;;  %v5492_v46 = vpop.f32.mrf.mxu0 }
 0x473   : > { %v5493_v43 = vadd.f32 %v5492_v46, %v5491_v8  ;;  %v5896_v47 = vpop.f32.mrf.mxu1 }
 0x474   : > { %9348 = vst [vmem:[#allocation26_spill] sm:$0xff] %v8677_v21  ;;  %v5494_v51 = vpop.f32.mrf.mxu0 }
 0x475   : > { %v3494_v1 = vadd.f32 %v5493_v43, %v3189_v35  ;;  %v3649_v33 = vpop.f32.mrf.mxu1 }
 0x476   : > { %v8681_v10 = vadd.f32 %v3649_v33, %v3489_v3  ;;  %v5495_v50 = vpop.f32.mrf.mxu0 }
 0x477   : > { %v8685_v56 = vadd.f32 %v5895_v57, %v3494_v1  ;;  %v5496_v52 = vadd.f32 %v5495_v50, %v5494_v51  ;;  %v5537_v5 = vpop.f32.mrf.mxu1 }
 0x478   : > { %9349 = vst [vmem:[#allocation29_spill] sm:$0xff] %v8681_v10  ;;  %v5915_v16 = vpop.f32.mrf.mxu0 }
 0x479   : > { %9350 = vst [vmem:[#allocation28_spill] sm:$0xff] %v8685_v56  ;;  %v3497_v7 = vadd.f32 %v5496_v52, %v3192_v24  ;;  %v5538_v62 = vpop.f32.mrf.mxu1 }
 0x47a   : > { %v5539_v11 = vadd.f32 %v5538_v62, %v5537_v5  ;;  %v4049_v55 = vpop.f32.mrf.mxu0 }
 0x47b   : > { %v8687_v22 = vadd.f32 %v5896_v47, %v3497_v7  ;;  %v5540_v48 = vpop.f32.mrf.mxu1 }
 0x47c   : > { %v4050_v29 = vadd.f32 %v5539_v11, %v4049_v55  ;;  %v5916_v37 = vpop.f32.mrf.mxu0 }
 0x47d   : > { %9351 = vst [vmem:[#allocation30_spill] sm:$0xff] %v8687_v22  ;;  %v5541_v38 = vpop.f32.mrf.mxu1 }
 0x47e   : > { %v4176_v28 = vadd.f32 %v4050_v29, %v8597_v39  ;;  %v4052_v18 = vpop.f32.mrf.mxu0  ;;  %v5542_v62 = vadd.f32 %v5541_v38, %v5540_v48 }
 0x47f   : > { %v5543_v31 = vpop.f32.mrf.mxu1 }
 0x480   : > { %v5919_v30 = vpop.f32.mrf.mxu0  ;;  %v4053_v56 = vadd.f32 %v5542_v62, %v4052_v18  ;;  %v8701_v18 = vld [vmem:[%s9222_s4] ss:$0 sm:$0xff] }
 0x481   : > { %v5544_v41 = vpop.f32.mrf.mxu1 }
 0x482   : > { %v4065_v45 = vpop.f32.mrf.mxu0  ;;  %v5545_v29 = vadd.f32 %v5544_v41, %v5543_v31  ;;  %v4177_v34 = vadd.f32 %v4053_v56, %v8604_v63 }
 0x483   : > { %v5546_v40 = vpop.f32.mrf.mxu1 }
 0x484   : > { %v5920_v25 = vpop.f32.mrf.mxu0  ;;  %v4058_v9 = vadd.f32 %v5915_v16, %v5545_v29  ;;  %v8704_v16 = vadd.f32 %v8701_v18, %v4177_v34 }
 0x485   : > { %v5547_v6 = vpop.f32.mrf.mxu1 }
 0x486   : > { %v4068_v35 = vpop.f32.mrf.mxu0  ;;  %v5548_v10 = vadd.f32 %v5547_v6, %v5546_v40  ;;  %v4178_v48 = vadd.f32 %v4058_v9, %v8593_v12  ;;  %v8710_v12 = vadd.f32 %v8701_v18, %v4176_v28 }
 0x487   : > { %v5549_v57 = vpop.f32.mrf.mxu1 }
 0x488   : > { %v8690_v51 = vpop.f32.mrf.mxu0  ;;  %v4061_v0 = vadd.f32 %v5916_v37, %v5548_v10  ;;  %v8713_v9 = vadd.f32 %v8701_v18, %v4178_v48  ;;  %v4246_v34 = vadd.f32 %v8704_v16, %v8710_v12 }
 0x489   : > { %v5550_v8 = vpop.f32.mrf.mxu1 }
 0x48a   : > { %v4081_v39 = vpop.f32.mrf.mxu0  ;;  %v5551_v58 = vadd.f32 %v5550_v8, %v5549_v57  ;;  %v4179_v40 = vadd.f32 %v4061_v0, %v8600_v36 }
 0x48b   : > { %v5552_v3 = vpop.f32.mrf.mxu1 }
 0x48c   : > { %v8692_v52 = vpop.f32.mrf.mxu0  ;;  %v4066_v38 = vadd.f32 %v5551_v58, %v4065_v45  ;;  %v8719_v36 = vadd.f32 %v8701_v18, %v4179_v40 }
 0x48d   : > { %v5553_v46 = vpop.f32.mrf.mxu1 }
 0x48e   : > { %v4084_v11 = vpop.f32.mrf.mxu0  ;;  %v5554_v61 = vadd.f32 %v5553_v46, %v5552_v3  ;;  %v4180_v58 = vadd.f32 %v4066_v38, %v8611_v32  ;;  %v4247_v46 = vadd.f32 %v4246_v34, %v8713_v9 }
 0x48f   : > { %v5555_v43 = vpop.f32.mrf.mxu1 }
 0x490   : > { %v8694_v21 = vpop.f32.mrf.mxu0  ;;  %v4069_v63 = vadd.f32 %v5554_v61, %v4068_v35  ;;  %v8724_v35 = vadd.f32 %v8701_v18, %v4180_v58 }
 0x491   : > { %v5556_v47 = vpop.f32.mrf.mxu1 }
 0x492   : > { %v4097_v42 = vpop.f32.mrf.mxu0  ;;  %v5557_v31 = vadd.f32 %v5556_v47, %v5555_v43  ;;  %v4181_v0 = vadd.f32 %v4069_v63, %v8618_v59 }
 0x493   : > { %v5558_v1 = vpop.f32.mrf.mxu1 }
 0x494   : > { %v8707_v10 = vpop.f32.mrf.mxu0  ;;  %v4074_v6 = vadd.f32 %v5919_v30, %v5557_v31 }
 0x495   : > { %v5559_v33 = vpop.f32.mrf.mxu1 }
 0x496   : > { %v5560_v56 = vadd.f32 %v5559_v33, %v5558_v1  ;;  %v4100_v8 = vpop.f32.mrf.mxu0  ;;  %v4182_v32 = vadd.f32 %v4074_v6, %v8607_v54  ;;  %v4248_v1 = vadd.f32 %v4247_v46, %v8719_v36  ;;  %v8729_v33 = vadd.f32 %v8701_v18, %v4181_v0 }
 0x497   : > { %v5561_v50 = vpop.f32.mrf.mxu1 }
 0x498   : > { %v4077_v61 = vadd.f32 %v5920_v25, %v5560_v56  ;;  %v5931_v25 = vpop.f32.mrf.mxu0  ;;  %v8734_v62 = vadd.f32 %v8701_v18, %v4182_v32 }
 0x499   : > { %v5562_v24 = vpop.f32.mrf.mxu1 }
 0x49a   : > { %v5563_v45 = vadd.f32 %v5562_v24, %v5561_v50  ;;  %v4183_v59 = vadd.f32 %v4077_v61, %v8614_v4  ;;  %v4113_v4 = vpop.f32.mrf.mxu0 }
 0x49b   : > { %v5564_v5 = vpop.f32.mrf.mxu1 }
 0x49c   : > { %v4082_v30 = vadd.f32 %v5563_v45, %v4081_v39  ;;  %v8740_v48 = vadd.f32 %v8701_v18, %v4183_v59  ;;  %v5932_v56 = vpop.f32.mrf.mxu0 }
 0x49d   : > { %v5565_v7 = vpop.f32.mrf.mxu1 }
 0x49e   : > { %v5566_v28 = vadd.f32 %v5565_v7, %v5564_v5  ;;  %v4249_v7 = vadd.f32 %v4248_v1, %v8724_v35  ;;  %v4184_v54 = vadd.f32 %v4082_v30, %v8625_v60 }
 0x49f   : > { %v5567_v55 = vpop.f32.mrf.mxu1 }
 0x4a0   : > { %v4085_v50 = vadd.f32 %v5566_v28, %v4084_v11  ;;  %v4250_v29 = vadd.f32 %v4249_v7, %v8729_v33  ;;  %v8746_v60 = vadd.f32 %v8701_v18, %v4184_v54  ;;  %v4116_v28 = vpop.f32.mrf.mxu0 }
 0x4a1   : > { %v5568_v22 = vpop.f32.mrf.mxu1 }
 0x4a2   : > { %v5569_v43 = vadd.f32 %v5568_v22, %v5567_v55  ;;  %v4251_v31 = vadd.f32 %v4250_v29, %v8734_v62  ;;  %v5935_v59 = vpop.f32.mrf.mxu0 }
 0x4a3   : > { %v5570_v53 = vpop.f32.mrf.mxu1 }
 0x4a4   : > { %v4090_v22 = vadd.f32 %v8690_v51, %v5569_v43  ;;  %v4252_v63 = vadd.f32 %v4251_v31, %v8740_v48  ;;  %v4129_v29 = vpop.f32.mrf.mxu0 }
 0x4a5   : > { %v5571_v13 = vpop.f32.mrf.mxu1 }
 0x4a6   : > { %v5572_v24 = vadd.f32 %v5571_v13, %v5570_v53  ;;  %v4185_v13 = vadd.f32 %v4085_v50, %v8632_v44  ;;  %v4253_v45 = vadd.f32 %v4252_v63, %v8746_v60 }
 0x4a7   : > { %v5573_v17 = vpop.f32.mrf.mxu1 }
 0x4a8   : > { %v4093_v53 = vadd.f32 %v8692_v52, %v5572_v24  ;;  %v8751_v58 = vadd.f32 %v8701_v18, %v4185_v13 }
 0x4a9   : > { %v5574_v41 = vpop.f32.mrf.mxu1 }
 0x4aa   : > { %v5575_v39 = vadd.f32 %v5574_v41, %v5573_v17  ;;  %v4186_v17 = vadd.f32 %v4090_v22, %v8621_v19  ;;  %v4187_v44 = vadd.f32 %v4093_v53, %v8628_v23  ;;  %v4254_v61 = vadd.f32 %v4253_v45, %v8751_v58  ;;  %v9353_v45 = vld [vmem:[#allocation23_spill] sm:$0xff] }
 0x4ab   : > { %v5576_v37 = vpop.f32.mrf.mxu1 }
 0x4ac   : > { %v4098_v51 = vadd.f32 %v5575_v39, %v4097_v42 }
 0x4ad   : > { %v5577_v57 = vpop.f32.mrf.mxu1 }
 0x4ae   : > { %v5578_v38 = vadd.f32 %v5577_v57, %v5576_v37  ;;  %v8756_v57 = vadd.f32 %v8701_v18, %v4186_v17  ;;  %v4188_v19 = vadd.f32 %v4098_v51, %v8638_v27  ;;  %v5936_v51 = vpop.f32.mrf.mxu0 }
 0x4af   : > { %v5579_v3 = vpop.f32.mrf.mxu1 }
 0x4b0   : > { %v4101_v37 = vadd.f32 %v5578_v38, %v4100_v8  ;;  %v4255_v30 = vadd.f32 %v4254_v61, %v8756_v57  ;;  %v8768_v27 = vadd.f32 %v8701_v18, %v4188_v19 }
 0x4b1   : > { %v5580_v47 = vpop.f32.mrf.mxu1 }
 0x4b2   : > { %v5581_v40 = vadd.f32 %v5580_v47, %v5579_v3  ;;  %v8762_v3 = vadd.f32 %v8701_v18, %v4187_v44  ;;  %v4189_v8 = vadd.f32 %v4101_v37, %v8644_v15  ;;  %v9352_v44 = vld [vmem:[#allocation21_spill] sm:$0xff] }
 0x4b3   : > { %v5582_v5 = vpop.f32.mrf.mxu1 }
 0x4b4   : > { %v4106_v34 = vadd.f32 %v8694_v21, %v5581_v40  ;;  %v4256_v50 = vadd.f32 %v4255_v30, %v8762_v3 }
 0x4b5   : > { %v5583_v55 = vpop.f32.mrf.mxu1 }
 0x4b6   : > { %v5584_v6 = vadd.f32 %v5583_v55, %v5582_v5  ;;  %v4190_v21 = vadd.f32 %v4106_v34, %v8634_v2  ;;  %v8773_v5 = vadd.f32 %v8701_v18, %v4189_v8  ;;  %v4257_v7 = vadd.f32 %v4256_v50, %v8768_v27 }
 0x4b7   : > { %v5585_v11 = vpop.f32.mrf.mxu1 }
 0x4b8   : > { %v4109_v46 = vadd.f32 %v8707_v10, %v5584_v6  ;;  %v8778_v22 = vadd.f32 %v8701_v18, %v4190_v21  ;;  %v4258_v13 = vadd.f32 %v4257_v7, %v8773_v5  ;;  %v9355_v7 = vld [vmem:[#allocation14_spill] sm:$0xff] }
 0x4b9   : > { %v5586_v41 = vpop.f32.mrf.mxu1 }
 0x4ba   : > { %v5587_v0 = vadd.f32 %v5586_v41, %v5585_v11  ;;  %v4191_v15 = vadd.f32 %v4109_v46, %v8640_v20  ;;  %v4259_v31 = vadd.f32 %v4258_v13, %v8778_v22 }
 0x4bb   : > { %v5588_v52 = vpop.f32.mrf.mxu1 }
 0x4bc   : > { %v4114_v47 = vadd.f32 %v5587_v0, %v4113_v4  ;;  %v8783_v53 = vadd.f32 %v8701_v18, %v4191_v15 }
 0x4bd   : > { %v5589_v42 = vpop.f32.mrf.mxu1 }
 0x4be   : > { %v5590_v32 = vadd.f32 %v5589_v42, %v5588_v52  ;;  %v4192_v2 = vadd.f32 %v4114_v47, %v8649_v14  ;;  %v4260_v40 = vadd.f32 %v4259_v31, %v8783_v53  ;;  %v4132_v42 = vpop.f32.mrf.mxu0 }
 0x4bf   : > { %v5591_v23 = vpop.f32.mrf.mxu1 }
 0x4c0   : > { %v4117_v10 = vadd.f32 %v5590_v32, %v4116_v28  ;;  %v8788_v17 = vadd.f32 %v8701_v18, %v4192_v2  ;;  %v9354_v32 = vld [vmem:[#allocation22_spill] sm:$0xff]  ;;  %v5939_v21 = vpop.f32.mrf.mxu0 }
 0x4c1   : > { %v5592_v43 = vpop.f32.mrf.mxu1 }
 0x4c2   : > { %v5593_v1 = vadd.f32 %v5592_v43, %v5591_v23  ;;  %v4193_v20 = vadd.f32 %v4117_v10, %v8654_v49  ;;  %v4261_v37 = vadd.f32 %v4260_v40, %v8788_v17 }
 0x4c3   : > { %v5594_v24 = vpop.f32.mrf.mxu1 }
 0x4c4   : > { %v4122_v39 = vadd.f32 %v5931_v25, %v5593_v1  ;;  %v8793_v63 = vadd.f32 %v8701_v18, %v4193_v20 }
 0x4c5   : > { %v5595_v54 = vpop.f32.mrf.mxu1 }
 0x4c6   : > { %v5596_v55 = vadd.f32 %v5595_v54, %v5594_v24  ;;  %v4194_v14 = vadd.f32 %v4122_v39, %v8646_v26  ;;  %v4262_v0 = vadd.f32 %v4261_v37, %v8793_v63  ;;  %v4145_v39 = vpop.f32.mrf.mxu0 }
 0x4c7   : > { %v5597_v4 = vpop.f32.mrf.mxu1 }
 0x4c8   : > { %v4125_v11 = vadd.f32 %v5932_v56, %v5596_v55  ;;  %v8798_v6 = vadd.f32 %v8701_v18, %v4194_v14  ;;  %v5940_v14 = vpop.f32.mrf.mxu0 }
 0x4c9   : > { %v5598_v38 = vpop.f32.mrf.mxu1 }
 0x4ca   : > { %v5599_v25 = vadd.f32 %v5598_v38, %v5597_v4  ;;  %v4195_v52 = vadd.f32 %v4125_v11, %v9352_v44  ;;  %v4263_v8 = vadd.f32 %v4262_v0, %v8798_v6  ;;  %v9356_v38 = vld [vmem:[#allocation19_spill] sm:$0xff]  ;;  %v9358_v0 = vld [vmem:[#allocation24_spill] sm:$0xff] }
 0x4cb   : > { %v5600_v41 = vpop.f32.mrf.mxu1 }
 0x4cc   : > { %v4130_v49 = vadd.f32 %v5599_v25, %v4129_v29  ;;  %v8803_v61 = vadd.f32 %v8701_v18, %v4195_v52 }
 0x4cd   : > { %v5601_v56 = vpop.f32.mrf.mxu1 }
 0x4ce   : > { %v4196_v19 = vadd.f32 %v4130_v49, %v9353_v45  ;;  %v5602_v26 = vadd.f32 %v5601_v56, %v5600_v41  ;;  %v4264_v1 = vadd.f32 %v4263_v8, %v8803_v61  ;;  %v9357_v49 = vld [vmem:[#allocation20_spill] sm:$0xff]  ;;  %v4148_v45 = vpop.f32.mrf.mxu0 }
 0x4cf   : > { %v5603_v34 = vpop.f32.mrf.mxu1 }
 0x4d0   : > { %v4133_v28 = vadd.f32 %v5602_v26, %v4132_v42  ;;  %v8807_v46 = vadd.f32 %v8701_v18, %v4196_v19  ;;  %v5943_v8 = vpop.f32.mrf.mxu0 }
 0x4d1   : > { %v5604_v23 = vpop.f32.mrf.mxu1 }
 0x4d2   : > { %v4197_v30 = vadd.f32 %v4133_v28, %v9354_v32  ;;  %v5605_v43 = vadd.f32 %v5604_v23, %v5603_v34  ;;  %v4265_v10 = vadd.f32 %v4264_v1, %v8807_v46 }
 0x4d3   : > { %v5606_v47 = vpop.f32.mrf.mxu1 }
 0x4d4   : > { %v8812_v50 = vadd.f32 %v8701_v18, %v4197_v30  ;;  %v4138_v24 = vadd.f32 %v5935_v59, %v5605_v43 }
 0x4d5   : > { %v5607_v15 = vpop.f32.mrf.mxu1 }
 0x4d6   : > { %v4198_v54 = vadd.f32 %v4138_v24, %v9355_v7  ;;  %v5608_v2 = vadd.f32 %v5607_v15, %v5606_v47  ;;  %v4266_v29 = vadd.f32 %v4265_v10, %v8812_v50  ;;  %v9359_v24 = vld [vmem:[#allocation25_spill] sm:$0xff]  ;;  %v4161_v7 = vpop.f32.mrf.mxu0 }
 0x4d7   : > { %v5609_v55 = vpop.f32.mrf.mxu1 }
 0x4d8   : > { %v8818_v4 = vadd.f32 %v8701_v18, %v4198_v54  ;;  %v4141_v13 = vadd.f32 %v5936_v51, %v5608_v2 }
 0x4d9   : > { %v5610_v20 = vpop.f32.mrf.mxu1 }
 0x4da   : > { %v4267_v11 = vadd.f32 %v4266_v29, %v8818_v4  ;;  %v4199_v31 = vadd.f32 %v4141_v13, %v9356_v38  ;;  %v5611_v59 = vadd.f32 %v5610_v20, %v5609_v55  ;;  %v9360_v13 = vld [vmem:[#allocation27_spill] sm:$0xff]  ;;  %v5944_v38 = vpop.f32.mrf.mxu0 }
 0x4db   : > { %v5612_v25 = vpop.f32.mrf.mxu1 }
 0x4dc   : > { %v8823_v41 = vadd.f32 %v8701_v18, %v4199_v31  ;;  %v4146_v40 = vadd.f32 %v5611_v59, %v4145_v39 }
 0x4dd   : > { %v5613_v44 = vpop.f32.mrf.mxu1 }
 0x4de   : > { %v4268_v52 = vadd.f32 %v4267_v11, %v8823_v41  ;;  %v4200_v56 = vadd.f32 %v4146_v40, %v9357_v49  ;;  %v5614_v37 = vadd.f32 %v5613_v44, %v5612_v25  ;;  %v9361_v44 = vld [vmem:[#allocation26_spill] sm:$0xff] }
 0x4df   : > { %v5615_v51 = vpop.f32.mrf.mxu1 }
 0x4e0   : > { %v4238_v19 = vadd.f32 %v8701_v18, %v4200_v56  ;;  %v4149_v26 = vadd.f32 %v5614_v37, %v4148_v45  ;;  %v4164_v56 = vpop.f32.mrf.mxu0 }
 0x4e1   : > { %v5616_v42 = vpop.f32.mrf.mxu1 }
 0x4e2   : > { %v4269_v34 = vadd.f32 %v4268_v52, %v4238_v19  ;;  %v4201_v28 = vadd.f32 %v4149_v26, %v9358_v0  ;;  %v5617_v23 = vadd.f32 %v5616_v42, %v5615_v51  ;;  %v9362_v42 = vld [vmem:[#allocation29_spill] sm:$0xff] }
 0x4e3   : > { %v5618_v32 = vpop.f32.mrf.mxu1 }
 0x4e4   : > { %v4239_v30 = vadd.f32 %v8701_v18, %v4201_v28  ;;  %v4154_v43 = vadd.f32 %v5939_v21, %v5617_v23 }
 0x4e5   : > { %v5619_v47 = vpop.f32.mrf.mxu1 }
 0x4e6   : > { %v4270_v1 = vadd.f32 %v4269_v34, %v4239_v30  ;;  %v4202_v15 = vadd.f32 %v4154_v43, %v9359_v24  ;;  %v5620_v10 = vadd.f32 %v5619_v47, %v5618_v32 }
 0x4e7   : > { %v5621_v54 = vpop.f32.mrf.mxu1 }
 0x4e8   : > { %v4240_v2 = vadd.f32 %v8701_v18, %v4202_v15  ;;  %v4157_v39 = vadd.f32 %v5940_v14, %v5620_v10 }
 0x4e9   : > { %v5622_v55 = vpop.f32.mrf.mxu1 }
 0x4ea   : > { %v4271_v29 = vadd.f32 %v4270_v1, %v4240_v2  ;;  %v4203_v20 = vadd.f32 %v4157_v39, %v9360_v13  ;;  %v5623_v11 = vadd.f32 %v5622_v55, %v5621_v54  ;;  %v9363_v1 = vld [vmem:[#allocation28_spill] sm:$0xff]  ;;  %v9364_v39 = vld [vmem:[#allocation30_spill] sm:$0xff] }
 0x4eb   : > { %v5624_v31 = vpop.f32.mrf.mxu1 }
 0x4ec   : > { %v4241_v59 = vadd.f32 %v8701_v18, %v4203_v20  ;;  %v4162_v21 = vadd.f32 %v5623_v11, %v4161_v7 }
 0x4ed   : > { %v5625_v25 = vpop.f32.mrf.mxu1 }
 0x4ee   : > { %v4272_v40 = vadd.f32 %v4271_v29, %v4241_v59  ;;  %v4204_v52 = vadd.f32 %v4162_v21, %v9361_v44  ;;  %v5626_v49 = vadd.f32 %v5625_v25, %v5624_v31 }
 0x4ef   : > { %v5627_v37 = vpop.f32.mrf.mxu1 }
 0x4f0   : > { %v4242_v45 = vadd.f32 %v8701_v18, %v4204_v52  ;;  %v4165_v14 = vadd.f32 %v5626_v49, %v4164_v56 }
 0x4f1   : > { %v5628_v51 = vpop.f32.mrf.mxu1 }
 0x4f2   : > { %v4273_v26 = vadd.f32 %v4272_v40, %v4242_v45  ;;  %v4205_v34 = vadd.f32 %v4165_v14, %v9362_v42  ;;  %v5629_v0 = vadd.f32 %v5628_v51, %v5627_v37 }
 0x4f3   : > { %v5630_v28 = vpop.f32.mrf.mxu1 }
 0x4f4   : > { %v4243_v23 = vadd.f32 %v8701_v18, %v4205_v34  ;;  %v4170_v32 = vadd.f32 %v5943_v8, %v5629_v0 }
 0x4f5   : > { %v5631_v43 = vpop.f32.mrf.mxu1 }
 0x4f6   : > { %v4274_v47 = vadd.f32 %v4273_v26, %v4243_v23  ;;  %v4206_v24 = vadd.f32 %v4170_v32, %v9363_v1  ;;  %v5632_v15 = vadd.f32 %v5631_v43, %v5630_v28 }
 0x4f8   : > { %v4244_v10 = vadd.f32 %v8701_v18, %v4206_v24  ;;  %v4173_v7 = vadd.f32 %v5944_v38, %v5632_v15 }
 0x4fa   : > { %v4275_v54 = vadd.f32 %v4274_v47, %v4244_v10  ;;  %v4207_v55 = vadd.f32 %v4173_v7, %v9364_v39 }
 0x4fc   : > { %v4245_v29 = vadd.f32 %v8701_v18, %v4207_v55 }
 0x4fe   : > { %v4276_v13 = vadd.f32 %v4275_v54, %v4245_v29 }
 0x500   : > { %v4277_v20 = vrot.slane %v4276_v13, 4 }
 0x502   : > { %v4278_v11 = vadd.f32 %v4277_v20, %v4276_v13 }
 0x504   : > { %v4279_v31 = vrot.slane %v4278_v11, 2 }
 0x506   : > { %v4280_v21 = vadd.f32 %v4279_v31, %v4278_v11 }
 0x508   : > { %v4281_v25 = vrot.slane %v4280_v21, 1 }
 0x50a   : > { %v4282_v8 = vadd.f32 %v4281_v25, %v4280_v21 }
 0x50c   : > { %v8842_v40 = vmul.f32 0.00390625, %v4282_v8 }
 0x50e   : > { %v8846_v44 = vsub.f32 %v8812_v50, %v8842_v40  ;;  %v8850_v38 = vsub.f32 %v8818_v4, %v8842_v40  ;;  %v8854_v18 = vsub.f32 %v8823_v41, %v8842_v40  ;;  %v8857_v52 = vsub.f32 %v4238_v19, %v8842_v40 }
 0x50f   : > { %v8860_v49 = vsub.f32 %v4239_v30, %v8842_v40  ;;  %v8863_v56 = vsub.f32 %v4240_v2, %v8842_v40  ;;  %v8866_v50 = vsub.f32 %v4241_v59, %v8842_v40  ;;  %v8869_v37 = vsub.f32 %v4242_v45, %v8842_v40 }
 0x510   : > { %v8872_v4 = vsub.f32 %v4243_v23, %v8842_v40  ;;  %v8875_v41 = vsub.f32 %v4244_v10, %v8842_v40  ;;  %v8878_v19 = vsub.f32 %v4245_v29, %v8842_v40  ;;  %v8882_v30 = vsub.f32 %v8710_v12, %v8842_v40 }
 0x511   : > { %v8886_v2 = vsub.f32 %v8704_v16, %v8842_v40  ;;  %v8890_v59 = vsub.f32 %v8713_v9, %v8842_v40  ;;  %v8898_v51 = vsub.f32 %v8719_v36, %v8842_v40  ;;  %v8902_v12 = vsub.f32 %v8724_v35, %v8842_v40 }
 0x512   : > { %v4316_v45 = vmul.f32 %v8882_v30, %v8882_v30  ;;  %v8908_v9 = vsub.f32 %v8729_v33, %v8842_v40  ;;  %v8914_v36 = vsub.f32 %v8734_v62, %v8842_v40  ;;  %v8920_v28 = vsub.f32 %v8740_v48, %v8842_v40 }
 0x513   : > { %v4317_v14 = vmul.f32 %v8886_v2, %v8886_v2  ;;  %v4318_v16 = vmul.f32 %v8890_v59, %v8890_v59  ;;  %v4319_v42 = vmul.f32 %v8898_v51, %v8898_v51  ;;  %v4320_v35 = vmul.f32 %v8902_v12, %v8902_v12 }
 0x514   : > { %v4321_v33 = vmul.f32 %v8908_v9, %v8908_v9  ;;  %v8926_v32 = vsub.f32 %v8746_v60, %v8842_v40  ;;  %v4322_v62 = vmul.f32 %v8914_v36, %v8914_v36  ;;  %v8932_v47 = vsub.f32 %v8751_v58, %v8842_v40 }
 0x515   : > { %v4348_v26 = vadd.f32 %v4317_v14, %v4316_v45  ;;  %v4323_v48 = vmul.f32 %v8920_v28, %v8920_v28  ;;  %v8938_v24 = vsub.f32 %v8756_v57, %v8842_v40  ;;  %v8944_v10 = vsub.f32 %v8762_v3, %v8842_v40 }
 0x516   : > { %v4324_v60 = vmul.f32 %v8926_v32, %v8926_v32  ;;  %v4325_v58 = vmul.f32 %v8932_v47, %v8932_v47  ;;  %v8950_v54 = vsub.f32 %v8768_v27, %v8842_v40  ;;  %v8956_v55 = vsub.f32 %v8773_v5, %v8842_v40 }
 0x517   : > { %v4349_v34 = vadd.f32 %v4348_v26, %v4318_v16  ;;  %v4326_v57 = vmul.f32 %v8938_v24, %v8938_v24  ;;  %v4327_v3 = vmul.f32 %v8944_v10, %v8944_v10  ;;  %v8962_v13 = vsub.f32 %v8778_v22, %v8842_v40 }
 0x518   : > { %v4328_v27 = vmul.f32 %v8950_v54, %v8950_v54  ;;  %v8968_v11 = vsub.f32 %v8783_v53, %v8842_v40  ;;  %v4329_v5 = vmul.f32 %v8956_v55, %v8956_v55  ;;  %v8974_v21 = vsub.f32 %v8788_v17, %v8842_v40 }
 0x519   : > { %v4350_v0 = vadd.f32 %v4349_v34, %v4319_v42  ;;  %v4330_v22 = vmul.f32 %v8962_v13, %v8962_v13  ;;  %v8980_v8 = vsub.f32 %v8793_v63, %v8842_v40  ;;  %v8986_v14 = vsub.f32 %v8798_v6, %v8842_v40 }
 0x51a   : > { %v4331_v53 = vmul.f32 %v8968_v11, %v8968_v11  ;;  %v4332_v17 = vmul.f32 %v8974_v21, %v8974_v21  ;;  %v8992_v26 = vsub.f32 %v8803_v61, %v8842_v40  ;;  %v8998_v34 = vsub.f32 %v8807_v46, %v8842_v40 }
 0x51b   : > { %v4351_v23 = vadd.f32 %v4350_v0, %v4320_v35  ;;  %v4333_v63 = vmul.f32 %v8980_v8, %v8980_v8  ;;  %v4334_v6 = vmul.f32 %v8986_v14, %v8986_v14  ;;  %v4338_v46 = vmul.f32 %v8850_v38, %v8850_v38 }
 0x51c   : > { %v4335_v0 = vmul.f32 %v8992_v26, %v8992_v26  ;;  %v4336_v61 = vmul.f32 %v8998_v34, %v8998_v34 }
 0x51d   : > { %v4352_v43 = vadd.f32 %v4351_v23, %v4321_v33 }
 0x51f   : > { %v4353_v1 = vadd.f32 %v4352_v43, %v4322_v62  ;;  %v4337_v62 = vmul.f32 %v8846_v44, %v8846_v44 }
 0x521   : > { %v4354_v15 = vadd.f32 %v4353_v1, %v4323_v48  ;;  %v4339_v48 = vmul.f32 %v8854_v18, %v8854_v18 }
 0x523   : > { %v4355_v7 = vadd.f32 %v4354_v15, %v4324_v60  ;;  %v4340_v60 = vmul.f32 %v8857_v52, %v8857_v52 }
 0x525   : > { %v4356_v39 = vadd.f32 %v4355_v7, %v4325_v58  ;;  %v4341_v58 = vmul.f32 %v8860_v49, %v8860_v49 }
 0x527   : > { %v4357_v29 = vadd.f32 %v4356_v39, %v4326_v57  ;;  %v4342_v57 = vmul.f32 %v8863_v56, %v8863_v56 }
 0x529   : > { %v4358_v20 = vadd.f32 %v4357_v29, %v4327_v3  ;;  %v4343_v3 = vmul.f32 %v8866_v50, %v8866_v50 }
 0x52b   : > { %v4359_v31 = vadd.f32 %v4358_v20, %v4328_v27  ;;  %v4344_v27 = vmul.f32 %v8869_v37, %v8869_v37 }
 0x52d   : > { %v4360_v25 = vadd.f32 %v4359_v31, %v4329_v5  ;;  %v4345_v5 = vmul.f32 %v8872_v4, %v8872_v4 }
 0x52f   : > { %v4361_v45 = vadd.f32 %v4360_v25, %v4330_v22  ;;  %v4346_v22 = vmul.f32 %v8875_v41, %v8875_v41 }
 0x531   : > { %v4362_v16 = vadd.f32 %v4361_v45, %v4331_v53  ;;  %v4347_v53 = vmul.f32 %v8878_v19, %v8878_v19 }
 0x533   : > { %v4363_v42 = vadd.f32 %v4362_v16, %v4332_v17 }
 0x535   : > { %v4364_v35 = vadd.f32 %v4363_v42, %v4333_v63 }
 0x537   : > { %v4365_v33 = vadd.f32 %v4364_v35, %v4334_v6 }
 0x539   : > { %v4366_v23 = vadd.f32 %v4365_v33, %v4335_v0 }
 0x53b   : > { %v4367_v43 = vadd.f32 %v4366_v23, %v4336_v61 }
 0x53d   : > { %v4368_v40 = vadd.f32 %v4367_v43, %v4337_v62 }
 0x53f   : > { %v4369_v1 = vadd.f32 %v4368_v40, %v4338_v46 }
 0x541   : > { %v4370_v15 = vadd.f32 %v4369_v1, %v4339_v48 }
 0x543   : > { %v4371_v7 = vadd.f32 %v4370_v15, %v4340_v60 }
 0x545   : > { %v4372_v39 = vadd.f32 %v4371_v7, %v4341_v58  ;;  %v6156_v58 = vld [vmem:[%s6473_s17 + $0xf8] sm:$0xff] }
 0x547   : > { %v4373_v29 = vadd.f32 %v4372_v39, %v4342_v57  ;;  %v6160_v39 = vld [vmem:[%s6473_s17 + $0x18] sm:$0xff] }
 0x549   : > { %v4374_v20 = vadd.f32 %v4373_v29, %v4343_v3  ;;  %v6161_v3 = vld [vmem:[%s6473_s17 + $0x20] sm:$0xff]  ;;  %v6162_v29 = vld [vmem:[%s6473_s17 + $0x28] sm:$0xff] }
 0x54b   : > { %v4375_v31 = vadd.f32 %v4374_v20, %v4344_v27  ;;  %v6163_v27 = vld [vmem:[%s6473_s17 + $0x30] sm:$0xff] }
 0x54d   : > { %v4376_v25 = vadd.f32 %v4375_v31, %v4345_v5  ;;  %v6164_v5 = vld [vmem:[%s6473_s17 + $0x38] sm:$0xff] }
 0x54f   : > { %v4377_v45 = vadd.f32 %v4376_v25, %v4346_v22  ;;  %v6165_v22 = vld [vmem:[%s6473_s17 + $0x40] sm:$0xff] }
 0x551   : > { %v4378_v17 = vadd.f32 %v4377_v45, %v4347_v53  ;;  %v6166_v53 = vld [vmem:[%s6473_s17 + $0x48] sm:$0xff] }
 0x553   : > { %v4379_v16 = vrot.slane %v4378_v17, 4 }
 0x555   : > { %v4380_v63 = vadd.f32 %v4379_v16, %v4378_v17  ;;  %v6167_v17 = vld [vmem:[%s6473_s17 + $0x50] sm:$0xff] }
 0x557   : > { %v4381_v42 = vrot.slane %v4380_v63, 2 }
 0x559   : > { %v4382_v6 = vadd.f32 %v4381_v42, %v4380_v63  ;;  %v6168_v63 = vld [vmem:[%s6473_s17 + $0x58] sm:$0xff] }
 0x55b   : > { %v4383_v35 = vrot.slane %v4382_v6, 1 }
 0x55d   : > { %v4384_v0 = vadd.f32 %v4383_v35, %v4382_v6  ;;  %v6169_v6 = vld [vmem:[%s6473_s17 + $0x60] sm:$0xff] }
 0x55f   : > { %v4385_v33 = vmul.f32 0.00390625, %v4384_v0  ;;  %v6170_v0 = vld [vmem:[%s6473_s17 + $0x68] sm:$0xff] }
 0x561   : > { %v4386_v61 = vadd.f32 1e-05, %v4385_v33 }
 0x563   : > { %6154 = vrsqrt.f32 %v4386_v61  ;;  %v6171_v61 = vld [vmem:[%s6473_s17 + $0x70] sm:$0xff] }
 0x570   : > { %v6155_v23 = vpop.eup %6154 }
 0x571   : > { %v4419_v62 = vmul.f32 %v6155_v23, %v8878_v19  ;;  %v4388_v43 = vmul.f32 %v6155_v23, %v8882_v30  ;;  %v4389_v46 = vmul.f32 %v6155_v23, %v8886_v2  ;;  %v4390_v40 = vmul.f32 %v6155_v23, %v8890_v59 }
 0x572   : > { %v4391_v48 = vmul.f32 %v6155_v23, %v8898_v51  ;;  %v4392_v1 = vmul.f32 %v6155_v23, %v8902_v12  ;;  %v4393_v60 = vmul.f32 %v6155_v23, %v8908_v9  ;;  %v4394_v15 = vmul.f32 %v6155_v23, %v8914_v36 }
 0x573   : > { %v4451_v7 = vadd.f32 %v6156_v58, %v4419_v62  ;;  %v4395_v57 = vmul.f32 %v6155_v23, %v8920_v28  ;;  %v4396_v19 = vmul.f32 %v6155_v23, %v8926_v32  ;;  %v4397_v30 = vmul.f32 %v6155_v23, %v8932_v47  ;;  %v6172_v62 = vld [vmem:[%s6473_s17 + $0x78] sm:$0xff] }
 0x574   : > { %v4398_v2 = vmul.f32 %v6155_v23, %v8938_v24  ;;  %v4399_v59 = vmul.f32 %v6155_v23, %v8944_v10  ;;  %v4400_v51 = vmul.f32 %v6155_v23, %v8950_v54  ;;  %v4401_v12 = vmul.f32 %v6155_v23, %v8956_v55  ;;  %v6176_v58 = vld [vmem:[%s6473_s17 + $0x98] sm:$0xff] }
 0x575   : > { %4483 = vst [vmem:[%s9046_s15 + $0xf8] sm:$0xff] %v4451_v7  ;;  %v4402_v9 = vmul.f32 %v6155_v23, %v8962_v13  ;;  %v4403_v36 = vmul.f32 %v6155_v23, %v8968_v11  ;;  %v4404_v28 = vmul.f32 %v6155_v23, %v8974_v21  ;;  %v4405_v32 = vmul.f32 %v6155_v23, %v8980_v8 }
 0x576   : > { %v4406_v47 = vmul.f32 %v6155_v23, %v8986_v14  ;;  %v9055_v24 = vmul.f32 %v6155_v23, %v8992_v26  ;;  %v9058_v10 = vmul.f32 %v6155_v23, %v8998_v34  ;;  %v9061_v54 = vmul.f32 %v6155_v23, %v8846_v44  ;;  %v6158_v26 = vld [vmem:[%s6473_s17 + $0x8] sm:$0xff]  ;;  %v6159_v34 = vld [vmem:[%s6473_s17 + $0x10] sm:$0xff] }
 0x577   : > { %v9064_v55 = vmul.f32 %v6155_v23, %v8850_v38  ;;  %v9067_v13 = vmul.f32 %v6155_v23, %v8854_v18  ;;  %v9070_v11 = vmul.f32 %v6155_v23, %v8857_v52  ;;  %v9073_v21 = vmul.f32 %v6155_v23, %v8860_v49  ;;  %v6157_v49 = vld [vmem:[%s6473_s17] sm:$0xff] }
 0x578   : > { %v9076_v8 = vmul.f32 %v6155_v23, %v8863_v56  ;;  %v9079_v44 = vmul.f32 %v6155_v23, %v8866_v50  ;;  %v9082_v38 = vmul.f32 %v6155_v23, %v8869_v37  ;;  %v9085_v18 = vmul.f32 %v6155_v23, %v8872_v4 }
 0x579   : > { %v9088_v52 = vmul.f32 %v6155_v23, %v8875_v41  ;;  %v4420_v14 = vadd.f32 %v6157_v49, %v4388_v43  ;;  %v4421_v56 = vadd.f32 %v6158_v26, %v4389_v46  ;;  %v4422_v50 = vadd.f32 %v6159_v34, %v4390_v40  ;;  %v6173_v46 = vld [vmem:[%s6473_s17 + $0x80] sm:$0xff]  ;;  %v6187_v49 = vld [vmem:[%s6473_s17 + $0xf0] sm:$0xff] }
 0x57a   : > { %v4423_v37 = vadd.f32 %v6160_v39, %v4391_v48  ;;  %v4424_v4 = vadd.f32 %v6161_v3, %v4392_v1  ;;  %v4425_v41 = vadd.f32 %v6162_v29, %v4393_v60  ;;  %v4426_v20 = vadd.f32 %v6163_v27, %v4394_v15  ;;  %v6174_v48 = vld [vmem:[%s6473_s17 + $0x88] sm:$0xff]  ;;  %v6175_v60 = vld [vmem:[%s6473_s17 + $0x90] sm:$0xff] }
 0x57b   : > { %v4427_v31 = vadd.f32 %v6164_v5, %v4395_v57  ;;  %v4428_v25 = vadd.f32 %v6165_v22, %v4396_v19  ;;  %v4429_v45 = vadd.f32 %v6166_v53, %v4397_v30  ;;  %v4430_v16 = vadd.f32 %v6167_v17, %v4398_v2  ;;  %4452 = vst [vmem:[%s9046_s15] sm:$0xff] %v4420_v14  ;;  %v6177_v57 = vld [vmem:[%s6473_s17 + $0xa0] sm:$0xff]  ;;  %v6178_v30 = vld [vmem:[%s6473_s17 + $0xa8] sm:$0xff] }
 0x57c   : > { %4453 = vst [vmem:[%s9046_s15 + $0x8] sm:$0xff] %v4421_v56  ;;  %4454 = vst [vmem:[%s9046_s15 + $0x10] sm:$0xff] %v4422_v50  ;;  %v4431_v42 = vadd.f32 %v6168_v63, %v4399_v59  ;;  %v4432_v35 = vadd.f32 %v6169_v6, %v4400_v51  ;;  %v4433_v33 = vadd.f32 %v6170_v0, %v4401_v12  ;;  %v6179_v59 = vld [vmem:[%s6473_s17 + $0xb0] sm:$0xff]  ;;  %v6180_v12 = vld [vmem:[%s6473_s17 + $0xb8] sm:$0xff] }
 0x57d   : > { %v4434_v23 = vadd.f32 %v6171_v61, %v4402_v9  ;;  %4455 = vst [vmem:[%s9046_s15 + $0x18] sm:$0xff] %v4423_v37  ;;  %4456 = vst [vmem:[%s9046_s15 + $0x20] sm:$0xff] %v4424_v4  ;;  %v4435_v43 = vadd.f32 %v6172_v62, %v4403_v36  ;;  %v4436_v40 = vadd.f32 %v6173_v46, %v4404_v28  ;;  %v6181_v36 = vld [vmem:[%s6473_s17 + $0xc0] sm:$0xff] }
 0x57e   : > { %4457 = vst [vmem:[%s9046_s15 + $0x28] sm:$0xff] %v4425_v41  ;;  %4458 = vst [vmem:[%s9046_s15 + $0x30] sm:$0xff] %v4426_v20  ;;  %v4437_v1 = vadd.f32 %v6174_v48, %v4405_v32  ;;  %v4438_v15 = vadd.f32 %v6175_v60, %v4406_v47  ;;  %v4439_v7 = vadd.f32 %v6176_v58, %v9055_v24  ;;  %v6182_v32 = vld [vmem:[%s6473_s17 + $0xc8] sm:$0xff]  ;;  %v6183_v24 = vld [vmem:[%s6473_s17 + $0xd0] sm:$0xff] }
 0x57f   : > { %4459 = vst [vmem:[%s9046_s15 + $0x38] sm:$0xff] %v4427_v31  ;;  %4460 = vst [vmem:[%s9046_s15 + $0x40] sm:$0xff] %v4428_v25  ;;  %v4440_v19 = vadd.f32 %v6177_v57, %v9058_v10  ;;  %v4441_v2 = vadd.f32 %v6178_v30, %v9061_v54  ;;  %v4442_v51 = vadd.f32 %v6179_v59, %v9064_v55  ;;  %v6184_v54 = vld [vmem:[%s6473_s17 + $0xd8] sm:$0xff] }
 0x580   : > { %4461 = vst [vmem:[%s9046_s15 + $0x48] sm:$0xff] %v4429_v45  ;;  %4462 = vst [vmem:[%s9046_s15 + $0x50] sm:$0xff] %v4430_v16  ;;  %v4443_v9 = vadd.f32 %v6180_v12, %v9067_v13  ;;  %v4444_v28 = vadd.f32 %v6181_v36, %v9070_v11  ;;  %v4445_v47 = vadd.f32 %v6182_v32, %v9073_v21  ;;  %v6185_v13 = vld [vmem:[%s6473_s17 + $0xe0] sm:$0xff]  ;;  %v6186_v21 = vld [vmem:[%s6473_s17 + $0xe8] sm:$0xff]  ;;  %s6318_s17 = smov [#allocation7]  }
 0x581   : > { %4463 = vst [vmem:[%s9046_s15 + $0x58] sm:$0xff] %v4431_v42  ;;  %4464 = vst [vmem:[%s9046_s15 + $0x60] sm:$0xff] %v4432_v35  ;;  %v4446_v10 = vadd.f32 %v6183_v24, %v9076_v8  ;;  %v4447_v55 = vadd.f32 %v6184_v54, %v9079_v44  ;;  %v4448_v11 = vadd.f32 %v6185_v13, %v9082_v38  ;;  %s6246_s10 = sshll.u32 %s6318_s17, 4  ;;  %s6247_s10 = int_to_ptr.vmem [resolvable:$false] %s6246_s10 }
 0x582   : > { %4465 = vst [vmem:[%s9046_s15 + $0x68] sm:$0xff] %v4433_v33  ;;  %4466 = vst [vmem:[%s9046_s15 + $0x70] sm:$0xff] %v4434_v23  ;;  %v4449_v8 = vadd.f32 %v6186_v21, %v9085_v18  ;;  %v4450_v14 = vadd.f32 %v6187_v49, %v9088_v52  ;;  %s6248_s16 = scalar_lea.vmem %s6247_s10, 8192  ;;  %p6249_p10 = scmp.lt.s32.totalorder %s9155_s24, %s6247_s10 }
 0x583   : > { %4467 = vst [vmem:[%s9046_s15 + $0x78] sm:$0xff] %v4435_v43  ;;  %4468 = vst [vmem:[%s9046_s15 + $0x80] sm:$0xff] %v4436_v40  ;;  %p6250_p2 = scmp.lt.s32.totalorder %s6248_s16, %s6242_s9 }
 0x584   : > { %4469 = vst [vmem:[%s9046_s15 + $0x88] sm:$0xff] %v4437_v1  ;;  %4470 = vst [vmem:[%s9046_s15 + $0x90] sm:$0xff] %v4438_v15 }
 0x585   : > { %4471 = vst [vmem:[%s9046_s15 + $0x98] sm:$0xff] %v4439_v7  ;;  %4472 = vst [vmem:[%s9046_s15 + $0xa0] sm:$0xff] %v4440_v19  ;;  %p6251_p13 = por %p6250_p2, %p6249_p10 }
 0x586   : > { %4473 = vst [vmem:[%s9046_s15 + $0xa8] sm:$0xff] %v4441_v2  ;;  %4474 = vst [vmem:[%s9046_s15 + $0xb0] sm:$0xff] %v4442_v51 }
 0x587   : > { %4475 = vst [vmem:[%s9046_s15 + $0xb8] sm:$0xff] %v4443_v9  ;;  %4476 = vst [vmem:[%s9046_s15 + $0xc0] sm:$0xff] %v4444_v28  ;;  %p6252_p0 = pnand %p6251_p13, %p6245_p12 }
 0x588   : > { %4477 = vst [vmem:[%s9046_s15 + $0xc8] sm:$0xff] %v4445_v47  ;;  %4478 = vst [vmem:[%s9046_s15 + $0xd0] sm:$0xff] %v4446_v10 }
 0x589   : > { %4479 = vst [vmem:[%s9046_s15 + $0xd8] sm:$0xff] %v4447_v55  ;;  %4480 = vst [vmem:[%s9046_s15 + $0xe0] sm:$0xff] %v4448_v11 }
 0x58a   : > { %4481 = vst [vmem:[%s9046_s15 + $0xe8] sm:$0xff] %v4449_v8  ;;  %4482 = vst [vmem:[%s9046_s15 + $0xf0] sm:$0xff] %v4450_v14 }
 0x58b   : > { %6255 = shalt.err (!%p6252_p0)
}
 0x58c   : > { %s6256_s26 = scalar_lea.hbm %s9151_s28, 4096  ;;  %s6260_s7 = scalar_lea.hbm %s9223_s5, 8192 }
 0x58d   : > { %p6257_p5 = scmp.ne.s32.totalorder %s9151_s28, %s6256_s26  ;;  %p6261_p4 = scmp.lt.s32.totalorder %s9151_s28, %s9223_s5 }
 0x58e   : > { %p6262_p6 = scmp.lt.s32.totalorder %s6260_s7, %s6256_s26 }
 0x58f   : > { %p6258_p9 = pnand %p6257_p5, %p9365_p11 }
 0x590   : > { %p6263_p8 = por %p6262_p6, %p6261_p4 }
 0x591   : > { %p6259_p1 = pneg %p6258_p9 }
 0x593   : > { %p6264_p3 = pnand %p6263_p8, %p6259_p1 }
 0x595   : > { %6267 = shalt.err (!%p6264_p3)
}
 0x596   : > { %s6319_s12 = smov 128   ;;  %s6320_s23 = smov 8  }
 0x597   : > { %5951 = dma.vmem_to_hbm [thread:$0]  (%p9365_p11), %s9155_s24, 4096, %s9151_s28, %s4485_s22, %s6319_s12, %s6319_s12, %s6320_s23  }
 0x598 PF: > { %s4513_s27 = sand.u32 1, %s6298_s18   ;;  %p9366_p7 = scmp.ne.s32.totalorder %s9257_s25, 0 }
 0x599   : > { %p9367_p12 = scmp.ge.s32.totalorder %s6310_s21, 2  ;;  %s4514_s9 = scalar_lea.sflag [#allocation4], %s4513_s27 }
 0x59b   : > { %p5962_p10 = pnand %p9367_p12, %p9366_p7 }
 0x59d   : > { %p5963_p2 = pneg %p5962_p10 }
 0x59f   : > { %6293 = dma.done.wait (%p5963_p2), %s4514_s9, 4096  }
 0x5a0   : > { %6295 = vsyncadd (%p5963_p2), %s4514_s9, 4294963200  ;;  %p19_p13 = scmp.ge.s32.totalorder %s6405_s30, 4   ;;  %s9368_s18 = smov %s6302_s19 }
 0x5a1   : > { %s9369_s19 = smov %s6306_s20  ;;  %s9370_s20 = smov %s6422_s13 }
 0x5a2   : > { %s9371_s21 = smov %s6405_s30  ;;  %21 = sbr.rel (!%p19_p13) target bundleno = 6 (0x6), region = 93 }
 0x5a7   :  { %4519 = vsyncpa [#allocation3], 1 }
 0x5a8   :  { %4521 = vsyncpa [#allocation3 + $0x1], 1 }
 0x5a9   :  { %4522 = vsyncpa [#allocation6], 1 }
 0x5aa   :  { %4523 = vsyncpa [#allocation4], 1 }
 0x5ab   :  { %4525 = vsyncpa [#allocation4 + $0x1], 1 }

</bundles_post_ra>
